<compile_context>
chip_gen: v6e
topology: v6e:2x2x1
jax: 0.10.0
libtpu: 0.0.40
codegen_flags: <defaults>
</compile_context>

<pallas_src>
import functools

import jax
import jax.numpy as jnp
from jax import lax
from jax.experimental import pallas as pl
from jax.experimental.pallas import tpu as pltpu


def _pool_out(n):
    # AvgPool2d(kernel_size=3, stride=2, padding=0, ceil_mode=True) output size.
    return -(-(n - 3) // 2) + 1


def _build_plan(H0, W0, C0, num_filters, no_convs_per_block):
    """Static per-op plan + matching VMEM scratch shapes for the fused kernel."""
    ops, scratch = [], []
    H, W, C = H0, W0, C0
    for bi, nf in enumerate(num_filters):
        if bi != 0:
            Ho, Wo = _pool_out(H), _pool_out(W)
            ops.append(("pool", H, W, C, Ho, Wo))
            # +1 channel: a "ones" plane whose pooled sum is the valid-element count.
            scratch.append(pltpu.VMEM((2 * Ho + 2, 2 * Wo + 1, C + 1), jnp.float32))
            H, W = Ho, Wo
        for _ in range(no_convs_per_block):
            ops.append(("conv", H, W, C, nf))
            # Zero-padded input slab (x stored at row offset 1, col offset 8 so every
            # store is tile-aligned; cols 0..7 / 8+W.. and rows 0 / H+1 stay zero).
            scratch.append(pltpu.VMEM((H + 2, W + 16, C), jnp.float32))
            # im2col patch: 9 taps packed along K -> one MXU matmul with K = 9*C.
            scratch.append(pltpu.VMEM((H * W, 9 * C), jnp.float32))
            C = nf
    return ops, scratch, (H, W, C)


def _make_fused_kernel(ops, latent_dim):
    n_conv = sum(1 for op in ops if op[0] == "conv")
    n_in = 1 + 2 * n_conv + 2  # x, (w, b) per conv, head_w, head_b

    def kernel(*refs):
        x_ref = refs[0]
        head_w_ref = refs[n_in - 2]
        head_b_ref = refs[n_in - 1]
        out_ref = refs[n_in]
        scratch = refs[n_in + 1:]

        x = x_ref[0]  # (H0, W0, C0) f32, one batch element
        wi = 0
        si = 0
        for op in ops:
            if op[0] == "conv":
                _, H, W, Cin, Cout = op
                w_ref = refs[1 + 2 * wi]   # (9*Cin, Cout) bf16
                b_ref = refs[2 + 2 * wi]   # (1, Cout) f32
                wi += 1
                xbuf = scratch[si]
                patch = scratch[si + 1]
                si += 2

                # Zero-padded input lives in VMEM (no HBM jnp.pad round trip).
                xbuf[...] = jnp.zeros(xbuf.shape, jnp.float32)
                xbuf[1:H + 1, 8:8 + W, :] = x
                # Pack the 9 taps along K (im2col) -> single K = 9*Cin matmul.
                for dy in range(3):
                    rs = xbuf[dy:dy + H, :, :]              # (H, W+16, Cin)
                    for dx in range(3):
                        k = 3 * dy + dx
                        slab = rs[:, 7 + dx:7 + dx + W, :]  # shifted window
                        patch[:, k * Cin:(k + 1) * Cin] = slab.reshape(H * W, Cin)
                acc = jnp.dot(patch[...].astype(jnp.bfloat16), w_ref[...],
                              preferred_element_type=jnp.float32)
                acc = jnp.maximum(acc + b_ref[...], 0.0)    # bias + ReLU in f32
                x = acc.reshape(H, W, Cout)
            else:
                # AvgPool2d(3, stride=2, padding=0, ceil_mode=True)
                _, H, W, C, Ho, Wo = op
                pbuf = scratch[si]
                si += 1
                Hp, Wp = 2 * Ho + 2, 2 * Wo + 1
                # Channel C carries ones -> its pooled sum is the PyTorch divisor
                # (# valid elements per clipped window).
                pbuf[...] = jnp.zeros(pbuf.shape, jnp.float32)
                pbuf[0:H, 0:W, 0:C] = x
                pbuf[0:H, 0:W, C:C + 1] = jnp.ones((H, W, 1), jnp.float32)
                xp = pbuf[...]                              # (Hp, Wp, C+1)
                # Even/odd row split via a leading-dim reshape (layout preserving).
                r = xp.reshape(Ho + 1, 2, Wp, C + 1)
                e = r[:, 0]
                o = r[:, 1]
                rowsum = e[:Ho] + o[:Ho] + e[1:Ho + 1]      # (Ho, Wp, C+1)
                cj = lax.broadcasted_iota(jnp.int32, (1, Wo, 1), 1)
                pooled = jnp.zeros((Ho, Wo, C + 1), jnp.float32)
                # Wo is small (static); column windows summed + placed with a mask.
                for j in range(Wo):
                    piece = (rowsum[:, 2 * j:2 * j + 1, :]
                             + rowsum[:, 2 * j + 1:2 * j + 2, :]
                             + rowsum[:, 2 * j + 2:2 * j + 3, :])   # (Ho, 1, C+1)
                    pooled = pooled + jnp.where(cj == j, piece, 0.0)
                x = pooled[:, :, 0:C] / pooled[:, :, C:C + 1]

        # Gaussian head (kept in f32): global spatial mean -> 1x1 conv ->
        # [mu | exp(log_sigma)] emitted as a single (1, 2L) store.
        He, We, Ce = x.shape
        m = jnp.mean(x.reshape(He * We, Ce), axis=0, keepdims=True)   # (1, Ce)
        ml = jnp.dot(m, head_w_ref[...], preferred_element_type=jnp.float32)
        ml = ml + head_b_ref[...]
        lane = lax.broadcasted_iota(jnp.int32, (1, 2 * latent_dim), 1)
        out_ref[0] = jnp.where(lane < latent_dim, ml, jnp.exp(ml))

    return kernel


def _fused_forward(x_nchw, conv_ws, conv_bs, head_w, head_b, *,
                   num_filters, no_convs_per_block, latent_dim):
    x = jnp.transpose(x_nchw, (0, 2, 3, 1)).astype(jnp.float32)  # NCHW -> NHWC
    N, H0, W0, C0 = x.shape
    ops, scratch_shapes, _ = _build_plan(H0, W0, C0, num_filters,
                                         no_convs_per_block)
    kernel = _make_fused_kernel(ops, latent_dim)

    in_specs = [pl.BlockSpec((1, H0, W0, C0), lambda n: (n, 0, 0, 0))]
    inputs = [x]
    for w, b in zip(conv_ws, conv_bs):
        in_specs.append(pl.BlockSpec(w.shape, lambda n: (0, 0)))
        in_specs.append(pl.BlockSpec(b.shape, lambda n: (0, 0)))
        inputs += [w, b]
    in_specs.append(pl.BlockSpec(head_w.shape, lambda n: (0, 0)))
    in_specs.append(pl.BlockSpec(head_b.shape, lambda n: (0, 0)))
    inputs += [head_w, head_b]

    two_l = 2 * latent_dim
    out = pl.pallas_call(
        kernel,
        out_shape=jax.ShapeDtypeStruct((N, 1, two_l), jnp.float32),
        grid=(N,),
        in_specs=in_specs,
        out_specs=pl.BlockSpec((1, 1, two_l), lambda n: (n, 0, 0)),
        scratch_shapes=scratch_shapes,
        compiler_params=pltpu.CompilerParams(
            dimension_semantics=("parallel",)),   # batch across TCs (v7x megacore)
    )(*inputs)

    out = out.reshape(N, two_l)
    mu = out[:, :latent_dim]
    sigma = out[:, latent_dim:]                   # exp already applied in-kernel
    return mu, sigma


class AxisAlignedGaussianPallas:
    def __init__(self, input_channels, num_filters, no_convs_per_block,
                 latent_dim, key, posterior=False, isotropic=False):
        self.posterior = posterior
        self.isotropic = isotropic
        self.latent_dim = latent_dim
        self.num_filters = tuple(num_filters)
        self.no_convs_per_block = no_convs_per_block
        in_ch = input_channels + (1 if posterior else 0)

        keys = jax.random.split(key, 2 * no_convs_per_block * len(num_filters) + 2)
        ki = 0
        self.conv_ws, self.conv_bs = [], []
        prev = in_ch
        for nf in num_filters:
            cin = prev
            for _ in range(no_convs_per_block):
                w = 0.1 * jax.random.normal(keys[ki], (3, 3, cin, nf), jnp.float32); ki += 1
                b = 0.01 * jax.random.normal(keys[ki], (1, nf), jnp.float32); ki += 1
                # (3,3,Cin,Cout) HWIO -> (9*Cin, Cout); bf16 operands for the MXU.
                self.conv_ws.append(w.reshape(9 * cin, nf).astype(jnp.bfloat16))
                self.conv_bs.append(b)
                cin = nf
            prev = nf
        # 1x1 conv: PyTorch weight (2L, C, 1, 1) stored here as (C, 2L); head kept f32.
        self.w_1x1 = 0.1 * jax.random.normal(keys[ki], (prev, 2 * latent_dim), jnp.float32); ki += 1
        self.b_1x1 = 0.01 * jax.random.normal(keys[ki], (1, 2 * latent_dim), jnp.float32)

        self._forward = jax.jit(functools.partial(
            _fused_forward,
            num_filters=self.num_filters,
            no_convs_per_block=self.no_convs_per_block,
            latent_dim=self.latent_dim))

    def __call__(self, x_nchw, segm_nchw=None):
        if segm_nchw is not None:
            x_nchw = jnp.concatenate([x_nchw, segm_nchw], axis=1)
        # TODO(synk): isotropic=True branch (mean log_sigma with hard-coded
        # .repeat(1, 6)) and returning a torch.distributions Independent(Normal)
        # object have no tensor-kernel equivalent; we return (mu, sigma).
        return self._forward(x_nchw, self.conv_ws, self.conv_bs,
                             self.w_1x1, self.b_1x1)


if __name__ == "__main__":
    key = jax.random.PRNGKey(0)
    k_x, k_p = jax.random.split(key)
    N, C, H, W = 2, 4, 16, 16
    x = jax.random.normal(k_x, (N, C, H, W), jnp.float32)   # NCHW like PyTorch

    model = AxisAlignedGaussianPallas(
        input_channels=C, num_filters=[8, 16], no_convs_per_block=2,
        latent_dim=6, key=k_p, posterior=False, isotropic=False)

    mu, sigma = model(x)
    jax.block_until_ready((mu, sigma))
    assert mu.shape == (N, 6) and sigma.shape == (N, 6)
    assert bool(jnp.all(sigma > 0))
    assert bool(jnp.all(jnp.isfinite(mu))) and bool(jnp.all(jnp.isfinite(sigma)))
    print("KERNEL_OK")
</pallas_src>

<mosaic_0001>
module attributes {stable_mosaic.version = 11 : i64} {
  func.func @kernel(%arg0: i32, %arg1: memref<1x16x16x4xf32, #tpu.memory_space<vmem>>, %arg2: memref<36x8xbf16, #tpu.memory_space<vmem>>, %arg3: memref<1x8xf32, #tpu.memory_space<vmem>>, %arg4: memref<72x8xbf16, #tpu.memory_space<vmem>>, %arg5: memref<1x8xf32, #tpu.memory_space<vmem>>, %arg6: memref<72x16xbf16, #tpu.memory_space<vmem>>, %arg7: memref<1x16xf32, #tpu.memory_space<vmem>>, %arg8: memref<144x16xbf16, #tpu.memory_space<vmem>>, %arg9: memref<1x16xf32, #tpu.memory_space<vmem>>, %arg10: memref<16x12xf32, #tpu.memory_space<vmem>>, %arg11: memref<1x12xf32, #tpu.memory_space<vmem>>, %arg12: memref<1x1x12xf32, #tpu.memory_space<vmem>>, %arg13: memref<18x32x4xf32, #tpu.memory_space<vmem>>, %arg14: memref<256x36xf32, #tpu.memory_space<vmem>>, %arg15: memref<18x32x8xf32, #tpu.memory_space<vmem>>, %arg16: memref<256x72xf32, #tpu.memory_space<vmem>>, %arg17: memref<18x17x9xf32, #tpu.memory_space<vmem>>, %arg18: memref<10x24x8xf32, #tpu.memory_space<vmem>>, %arg19: memref<64x72xf32, #tpu.memory_space<vmem>>, %arg20: memref<10x24x16xf32, #tpu.memory_space<vmem>>, %arg21: memref<64x144xf32, #tpu.memory_space<vmem>>) attributes {dimension_semantics = [#tpu.dimension_semantics<parallel>], iteration_bounds = array<i64: 2>, scalar_prefetch = 0 : i64, scratch_operands = 9 : i64, tpu.core_type = #tpu.core_type<tc>, window_params = [{transform_indices = @transform_0, window_bounds = array<i64: 1, 16, 16, 4>}, {pipeline_mode = #tpu.pipeline_mode<synchronous>, transform_indices = @transform_1, window_bounds = array<i64: 36, 8>}, {pipeline_mode = #tpu.pipeline_mode<synchronous>, transform_indices = @transform_2, window_bounds = array<i64: 1, 8>}, {pipeline_mode = #tpu.pipeline_mode<synchronous>, transform_indices = @transform_3, window_bounds = array<i64: 72, 8>}, {pipeline_mode = #tpu.pipeline_mode<synchronous>, transform_indices = @transform_4, window_bounds = array<i64: 1, 8>}, {pipeline_mode = #tpu.pipeline_mode<synchronous>, transform_indices = @transform_5, window_bounds = array<i64: 72, 16>}, {pipeline_mode = #tpu.pipeline_mode<synchronous>, transform_indices = @transform_6, window_bounds = array<i64: 1, 16>}, {pipeline_mode = #tpu.pipeline_mode<synchronous>, transform_indices = @transform_7, window_bounds = array<i64: 144, 16>}, {pipeline_mode = #tpu.pipeline_mode<synchronous>, transform_indices = @transform_8, window_bounds = array<i64: 1, 16>}, {pipeline_mode = #tpu.pipeline_mode<synchronous>, transform_indices = @transform_9, window_bounds = array<i64: 16, 12>}, {pipeline_mode = #tpu.pipeline_mode<synchronous>, transform_indices = @transform_10, window_bounds = array<i64: 1, 12>}, {transform_indices = @transform_11, window_bounds = array<i64: 1, 1, 12>}]} {
    %c0 = arith.constant 0 : index
    %c0_0 = arith.constant 0 : index
    %c0_1 = arith.constant 0 : index
    %c0_2 = arith.constant 0 : index
    %0 = vector.load %arg1[%c0, %c0_0, %c0_1, %c0_2] : memref<1x16x16x4xf32, #tpu.memory_space<vmem>>, vector<1x16x16x4xf32>
    %1 = vector.shape_cast %0 : vector<1x16x16x4xf32> to vector<16x16x4xf32>
    %cst = arith.constant 0.000000e+00 : f32
    %2 = vector.broadcast %cst : f32 to vector<18x32x4xf32>
    %c0_3 = arith.constant 0 : index
    %c0_4 = arith.constant 0 : index
    %c0_5 = arith.constant 0 : index
    %3 = vector.load %arg13[%c0_3, %c0_4, %c0_5] : memref<18x32x4xf32, #tpu.memory_space<vmem>>, vector<18x32x4xf32>
    tpu.vector_store %arg13[%c0_3, %c0_4, %c0_5], %2 {strides = array<i32>} : memref<18x32x4xf32, #tpu.memory_space<vmem>>, vector<18x32x4xf32>,
    %c1 = arith.constant 1 : index
    %c8 = arith.constant 8 : index
    %c0_6 = arith.constant 0 : index
    %4 = vector.load %arg13[%c1, %c8, %c0_6] : memref<18x32x4xf32, #tpu.memory_space<vmem>>, vector<16x16x4xf32>
    tpu.vector_store %arg13[%c1, %c8, %c0_6], %1 {strides = array<i32>} : memref<18x32x4xf32, #tpu.memory_space<vmem>>, vector<16x16x4xf32>,
    %c0_7 = arith.constant 0 : index
    %c0_8 = arith.constant 0 : index
    %c0_9 = arith.constant 0 : index
    %5 = vector.load %arg13[%c0_7, %c0_8, %c0_9] : memref<18x32x4xf32, #tpu.memory_space<vmem>>, vector<16x32x4xf32>
    %6 = vector.extract_strided_slice %5 {offsets = [0, 7, 0], sizes = [16, 16, 4], strides = [1, 1, 1]} : vector<16x32x4xf32> to vector<16x16x4xf32>
    %7 = vector.shape_cast %6 : vector<16x16x4xf32> to vector<256x4xf32>
    %c0_10 = arith.constant 0 : index
    %c0_11 = arith.constant 0 : index
    %8 = vector.load %arg14[%c0_10, %c0_11] : memref<256x36xf32, #tpu.memory_space<vmem>>, vector<256x4xf32>
    tpu.vector_store %arg14[%c0_10, %c0_11], %7 {strides = array<i32>} : memref<256x36xf32, #tpu.memory_space<vmem>>, vector<256x4xf32>,
    %9 = vector.extract_strided_slice %5 {offsets = [0, 8, 0], sizes = [16, 16, 4], strides = [1, 1, 1]} : vector<16x32x4xf32> to vector<16x16x4xf32>
    %10 = vector.shape_cast %9 : vector<16x16x4xf32> to vector<256x4xf32>
    %c0_12 = arith.constant 0 : index
    %c4 = arith.constant 4 : index
    %11 = vector.load %arg14[%c0_12, %c4] : memref<256x36xf32, #tpu.memory_space<vmem>>, vector<256x4xf32>
    tpu.vector_store %arg14[%c0_12, %c4], %10 {strides = array<i32>} : memref<256x36xf32, #tpu.memory_space<vmem>>, vector<256x4xf32>,
    %12 = vector.extract_strided_slice %5 {offsets = [0, 9, 0], sizes = [16, 16, 4], strides = [1, 1, 1]} : vector<16x32x4xf32> to vector<16x16x4xf32>
    %13 = vector.shape_cast %12 : vector<16x16x4xf32> to vector<256x4xf32>
    %c0_13 = arith.constant 0 : index
    %c8_14 = arith.constant 8 : index
    %14 = vector.load %arg14[%c0_13, %c8_14] : memref<256x36xf32, #tpu.memory_space<vmem>>, vector<256x4xf32>
    tpu.vector_store %arg14[%c0_13, %c8_14], %13 {strides = array<i32>} : memref<256x36xf32, #tpu.memory_space<vmem>>, vector<256x4xf32>,
    %c1_15 = arith.constant 1 : index
    %c0_16 = arith.constant 0 : index
    %c0_17 = arith.constant 0 : index
    %15 = vector.load %arg13[%c1_15, %c0_16, %c0_17] : memref<18x32x4xf32, #tpu.memory_space<vmem>>, vector<16x32x4xf32>
    %16 = vector.extract_strided_slice %15 {offsets = [0, 7, 0], sizes = [16, 16, 4], strides = [1, 1, 1]} : vector<16x32x4xf32> to vector<16x16x4xf32>
    %17 = vector.shape_cast %16 : vector<16x16x4xf32> to vector<256x4xf32>
    %c0_18 = arith.constant 0 : index
    %c12 = arith.constant 12 : index
    %18 = vector.load %arg14[%c0_18, %c12] : memref<256x36xf32, #tpu.memory_space<vmem>>, vector<256x4xf32>
    tpu.vector_store %arg14[%c0_18, %c12], %17 {strides = array<i32>} : memref<256x36xf32, #tpu.memory_space<vmem>>, vector<256x4xf32>,
    %19 = vector.extract_strided_slice %15 {offsets = [0, 8, 0], sizes = [16, 16, 4], strides = [1, 1, 1]} : vector<16x32x4xf32> to vector<16x16x4xf32>
    %20 = vector.shape_cast %19 : vector<16x16x4xf32> to vector<256x4xf32>
    %c0_19 = arith.constant 0 : index
    %c16 = arith.constant 16 : index
    %21 = vector.load %arg14[%c0_19, %c16] : memref<256x36xf32, #tpu.memory_space<vmem>>, vector<256x4xf32>
    tpu.vector_store %arg14[%c0_19, %c16], %20 {strides = array<i32>} : memref<256x36xf32, #tpu.memory_space<vmem>>, vector<256x4xf32>,
    %22 = vector.extract_strided_slice %15 {offsets = [0, 9, 0], sizes = [16, 16, 4], strides = [1, 1, 1]} : vector<16x32x4xf32> to vector<16x16x4xf32>
    %23 = vector.shape_cast %22 : vector<16x16x4xf32> to vector<256x4xf32>
    %c0_20 = arith.constant 0 : index
    %c20 = arith.constant 20 : index
    %24 = vector.load %arg14[%c0_20, %c20] : memref<256x36xf32, #tpu.memory_space<vmem>>, vector<256x4xf32>
    tpu.vector_store %arg14[%c0_20, %c20], %23 {strides = array<i32>} : memref<256x36xf32, #tpu.memory_space<vmem>>, vector<256x4xf32>,
    %c2 = arith.constant 2 : index
    %c0_21 = arith.constant 0 : index
    %c0_22 = arith.constant 0 : index
    %25 = vector.load %arg13[%c2, %c0_21, %c0_22] : memref<18x32x4xf32, #tpu.memory_space<vmem>>, vector<16x32x4xf32>
    %26 = vector.extract_strided_slice %25 {offsets = [0, 7, 0], sizes = [16, 16, 4], strides = [1, 1, 1]} : vector<16x32x4xf32> to vector<16x16x4xf32>
    %27 = vector.shape_cast %26 : vector<16x16x4xf32> to vector<256x4xf32>
    %c0_23 = arith.constant 0 : index
    %c24 = arith.constant 24 : index
    %28 = vector.load %arg14[%c0_23, %c24] : memref<256x36xf32, #tpu.memory_space<vmem>>, vector<256x4xf32>
    tpu.vector_store %arg14[%c0_23, %c24], %27 {strides = array<i32>} : memref<256x36xf32, #tpu.memory_space<vmem>>, vector<256x4xf32>,
    %29 = vector.extract_strided_slice %25 {offsets = [0, 8, 0], sizes = [16, 16, 4], strides = [1, 1, 1]} : vector<16x32x4xf32> to vector<16x16x4xf32>
    %30 = vector.shape_cast %29 : vector<16x16x4xf32> to vector<256x4xf32>
    %c0_24 = arith.constant 0 : index
    %c28 = arith.constant 28 : index
    %31 = vector.load %arg14[%c0_24, %c28] : memref<256x36xf32, #tpu.memory_space<vmem>>, vector<256x4xf32>
    tpu.vector_store %arg14[%c0_24, %c28], %30 {strides = array<i32>} : memref<256x36xf32, #tpu.memory_space<vmem>>, vector<256x4xf32>,
    %32 = vector.extract_strided_slice %25 {offsets = [0, 9, 0], sizes = [16, 16, 4], strides = [1, 1, 1]} : vector<16x32x4xf32> to vector<16x16x4xf32>
    %33 = vector.shape_cast %32 : vector<16x16x4xf32> to vector<256x4xf32>
    %c0_25 = arith.constant 0 : index
    %c32 = arith.constant 32 : index
    %34 = vector.load %arg14[%c0_25, %c32] : memref<256x36xf32, #tpu.memory_space<vmem>>, vector<256x4xf32>
    tpu.vector_store %arg14[%c0_25, %c32], %33 {strides = array<i32>} : memref<256x36xf32, #tpu.memory_space<vmem>>, vector<256x4xf32>,
    %c0_26 = arith.constant 0 : index
    %c0_27 = arith.constant 0 : index
    %35 = vector.load %arg14[%c0_26, %c0_27] : memref<256x36xf32, #tpu.memory_space<vmem>>, vector<256x36xf32>
    %36 = arith.truncf %35 : vector<256x36xf32> to vector<256x36xbf16>
    %c0_28 = arith.constant 0 : index
    %c0_29 = arith.constant 0 : index
    %37 = vector.load %arg2[%c0_28, %c0_29] : memref<36x8xbf16, #tpu.memory_space<vmem>>, vector<36x8xbf16>
    %cst_30 = arith.constant dense<0.000000e+00> : vector<256x8xf32>
    %38 = tpu.matmul %36, %37, %cst_30 {dimension_numbers = #tpu.dot_dimension_numbers<[1], [0], [0], [1], [0, 0, 1, 1], [], []>} : vector<256x36xbf16>, vector<36x8xbf16>, vector<256x8xf32> -> vector<256x8xf32>
    %c0_31 = arith.constant 0 : index
    %c0_32 = arith.constant 0 : index
    %39 = vector.load %arg3[%c0_31, %c0_32] : memref<1x8xf32, #tpu.memory_space<vmem>>, vector<1x8xf32>
    %40 = vector.broadcast %39 : vector<1x8xf32> to vector<256x8xf32>
    %41 = arith.addf %38, %40 : vector<256x8xf32>
    %cst_33 = arith.constant 0.000000e+00 : f32
    %42 = vector.broadcast %cst_33 : f32 to vector<256x8xf32>
    %43 = arith.maximumf %41, %42 : vector<256x8xf32>
    %44 = vector.shape_cast %43 : vector<256x8xf32> to vector<16x16x8xf32>
    %cst_34 = arith.constant 0.000000e+00 : f32
    %45 = vector.broadcast %cst_34 : f32 to vector<18x32x8xf32>
    %c0_35 = arith.constant 0 : index
    %c0_36 = arith.constant 0 : index
    %c0_37 = arith.constant 0 : index
    %46 = vector.load %arg15[%c0_35, %c0_36, %c0_37] : memref<18x32x8xf32, #tpu.memory_space<vmem>>, vector<18x32x8xf32>
    tpu.vector_store %arg15[%c0_35, %c0_36, %c0_37], %45 {strides = array<i32>} : memref<18x32x8xf32, #tpu.memory_space<vmem>>, vector<18x32x8xf32>,
    %c1_38 = arith.constant 1 : index
    %c8_39 = arith.constant 8 : index
    %c0_40 = arith.constant 0 : index
    %47 = vector.load %arg15[%c1_38, %c8_39, %c0_40] : memref<18x32x8xf32, #tpu.memory_space<vmem>>, vector<16x16x8xf32>
    tpu.vector_store %arg15[%c1_38, %c8_39, %c0_40], %44 {strides = array<i32>} : memref<18x32x8xf32, #tpu.memory_space<vmem>>, vector<16x16x8xf32>,
    %c0_41 = arith.constant 0 : index
    %c0_42 = arith.constant 0 : index
    %c0_43 = arith.constant 0 : index
    %48 = vector.load %arg15[%c0_41, %c0_42, %c0_43] : memref<18x32x8xf32, #tpu.memory_space<vmem>>, vector<16x32x8xf32>
    %49 = vector.extract_strided_slice %48 {offsets = [0, 7, 0], sizes = [16, 16, 8], strides = [1, 1, 1]} : vector<16x32x8xf32> to vector<16x16x8xf32>
    %50 = vector.shape_cast %49 : vector<16x16x8xf32> to vector<256x8xf32>
    %c0_44 = arith.constant 0 : index
    %c0_45 = arith.constant 0 : index
    %51 = vector.load %arg16[%c0_44, %c0_45] : memref<256x72xf32, #tpu.memory_space<vmem>>, vector<256x8xf32>
    tpu.vector_store %arg16[%c0_44, %c0_45], %50 {strides = array<i32>} : memref<256x72xf32, #tpu.memory_space<vmem>>, vector<256x8xf32>,
    %52 = vector.extract_strided_slice %48 {offsets = [0, 8, 0], sizes = [16, 16, 8], strides = [1, 1, 1]} : vector<16x32x8xf32> to vector<16x16x8xf32>
    %53 = vector.shape_cast %52 : vector<16x16x8xf32> to vector<256x8xf32>
    %c0_46 = arith.constant 0 : index
    %c8_47 = arith.constant 8 : index
    %54 = vector.load %arg16[%c0_46, %c8_47] : memref<256x72xf32, #tpu.memory_space<vmem>>, vector<256x8xf32>
    tpu.vector_store %arg16[%c0_46, %c8_47], %53 {strides = array<i32>} : memref<256x72xf32, #tpu.memory_space<vmem>>, vector<256x8xf32>,
    %55 = vector.extract_strided_slice %48 {offsets = [0, 9, 0], sizes = [16, 16, 8], strides = [1, 1, 1]} : vector<16x32x8xf32> to vector<16x16x8xf32>
    %56 = vector.shape_cast %55 : vector<16x16x8xf32> to vector<256x8xf32>
    %c0_48 = arith.constant 0 : index
    %c16_49 = arith.constant 16 : index
    %57 = vector.load %arg16[%c0_48, %c16_49] : memref<256x72xf32, #tpu.memory_space<vmem>>, vector<256x8xf32>
    tpu.vector_store %arg16[%c0_48, %c16_49], %56 {strides = array<i32>} : memref<256x72xf32, #tpu.memory_space<vmem>>, vector<256x8xf32>,
    %c1_50 = arith.constant 1 : index
    %c0_51 = arith.constant 0 : index
    %c0_52 = arith.constant 0 : index
    %58 = vector.load %arg15[%c1_50, %c0_51, %c0_52] : memref<18x32x8xf32, #tpu.memory_space<vmem>>, vector<16x32x8xf32>
    %59 = vector.extract_strided_slice %58 {offsets = [0, 7, 0], sizes = [16, 16, 8], strides = [1, 1, 1]} : vector<16x32x8xf32> to vector<16x16x8xf32>
    %60 = vector.shape_cast %59 : vector<16x16x8xf32> to vector<256x8xf32>
    %c0_53 = arith.constant 0 : index
    %c24_54 = arith.constant 24 : index
    %61 = vector.load %arg16[%c0_53, %c24_54] : memref<256x72xf32, #tpu.memory_space<vmem>>, vector<256x8xf32>
    tpu.vector_store %arg16[%c0_53, %c24_54], %60 {strides = array<i32>} : memref<256x72xf32, #tpu.memory_space<vmem>>, vector<256x8xf32>,
    %62 = vector.extract_strided_slice %58 {offsets = [0, 8, 0], sizes = [16, 16, 8], strides = [1, 1, 1]} : vector<16x32x8xf32> to vector<16x16x8xf32>
    %63 = vector.shape_cast %62 : vector<16x16x8xf32> to vector<256x8xf32>
    %c0_55 = arith.constant 0 : index
    %c32_56 = arith.constant 32 : index
    %64 = vector.load %arg16[%c0_55, %c32_56] : memref<256x72xf32, #tpu.memory_space<vmem>>, vector<256x8xf32>
    tpu.vector_store %arg16[%c0_55, %c32_56], %63 {strides = array<i32>} : memref<256x72xf32, #tpu.memory_space<vmem>>, vector<256x8xf32>,
    %65 = vector.extract_strided_slice %58 {offsets = [0, 9, 0], sizes = [16, 16, 8], strides = [1, 1, 1]} : vector<16x32x8xf32> to vector<16x16x8xf32>
    %66 = vector.shape_cast %65 : vector<16x16x8xf32> to vector<256x8xf32>
    %c0_57 = arith.constant 0 : index
    %c40 = arith.constant 40 : index
    %67 = vector.load %arg16[%c0_57, %c40] : memref<256x72xf32, #tpu.memory_space<vmem>>, vector<256x8xf32>
    tpu.vector_store %arg16[%c0_57, %c40], %66 {strides = array<i32>} : memref<256x72xf32, #tpu.memory_space<vmem>>, vector<256x8xf32>,
    %c2_58 = arith.constant 2 : index
    %c0_59 = arith.constant 0 : index
    %c0_60 = arith.constant 0 : index
    %68 = vector.load %arg15[%c2_58, %c0_59, %c0_60] : memref<18x32x8xf32, #tpu.memory_space<vmem>>, vector<16x32x8xf32>
    %69 = vector.extract_strided_slice %68 {offsets = [0, 7, 0], sizes = [16, 16, 8], strides = [1, 1, 1]} : vector<16x32x8xf32> to vector<16x16x8xf32>
    %70 = vector.shape_cast %69 : vector<16x16x8xf32> to vector<256x8xf32>
    %c0_61 = arith.constant 0 : index
    %c48 = arith.constant 48 : index
    %71 = vector.load %arg16[%c0_61, %c48] : memref<256x72xf32, #tpu.memory_space<vmem>>, vector<256x8xf32>
    tpu.vector_store %arg16[%c0_61, %c48], %70 {strides = array<i32>} : memref<256x72xf32, #tpu.memory_space<vmem>>, vector<256x8xf32>,
    %72 = vector.extract_strided_slice %68 {offsets = [0, 8, 0], sizes = [16, 16, 8], strides = [1, 1, 1]} : vector<16x32x8xf32> to vector<16x16x8xf32>
    %73 = vector.shape_cast %72 : vector<16x16x8xf32> to vector<256x8xf32>
    %c0_62 = arith.constant 0 : index
    %c56 = arith.constant 56 : index
    %74 = vector.load %arg16[%c0_62, %c56] : memref<256x72xf32, #tpu.memory_space<vmem>>, vector<256x8xf32>
    tpu.vector_store %arg16[%c0_62, %c56], %73 {strides = array<i32>} : memref<256x72xf32, #tpu.memory_space<vmem>>, vector<256x8xf32>,
    %75 = vector.extract_strided_slice %68 {offsets = [0, 9, 0], sizes = [16, 16, 8], strides = [1, 1, 1]} : vector<16x32x8xf32> to vector<16x16x8xf32>
    %76 = vector.shape_cast %75 : vector<16x16x8xf32> to vector<256x8xf32>
    %c0_63 = arith.constant 0 : index
    %c64 = arith.constant 64 : index
    %77 = vector.load %arg16[%c0_63, %c64] : memref<256x72xf32, #tpu.memory_space<vmem>>, vector<256x8xf32>
    tpu.vector_store %arg16[%c0_63, %c64], %76 {strides = array<i32>} : memref<256x72xf32, #tpu.memory_space<vmem>>, vector<256x8xf32>,
    %c0_64 = arith.constant 0 : index
    %c0_65 = arith.constant 0 : index
    %78 = vector.load %arg16[%c0_64, %c0_65] : memref<256x72xf32, #tpu.memory_space<vmem>>, vector<256x72xf32>
    %79 = arith.truncf %78 : vector<256x72xf32> to vector<256x72xbf16>
    %c0_66 = arith.constant 0 : index
    %c0_67 = arith.constant 0 : index
    %80 = vector.load %arg4[%c0_66, %c0_67] : memref<72x8xbf16, #tpu.memory_space<vmem>>, vector<72x8xbf16>
    %cst_68 = arith.constant dense<0.000000e+00> : vector<256x8xf32>
    %81 = tpu.matmul %79, %80, %cst_68 {dimension_numbers = #tpu.dot_dimension_numbers<[1], [0], [0], [1], [0, 0, 1, 1], [], []>} : vector<256x72xbf16>, vector<72x8xbf16>, vector<256x8xf32> -> vector<256x8xf32>
    %c0_69 = arith.constant 0 : index
    %c0_70 = arith.constant 0 : index
    %82 = vector.load %arg5[%c0_69, %c0_70] : memref<1x8xf32, #tpu.memory_space<vmem>>, vector<1x8xf32>
    %83 = vector.broadcast %82 : vector<1x8xf32> to vector<256x8xf32>
    %84 = arith.addf %81, %83 : vector<256x8xf32>
    %cst_71 = arith.constant 0.000000e+00 : f32
    %85 = vector.broadcast %cst_71 : f32 to vector<256x8xf32>
    %86 = arith.maximumf %84, %85 : vector<256x8xf32>
    %87 = vector.shape_cast %86 : vector<256x8xf32> to vector<16x16x8xf32>
    %cst_72 = arith.constant 0.000000e+00 : f32
    %88 = vector.broadcast %cst_72 : f32 to vector<18x17x9xf32>
    %c0_73 = arith.constant 0 : index
    %c0_74 = arith.constant 0 : index
    %c0_75 = arith.constant 0 : index
    %89 = vector.load %arg17[%c0_73, %c0_74, %c0_75] : memref<18x17x9xf32, #tpu.memory_space<vmem>>, vector<18x17x9xf32>
    tpu.vector_store %arg17[%c0_73, %c0_74, %c0_75], %88 {strides = array<i32>} : memref<18x17x9xf32, #tpu.memory_space<vmem>>, vector<18x17x9xf32>,
    %c0_76 = arith.constant 0 : index
    %c0_77 = arith.constant 0 : index
    %c0_78 = arith.constant 0 : index
    %90 = vector.load %arg17[%c0_76, %c0_77, %c0_78] : memref<18x17x9xf32, #tpu.memory_space<vmem>>, vector<16x16x8xf32>
    tpu.vector_store %arg17[%c0_76, %c0_77, %c0_78], %87 {strides = array<i32>} : memref<18x17x9xf32, #tpu.memory_space<vmem>>, vector<16x16x8xf32>,
    %cst_79 = arith.constant 1.000000e+00 : f32
    %91 = vector.broadcast %cst_79 : f32 to vector<16x16x1xf32>
    %c0_80 = arith.constant 0 : index
    %c0_81 = arith.constant 0 : index
    %c8_82 = arith.constant 8 : index
    %92 = vector.load %arg17[%c0_80, %c0_81, %c8_82] : memref<18x17x9xf32, #tpu.memory_space<vmem>>, vector<16x16x1xf32>
    tpu.vector_store %arg17[%c0_80, %c0_81, %c8_82], %91 {strides = array<i32>} : memref<18x17x9xf32, #tpu.memory_space<vmem>>, vector<16x16x1xf32>,
    %c0_83 = arith.constant 0 : index
    %c0_84 = arith.constant 0 : index
    %c0_85 = arith.constant 0 : index
    %93 = vector.load %arg17[%c0_83, %c0_84, %c0_85] : memref<18x17x9xf32, #tpu.memory_space<vmem>>, vector<18x17x9xf32>
    %94 = vector.shape_cast %93 : vector<18x17x9xf32> to vector<9x2x17x9xf32>
    %95 = vector.extract_strided_slice %94 {offsets = [0, 0, 0, 0], sizes = [9, 1, 17, 9], strides = [1, 1, 1, 1]} : vector<9x2x17x9xf32> to vector<9x1x17x9xf32>
    %96 = vector.shape_cast %95 : vector<9x1x17x9xf32> to vector<9x17x9xf32>
    %97 = vector.extract_strided_slice %94 {offsets = [0, 1, 0, 0], sizes = [9, 1, 17, 9], strides = [1, 1, 1, 1]} : vector<9x2x17x9xf32> to vector<9x1x17x9xf32>
    %98 = vector.shape_cast %97 : vector<9x1x17x9xf32> to vector<9x17x9xf32>
    %99 = vector.extract_strided_slice %96 {offsets = [0, 0, 0], sizes = [8, 17, 9], strides = [1, 1, 1]} : vector<9x17x9xf32> to vector<8x17x9xf32>
    %100 = vector.extract_strided_slice %98 {offsets = [0, 0, 0], sizes = [8, 17, 9], strides = [1, 1, 1]} : vector<9x17x9xf32> to vector<8x17x9xf32>
    %101 = arith.addf %99, %100 : vector<8x17x9xf32>
    %102 = vector.extract_strided_slice %96 {offsets = [1, 0, 0], sizes = [8, 17, 9], strides = [1, 1, 1]} : vector<9x17x9xf32> to vector<8x17x9xf32>
    %103 = arith.addf %101, %102 : vector<8x17x9xf32>
    %104 = tpu.iota {dimensions = array<i32: 1>} : vector<1x8x1xi32>
    %cst_86 = arith.constant 0.000000e+00 : f32
    %105 = vector.broadcast %cst_86 : f32 to vector<8x8x9xf32>
    %106 = vector.extract_strided_slice %103 {offsets = [0, 0, 0], sizes = [8, 1, 9], strides = [1, 1, 1]} : vector<8x17x9xf32> to vector<8x1x9xf32>
    %107 = vector.extract_strided_slice %103 {offsets = [0, 1, 0], sizes = [8, 1, 9], strides = [1, 1, 1]} : vector<8x17x9xf32> to vector<8x1x9xf32>
    %108 = arith.addf %106, %107 : vector<8x1x9xf32>
    %109 = vector.extract_strided_slice %103 {offsets = [0, 2, 0], sizes = [8, 1, 9], strides = [1, 1, 1]} : vector<8x17x9xf32> to vector<8x1x9xf32>
    %110 = arith.addf %108, %109 : vector<8x1x9xf32>
    %c0_i32 = arith.constant 0 : i32
    %111 = vector.broadcast %c0_i32 : i32 to vector<1x8x1xi32>
    %112 = arith.cmpi eq, %104, %111 : vector<1x8x1xi32>
    %cst_87 = arith.constant 0.000000e+00 : f32
    %113 = vector.shape_cast %112 : vector<1x8x1xi1> to vector<1x8x1xi1>
    %114 = vector.broadcast %113 : vector<1x8x1xi1> to vector<8x8x9xi1>
    %115 = vector.shape_cast %110 : vector<8x1x9xf32> to vector<8x1x9xf32>
    %116 = vector.broadcast %115 : vector<8x1x9xf32> to vector<8x8x9xf32>
    %117 = vector.broadcast %cst_87 : f32 to vector<8x8x9xf32>
    %118 = arith.select %114, %116, %117 : vector<8x8x9xi1>, vector<8x8x9xf32>
    %119 = arith.addf %105, %118 : vector<8x8x9xf32>
    %120 = vector.extract_strided_slice %103 {offsets = [0, 2, 0], sizes = [8, 1, 9], strides = [1, 1, 1]} : vector<8x17x9xf32> to vector<8x1x9xf32>
    %121 = vector.extract_strided_slice %103 {offsets = [0, 3, 0], sizes = [8, 1, 9], strides = [1, 1, 1]} : vector<8x17x9xf32> to vector<8x1x9xf32>
    %122 = arith.addf %120, %121 : vector<8x1x9xf32>
    %123 = vector.extract_strided_slice %103 {offsets = [0, 4, 0], sizes = [8, 1, 9], strides = [1, 1, 1]} : vector<8x17x9xf32> to vector<8x1x9xf32>
    %124 = arith.addf %122, %123 : vector<8x1x9xf32>
    %c1_i32 = arith.constant 1 : i32
    %125 = vector.broadcast %c1_i32 : i32 to vector<1x8x1xi32>
    %126 = arith.cmpi eq, %104, %125 : vector<1x8x1xi32>
    %cst_88 = arith.constant 0.000000e+00 : f32
    %127 = vector.shape_cast %126 : vector<1x8x1xi1> to vector<1x8x1xi1>
    %128 = vector.broadcast %127 : vector<1x8x1xi1> to vector<8x8x9xi1>
    %129 = vector.shape_cast %124 : vector<8x1x9xf32> to vector<8x1x9xf32>
    %130 = vector.broadcast %129 : vector<8x1x9xf32> to vector<8x8x9xf32>
    %131 = vector.broadcast %cst_88 : f32 to vector<8x8x9xf32>
    %132 = arith.select %128, %130, %131 : vector<8x8x9xi1>, vector<8x8x9xf32>
    %133 = arith.addf %119, %132 : vector<8x8x9xf32>
    %134 = vector.extract_strided_slice %103 {offsets = [0, 4, 0], sizes = [8, 1, 9], strides = [1, 1, 1]} : vector<8x17x9xf32> to vector<8x1x9xf32>
    %135 = vector.extract_strided_slice %103 {offsets = [0, 5, 0], sizes = [8, 1, 9], strides = [1, 1, 1]} : vector<8x17x9xf32> to vector<8x1x9xf32>
    %136 = arith.addf %134, %135 : vector<8x1x9xf32>
    %137 = vector.extract_strided_slice %103 {offsets = [0, 6, 0], sizes = [8, 1, 9], strides = [1, 1, 1]} : vector<8x17x9xf32> to vector<8x1x9xf32>
    %138 = arith.addf %136, %137 : vector<8x1x9xf32>
    %c2_i32 = arith.constant 2 : i32
    %139 = vector.broadcast %c2_i32 : i32 to vector<1x8x1xi32>
    %140 = arith.cmpi eq, %104, %139 : vector<1x8x1xi32>
    %cst_89 = arith.constant 0.000000e+00 : f32
    %141 = vector.shape_cast %140 : vector<1x8x1xi1> to vector<1x8x1xi1>
    %142 = vector.broadcast %141 : vector<1x8x1xi1> to vector<8x8x9xi1>
    %143 = vector.shape_cast %138 : vector<8x1x9xf32> to vector<8x1x9xf32>
    %144 = vector.broadcast %143 : vector<8x1x9xf32> to vector<8x8x9xf32>
    %145 = vector.broadcast %cst_89 : f32 to vector<8x8x9xf32>
    %146 = arith.select %142, %144, %145 : vector<8x8x9xi1>, vector<8x8x9xf32>
    %147 = arith.addf %133, %146 : vector<8x8x9xf32>
    %148 = vector.extract_strided_slice %103 {offsets = [0, 6, 0], sizes = [8, 1, 9], strides = [1, 1, 1]} : vector<8x17x9xf32> to vector<8x1x9xf32>
    %149 = vector.extract_strided_slice %103 {offsets = [0, 7, 0], sizes = [8, 1, 9], strides = [1, 1, 1]} : vector<8x17x9xf32> to vector<8x1x9xf32>
    %150 = arith.addf %148, %149 : vector<8x1x9xf32>
    %151 = vector.extract_strided_slice %103 {offsets = [0, 8, 0], sizes = [8, 1, 9], strides = [1, 1, 1]} : vector<8x17x9xf32> to vector<8x1x9xf32>
    %152 = arith.addf %150, %151 : vector<8x1x9xf32>
    %c3_i32 = arith.constant 3 : i32
    %153 = vector.broadcast %c3_i32 : i32 to vector<1x8x1xi32>
    %154 = arith.cmpi eq, %104, %153 : vector<1x8x1xi32>
    %cst_90 = arith.constant 0.000000e+00 : f32
    %155 = vector.shape_cast %154 : vector<1x8x1xi1> to vector<1x8x1xi1>
    %156 = vector.broadcast %155 : vector<1x8x1xi1> to vector<8x8x9xi1>
    %157 = vector.shape_cast %152 : vector<8x1x9xf32> to vector<8x1x9xf32>
    %158 = vector.broadcast %157 : vector<8x1x9xf32> to vector<8x8x9xf32>
    %159 = vector.broadcast %cst_90 : f32 to vector<8x8x9xf32>
    %160 = arith.select %156, %158, %159 : vector<8x8x9xi1>, vector<8x8x9xf32>
    %161 = arith.addf %147, %160 : vector<8x8x9xf32>
    %162 = vector.extract_strided_slice %103 {offsets = [0, 8, 0], sizes = [8, 1, 9], strides = [1, 1, 1]} : vector<8x17x9xf32> to vector<8x1x9xf32>
    %163 = vector.extract_strided_slice %103 {offsets = [0, 9, 0], sizes = [8, 1, 9], strides = [1, 1, 1]} : vector<8x17x9xf32> to vector<8x1x9xf32>
    %164 = arith.addf %162, %163 : vector<8x1x9xf32>
    %165 = vector.extract_strided_slice %103 {offsets = [0, 10, 0], sizes = [8, 1, 9], strides = [1, 1, 1]} : vector<8x17x9xf32> to vector<8x1x9xf32>
    %166 = arith.addf %164, %165 : vector<8x1x9xf32>
    %c4_i32 = arith.constant 4 : i32
    %167 = vector.broadcast %c4_i32 : i32 to vector<1x8x1xi32>
    %168 = arith.cmpi eq, %104, %167 : vector<1x8x1xi32>
    %cst_91 = arith.constant 0.000000e+00 : f32
    %169 = vector.shape_cast %168 : vector<1x8x1xi1> to vector<1x8x1xi1>
    %170 = vector.broadcast %169 : vector<1x8x1xi1> to vector<8x8x9xi1>
    %171 = vector.shape_cast %166 : vector<8x1x9xf32> to vector<8x1x9xf32>
    %172 = vector.broadcast %171 : vector<8x1x9xf32> to vector<8x8x9xf32>
    %173 = vector.broadcast %cst_91 : f32 to vector<8x8x9xf32>
    %174 = arith.select %170, %172, %173 : vector<8x8x9xi1>, vector<8x8x9xf32>
    %175 = arith.addf %161, %174 : vector<8x8x9xf32>
    %176 = vector.extract_strided_slice %103 {offsets = [0, 10, 0], sizes = [8, 1, 9], strides = [1, 1, 1]} : vector<8x17x9xf32> to vector<8x1x9xf32>
    %177 = vector.extract_strided_slice %103 {offsets = [0, 11, 0], sizes = [8, 1, 9], strides = [1, 1, 1]} : vector<8x17x9xf32> to vector<8x1x9xf32>
    %178 = arith.addf %176, %177 : vector<8x1x9xf32>
    %179 = vector.extract_strided_slice %103 {offsets = [0, 12, 0], sizes = [8, 1, 9], strides = [1, 1, 1]} : vector<8x17x9xf32> to vector<8x1x9xf32>
    %180 = arith.addf %178, %179 : vector<8x1x9xf32>
    %c5_i32 = arith.constant 5 : i32
    %181 = vector.broadcast %c5_i32 : i32 to vector<1x8x1xi32>
    %182 = arith.cmpi eq, %104, %181 : vector<1x8x1xi32>
    %cst_92 = arith.constant 0.000000e+00 : f32
    %183 = vector.shape_cast %182 : vector<1x8x1xi1> to vector<1x8x1xi1>
    %184 = vector.broadcast %183 : vector<1x8x1xi1> to vector<8x8x9xi1>
    %185 = vector.shape_cast %180 : vector<8x1x9xf32> to vector<8x1x9xf32>
    %186 = vector.broadcast %185 : vector<8x1x9xf32> to vector<8x8x9xf32>
    %187 = vector.broadcast %cst_92 : f32 to vector<8x8x9xf32>
    %188 = arith.select %184, %186, %187 : vector<8x8x9xi1>, vector<8x8x9xf32>
    %189 = arith.addf %175, %188 : vector<8x8x9xf32>
    %190 = vector.extract_strided_slice %103 {offsets = [0, 12, 0], sizes = [8, 1, 9], strides = [1, 1, 1]} : vector<8x17x9xf32> to vector<8x1x9xf32>
    %191 = vector.extract_strided_slice %103 {offsets = [0, 13, 0], sizes = [8, 1, 9], strides = [1, 1, 1]} : vector<8x17x9xf32> to vector<8x1x9xf32>
    %192 = arith.addf %190, %191 : vector<8x1x9xf32>
    %193 = vector.extract_strided_slice %103 {offsets = [0, 14, 0], sizes = [8, 1, 9], strides = [1, 1, 1]} : vector<8x17x9xf32> to vector<8x1x9xf32>
    %194 = arith.addf %192, %193 : vector<8x1x9xf32>
    %c6_i32 = arith.constant 6 : i32
    %195 = vector.broadcast %c6_i32 : i32 to vector<1x8x1xi32>
    %196 = arith.cmpi eq, %104, %195 : vector<1x8x1xi32>
    %cst_93 = arith.constant 0.000000e+00 : f32
    %197 = vector.shape_cast %196 : vector<1x8x1xi1> to vector<1x8x1xi1>
    %198 = vector.broadcast %197 : vector<1x8x1xi1> to vector<8x8x9xi1>
    %199 = vector.shape_cast %194 : vector<8x1x9xf32> to vector<8x1x9xf32>
    %200 = vector.broadcast %199 : vector<8x1x9xf32> to vector<8x8x9xf32>
    %201 = vector.broadcast %cst_93 : f32 to vector<8x8x9xf32>
    %202 = arith.select %198, %200, %201 : vector<8x8x9xi1>, vector<8x8x9xf32>
    %203 = arith.addf %189, %202 : vector<8x8x9xf32>
    %204 = vector.extract_strided_slice %103 {offsets = [0, 14, 0], sizes = [8, 1, 9], strides = [1, 1, 1]} : vector<8x17x9xf32> to vector<8x1x9xf32>
    %205 = vector.extract_strided_slice %103 {offsets = [0, 15, 0], sizes = [8, 1, 9], strides = [1, 1, 1]} : vector<8x17x9xf32> to vector<8x1x9xf32>
    %206 = arith.addf %204, %205 : vector<8x1x9xf32>
    %207 = vector.extract_strided_slice %103 {offsets = [0, 16, 0], sizes = [8, 1, 9], strides = [1, 1, 1]} : vector<8x17x9xf32> to vector<8x1x9xf32>
    %208 = arith.addf %206, %207 : vector<8x1x9xf32>
    %c7_i32 = arith.constant 7 : i32
    %209 = vector.broadcast %c7_i32 : i32 to vector<1x8x1xi32>
    %210 = arith.cmpi eq, %104, %209 : vector<1x8x1xi32>
    %cst_94 = arith.constant 0.000000e+00 : f32
    %211 = vector.shape_cast %210 : vector<1x8x1xi1> to vector<1x8x1xi1>
    %212 = vector.broadcast %211 : vector<1x8x1xi1> to vector<8x8x9xi1>
    %213 = vector.shape_cast %208 : vector<8x1x9xf32> to vector<8x1x9xf32>
    %214 = vector.broadcast %213 : vector<8x1x9xf32> to vector<8x8x9xf32>
    %215 = vector.broadcast %cst_94 : f32 to vector<8x8x9xf32>
    %216 = arith.select %212, %214, %215 : vector<8x8x9xi1>, vector<8x8x9xf32>
    %217 = arith.addf %203, %216 : vector<8x8x9xf32>
    %218 = vector.extract_strided_slice %217 {offsets = [0, 0, 0], sizes = [8, 8, 8], strides = [1, 1, 1]} : vector<8x8x9xf32> to vector<8x8x8xf32>
    %219 = vector.extract_strided_slice %217 {offsets = [0, 0, 8], sizes = [8, 8, 1], strides = [1, 1, 1]} : vector<8x8x9xf32> to vector<8x8x1xf32>
    %220 = vector.broadcast %219 : vector<8x8x1xf32> to vector<8x8x8xf32>
    %221 = arith.divf %218, %220 : vector<8x8x8xf32>
    %cst_95 = arith.constant 0.000000e+00 : f32
    %222 = vector.broadcast %cst_95 : f32 to vector<10x24x8xf32>
    %c0_96 = arith.constant 0 : index
    %c0_97 = arith.constant 0 : index
    %c0_98 = arith.constant 0 : index
    %223 = vector.load %arg18[%c0_96, %c0_97, %c0_98] : memref<10x24x8xf32, #tpu.memory_space<vmem>>, vector<10x24x8xf32>
    tpu.vector_store %arg18[%c0_96, %c0_97, %c0_98], %222 {strides = array<i32>} : memref<10x24x8xf32, #tpu.memory_space<vmem>>, vector<10x24x8xf32>,
    %c1_99 = arith.constant 1 : index
    %c8_100 = arith.constant 8 : index
    %c0_101 = arith.constant 0 : index
    %224 = vector.load %arg18[%c1_99, %c8_100, %c0_101] : memref<10x24x8xf32, #tpu.memory_space<vmem>>, vector<8x8x8xf32>
    tpu.vector_store %arg18[%c1_99, %c8_100, %c0_101], %221 {strides = array<i32>} : memref<10x24x8xf32, #tpu.memory_space<vmem>>, vector<8x8x8xf32>,
    %c0_102 = arith.constant 0 : index
    %c0_103 = arith.constant 0 : index
    %c0_104 = arith.constant 0 : index
    %225 = vector.load %arg18[%c0_102, %c0_103, %c0_104] : memref<10x24x8xf32, #tpu.memory_space<vmem>>, vector<8x24x8xf32>
    %226 = vector.extract_strided_slice %225 {offsets = [0, 7, 0], sizes = [8, 8, 8], strides = [1, 1, 1]} : vector<8x24x8xf32> to vector<8x8x8xf32>
    %227 = vector.shape_cast %226 : vector<8x8x8xf32> to vector<64x8xf32>
    %c0_105 = arith.constant 0 : index
    %c0_106 = arith.constant 0 : index
    %228 = vector.load %arg19[%c0_105, %c0_106] : memref<64x72xf32, #tpu.memory_space<vmem>>, vector<64x8xf32>
    tpu.vector_store %arg19[%c0_105, %c0_106], %227 {strides = array<i32>} : memref<64x72xf32, #tpu.memory_space<vmem>>, vector<64x8xf32>,
    %229 = vector.extract_strided_slice %225 {offsets = [0, 8, 0], sizes = [8, 8, 8], strides = [1, 1, 1]} : vector<8x24x8xf32> to vector<8x8x8xf32>
    %230 = vector.shape_cast %229 : vector<8x8x8xf32> to vector<64x8xf32>
    %c0_107 = arith.constant 0 : index
    %c8_108 = arith.constant 8 : index
    %231 = vector.load %arg19[%c0_107, %c8_108] : memref<64x72xf32, #tpu.memory_space<vmem>>, vector<64x8xf32>
    tpu.vector_store %arg19[%c0_107, %c8_108], %230 {strides = array<i32>} : memref<64x72xf32, #tpu.memory_space<vmem>>, vector<64x8xf32>,
    %232 = vector.extract_strided_slice %225 {offsets = [0, 9, 0], sizes = [8, 8, 8], strides = [1, 1, 1]} : vector<8x24x8xf32> to vector<8x8x8xf32>
    %233 = vector.shape_cast %232 : vector<8x8x8xf32> to vector<64x8xf32>
    %c0_109 = arith.constant 0 : index
    %c16_110 = arith.constant 16 : index
    %234 = vector.load %arg19[%c0_109, %c16_110] : memref<64x72xf32, #tpu.memory_space<vmem>>, vector<64x8xf32>
    tpu.vector_store %arg19[%c0_109, %c16_110], %233 {strides = array<i32>} : memref<64x72xf32, #tpu.memory_space<vmem>>, vector<64x8xf32>,
    %c1_111 = arith.constant 1 : index
    %c0_112 = arith.constant 0 : index
    %c0_113 = arith.constant 0 : index
    %235 = vector.load %arg18[%c1_111, %c0_112, %c0_113] : memref<10x24x8xf32, #tpu.memory_space<vmem>>, vector<8x24x8xf32>
    %236 = vector.extract_strided_slice %235 {offsets = [0, 7, 0], sizes = [8, 8, 8], strides = [1, 1, 1]} : vector<8x24x8xf32> to vector<8x8x8xf32>
    %237 = vector.shape_cast %236 : vector<8x8x8xf32> to vector<64x8xf32>
    %c0_114 = arith.constant 0 : index
    %c24_115 = arith.constant 24 : index
    %238 = vector.load %arg19[%c0_114, %c24_115] : memref<64x72xf32, #tpu.memory_space<vmem>>, vector<64x8xf32>
    tpu.vector_store %arg19[%c0_114, %c24_115], %237 {strides = array<i32>} : memref<64x72xf32, #tpu.memory_space<vmem>>, vector<64x8xf32>,
    %239 = vector.extract_strided_slice %235 {offsets = [0, 8, 0], sizes = [8, 8, 8], strides = [1, 1, 1]} : vector<8x24x8xf32> to vector<8x8x8xf32>
    %240 = vector.shape_cast %239 : vector<8x8x8xf32> to vector<64x8xf32>
    %c0_116 = arith.constant 0 : index
    %c32_117 = arith.constant 32 : index
    %241 = vector.load %arg19[%c0_116, %c32_117] : memref<64x72xf32, #tpu.memory_space<vmem>>, vector<64x8xf32>
    tpu.vector_store %arg19[%c0_116, %c32_117], %240 {strides = array<i32>} : memref<64x72xf32, #tpu.memory_space<vmem>>, vector<64x8xf32>,
    %242 = vector.extract_strided_slice %235 {offsets = [0, 9, 0], sizes = [8, 8, 8], strides = [1, 1, 1]} : vector<8x24x8xf32> to vector<8x8x8xf32>
    %243 = vector.shape_cast %242 : vector<8x8x8xf32> to vector<64x8xf32>
    %c0_118 = arith.constant 0 : index
    %c40_119 = arith.constant 40 : index
    %244 = vector.load %arg19[%c0_118, %c40_119] : memref<64x72xf32, #tpu.memory_space<vmem>>, vector<64x8xf32>
    tpu.vector_store %arg19[%c0_118, %c40_119], %243 {strides = array<i32>} : memref<64x72xf32, #tpu.memory_space<vmem>>, vector<64x8xf32>,
    %c2_120 = arith.constant 2 : index
    %c0_121 = arith.constant 0 : index
    %c0_122 = arith.constant 0 : index
    %245 = vector.load %arg18[%c2_120, %c0_121, %c0_122] : memref<10x24x8xf32, #tpu.memory_space<vmem>>, vector<8x24x8xf32>
    %246 = vector.extract_strided_slice %245 {offsets = [0, 7, 0], sizes = [8, 8, 8], strides = [1, 1, 1]} : vector<8x24x8xf32> to vector<8x8x8xf32>
    %247 = vector.shape_cast %246 : vector<8x8x8xf32> to vector<64x8xf32>
    %c0_123 = arith.constant 0 : index
    %c48_124 = arith.constant 48 : index
    %248 = vector.load %arg19[%c0_123, %c48_124] : memref<64x72xf32, #tpu.memory_space<vmem>>, vector<64x8xf32>
    tpu.vector_store %arg19[%c0_123, %c48_124], %247 {strides = array<i32>} : memref<64x72xf32, #tpu.memory_space<vmem>>, vector<64x8xf32>,
    %249 = vector.extract_strided_slice %245 {offsets = [0, 8, 0], sizes = [8, 8, 8], strides = [1, 1, 1]} : vector<8x24x8xf32> to vector<8x8x8xf32>
    %250 = vector.shape_cast %249 : vector<8x8x8xf32> to vector<64x8xf32>
    %c0_125 = arith.constant 0 : index
    %c56_126 = arith.constant 56 : index
    %251 = vector.load %arg19[%c0_125, %c56_126] : memref<64x72xf32, #tpu.memory_space<vmem>>, vector<64x8xf32>
    tpu.vector_store %arg19[%c0_125, %c56_126], %250 {strides = array<i32>} : memref<64x72xf32, #tpu.memory_space<vmem>>, vector<64x8xf32>,
    %252 = vector.extract_strided_slice %245 {offsets = [0, 9, 0], sizes = [8, 8, 8], strides = [1, 1, 1]} : vector<8x24x8xf32> to vector<8x8x8xf32>
    %253 = vector.shape_cast %252 : vector<8x8x8xf32> to vector<64x8xf32>
    %c0_127 = arith.constant 0 : index
    %c64_128 = arith.constant 64 : index
    %254 = vector.load %arg19[%c0_127, %c64_128] : memref<64x72xf32, #tpu.memory_space<vmem>>, vector<64x8xf32>
    tpu.vector_store %arg19[%c0_127, %c64_128], %253 {strides = array<i32>} : memref<64x72xf32, #tpu.memory_space<vmem>>, vector<64x8xf32>,
    %c0_129 = arith.constant 0 : index
    %c0_130 = arith.constant 0 : index
    %255 = vector.load %arg19[%c0_129, %c0_130] : memref<64x72xf32, #tpu.memory_space<vmem>>, vector<64x72xf32>
    %256 = arith.truncf %255 : vector<64x72xf32> to vector<64x72xbf16>
    %c0_131 = arith.constant 0 : index
    %c0_132 = arith.constant 0 : index
    %257 = vector.load %arg6[%c0_131, %c0_132] : memref<72x16xbf16, #tpu.memory_space<vmem>>, vector<72x16xbf16>
    %cst_133 = arith.constant dense<0.000000e+00> : vector<64x16xf32>
    %258 = tpu.matmul %256, %257, %cst_133 {dimension_numbers = #tpu.dot_dimension_numbers<[1], [0], [0], [1], [0, 0, 1, 1], [], []>} : vector<64x72xbf16>, vector<72x16xbf16>, vector<64x16xf32> -> vector<64x16xf32>
    %c0_134 = arith.constant 0 : index
    %c0_135 = arith.constant 0 : index
    %259 = vector.load %arg7[%c0_134, %c0_135] : memref<1x16xf32, #tpu.memory_space<vmem>>, vector<1x16xf32>
    %260 = vector.broadcast %259 : vector<1x16xf32> to vector<64x16xf32>
    %261 = arith.addf %258, %260 : vector<64x16xf32>
    %cst_136 = arith.constant 0.000000e+00 : f32
    %262 = vector.broadcast %cst_136 : f32 to vector<64x16xf32>
    %263 = arith.maximumf %261, %262 : vector<64x16xf32>
    %264 = vector.shape_cast %263 : vector<64x16xf32> to vector<8x8x16xf32>
    %cst_137 = arith.constant 0.000000e+00 : f32
    %265 = vector.broadcast %cst_137 : f32 to vector<10x24x16xf32>
    %c0_138 = arith.constant 0 : index
    %c0_139 = arith.constant 0 : index
    %c0_140 = arith.constant 0 : index
    %266 = vector.load %arg20[%c0_138, %c0_139, %c0_140] : memref<10x24x16xf32, #tpu.memory_space<vmem>>, vector<10x24x16xf32>
    tpu.vector_store %arg20[%c0_138, %c0_139, %c0_140], %265 {strides = array<i32>} : memref<10x24x16xf32, #tpu.memory_space<vmem>>, vector<10x24x16xf32>,
    %c1_141 = arith.constant 1 : index
    %c8_142 = arith.constant 8 : index
    %c0_143 = arith.constant 0 : index
    %267 = vector.load %arg20[%c1_141, %c8_142, %c0_143] : memref<10x24x16xf32, #tpu.memory_space<vmem>>, vector<8x8x16xf32>
    tpu.vector_store %arg20[%c1_141, %c8_142, %c0_143], %264 {strides = array<i32>} : memref<10x24x16xf32, #tpu.memory_space<vmem>>, vector<8x8x16xf32>,
    %c0_144 = arith.constant 0 : index
    %c0_145 = arith.constant 0 : index
    %c0_146 = arith.constant 0 : index
    %268 = vector.load %arg20[%c0_144, %c0_145, %c0_146] : memref<10x24x16xf32, #tpu.memory_space<vmem>>, vector<8x24x16xf32>
    %269 = vector.extract_strided_slice %268 {offsets = [0, 7, 0], sizes = [8, 8, 16], strides = [1, 1, 1]} : vector<8x24x16xf32> to vector<8x8x16xf32>
    %270 = vector.shape_cast %269 : vector<8x8x16xf32> to vector<64x16xf32>
    %c0_147 = arith.constant 0 : index
    %c0_148 = arith.constant 0 : index
    %271 = vector.load %arg21[%c0_147, %c0_148] : memref<64x144xf32, #tpu.memory_space<vmem>>, vector<64x16xf32>
    tpu.vector_store %arg21[%c0_147, %c0_148], %270 {strides = array<i32>} : memref<64x144xf32, #tpu.memory_space<vmem>>, vector<64x16xf32>,
    %272 = vector.extract_strided_slice %268 {offsets = [0, 8, 0], sizes = [8, 8, 16], strides = [1, 1, 1]} : vector<8x24x16xf32> to vector<8x8x16xf32>
    %273 = vector.shape_cast %272 : vector<8x8x16xf32> to vector<64x16xf32>
    %c0_149 = arith.constant 0 : index
    %c16_150 = arith.constant 16 : index
    %274 = vector.load %arg21[%c0_149, %c16_150] : memref<64x144xf32, #tpu.memory_space<vmem>>, vector<64x16xf32>
    tpu.vector_store %arg21[%c0_149, %c16_150], %273 {strides = array<i32>} : memref<64x144xf32, #tpu.memory_space<vmem>>, vector<64x16xf32>,
    %275 = vector.extract_strided_slice %268 {offsets = [0, 9, 0], sizes = [8, 8, 16], strides = [1, 1, 1]} : vector<8x24x16xf32> to vector<8x8x16xf32>
    %276 = vector.shape_cast %275 : vector<8x8x16xf32> to vector<64x16xf32>
    %c0_151 = arith.constant 0 : index
    %c32_152 = arith.constant 32 : index
    %277 = vector.load %arg21[%c0_151, %c32_152] : memref<64x144xf32, #tpu.memory_space<vmem>>, vector<64x16xf32>
    tpu.vector_store %arg21[%c0_151, %c32_152], %276 {strides = array<i32>} : memref<64x144xf32, #tpu.memory_space<vmem>>, vector<64x16xf32>,
    %c1_153 = arith.constant 1 : index
    %c0_154 = arith.constant 0 : index
    %c0_155 = arith.constant 0 : index
    %278 = vector.load %arg20[%c1_153, %c0_154, %c0_155] : memref<10x24x16xf32, #tpu.memory_space<vmem>>, vector<8x24x16xf32>
    %279 = vector.extract_strided_slice %278 {offsets = [0, 7, 0], sizes = [8, 8, 16], strides = [1, 1, 1]} : vector<8x24x16xf32> to vector<8x8x16xf32>
    %280 = vector.shape_cast %279 : vector<8x8x16xf32> to vector<64x16xf32>
    %c0_156 = arith.constant 0 : index
    %c48_157 = arith.constant 48 : index
    %281 = vector.load %arg21[%c0_156, %c48_157] : memref<64x144xf32, #tpu.memory_space<vmem>>, vector<64x16xf32>
    tpu.vector_store %arg21[%c0_156, %c48_157], %280 {strides = array<i32>} : memref<64x144xf32, #tpu.memory_space<vmem>>, vector<64x16xf32>,
    %282 = vector.extract_strided_slice %278 {offsets = [0, 8, 0], sizes = [8, 8, 16], strides = [1, 1, 1]} : vector<8x24x16xf32> to vector<8x8x16xf32>
    %283 = vector.shape_cast %282 : vector<8x8x16xf32> to vector<64x16xf32>
    %c0_158 = arith.constant 0 : index
    %c64_159 = arith.constant 64 : index
    %284 = vector.load %arg21[%c0_158, %c64_159] : memref<64x144xf32, #tpu.memory_space<vmem>>, vector<64x16xf32>
    tpu.vector_store %arg21[%c0_158, %c64_159], %283 {strides = array<i32>} : memref<64x144xf32, #tpu.memory_space<vmem>>, vector<64x16xf32>,
    %285 = vector.extract_strided_slice %278 {offsets = [0, 9, 0], sizes = [8, 8, 16], strides = [1, 1, 1]} : vector<8x24x16xf32> to vector<8x8x16xf32>
    %286 = vector.shape_cast %285 : vector<8x8x16xf32> to vector<64x16xf32>
    %c0_160 = arith.constant 0 : index
    %c80 = arith.constant 80 : index
    %287 = vector.load %arg21[%c0_160, %c80] : memref<64x144xf32, #tpu.memory_space<vmem>>, vector<64x16xf32>
    tpu.vector_store %arg21[%c0_160, %c80], %286 {strides = array<i32>} : memref<64x144xf32, #tpu.memory_space<vmem>>, vector<64x16xf32>,
    %c2_161 = arith.constant 2 : index
    %c0_162 = arith.constant 0 : index
    %c0_163 = arith.constant 0 : index
    %288 = vector.load %arg20[%c2_161, %c0_162, %c0_163] : memref<10x24x16xf32, #tpu.memory_space<vmem>>, vector<8x24x16xf32>
    %289 = vector.extract_strided_slice %288 {offsets = [0, 7, 0], sizes = [8, 8, 16], strides = [1, 1, 1]} : vector<8x24x16xf32> to vector<8x8x16xf32>
    %290 = vector.shape_cast %289 : vector<8x8x16xf32> to vector<64x16xf32>
    %c0_164 = arith.constant 0 : index
    %c96 = arith.constant 96 : index
    %291 = vector.load %arg21[%c0_164, %c96] : memref<64x144xf32, #tpu.memory_space<vmem>>, vector<64x16xf32>
    tpu.vector_store %arg21[%c0_164, %c96], %290 {strides = array<i32>} : memref<64x144xf32, #tpu.memory_space<vmem>>, vector<64x16xf32>,
    %292 = vector.extract_strided_slice %288 {offsets = [0, 8, 0], sizes = [8, 8, 16], strides = [1, 1, 1]} : vector<8x24x16xf32> to vector<8x8x16xf32>
    %293 = vector.shape_cast %292 : vector<8x8x16xf32> to vector<64x16xf32>
    %c0_165 = arith.constant 0 : index
    %c112 = arith.constant 112 : index
    %294 = vector.load %arg21[%c0_165, %c112] : memref<64x144xf32, #tpu.memory_space<vmem>>, vector<64x16xf32>
    tpu.vector_store %arg21[%c0_165, %c112], %293 {strides = array<i32>} : memref<64x144xf32, #tpu.memory_space<vmem>>, vector<64x16xf32>,
    %295 = vector.extract_strided_slice %288 {offsets = [0, 9, 0], sizes = [8, 8, 16], strides = [1, 1, 1]} : vector<8x24x16xf32> to vector<8x8x16xf32>
    %296 = vector.shape_cast %295 : vector<8x8x16xf32> to vector<64x16xf32>
    %c0_166 = arith.constant 0 : index
    %c128 = arith.constant 128 : index
    %297 = vector.load %arg21[%c0_166, %c128] : memref<64x144xf32, #tpu.memory_space<vmem>>, vector<64x16xf32>
    tpu.vector_store %arg21[%c0_166, %c128], %296 {strides = array<i32>} : memref<64x144xf32, #tpu.memory_space<vmem>>, vector<64x16xf32>,
    %c0_167 = arith.constant 0 : index
    %c0_168 = arith.constant 0 : index
    %298 = vector.load %arg21[%c0_167, %c0_168] : memref<64x144xf32, #tpu.memory_space<vmem>>, vector<64x144xf32>
    %299 = arith.truncf %298 : vector<64x144xf32> to vector<64x144xbf16>
    %c0_169 = arith.constant 0 : index
    %c0_170 = arith.constant 0 : index
    %300 = vector.load %arg8[%c0_169, %c0_170] : memref<144x16xbf16, #tpu.memory_space<vmem>>, vector<144x16xbf16>
    %cst_171 = arith.constant dense<0.000000e+00> : vector<64x16xf32>
    %301 = tpu.matmul %299, %300, %cst_171 {dimension_numbers = #tpu.dot_dimension_numbers<[1], [0], [0], [1], [0, 0, 1, 1], [], []>} : vector<64x144xbf16>, vector<144x16xbf16>, vector<64x16xf32> -> vector<64x16xf32>
    %c0_172 = arith.constant 0 : index
    %c0_173 = arith.constant 0 : index
    %302 = vector.load %arg9[%c0_172, %c0_173] : memref<1x16xf32, #tpu.memory_space<vmem>>, vector<1x16xf32>
    %303 = vector.broadcast %302 : vector<1x16xf32> to vector<64x16xf32>
    %304 = arith.addf %301, %303 : vector<64x16xf32>
    %cst_174 = arith.constant 0.000000e+00 : f32
    %305 = vector.broadcast %cst_174 : f32 to vector<64x16xf32>
    %306 = arith.maximumf %304, %305 : vector<64x16xf32>
    %307 = vector.shape_cast %306 : vector<64x16xf32> to vector<8x8x16xf32>
    %308 = vector.shape_cast %307 : vector<8x8x16xf32> to vector<64x16xf32>
    %cst_175 = arith.constant dense<0.000000e+00> : vector<16xf32>
    %309 = vector.multi_reduction <add>, %308, %cst_175 [0] : vector<64x16xf32> to vector<16xf32>
    %310 = vector.shape_cast %309 : vector<16xf32> to vector<1x16xf32>
    %cst_176 = arith.constant 6.400000e+01 : f32
    %311 = vector.broadcast %cst_176 : f32 to vector<1x16xf32>
    %312 = arith.divf %310, %311 : vector<1x16xf32>
    %c0_177 = arith.constant 0 : index
    %c0_178 = arith.constant 0 : index
    %313 = vector.load %arg10[%c0_177, %c0_178] : memref<16x12xf32, #tpu.memory_space<vmem>>, vector<16x12xf32>
    %cst_179 = arith.constant dense<0.000000e+00> : vector<1x12xf32>
    %314 = tpu.matmul %312, %313, %cst_179 {dimension_numbers = #tpu.dot_dimension_numbers<[1], [0], [0], [1], [0, 0, 1, 1], [], []>} : vector<1x16xf32>, vector<16x12xf32>, vector<1x12xf32> -> vector<1x12xf32>
    %c0_180 = arith.constant 0 : index
    %c0_181 = arith.constant 0 : index
    %315 = vector.load %arg11[%c0_180, %c0_181] : memref<1x12xf32, #tpu.memory_space<vmem>>, vector<1x12xf32>
    %316 = arith.addf %314, %315 : vector<1x12xf32>
    %317 = tpu.iota {dimensions = array<i32: 1>} : vector<1x12xi32>
    %c6_i32_182 = arith.constant 6 : i32
    %318 = vector.broadcast %c6_i32_182 : i32 to vector<1x12xi32>
    %319 = arith.cmpi slt, %317, %318 : vector<1x12xi32>
    %320 = math.exp %316 : vector<1x12xf32>
    %321 = arith.select %319, %316, %320 : vector<1x12xi1>, vector<1x12xf32>
    %c0_183 = arith.constant 0 : index
    %c0_184 = arith.constant 0 : index
    %c0_185 = arith.constant 0 : index
    %322 = vector.load %arg12[%c0_183, %c0_184, %c0_185] : memref<1x1x12xf32, #tpu.memory_space<vmem>>, vector<1x1x12xf32>
    %323 = vector.shape_cast %322 : vector<1x1x12xf32> to vector<1x12xf32>
    %324 = vector.shape_cast %321 : vector<1x12xf32> to vector<1x1x12xf32>
    tpu.vector_store %arg12[%c0_183, %c0_184, %c0_185], %324 {strides = array<i32>} : memref<1x1x12xf32, #tpu.memory_space<vmem>>, vector<1x1x12xf32>,
    return
  }
  func.func @transform_0(%arg0: i32) -> (i32, i32, i32, i32) {
    %c0_i32 = arith.constant 0 : i32
    %c0_i32_0 = arith.constant 0 : i32
    %c0_i32_1 = arith.constant 0 : i32
    %c0_i32_2 = arith.constant 0 : i32
    return %arg0, %c0_i32, %c0_i32_0, %c0_i32_1 : i32, i32, i32, i32
  }
  func.func @transform_1(%arg0: i32) -> (i32, i32) {
    %c0_i32 = arith.constant 0 : i32
    %c0_i32_0 = arith.constant 0 : i32
    %c0_i32_1 = arith.constant 0 : i32
    return %c0_i32, %c0_i32_0 : i32, i32
  }
  func.func @transform_2(%arg0: i32) -> (i32, i32) {
    %c0_i32 = arith.constant 0 : i32
    %c0_i32_0 = arith.constant 0 : i32
    %c0_i32_1 = arith.constant 0 : i32
    return %c0_i32, %c0_i32_0 : i32, i32
  }
  func.func @transform_3(%arg0: i32) -> (i32, i32) {
    %c0_i32 = arith.constant 0 : i32
    %c0_i32_0 = arith.constant 0 : i32
    %c0_i32_1 = arith.constant 0 : i32
    return %c0_i32, %c0_i32_0 : i32, i32
  }
  func.func @transform_4(%arg0: i32) -> (i32, i32) {
    %c0_i32 = arith.constant 0 : i32
    %c0_i32_0 = arith.constant 0 : i32
    %c0_i32_1 = arith.constant 0 : i32
    return %c0_i32, %c0_i32_0 : i32, i32
  }
  func.func @transform_5(%arg0: i32) -> (i32, i32) {
    %c0_i32 = arith.constant 0 : i32
    %c0_i32_0 = arith.constant 0 : i32
    %c0_i32_1 = arith.constant 0 : i32
    return %c0_i32, %c0_i32_0 : i32, i32
  }
  func.func @transform_6(%arg0: i32) -> (i32, i32) {
    %c0_i32 = arith.constant 0 : i32
    %c0_i32_0 = arith.constant 0 : i32
    %c0_i32_1 = arith.constant 0 : i32
    return %c0_i32, %c0_i32_0 : i32, i32
  }
  func.func @transform_7(%arg0: i32) -> (i32, i32) {
    %c0_i32 = arith.constant 0 : i32
    %c0_i32_0 = arith.constant 0 : i32
    %c0_i32_1 = arith.constant 0 : i32
    return %c0_i32, %c0_i32_0 : i32, i32
  }
  func.func @transform_8(%arg0: i32) -> (i32, i32) {
    %c0_i32 = arith.constant 0 : i32
    %c0_i32_0 = arith.constant 0 : i32
    %c0_i32_1 = arith.constant 0 : i32
    return %c0_i32, %c0_i32_0 : i32, i32
  }
  func.func @transform_9(%arg0: i32) -> (i32, i32) {
    %c0_i32 = arith.constant 0 : i32
    %c0_i32_0 = arith.constant 0 : i32
    %c0_i32_1 = arith.constant 0 : i32
    return %c0_i32, %c0_i32_0 : i32, i32
  }
  func.func @transform_10(%arg0: i32) -> (i32, i32) {
    %c0_i32 = arith.constant 0 : i32
    %c0_i32_0 = arith.constant 0 : i32
    %c0_i32_1 = arith.constant 0 : i32
    return %c0_i32, %c0_i32_0 : i32, i32
  }
  func.func @transform_11(%arg0: i32) -> (i32, i32, i32) {
    %c0_i32 = arith.constant 0 : i32
    %c0_i32_0 = arith.constant 0 : i32
    %c0_i32_1 = arith.constant 0 : i32
    return %arg0, %c0_i32, %c0_i32_0 : i32, i32, i32
  }
}

</mosaic_0001>

<bundles_post_ra>
// kernel: _fused_forward.1
= control target key start
LH: loop header
LB: loop body
LE: loop exit
PB: predicated region body
PF: predicated region fallthrough
CT: control target
= control target key end

     0   :  { %s8123_s17 = smov 0   ;;  %s12119_s0 = inlined_call_operand.vmem [shape: f32[2,16,16,4], index: 0, kind: input, shape index: {}]   ;;  %s12120_s1 = inlined_call_operand.vmem [shape: bf16[36,8], index: 1, kind: input, shape index: {}]   ;;  %s12121_s2 = inlined_call_operand.vmem [shape: f32[1,8], index: 2, kind: input, shape index: {}]   ;;  %s12122_s3 = inlined_call_operand.vmem [shape: bf16[72,8], index: 3, kind: input, shape index: {}]   ;;  %s12123_s4 = inlined_call_operand.vmem [shape: f32[1,8], index: 4, kind: input, shape index: {}]   ;;  %s12124_s5 = inlined_call_operand.vmem [shape: bf16[72,16], index: 5, kind: input, shape index: {}]   ;;  %s12125_s6 = inlined_call_operand.vmem [shape: f32[1,16], index: 6, kind: input, shape index: {}]   ;;  %s12126_s7 = inlined_call_operand.vmem [shape: bf16[144,16], index: 7, kind: input, shape index: {}]   ;;  %s12127_s8 = inlined_call_operand.vmem [shape: f32[1,16], index: 8, kind: input, shape index: {}]   ;;  %s12128_s9 = inlined_call_operand.vmem [shape: f32[16,12], index: 9, kind: input, shape index: {}]   ;;  %s12129_s10 = inlined_call_operand.vmem [shape: f32[1,12], index: 10, kind: input, shape index: {}]   ;;  %s12130_s11 = inlined_call_operand.vmem [shape: f32[2,1,12], index: 11, kind: output, shape index: {}]  }
   0x1 LB: > { %s7725_s18 = sadd.s32 4294967295, %s8041_s17   ;;  %p7729_p0 = scmp.ge.s32.totalorder %s8041_s17, 1  ;;  %s8041_s17 = sphi %s8123_s17, %s21_s17  }
   0x2   : > { %p337_p1 = scmp.lt.s32.totalorder %s8041_s17, 3 }
   0x4   : > { %p338_p2 = pnand %p7729_p0, %p337_p1 }
   0x5   : > { %p375_p3 = scmp.lt.s32.totalorder (!%p338_p2), %s7725_s18, 1  ;;  %s8044_s23 = smov (!%p338_p2), 4  }
   0x6   : > { %341 = sbr.rel (%p338_p2) target bundleno = 2580 (0xa14), region = 64  ;;  %s8045_s24 = smov (!%p338_p2), 8  }
   0x7   : > { %s8046_s25 = smov (!%p338_p2), 12   ;;  %s8047_s26 = smov (!%p338_p2), 16  }
   0x8   : > { %s8048_s27 = smov (!%p338_p2), 20   ;;  %s8049_s28 = smov (!%p338_p2), 24  }
   0x9   : > { %s8050_s29 = smov (!%p338_p2), 28   ;;  %s8051_s15 = smov (!%p338_p2), 32  }
   0xa   : > { %s8054_s12 = smov (!%p338_p2), 56   ;;  %s8055_s20 = smov (!%p338_p2), 64  }
   0xb   : > { %vm416_vm0 = vcmask 31744   ;;  %v8043_v0 = vmov 0.0   ;;  %s12192_s18 = smov (!%p375_p3, %s7725_s18), 1  ;;  %vm12135_vm1 = vcmask 1046528   ;;  %vm634_vm2 = vcmask 1040384   ;;  %s8061_s30 = smov 96  }
   0xc   : > { %418 = vst.msk [vmem:[#allocation2 + $0x8] sm:$0xff] %vm416_vm0, %v8043_v0  ;;  %417 = vst.msk [vmem:[#allocation2] sm:$0xff] %vm416_vm0, %v8043_v0  ;;  %s7801_s19 = sshll.u32 %s12192_s18, 8  ;;  %vm2609_vm3 = vcmask 1041408   ;;  %vm875_vm4 = vcmask 64544   ;;  %vm1101_vm5 = vcmask 97344  }
   0xd   : > { %419 = vst.msk [vmem:[#allocation2 + $0x10] sm:$0xff] %vm416_vm0, %v8043_v0  ;;  %420 = vst.msk [vmem:[#allocation2 + $0x18] sm:$0xff] %vm416_vm0, %v8043_v0  ;;  %s8285_s22 = scalar_lea.vmem %s12119_s0, %s7801_s19  ;;  %vm1422_vm6 = vcmask 130144   ;;  %vm1551_vm7 = vcmask 162944   ;;  %vm1776_vm8 = vcmask 195744   ;;  %vm2098_vm9 = vcmask 228544  }
   0xe   : > { %421 = vst.msk [vmem:[#allocation2 + $0x20] sm:$0xff] %vm416_vm0, %v8043_v0  ;;  %422 = vst.msk [vmem:[#allocation2 + $0x28] sm:$0xff] %vm416_vm0, %v8043_v0  ;;  %v384_v1 = vld [vmem:[%s8285_s22] sm:$0xff]  ;;  %v385_v2 = vld [vmem:[%s8285_s22 + $0x8] sm:$0xff]  ;;  %vm2227_vm10 = vcmask 261344   ;;  %vm2452_vm11 = vcmask 294144  }
   0xf   : > { %423 = vst.msk [vmem:[#allocation2 + $0x30] sm:$0xff] %vm416_vm0, %v8043_v0  ;;  %424 = vst.msk [vmem:[#allocation2 + $0x38] sm:$0xff] %vm416_vm0, %v8043_v0  ;;  %v386_v3 = vld [vmem:[%s8285_s22 + $0x10] sm:$0xff]  ;;  %v387_v11 = vld [vmem:[%s8285_s22 + $0x18] sm:$0xff]  ;;  %vm2560_vm12 = vcmask 293888   ;;  %vm2806_vm13 = vcmask 64512  }
  0x10   : > { %425 = vst.msk [vmem:[#allocation2 + $0x40] sm:$0xff] %vm416_vm0, %v8043_v0  ;;  %426 = vst.msk [vmem:[#allocation2 + $0x48] sm:$0xff] %vm416_vm0, %v8043_v0  ;;  %v388_v15 = vld [vmem:[%s8285_s22 + $0x20] sm:$0xff]  ;;  %v389_v16 = vld [vmem:[%s8285_s22 + $0x28] sm:$0xff]  ;;  %vm12134_vm14 = vcmask 1043456   ;;  %vm12133_vm15 = vcmask 130112  }
  0x11   : > { %427 = vst.msk [vmem:[#allocation2 + $0x50] sm:$0xff] %vm416_vm0, %v8043_v0  ;;  %428 = vst.msk [vmem:[#allocation2 + $0x58] sm:$0xff] %vm416_vm0, %v8043_v0  ;;  %v390_v18 = vld [vmem:[%s8285_s22 + $0x30] sm:$0xff]  ;;  %v391_v21 = vld [vmem:[%s8285_s22 + $0x38] sm:$0xff] }
  0x12   : > { %429 = vst.msk [vmem:[#allocation2 + $0x60] sm:$0xff] %vm416_vm0, %v8043_v0  ;;  %430 = vst.msk [vmem:[#allocation2 + $0x68] sm:$0xff] %vm416_vm0, %v8043_v0  ;;  %v392_v22 = vld [vmem:[%s8285_s22 + $0x40] sm:$0xff]  ;;  %v393_v26 = vld [vmem:[%s8285_s22 + $0x48] sm:$0xff] }
  0x13   : > { %431 = vst.msk [vmem:[#allocation2 + $0x70] sm:$0xff] %vm416_vm0, %v8043_v0  ;;  %432 = vst.msk [vmem:[#allocation2 + $0x78] sm:$0xff] %vm416_vm0, %v8043_v0  ;;  %v523_v4 = vld [vmem:[#allocation2 + $0x8] sm:$0xff]  ;;  %v522_v27 = vld [vmem:[#allocation2] sm:$0xff] }
  0x14   : > { %433 = vst.msk [vmem:[#allocation2 + $0x80] sm:$0xff] %vm416_vm0, %v8043_v0  ;;  %434 = vst.msk [vmem:[#allocation2 + $0x88] sm:$0xff] %vm416_vm0, %v8043_v0  ;;  %v524_v5 = vld [vmem:[#allocation2 + $0x10] sm:$0xff]  ;;  %v525_v6 = vld [vmem:[#allocation2 + $0x18] sm:$0xff]  ;;  %779 = vrot.lane.b32.xlu0 %v523_v4, %s8044_s23  ;;  %v636_v7 = vrot.slane %v523_v4, 7  ;;  %v925_v10 = vrot.slane %v523_v4, 1 }
  0x15   : > { %435 = vst.msk [vmem:[#allocation2 + $0x90] sm:$0xff] %vm416_vm0, %v8043_v0  ;;  %436 = vst.msk [vmem:[#allocation2 + $0x98] sm:$0xff] %vm416_vm0, %v8043_v0  ;;  %v926_v8 = vrot.slane %v524_v5, 1  ;;  %v928_v9 = vrot.slane %v525_v6, 1  ;;  %v638_v12 = vrot.slane %v524_v5, 7  ;;  %v1134_v14 = vld [vmem:[#allocation2 + $0x20] sm:$0xff] }
  0x16   : > { %437 = vst.msk [vmem:[#allocation2 + $0xa0] sm:$0xff] %vm416_vm0, %v8043_v0  ;;  %438 = vst.msk [vmem:[#allocation2 + $0xa8] sm:$0xff] %vm416_vm0, %v8043_v0  ;;  %v529_v20 = vld [vmem:[#allocation2 + $0x38] sm:$0xff]  ;;  %v1246_v24 = vrot.slane %v1134_v14, 7  ;;  %v635_v32 = vrot.slane %v522_v27, 7  ;;  %v394_v42 = vld [vmem:[%s8285_s22 + $0x50] sm:$0xff] }
  0x17   : > { %439 = vst.msk [vmem:[#allocation2 + $0xb0] sm:$0xff] %vm416_vm0, %v8043_v0  ;;  %440 = vst.msk [vmem:[#allocation2 + $0xb8] sm:$0xff] %vm416_vm0, %v8043_v0  ;;  %v929_v13 = vsel %vm12135_vm1, %v926_v8, %v928_v9  ;;  %v1138_v17 = vld [vmem:[#allocation2 + $0x40] sm:$0xff]  ;;  %v639_v19 = vsel %vm634_vm2, %v636_v7, %v638_v12  ;;  %v927_v23 = vsel %vm12135_vm1, %v925_v10, %v926_v8  ;;  %v933_v36 = vrot.slane %v529_v20, 1  ;;  %v395_v56 = vld [vmem:[%s8285_s22 + $0x58] sm:$0xff] }
  0x18   : > { %441 = vst.msk [vmem:[#allocation2 + $0xc0] sm:$0xff] %vm416_vm0, %v8043_v0  ;;  %442 = vst.msk [vmem:[#allocation2 + $0xc8] sm:$0xff] %vm416_vm0, %v8043_v0  ;;  %1007 = vrot.lane.b32.xlu1 %v929_v13, %s8045_s24  ;;  %781 = vrot.lane.b32.xlu0 %v524_v5, %s8044_s23  ;;  %v1251_v31 = vrot.slane %v1138_v17, 7  ;;  %v637_v41 = vsel %vm634_vm2, %v635_v32, %v636_v7  ;;  %v1141_v20 = vld [vmem:[#allocation2 + $0x58] sm:$0xff] }
  0x19   : > { %443 = vst.msk [vmem:[#allocation2 + $0xd0] sm:$0xff] %vm416_vm0, %v8043_v0  ;;  %444 = vst.msk [vmem:[#allocation2 + $0xd8] sm:$0xff] %vm416_vm0, %v8043_v0  ;;  %v1814_v25 = vld [vmem:[#allocation2 + $0x60] sm:$0xff] }
  0x1a   : > { %445 = vst.msk [vmem:[#allocation2 + $0xe0] sm:$0xff] %vm416_vm0, %v8043_v0  ;;  %446 = vst.msk [vmem:[#allocation2 + $0xe8] sm:$0xff] %vm416_vm0, %v8043_v0  ;;  %v1927_v46 = vrot.slane %v1814_v25, 7 }
  0x1b   : > { %447 = vst.msk [vmem:[#allocation2 + $0xf0] sm:$0xff] %vm416_vm0, %v8043_v0  ;;  %448 = vst.msk [vmem:[#allocation2 + $0xf8] sm:$0xff] %vm416_vm0, %v8043_v0  ;;  %v1146_v37 = vld [vmem:[#allocation2 + $0x80] sm:$0xff] }
  0x1c   : > { %449 = vst.msk [vmem:[#allocation2 + $0x100] sm:$0xff] %vm416_vm0, %v8043_v0  ;;  %450 = vst.msk [vmem:[#allocation2 + $0x108] sm:$0xff] %vm416_vm0, %v8043_v0  ;;  %1005 = vrot.lane.b32.xlu0 %v927_v23, %s8045_s24  ;;  %v1261_v51 = vrot.slane %v1146_v37, 7  ;;  %v7993_v37 = vld [vmem:[%s12120_s1 + $0x8] sm:$0xff]  }
  0x1d   : > { %451 = vst.msk [vmem:[#allocation2 + $0x110] sm:$0xff] %vm416_vm0, %v8043_v0  ;;  %452 = vst.msk [vmem:[#allocation2 + $0x118] sm:$0xff] %vm416_vm0, %v8043_v0  ;;  %v1822_v40 = vld [vmem:[#allocation2 + $0xa0] sm:$0xff] }
  0x1e   : > { %453 = vst.msk [vmem:[#allocation2 + $0x120] sm:$0xff] %vm416_vm0, %v8043_v0  ;;  %454 = vst.msk [vmem:[#allocation2 + $0x128] sm:$0xff] %vm416_vm0, %v8043_v0 }
  0x1f   : > { %455 = vst.msk [vmem:[#allocation2 + $0x130] sm:$0xff] %vm416_vm0, %v8043_v0  ;;  %456 = vst.msk [vmem:[#allocation2 + $0x138] sm:$0xff] %vm416_vm0, %v8043_v0  ;;  %v1154_v8 = vld [vmem:[#allocation2 + $0xc0] sm:$0xff] }
  0x20   : > { %457 = vst.msk [vmem:[#allocation2 + $0x140] sm:$0xff] %vm416_vm0, %v8043_v0  ;;  %458 = vst.msk [vmem:[#allocation2 + $0x148] sm:$0xff] %vm416_vm0, %v8043_v0  ;;  %v1271_v12 = vrot.slane %v1154_v8, 7 }
  0x21   : > { %459 = vst.msk [vmem:[#allocation2 + $0x150] sm:$0xff] %vm416_vm0, %v8043_v0  ;;  %460 = vst.msk [vmem:[#allocation2 + $0x158] sm:$0xff] %vm416_vm0, %v8043_v0 }
  0x22   : > { %461 = vst.msk [vmem:[#allocation2 + $0x160] sm:$0xff] %vm416_vm0, %v8043_v0  ;;  %462 = vst.msk [vmem:[#allocation2 + $0x168] sm:$0xff] %vm416_vm0, %v8043_v0 }
  0x23   : > { %463 = vst.msk [vmem:[#allocation2 + $0x170] sm:$0xff] %vm416_vm0, %v8043_v0  ;;  %464 = vst.msk [vmem:[#allocation2 + $0x178] sm:$0xff] %vm416_vm0, %v8043_v0 }
  0x24   : > { %465 = vst.msk [vmem:[#allocation2 + $0x180] sm:$0xff] %vm416_vm0, %v8043_v0  ;;  %466 = vst.msk [vmem:[#allocation2 + $0x188] sm:$0xff] %vm416_vm0, %v8043_v0 }
  0x25   : > { %467 = vst.msk [vmem:[#allocation2 + $0x190] sm:$0xff] %vm416_vm0, %v8043_v0  ;;  %468 = vst.msk [vmem:[#allocation2 + $0x198] sm:$0xff] %vm416_vm0, %v8043_v0 }
  0x26   : > { %469 = vst.msk [vmem:[#allocation2 + $0x1a0] sm:$0xff] %vm416_vm0, %v8043_v0  ;;  %470 = vst.msk [vmem:[#allocation2 + $0x1a8] sm:$0xff] %vm416_vm0, %v8043_v0 }
  0x27   : > { %471 = vst.msk [vmem:[#allocation2 + $0x1b0] sm:$0xff] %vm416_vm0, %v8043_v0  ;;  %472 = vst.msk [vmem:[#allocation2 + $0x1b8] sm:$0xff] %vm416_vm0, %v8043_v0 }
  0x28   : > { %473 = vst.msk [vmem:[#allocation2 + $0x1c0] sm:$0xff] %vm416_vm0, %v8043_v0  ;;  %474 = vst.msk [vmem:[#allocation2 + $0x1c8] sm:$0xff] %vm416_vm0, %v8043_v0 }
  0x29   : > { %475 = vst.msk [vmem:[#allocation2 + $0x1d0] sm:$0xff] %vm416_vm0, %v8043_v0  ;;  %476 = vst.msk [vmem:[#allocation2 + $0x1d8] sm:$0xff] %vm416_vm0, %v8043_v0 }
  0x2a   : > { %477 = vst.msk [vmem:[#allocation2 + $0x1e0] sm:$0xff] %vm416_vm0, %v8043_v0  ;;  %478 = vst.msk [vmem:[#allocation2 + $0x1e8] sm:$0xff] %vm416_vm0, %v8043_v0 }
  0x2b   : > { %479 = vst.msk [vmem:[#allocation2 + $0x1f0] sm:$0xff] %vm416_vm0, %v8043_v0  ;;  %480 = vst.msk [vmem:[#allocation2 + $0x1f8] sm:$0xff] %vm416_vm0, %v8043_v0 }
  0x2c   : > { %481 = vst.msk [vmem:[#allocation2 + $0x200] sm:$0xff] %vm416_vm0, %v8043_v0  ;;  %482 = vst.msk [vmem:[#allocation2 + $0x208] sm:$0xff] %vm416_vm0, %v8043_v0 }
  0x2d   : > { %483 = vst.msk [vmem:[#allocation2 + $0x210] sm:$0xff] %vm416_vm0, %v8043_v0  ;;  %484 = vst.msk [vmem:[#allocation2 + $0x218] sm:$0xff] %vm416_vm0, %v8043_v0 }
  0x2e   : > { %485 = vst.msk [vmem:[#allocation2 + $0x220] sm:$0xff] %vm416_vm0, %v8043_v0  ;;  %486 = vst.msk [vmem:[#allocation2 + $0x228] sm:$0xff] %vm416_vm0, %v8043_v0 }
  0x2f   : > { %487 = vst.msk [vmem:[#allocation2 + $0x230] sm:$0xff] %vm416_vm0, %v8043_v0  ;;  %488 = vst.msk [vmem:[#allocation2 + $0x238] sm:$0xff] %vm416_vm0, %v8043_v0 }
  0x30   : > { %490 = vst.msk [vmem:[#allocation2 + $0x28] sm:$0xff] %vm416_vm0, %v384_v1  ;;  %491 = vst.msk [vmem:[#allocation2 + $0x30] sm:$0xff] %vm416_vm0, %v385_v2  ;;  %v1937_v1 = vrot.slane %v1822_v40, 7  ;;  %v1817_v40 = vld [vmem:[#allocation2 + $0x78] sm:$0xff] }
  0x31   : > { %492 = vst.msk [vmem:[#allocation2 + $0x48] sm:$0xff] %vm416_vm0, %v386_v3  ;;  %493 = vst.msk [vmem:[#allocation2 + $0x50] sm:$0xff] %vm416_vm0, %v387_v11 }
  0x32   : > { %494 = vst.msk [vmem:[#allocation2 + $0x68] sm:$0xff] %vm416_vm0, %v388_v15  ;;  %495 = vst.msk [vmem:[#allocation2 + $0x70] sm:$0xff] %vm416_vm0, %v389_v16 }
  0x33   : > { %496 = vst.msk [vmem:[#allocation2 + $0x88] sm:$0xff] %vm416_vm0, %v390_v18  ;;  %748 = vst.msk [vmem:[#allocation3 + $0x8] sm:$0xff] %vm416_vm0, %v639_v19 }
  0x34   : > { %497 = vst.msk [vmem:[#allocation2 + $0x90] sm:$0xff] %vm416_vm0, %v391_v21  ;;  %498 = vst.msk [vmem:[#allocation2 + $0xa8] sm:$0xff] %vm416_vm0, %v392_v22  ;;  %v1608_v21 = vrot.slane %v1141_v20, 1  ;;  %v396_v22 = vld [vmem:[%s8285_s22 + $0x60] sm:$0xff] }
  0x35   : > { %499 = vst.msk [vmem:[#allocation2 + $0xb0] sm:$0xff] %vm416_vm0, %v393_v26  ;;  %747 = vst.msk [vmem:[#allocation3] sm:$0xff] %vm416_vm0, %v637_v41  ;;  %v1830_v26 = vld [vmem:[#allocation2 + $0xe0] sm:$0xff] }
  0x36   : > { %500 = vst.msk [vmem:[#allocation2 + $0xc8] sm:$0xff] %vm416_vm0, %v394_v42  ;;  %501 = vst.msk [vmem:[#allocation2 + $0xd0] sm:$0xff] %vm416_vm0, %v395_v56  ;;  %v7994_v41 = vld [vmem:[%s12120_s1] sm:$0xff]   ;;  %v2284_v42 = vrot.slane %v1817_v40, 1  ;;  %v403_v40 = vld [vmem:[%s8285_s22 + $0x98] sm:$0xff] }
  0x37   : > { %v8313_v28 = vld [vmem:[#allocation2 + $0x28] sm:$0xff]  ;;  %v8315_v29 = vld [vmem:[#allocation2 + $0x30] sm:$0xff]  ;;  %502 = vst.msk [vmem:[#allocation2 + $0xe8] sm:$0xff] %vm416_vm0, %v396_v22  ;;  %509 = vst.msk [vmem:[#allocation2 + $0x150] sm:$0xff] %vm416_vm0, %v403_v40 }
  0x38   : > { %v8317_v30 = vld [vmem:[#allocation2 + $0x48] sm:$0xff]  ;;  %783 = vrot.lane.b32.xlu1 %v8313_v28, %s8044_s23  ;;  %v641_v33 = vrot.slane %v8313_v28, 7  ;;  %v930_v34 = vrot.slane %v8313_v28, 1  ;;  %v931_v35 = vrot.slane %v8315_v29, 1  ;;  %v643_v38 = vrot.slane %v8315_v29, 7  ;;  %v8334_v45 = vld [vmem:[#allocation2 + $0x50] sm:$0xff] }
  0x39   : > { %v1252_v39 = vrot.slane %v8317_v30, 7  ;;  %v1254_v48 = vrot.slane %v8334_v45, 7  ;;  %v8342_v49 = vld [vmem:[#allocation2 + $0x68] sm:$0xff]  ;;  %v8344_v50 = vld [vmem:[#allocation2 + $0x70] sm:$0xff]  ;;  %v1605_v18 = vrot.slane %v8317_v30, 1  ;;  %v1606_v19 = vrot.slane %v8334_v45, 1 }
  0x3a   : > { %v8331_v43 = vsel %vm12135_vm1, %v930_v34, %v931_v35  ;;  %v1248_v44 = vsel %vm634_vm2, %v1246_v24, %v641_v33  ;;  %v644_v52 = vsel %vm634_vm2, %v641_v33, %v643_v38  ;;  %v1928_v53 = vrot.slane %v8342_v49, 7  ;;  %v8352_v55 = vld [vmem:[#allocation2 + $0x88] sm:$0xff]  ;;  %v406_v40 = vld [vmem:[%s8285_s22 + $0xb0] sm:$0xff]  ;;  %2816 = vst.msk [vmem:[#allocation4 + $0x48] sm:$0xff] %vm2806_vm13, %v8043_v0  ;;  %2807 = vst.msk [vmem:[#allocation4] sm:$0xff] %vm2806_vm13, %v8043_v0 }
  0x3b   : > { %v8339_v47 = vsel %vm634_vm2, %v1251_v31, %v1252_v39  ;;  %749 = vst.msk [vmem:[#allocation3 + $0x10] sm:$0xff] %vm416_vm0, %v1248_v44  ;;  %v1930_v54 = vrot.slane %v8344_v50, 7  ;;  %750 = vst.msk [vmem:[#allocation3 + $0x18] sm:$0xff] %vm416_vm0, %v644_v52  ;;  %1009 = vrot.lane.b32.xlu0 %v8331_v43, %s8045_s24  ;;  %v934_v57 = vsel %vm12135_vm1, %v931_v35, %v933_v36  ;;  %v1262_v59 = vrot.slane %v8352_v55, 7  ;;  %v8365_v60 = vld [vmem:[#allocation2 + $0x90] sm:$0xff]  ;;  %v8367_v61 = vld [vmem:[#allocation2 + $0xa8] sm:$0xff] }
  0x3c   : > { %785 = vrot.lane.b32.xlu1 %v8315_v29, %s8044_s23  ;;  %751 = vst.msk [vmem:[#allocation3 + $0x20] sm:$0xff] %vm416_vm0, %v8339_v47  ;;  %v8362_v58 = vsel %vm634_vm2, %v1252_v39, %v1254_v48  ;;  %v8371_v62 = vsel %vm634_vm2, %v1927_v46, %v1928_v53  ;;  %v8376_v2 = vld [vmem:[#allocation2 + $0xb0] sm:$0xff]  ;;  %v1264_v4 = vrot.slane %v8365_v60, 7  ;;  %v1938_v5 = vrot.slane %v8367_v61, 7  ;;  %v397_v24 = vld [vmem:[%s8285_s22 + $0x68] sm:$0xff]  ;;  %v1162_v46 = vld [vmem:[#allocation2 + $0x100] sm:$0xff] }
  0x3d   : > { %v8374_v63 = vsel %vm634_vm2, %v1928_v53, %v1930_v54  ;;  %752 = vst.msk [vmem:[#allocation3 + $0x28] sm:$0xff] %vm416_vm0, %v8362_v58  ;;  %v8381_v3 = vsel %vm634_vm2, %v1261_v51, %v1262_v59  ;;  %753 = vst.msk [vmem:[#allocation3 + $0x30] sm:$0xff] %vm416_vm0, %v8371_v62  ;;  %v1940_v6 = vrot.slane %v8376_v2, 7  ;;  %v8397_v9 = vld [vmem:[#allocation2 + $0xc8] sm:$0xff]  ;;  %v8413_v14 = vld [vmem:[#allocation2 + $0xd0] sm:$0xff]  ;;  %v1607_v23 = vsel %vm12135_vm1, %v1605_v18, %v1606_v19 }
  0x3e   : > { %754 = vst.msk [vmem:[#allocation3 + $0x38] sm:$0xff] %vm416_vm0, %v8374_v63  ;;  %755 = vst.msk [vmem:[#allocation3 + $0x40] sm:$0xff] %vm416_vm0, %v8381_v3  ;;  %v8395_v7 = vsel %vm634_vm2, %v1262_v59, %v1264_v4  ;;  %v8400_v10 = vsel %vm634_vm2, %v1937_v1, %v1938_v5  ;;  %v1272_v13 = vrot.slane %v8397_v9, 7  ;;  %v1274_v16 = vrot.slane %v8413_v14, 7  ;;  %v8453_v27 = vld [vmem:[#allocation2 + $0xe8] sm:$0xff]  ;;  %v1149_v59 = vld [vmem:[#allocation2 + $0x98] sm:$0xff] }
  0x3f   : > { %1326 = vrot.lane.b32.xlu0 %v1248_v44, %s8046_s25  ;;  %v8403_v11 = vsel %vm634_vm2, %v1938_v5, %v1940_v6  ;;  %756 = vst.msk [vmem:[#allocation3 + $0x48] sm:$0xff] %vm416_vm0, %v8395_v7  ;;  %757 = vst.msk [vmem:[#allocation3 + $0x50] sm:$0xff] %vm416_vm0, %v8400_v10  ;;  %v1609_v25 = vsel %vm12135_vm1, %v1606_v19, %v1608_v21  ;;  %v7992_v35 = vld [vmem:[%s12120_s1 + $0x10] ss:$0 sps:$4 sm:$0x33]   ;;  %v2281_v38 = vrot.slane %v8342_v49, 1 }
  0x40   : > { %1011 = vrot.lane.b32.xlu1 %v934_v57, %s8045_s24  ;;  %758 = vst.msk [vmem:[#allocation3 + $0x58] sm:$0xff] %vm416_vm0, %v8403_v11  ;;  %v8418_v15 = vsel %vm634_vm2, %v1271_v12, %v1272_v13  ;;  %v8424_v17 = vsel %vm634_vm2, %v1272_v13, %v1274_v16  ;;  %503 = vst.msk [vmem:[#allocation2 + $0xf0] sm:$0xff] %vm416_vm0, %v397_v24  ;;  %7959 = vmatprep.subr.msk.bf16.mxu0 %vm2609_vm3, %v7992_v35  ;;  %v2611_v36 = vsel %vm2609_vm3, %v7992_v35, 0  ;;  %v1838_v4 = vld [vmem:[#allocation2 + $0x120] sm:$0xff]  ;;  %vm12131_vm3 = vcmask 261312  }
  0x41   : > { %759 = vst.msk [vmem:[#allocation3 + $0x60] sm:$0xff] %vm416_vm0, %v8418_v15  ;;  %760 = vst.msk [vmem:[#allocation3 + $0x68] sm:$0xff] %vm416_vm0, %v8424_v17  ;;  %7855 = vmatpush3.bf16.msra.mxu0 %v2611_v36  ;;  %v2282_v39 = vrot.slane %v8344_v50, 1  ;;  %v1281_v48 = vrot.slane %v1162_v46, 7  ;;  %v1957_v6 = vrot.slane %v1838_v4, 7  ;;  %v2291_v21 = vrot.slane %v8367_v61, 1 }
  0x42   : > { %7856 = vmatprep.subr.bf16.mxu0 %v7993_v37  ;;  %v2292_v22 = vrot.slane %v8376_v2, 1  ;;  %512 = vst.msk [vmem:[#allocation2 + $0x188] sm:$0xff] %vm416_vm0, %v406_v40  ;;  %v411_v40 = vld [vmem:[%s8285_s22 + $0xd8] sm:$0xff] }
  0x43   : > { %1330 = vrot.lane.b32.xlu0 %v8339_v47, %s8046_s25  ;;  %v2285_v44 = vsel %vm12135_vm1, %v2282_v39, %v2284_v42  ;;  %2808 = vst.msk [vmem:[#allocation4 + $0x8] sm:$0xff] %vm2806_vm13, %v8043_v0  ;;  %2809 = vst.msk [vmem:[#allocation4 + $0x10] sm:$0xff] %vm2806_vm13, %v8043_v0 }
  0x44   : > { %1328 = vrot.lane.b32.xlu1 %v644_v52, %s8046_s25  ;;  %2810 = vst.msk [vmem:[#allocation4 + $0x18] sm:$0xff] %vm2806_vm13, %v8043_v0  ;;  %2811 = vst.msk [vmem:[#allocation4 + $0x20] sm:$0xff] %vm2806_vm13, %v8043_v0 }
  0x45   : > { %7857 = vmatpush3.bf16.msra.mxu0 %v7993_v37  ;;  %v402_v37 = vld [vmem:[%s8285_s22 + $0x90] sm:$0xff]  ;;  %2812 = vst.msk [vmem:[#allocation4 + $0x28] sm:$0xff] %vm2806_vm13, %v8043_v0  ;;  %2813 = vst.msk [vmem:[#allocation4 + $0x30] sm:$0xff] %vm2806_vm13, %v8043_v0 }
  0x46   : > { %7858 = vmatprep.subr.bf16.mxu0 %v7994_v41  ;;  %508 = vst.msk [vmem:[#allocation2 + $0x148] sm:$0xff] %vm416_vm0, %v402_v37  ;;  %517 = vst.msk [vmem:[#allocation2 + $0x1d0] sm:$0xff] %vm416_vm0, %v411_v40 }
  0x47   : > { %1455 = vrot.lane.b32.xlu0 %v8313_v28, %s8047_s26  ;;  %v1947_v28 = vrot.slane %v1830_v26, 7  ;;  %v8461_v32 = vld [vmem:[#allocation2 + $0xf0] sm:$0xff]  ;;  %2814 = vst.msk [vmem:[#allocation4 + $0x38] sm:$0xff] %vm2806_vm13, %v8043_v0  ;;  %2815 = vst.msk [vmem:[#allocation4 + $0x40] sm:$0xff] %vm2806_vm13, %v8043_v0 }
  0x48   : > { %1332 = vrot.lane.b32.xlu1 %v8362_v58, %s8046_s25  ;;  %v1950_v33 = vrot.slane %v8461_v32, 7  ;;  %2817 = vst.msk [vmem:[#allocation4 + $0x50] sm:$0xff] %vm2806_vm13, %v8043_v0  ;;  %2818 = vst.msk [vmem:[#allocation4 + $0x58] sm:$0xff] %vm2806_vm13, %v8043_v0 }
  0x49   : > { %7859 = vmatpush3.bf16.msra.mxu0 %v7994_v41  ;;  %2819 = vst.msk [vmem:[#allocation4 + $0x60] sm:$0xff] %vm2806_vm13, %v8043_v0  ;;  %2820 = vst.msk [vmem:[#allocation4 + $0x68] sm:$0xff] %vm2806_vm13, %v8043_v0 }
  0x4a   : > { %2821 = vst.msk [vmem:[#allocation4 + $0x70] sm:$0xff] %vm2806_vm13, %v8043_v0  ;;  %2822 = vst.msk [vmem:[#allocation4 + $0x78] sm:$0xff] %vm2806_vm13, %v8043_v0 }
  0x4b   : > { %1459 = vrot.lane.b32.xlu0 %v8317_v30, %s8047_s26  ;;  %2823 = vst.msk [vmem:[#allocation4 + $0x80] sm:$0xff] %vm2806_vm13, %v8043_v0  ;;  %2824 = vst.msk [vmem:[#allocation4 + $0x88] sm:$0xff] %vm2806_vm13, %v8043_v0 }
  0x4c   : > { %1457 = vrot.lane.b32.xlu1 %v8315_v29, %s8047_s26  ;;  %v1948_v29 = vrot.slane %v8453_v27, 7  ;;  %2825 = vst.msk [vmem:[#allocation4 + $0x90] sm:$0xff] %vm2806_vm13, %v8043_v0  ;;  %2826 = vst.msk [vmem:[#allocation4 + $0x98] sm:$0xff] %vm2806_vm13, %v8043_v0 }
  0x4d   : > { %2827 = vst.msk [vmem:[#allocation4 + $0xa0] sm:$0xff] %vm2806_vm13, %v8043_v0  ;;  %2828 = vst.msk [vmem:[#allocation4 + $0xa8] sm:$0xff] %vm2806_vm13, %v8043_v0 }
  0x4e   : > { %v8459_v31 = vsel %vm634_vm2, %v1947_v28, %v1948_v29  ;;  %v8469_v34 = vsel %vm634_vm2, %v1948_v29, %v1950_v33  ;;  %v8612_v28 = vsel %vm12135_vm1, %v2291_v21, %v2292_v22  ;;  %2829 = vst.msk [vmem:[#allocation4 + $0xb0] sm:$0xff] %vm2806_vm13, %v8043_v0  ;;  %2830 = vst.msk [vmem:[#allocation4 + $0xb8] sm:$0xff] %vm2806_vm13, %v8043_v0 }
  0x4f   : > { %1680 = vrot.lane.b32.xlu0 %v8331_v43, %s8048_s27  ;;  %761 = vst.msk [vmem:[#allocation3 + $0x70] sm:$0xff] %vm416_vm0, %v8459_v31  ;;  %762 = vst.msk [vmem:[#allocation3 + $0x78] sm:$0xff] %vm416_vm0, %v8469_v34  ;;  %v2283_v43 = vsel %vm12135_vm1, %v2281_v38, %v2282_v39 }
  0x50   : > { %1461 = vrot.lane.b32.xlu1 %v8334_v45, %s8047_s26  ;;  %2831 = vst.msk [vmem:[#allocation4 + $0xc0] sm:$0xff] %vm2806_vm13, %v8043_v0  ;;  %2832 = vst.msk [vmem:[#allocation4 + $0xc8] sm:$0xff] %vm2806_vm13, %v8043_v0 }
  0x51   : > { %2833 = vst.msk [vmem:[#allocation4 + $0xd0] sm:$0xff] %vm2806_vm13, %v8043_v0  ;;  %2834 = vst.msk [vmem:[#allocation4 + $0xd8] sm:$0xff] %vm2806_vm13, %v8043_v0 }
  0x52   : > { %2835 = vst.msk [vmem:[#allocation4 + $0xe0] sm:$0xff] %vm2806_vm13, %v8043_v0  ;;  %2836 = vst.msk [vmem:[#allocation4 + $0xe8] sm:$0xff] %vm2806_vm13, %v8043_v0 }
  0x53   : > { %1684 = vrot.lane.b32.xlu0 %v1607_v23, %s8048_s27  ;;  %2837 = vst.msk [vmem:[#allocation4 + $0xf0] sm:$0xff] %vm2806_vm13, %v8043_v0  ;;  %2838 = vst.msk [vmem:[#allocation4 + $0xf8] sm:$0xff] %vm2806_vm13, %v8043_v0 }
  0x54   : > { %1682 = vrot.lane.b32.xlu1 %v934_v57, %s8048_s27  ;;  %v1615_v57 = vrot.slane %v8352_v55, 1  ;;  %2839 = vst.msk [vmem:[#allocation4 + $0x100] sm:$0xff] %vm2806_vm13, %v8043_v0  ;;  %2840 = vst.msk [vmem:[#allocation4 + $0x108] sm:$0xff] %vm2806_vm13, %v8043_v0 }
  0x55   : > { %2841 = vst.msk [vmem:[#allocation4 + $0x110] sm:$0xff] %vm2806_vm13, %v8043_v0  ;;  %2842 = vst.msk [vmem:[#allocation4 + $0x118] sm:$0xff] %vm2806_vm13, %v8043_v0 }
  0x56   : > { %2843 = vst.msk [vmem:[#allocation4 + $0x120] sm:$0xff] %vm2806_vm13, %v8043_v0  ;;  %2844 = vst.msk [vmem:[#allocation4 + $0x128] sm:$0xff] %vm2806_vm13, %v8043_v0 }
  0x57   : > { %2002 = vrot.lane.b32.xlu0 %v8339_v47, %s8049_s28  ;;  %2845 = vst.msk [vmem:[#allocation4 + $0x130] sm:$0xff] %vm2806_vm13, %v8043_v0  ;;  %2846 = vst.msk [vmem:[#allocation4 + $0x138] sm:$0xff] %vm2806_vm13, %v8043_v0 }
  0x58   : > { %1686 = vrot.lane.b32.xlu1 %v1609_v25, %s8048_s27  ;;  %2847 = vst.msk [vmem:[#allocation4 + $0x140] sm:$0xff] %vm2806_vm13, %v8043_v0  ;;  %2848 = vst.msk [vmem:[#allocation4 + $0x148] sm:$0xff] %vm2806_vm13, %v8043_v0 }
  0x59   : > { %2849 = vst.msk [vmem:[#allocation4 + $0x150] sm:$0xff] %vm2806_vm13, %v8043_v0  ;;  %2850 = vst.msk [vmem:[#allocation4 + $0x158] sm:$0xff] %vm2806_vm13, %v8043_v0 }
  0x5a   : > { %2851 = vst.msk [vmem:[#allocation4 + $0x160] sm:$0xff] %vm2806_vm13, %v8043_v0  ;;  %2852 = vst.msk [vmem:[#allocation4 + $0x168] sm:$0xff] %vm2806_vm13, %v8043_v0 }
  0x5b   : > { %2006 = vrot.lane.b32.xlu0 %v8371_v62, %s8049_s28  ;;  %2853 = vst.msk [vmem:[#allocation4 + $0x170] sm:$0xff] %vm2806_vm13, %v8043_v0  ;;  %2854 = vst.msk [vmem:[#allocation4 + $0x178] sm:$0xff] %vm2806_vm13, %v8043_v0 }
  0x5c   : > { %2004 = vrot.lane.b32.xlu1 %v8362_v58, %s8049_s28  ;;  %v1616_v58 = vrot.slane %v8365_v60, 1  ;;  %2855 = vst.msk [vmem:[#allocation4 + $0x180] sm:$0xff] %vm2806_vm13, %v8043_v0  ;;  %2856 = vst.msk [vmem:[#allocation4 + $0x188] sm:$0xff] %vm2806_vm13, %v8043_v0 }
  0x5d   : > { %2857 = vst.msk [vmem:[#allocation4 + $0x190] sm:$0xff] %vm2806_vm13, %v8043_v0  ;;  %2858 = vst.msk [vmem:[#allocation4 + $0x198] sm:$0xff] %vm2806_vm13, %v8043_v0 }
  0x5e   : > { %2859 = vst.msk [vmem:[#allocation4 + $0x1a0] sm:$0xff] %vm2806_vm13, %v8043_v0  ;;  %2860 = vst.msk [vmem:[#allocation4 + $0x1a8] sm:$0xff] %vm2806_vm13, %v8043_v0 }
  0x5f   : > { %2131 = vrot.lane.b32.xlu0 %v8317_v30, %s8050_s29  ;;  %2861 = vst.msk [vmem:[#allocation4 + $0x1b0] sm:$0xff] %vm2806_vm13, %v8043_v0  ;;  %2862 = vst.msk [vmem:[#allocation4 + $0x1b8] sm:$0xff] %vm2806_vm13, %v8043_v0 }
  0x60   : > { %2008 = vrot.lane.b32.xlu1 %v8374_v63, %s8049_s28  ;;  %2863 = vst.msk [vmem:[#allocation4 + $0x1c0] sm:$0xff] %vm2806_vm13, %v8043_v0  ;;  %2864 = vst.msk [vmem:[#allocation4 + $0x1c8] sm:$0xff] %vm2806_vm13, %v8043_v0 }
  0x61   : > { %2865 = vst.msk [vmem:[#allocation4 + $0x1d0] sm:$0xff] %vm2806_vm13, %v8043_v0  ;;  %2866 = vst.msk [vmem:[#allocation4 + $0x1d8] sm:$0xff] %vm2806_vm13, %v8043_v0 }
  0x62   : > { %2867 = vst.msk [vmem:[#allocation4 + $0x1e0] sm:$0xff] %vm2806_vm13, %v8043_v0  ;;  %2868 = vst.msk [vmem:[#allocation4 + $0x1e8] sm:$0xff] %vm2806_vm13, %v8043_v0 }
  0x63   : > { %2135 = vrot.lane.b32.xlu0 %v8342_v49, %s8050_s29  ;;  %2869 = vst.msk [vmem:[#allocation4 + $0x1f0] sm:$0xff] %vm2806_vm13, %v8043_v0  ;;  %2870 = vst.msk [vmem:[#allocation4 + $0x1f8] sm:$0xff] %vm2806_vm13, %v8043_v0 }
  0x64   : > { %2133 = vrot.lane.b32.xlu1 %v8334_v45, %s8050_s29  ;;  %2871 = vst.msk [vmem:[#allocation4 + $0x200] sm:$0xff] %vm2806_vm13, %v8043_v0  ;;  %2872 = vst.msk [vmem:[#allocation4 + $0x208] sm:$0xff] %vm2806_vm13, %v8043_v0 }
  0x65   : > { %2873 = vst.msk [vmem:[#allocation4 + $0x210] sm:$0xff] %vm2806_vm13, %v8043_v0  ;;  %2874 = vst.msk [vmem:[#allocation4 + $0x218] sm:$0xff] %vm2806_vm13, %v8043_v0 }
  0x66   : > { %2875 = vst.msk [vmem:[#allocation4 + $0x220] sm:$0xff] %vm2806_vm13, %v8043_v0  ;;  %2876 = vst.msk [vmem:[#allocation4 + $0x228] sm:$0xff] %vm2806_vm13, %v8043_v0 }
  0x67   : > { %2356 = vrot.lane.b32.xlu0 %v1607_v23, %s8051_s15  ;;  %2877 = vst.msk [vmem:[#allocation4 + $0x230] sm:$0xff] %vm2806_vm13, %v8043_v0  ;;  %2878 = vst.msk [vmem:[#allocation4 + $0x238] sm:$0xff] %vm2806_vm13, %v8043_v0 }
  0x68   : > { %2137 = vrot.lane.b32.xlu1 %v8344_v50, %s8050_s29  ;;  %6048 = vst.msk [vmem:[#allocation7] sm:$0xff] %vm2806_vm13, %v8043_v0  ;;  %6049 = vst.msk [vmem:[#allocation7 + $0x8] sm:$0xff] %vm2806_vm13, %v8043_v0 }
  0x69   : > { %6050 = vst.msk [vmem:[#allocation7 + $0x10] sm:$0xff] %vm2806_vm13, %v8043_v0  ;;  %6051 = vst.msk [vmem:[#allocation7 + $0x18] sm:$0xff] %vm2806_vm13, %v8043_v0 }
  0x6a   : > { %6052 = vst.msk [vmem:[#allocation7 + $0x20] sm:$0xff] %vm2806_vm13, %v8043_v0  ;;  %6053 = vst.msk [vmem:[#allocation7 + $0x28] sm:$0xff] %vm2806_vm13, %v8043_v0 }
  0x6b   : > { %787 = vrot.lane.b32.xlu0 %v8317_v30, %s8044_s23  ;;  %v398_v30 = vld [vmem:[%s8285_s22 + $0x70] sm:$0xff]  ;;  %6054 = vst.msk [vmem:[#allocation7 + $0x30] sm:$0xff] %vm2806_vm13, %v8043_v0  ;;  %6055 = vst.msk [vmem:[#allocation7 + $0x38] sm:$0xff] %vm2806_vm13, %v8043_v0 }
  0x6c   : > { %2358 = vrot.lane.b32.xlu1 %v1609_v25, %s8051_s15  ;;  %504 = vst.msk [vmem:[#allocation2 + $0x108] sm:$0xff] %vm416_vm0, %v398_v30 }
  0x6d   : > { %6056 = vst.msk [vmem:[#allocation7 + $0x40] sm:$0xff] %vm2806_vm13, %v8043_v0  ;;  %6057 = vst.msk [vmem:[#allocation7 + $0x48] sm:$0xff] %vm2806_vm13, %v8043_v0 }
  0x6e   : > { %6058 = vst.msk [vmem:[#allocation7 + $0x50] sm:$0xff] %vm2806_vm13, %v8043_v0  ;;  %6059 = vst.msk [vmem:[#allocation7 + $0x58] sm:$0xff] %vm2806_vm13, %v8043_v0 }
  0x6f   : > { %2360 = vrot.lane.b32.xlu0 %v2283_v43, %s8051_s15  ;;  %6060 = vst.msk [vmem:[#allocation7 + $0x60] sm:$0xff] %vm2806_vm13, %v8043_v0  ;;  %6061 = vst.msk [vmem:[#allocation7 + $0x68] sm:$0xff] %vm2806_vm13, %v8043_v0 }
  0x70   : > { %789 = vrot.lane.b32.xlu1 %v8334_v45, %s8044_s23  ;;  %v399_v45 = vld [vmem:[%s8285_s22 + $0x78] sm:$0xff]  ;;  %6062 = vst.msk [vmem:[#allocation7 + $0x70] sm:$0xff] %vm2806_vm13, %v8043_v0  ;;  %6063 = vst.msk [vmem:[#allocation7 + $0x78] sm:$0xff] %vm2806_vm13, %v8043_v0 }
  0x71   : > { %505 = vst.msk [vmem:[#allocation2 + $0x110] sm:$0xff] %vm416_vm0, %v399_v45 }
  0x72   : > { %6064 = vst.msk [vmem:[#allocation7 + $0x80] sm:$0xff] %vm2806_vm13, %v8043_v0  ;;  %6065 = vst.msk [vmem:[#allocation7 + $0x88] sm:$0xff] %vm2806_vm13, %v8043_v0 }
  0x73   : > { %791 = vrot.lane.b32.xlu0 %v8342_v49, %s8044_s23  ;;  %v8518_v47 = vld [vmem:[#allocation2 + $0x108] sm:$0xff]  ;;  %6066 = vst.msk [vmem:[#allocation7 + $0x90] sm:$0xff] %vm2806_vm13, %v8043_v0  ;;  %6067 = vst.msk [vmem:[#allocation7 + $0x98] sm:$0xff] %vm2806_vm13, %v8043_v0 }
  0x74   : > { %2362 = vrot.lane.b32.xlu1 %v2285_v44, %s8051_s15  ;;  %v1282_v51 = vrot.slane %v8518_v47, 7  ;;  %6068 = vst.msk [vmem:[#allocation7 + $0xa0] sm:$0xff] %vm2806_vm13, %v8043_v0  ;;  %6069 = vst.msk [vmem:[#allocation7 + $0xa8] sm:$0xff] %vm2806_vm13, %v8043_v0 }
  0x75   : > { %6070 = vst.msk [vmem:[#allocation7 + $0xb0] sm:$0xff] %vm2806_vm13, %v8043_v0  ;;  %6071 = vst.msk [vmem:[#allocation7 + $0xb8] sm:$0xff] %vm2806_vm13, %v8043_v0 }
  0x76   : > { %v8524_v52 = vsel %vm634_vm2, %v1281_v48, %v1282_v51  ;;  %v1625_v48 = vrot.slane %v8397_v9, 1  ;;  %6072 = vst.msk [vmem:[#allocation7 + $0xc0] sm:$0xff] %vm2806_vm13, %v8043_v0  ;;  %6073 = vst.msk [vmem:[#allocation7 + $0xc8] sm:$0xff] %vm2806_vm13, %v8043_v0 }
  0x77   : > { %1013 = vrot.lane.b32.xlu0 %v1607_v23, %s8045_s24  ;;  %763 = vst.msk [vmem:[#allocation3 + $0x80] sm:$0xff] %vm416_vm0, %v8524_v52  ;;  %v1825_v23 = vld [vmem:[#allocation2 + $0xb8] sm:$0xff] }
  0x78   : > { %793 = vrot.lane.b32.xlu1 %v8344_v50, %s8044_s23  ;;  %v8526_v53 = vld [vmem:[#allocation2 + $0x110] sm:$0xff]  ;;  %6074 = vst.msk [vmem:[#allocation7 + $0xd0] sm:$0xff] %vm2806_vm13, %v8043_v0  ;;  %6075 = vst.msk [vmem:[#allocation7 + $0xd8] sm:$0xff] %vm2806_vm13, %v8043_v0 }
  0x79   : > { %v1284_v54 = vrot.slane %v8526_v53, 7  ;;  %6076 = vst.msk [vmem:[#allocation7 + $0xe0] sm:$0xff] %vm2806_vm13, %v8043_v0  ;;  %6077 = vst.msk [vmem:[#allocation7 + $0xe8] sm:$0xff] %vm2806_vm13, %v8043_v0 }
  0x7b   : > { %1017 = vrot.lane.b32.xlu0 %v2283_v43, %s8045_s24  ;;  %v8534_v56 = vsel %vm634_vm2, %v1282_v51, %v1284_v54  ;;  %v1626_v51 = vrot.slane %v8413_v14, 1 }
  0x7c   : > { %1015 = vrot.lane.b32.xlu1 %v1609_v25, %s8045_s24  ;;  %764 = vst.msk [vmem:[#allocation3 + $0x88] sm:$0xff] %vm416_vm0, %v8534_v56  ;;  %v2294_v25 = vrot.slane %v1825_v23, 1  ;;  %v2301_v23 = vrot.slane %v8453_v27, 1 }
  0x7f   : > { %1334 = vrot.lane.b32.xlu0 %v8371_v62, %s8046_s25  ;;  %v1618_v62 = vrot.slane %v1149_v59, 1  ;;  %v8679_v59 = vsel %vm12135_vm1, %v1625_v48, %v1626_v51 }
  0x80   : > { %1019 = vrot.lane.b32.xlu1 %v2285_v44, %s8045_s24 }
  0x81   : > { %v8561_v1 = vsel %vm12135_vm1, %v1616_v58, %v1618_v62 }
  0x83   : > { %1338 = vrot.lane.b32.xlu0 %v8381_v3, %s8046_s25 }
  0x84   : > { %1336 = vrot.lane.b32.xlu1 %v8374_v63, %s8046_s25  ;;  %v400_v63 = vld [vmem:[%s8285_s22 + $0x80] sm:$0xff] }
  0x85   : > { %506 = vst.msk [vmem:[#allocation2 + $0x128] sm:$0xff] %vm416_vm0, %v400_v63  ;;  %v405_v63 = vld [vmem:[%s8285_s22 + $0xa8] sm:$0xff] }
  0x86   : > { %511 = vst.msk [vmem:[#allocation2 + $0x170] sm:$0xff] %vm416_vm0, %v405_v63 }
  0x87   : > { %1463 = vrot.lane.b32.xlu0 %v8342_v49, %s8047_s26  ;;  %v8553_v49 = vsel %vm12135_vm1, %v1615_v57, %v1616_v58  ;;  %v404_v57 = vld [vmem:[%s8285_s22 + $0xa0] sm:$0xff] }
  0x88   : > { %1340 = vrot.lane.b32.xlu1 %v8395_v7, %s8046_s25  ;;  %510 = vst.msk [vmem:[#allocation2 + $0x168] sm:$0xff] %vm416_vm0, %v404_v57 }
  0x8a   : > { %v1008_v18 = vpop.permute.xlu1 %1007 }
  0x8b   : > { %1467 = vrot.lane.b32.xlu0 %v8352_v55, %s8047_s26 }
  0x8c   : > { %1465 = vrot.lane.b32.xlu1 %v8344_v50, %s8047_s26  ;;  %v401_v50 = vld [vmem:[%s8285_s22 + $0x88] sm:$0xff] }
  0x8d   : > { %507 = vst.msk [vmem:[#allocation2 + $0x130] sm:$0xff] %vm416_vm0, %v401_v50  ;;  %v8568_v5 = vld [vmem:[#allocation2 + $0x128] sm:$0xff] }
  0x8e   : > { %v1958_v8 = vrot.slane %v8568_v5, 7 }
  0x8f   : > { %1688 = vrot.lane.b32.xlu0 %v2283_v43, %s8048_s27 }
  0x90   : > { %1469 = vrot.lane.b32.xlu1 %v8365_v60, %s8047_s26  ;;  %v8574_v12 = vsel %vm634_vm2, %v1957_v6, %v1958_v8 }
  0x91   : > { %765 = vst.msk [vmem:[#allocation3 + $0x90] sm:$0xff] %vm416_vm0, %v8574_v12 }
  0x93   : > { %1692 = vrot.lane.b32.xlu0 %v8553_v49, %s8048_s27 }
  0x94   : > { %1690 = vrot.lane.b32.xlu1 %v2285_v44, %s8048_s27  ;;  %v8576_v13 = vld [vmem:[#allocation2 + $0x130] sm:$0xff] }
  0x95   : > { %v1960_v16 = vrot.slane %v8576_v13, 7 }
  0x97   : > { %2010 = vrot.lane.b32.xlu0 %v8381_v3, %s8049_s28  ;;  %v8584_v3 = vsel %vm634_vm2, %v1958_v8, %v1960_v16 }
  0x98   : > { %1694 = vrot.lane.b32.xlu1 %v8561_v1, %s8048_s27  ;;  %766 = vst.msk [vmem:[#allocation3 + $0x98] sm:$0xff] %vm416_vm0, %v8584_v3 }
  0x9b   : > { %2014 = vrot.lane.b32.xlu0 %v8400_v10, %s8049_s28 }
  0x9c   : > { %2012 = vrot.lane.b32.xlu1 %v8395_v7, %s8049_s28  ;;  %v780_v7 = vpop.permute.xlu0 %779 }
  0x9d   : > { %876 = vst.msk [vmem:[#allocation3] sm:$0xff] %vm875_vm4, %v780_v7 }
  0x9f   : > { %2139 = vrot.lane.b32.xlu0 %v8352_v55, %s8050_s29 }
  0xa0   : > { %2016 = vrot.lane.b32.xlu1 %v8403_v11, %s8049_s28  ;;  %v782_v19 = vpop.permute.xlu0 %781 }
  0xa1   : > { %877 = vst.msk [vmem:[#allocation3 + $0x8] sm:$0xff] %vm875_vm4, %v782_v19 }
  0xa2   : > { %1103 = vst.msk [vmem:[#allocation3 + $0x8] sm:$0xff] %vm1101_vm5, %v1008_v18 }
  0xa3   : > { %2143 = vrot.lane.b32.xlu0 %v8367_v61, %s8050_s29 }
  0xa4   : > { %2141 = vrot.lane.b32.xlu1 %v8365_v60, %s8050_s29  ;;  %v1006_v24 = vpop.permute.xlu0 %1005 }
  0xa5   : > { %1102 = vst.msk [vmem:[#allocation3] sm:$0xff] %vm1101_vm5, %v1006_v24  ;;  %v2302_v24 = vrot.slane %v8461_v32, 1 }
  0xa7   : > { %2364 = vrot.lane.b32.xlu0 %v8553_v49, %s8051_s15 }
  0xa8   : > { %2145 = vrot.lane.b32.xlu1 %v8376_v2, %s8050_s29 }
  0xaa   : > { %v784_v20 = vpop.permute.xlu1 %783 }
  0xab   : > { %878 = vst.msk [vmem:[#allocation3 + $0x10] sm:$0xff] %vm875_vm4, %v784_v20  ;;  %795 = vrot.lane.b32.xlu0 %v8352_v55, %s8044_s23  ;;  %v8621_v55 = vsel %vm12135_vm1, %v2292_v22, %v2294_v25  ;;  %v1833_v25 = vld [vmem:[#allocation2 + $0xf8] sm:$0xff] }
  0xac   : > { %2366 = vrot.lane.b32.xlu1 %v8561_v1, %s8051_s15 }
  0xad   : > { %v1010_v29 = vpop.permute.xlu0 %1009 }
  0xae   : > { %v786_v26 = vpop.permute.xlu1 %785  ;;  %1104 = vst.msk [vmem:[#allocation3 + $0x10] sm:$0xff] %vm1101_vm5, %v1010_v29  ;;  %v2304_v29 = vrot.slane %v1833_v25, 1 }
  0xaf   : > { %879 = vst.msk [vmem:[#allocation3 + $0x18] sm:$0xff] %vm875_vm4, %v786_v26  ;;  %2368 = vrot.lane.b32.xlu0 %v8612_v28, %s8051_s15 }
  0xb0   : > { %797 = vrot.lane.b32.xlu1 %v8365_v60, %s8044_s23 }
  0xb1   : > { %v1327_v35 = vpop.permute.xlu0 %1326 }
  0xb2   : > { %v1012_v33 = vpop.permute.xlu1 %1011  ;;  %1423 = vst.msk [vmem:[#allocation3] sm:$0xff] %vm1422_vm6, %v1327_v35 }
  0xb3   : > { %1105 = vst.msk [vmem:[#allocation3 + $0x18] sm:$0xff] %vm1101_vm5, %v1012_v33  ;;  %799 = vrot.lane.b32.xlu0 %v8367_v61, %s8044_s23  ;;  %v8733_v33 = vsel %vm12135_vm1, %v2301_v23, %v2302_v24 }
  0xb4   : > { %2370 = vrot.lane.b32.xlu1 %v8621_v55, %s8051_s15 }
  0xb5   : > { %v1331_v36 = vpop.permute.xlu0 %1330 }
  0xb6   : > { %v1329_v60 = vpop.permute.xlu1 %1328  ;;  %1425 = vst.msk [vmem:[#allocation3 + $0x10] sm:$0xff] %vm1422_vm6, %v1331_v36 }
  0xb7   : > { %1424 = vst.msk [vmem:[#allocation3 + $0x8] sm:$0xff] %vm1422_vm6, %v1329_v60  ;;  %1021 = vrot.lane.b32.xlu0 %v8553_v49, %s8045_s24 }
  0xb8   : > { %801 = vrot.lane.b32.xlu1 %v8376_v2, %s8044_s23 }
  0xb9   : > { %v1456_v39 = vpop.permute.xlu0 %1455 }
  0xba   : > { %v1333_v38 = vpop.permute.xlu1 %1332  ;;  %1552 = vst.msk [vmem:[#allocation3] sm:$0xff] %vm1551_vm7, %v1456_v39 }
  0xbb   : > { %1426 = vst.msk [vmem:[#allocation3 + $0x18] sm:$0xff] %vm1422_vm6, %v1333_v38  ;;  %1025 = vrot.lane.b32.xlu0 %v8612_v28, %s8045_s24 }
  0xbc   : > { %1023 = vrot.lane.b32.xlu1 %v8561_v1, %s8045_s24 }
  0xbd   : > { %v1460_v42 = vpop.permute.xlu0 %1459 }
  0xbe   : > { %v1458_v41 = vpop.permute.xlu1 %1457  ;;  %1554 = vst.msk [vmem:[#allocation3 + $0x10] sm:$0xff] %vm1551_vm7, %v1460_v42 }
  0xbf   : > { %1553 = vst.msk [vmem:[#allocation3 + $0x8] sm:$0xff] %vm1551_vm7, %v1458_v41  ;;  %1342 = vrot.lane.b32.xlu0 %v8400_v10, %s8046_s25 }
  0xc0   : > { %1027 = vrot.lane.b32.xlu1 %v8621_v55, %s8045_s24 }
  0xc1   : > { %v1681_v44 = vpop.permute.xlu0 %1680 }
  0xc2   : > { %v1462_v43 = vpop.permute.xlu1 %1461  ;;  %1777 = vst.msk [vmem:[#allocation3] sm:$0xff] %vm1776_vm8, %v1681_v44 }
  0xc3   : > { %1555 = vst.msk [vmem:[#allocation3 + $0x18] sm:$0xff] %vm1551_vm7, %v1462_v43  ;;  %1346 = vrot.lane.b32.xlu0 %v8418_v15, %s8046_s25  ;;  %v407_v43 = vld [vmem:[%s8285_s22 + $0xb8] sm:$0xff] }
  0xc4   : > { %1344 = vrot.lane.b32.xlu1 %v8403_v11, %s8046_s25  ;;  %513 = vst.msk [vmem:[#allocation2 + $0x190] sm:$0xff] %vm416_vm0, %v407_v43 }
  0xc5   : > { %v1685_v45 = vpop.permute.xlu0 %1684 }
  0xc6   : > { %v1683_v30 = vpop.permute.xlu1 %1682  ;;  %1779 = vst.msk [vmem:[#allocation3 + $0x10] sm:$0xff] %vm1776_vm8, %v1685_v45 }
  0xc7   : > { %1778 = vst.msk [vmem:[#allocation3 + $0x8] sm:$0xff] %vm1776_vm8, %v1683_v30  ;;  %1471 = vrot.lane.b32.xlu0 %v8367_v61, %s8047_s26  ;;  %v1157_v61 = vld [vmem:[#allocation2 + $0xd8] sm:$0xff] }
  0xc8   : > { %1348 = vrot.lane.b32.xlu1 %v8424_v17, %s8046_s25 }
  0xc9   : > { %v2003_v11 = vpop.permute.xlu0 %2002 }
  0xca   : > { %v1687_v10 = vpop.permute.xlu1 %1686  ;;  %2099 = vst.msk [vmem:[#allocation3] sm:$0xff] %vm2098_vm9, %v2003_v11 }
  0xcb   : > { %1780 = vst.msk [vmem:[#allocation3 + $0x18] sm:$0xff] %vm1776_vm8, %v1687_v10  ;;  %1475 = vrot.lane.b32.xlu0 %v8397_v9, %s8047_s26 }
  0xcc   : > { %1473 = vrot.lane.b32.xlu1 %v8376_v2, %s8047_s26  ;;  %v1628_v2 = vrot.slane %v1157_v61, 1  ;;  %v1636_v61 = vrot.slane %v8526_v53, 1 }
  0xcd   : > { %v2007_v54 = vpop.permute.xlu0 %2006 }
  0xce   : > { %v2005_v46 = vpop.permute.xlu1 %2004  ;;  %2101 = vst.msk [vmem:[#allocation3 + $0x10] sm:$0xff] %vm2098_vm9, %v2007_v54  ;;  %v8690_v49 = vsel %vm12135_vm1, %v1626_v51, %v1628_v2  ;;  %v1635_v51 = vrot.slane %v8518_v47, 1  ;;  %v408_v2 = vld [vmem:[%s8285_s22 + $0xc0] sm:$0xff] }
  0xcf   : > { %2100 = vst.msk [vmem:[#allocation3 + $0x8] sm:$0xff] %vm2098_vm9, %v2005_v46  ;;  %1696 = vrot.lane.b32.xlu0 %v8612_v28, %s8048_s27 }
  0xd0   : > { %1477 = vrot.lane.b32.xlu1 %v8413_v14, %s8047_s26  ;;  %514 = vst.msk [vmem:[#allocation2 + $0x1a8] sm:$0xff] %vm416_vm0, %v408_v2 }
  0xd1   : > { %v2132_v62 = vpop.permute.xlu0 %2131 }
  0xd2   : > { %v2009_v58 = vpop.permute.xlu1 %2008  ;;  %2228 = vst.msk [vmem:[#allocation3] sm:$0xff] %vm2227_vm10, %v2132_v62  ;;  %v409_v62 = vld [vmem:[%s8285_s22 + $0xc8] sm:$0xff] }
  0xd3   : > { %2102 = vst.msk [vmem:[#allocation3 + $0x18] sm:$0xff] %vm2098_vm9, %v2009_v58  ;;  %1700 = vrot.lane.b32.xlu0 %v8679_v59, %s8048_s27  ;;  %v8801_v58 = vsel %vm12135_vm1, %v1635_v51, %v1636_v61 }
  0xd4   : > { %1698 = vrot.lane.b32.xlu1 %v8621_v55, %s8048_s27  ;;  %515 = vst.msk [vmem:[#allocation2 + $0x1b0] sm:$0xff] %vm416_vm0, %v409_v62 }
  0xd5   : > { %v2136_v1 = vpop.permute.xlu0 %2135 }
  0xd6   : > { %v2134_v50 = vpop.permute.xlu1 %2133  ;;  %2230 = vst.msk [vmem:[#allocation3 + $0x10] sm:$0xff] %vm2227_vm10, %v2136_v1 }
  0xd7   : > { %2229 = vst.msk [vmem:[#allocation3 + $0x8] sm:$0xff] %vm2227_vm10, %v2134_v50  ;;  %2018 = vrot.lane.b32.xlu0 %v8418_v15, %s8049_s28 }
  0xd8   : > { %1702 = vrot.lane.b32.xlu1 %v8690_v49, %s8048_s27 }
  0xd9   : > { %v2357_v6 = vpop.permute.xlu0 %2356 }
  0xda   : > { %v2138_v4 = vpop.permute.xlu1 %2137  ;;  %2453 = vst.msk [vmem:[#allocation3] sm:$0xff] %vm2452_vm11, %v2357_v6 }
  0xdb   : > { %2231 = vst.msk [vmem:[#allocation3 + $0x18] sm:$0xff] %vm2227_vm10, %v2138_v4  ;;  %2022 = vrot.lane.b32.xlu0 %v8459_v31, %s8049_s28 }
  0xdc   : > { %2020 = vrot.lane.b32.xlu1 %v8424_v17, %s8049_s28 }
  0xdd   : > { %v788_v16 = vpop.permute.xlu0 %787 }
  0xde   : > { %v2359_v8 = vpop.permute.xlu1 %2358  ;;  %880 = vst.msk [vmem:[#allocation3 + $0x20] sm:$0xff] %vm875_vm4, %v788_v16 }
  0xdf   : > { %2454 = vst.msk [vmem:[#allocation3 + $0x8] sm:$0xff] %vm2452_vm11, %v2359_v8  ;;  %2147 = vrot.lane.b32.xlu0 %v8397_v9, %s8050_s29 }
  0xe0   : > { %2024 = vrot.lane.b32.xlu1 %v8469_v34, %s8049_s28 }
  0xe1   : > { %v2361_v7 = vpop.permute.xlu0 %2360  ;;  %v2485_v17 = vld [vmem:[#allocation3] sm:$0xff] }
  0xe2   : > { %v790_v15 = vpop.permute.xlu1 %789  ;;  %2455 = vst.msk [vmem:[#allocation3 + $0x10] sm:$0xff] %vm2452_vm11, %v2361_v7 }
  0xe3   : > { %881 = vst.msk [vmem:[#allocation3 + $0x28] sm:$0xff] %vm875_vm4, %v790_v15  ;;  %2151 = vrot.lane.b32.xlu0 %v8453_v27, %s8050_s29 }
  0xe4   : > { %2149 = vrot.lane.b32.xlu1 %v8413_v14, %s8050_s29 }
  0xe5   : > { %v792_v20 = vpop.permute.xlu0 %791 }
  0xe6   : > { %v2363_v18 = vpop.permute.xlu1 %2362  ;;  %v2486_v19 = vld [vmem:[#allocation3 + $0x8] sm:$0xff]  ;;  %882 = vst.msk [vmem:[#allocation3 + $0x30] sm:$0xff] %vm875_vm4, %v792_v20  ;;  %v2311_v20 = vrot.slane %v8568_v5, 1 }
  0xe7   : > { %2456 = vst.msk [vmem:[#allocation3 + $0x18] sm:$0xff] %vm2452_vm11, %v2363_v18  ;;  %v2517_v21 = vpack.c.bf16 %v2486_v19, %v2485_v17  ;;  %2372 = vrot.lane.b32.xlu0 %v8679_v59, %s8051_s15 }
  0xe8   : > { %2153 = vrot.lane.b32.xlu1 %v8461_v32, %s8050_s29 }
  0xe9   : > { %7860 = vmatprep.mubr.msk.bf16.mxu0 %vm2560_vm12, %v2517_v21  ;;  %v1014_v26 = vpop.permute.xlu0 %1013  ;;  %v2487_v28 = vld [vmem:[#allocation3 + $0x10] sm:$0xff]  ;;  %v2312_v21 = vrot.slane %v8576_v13, 1 }
  0xea   : > { %v794_v22 = vpop.permute.xlu1 %793  ;;  %1106 = vst.msk [vmem:[#allocation3 + $0x20] sm:$0xff] %vm1101_vm5, %v1014_v26 }
  0xeb   : > { %883 = vst.msk [vmem:[#allocation3 + $0x38] sm:$0xff] %vm875_vm4, %v794_v22  ;;  %803 = vrot.lane.b32.xlu0 %v8397_v9, %s8044_s23  ;;  %v8743_v9 = vsel %vm12135_vm1, %v2302_v24, %v2304_v29  ;;  %v1841_v22 = vld [vmem:[#allocation2 + $0x138] sm:$0xff] }
  0xec   : > { %2374 = vrot.lane.b32.xlu1 %v8690_v49, %s8051_s15  ;;  %v2314_v25 = vrot.slane %v1841_v22, 1 }
  0xed   : > { %v1018_v60 = vpop.permute.xlu0 %1017 }
  0xee   : > { %v1016_v55 = vpop.permute.xlu1 %1015  ;;  %v2488_v35 = vld [vmem:[#allocation3 + $0x18] sm:$0xff]  ;;  %1108 = vst.msk [vmem:[#allocation3 + $0x30] sm:$0xff] %vm1101_vm5, %v1018_v60 }
  0xef   : > { %1107 = vst.msk [vmem:[#allocation3 + $0x28] sm:$0xff] %vm1101_vm5, %v1016_v55  ;;  %v2518_v36 = vpack.c.bf16 %v2488_v35, %v2487_v28  ;;  %2376 = vrot.lane.b32.xlu0 %v8733_v33, %s8051_s15  ;;  %v8855_v28 = vsel %vm12135_vm1, %v2311_v20, %v2312_v21 }
  0xf0   : > { %805 = vrot.lane.b32.xlu1 %v8413_v14, %s8044_s23 }
  0xf1   : > { %7861 = vmatmul.mubr.msk.bf16.vlgmr.msra.gmra.mxu0 %vm2560_vm12, %v2518_v36  ;;  %v1335_v38 = vpop.permute.xlu0 %1334 }
  0xf2   : > { %v1020_v37 = vpop.permute.xlu1 %1019  ;;  %1427 = vst.msk [vmem:[#allocation3 + $0x20] sm:$0xff] %vm1422_vm6, %v1335_v38 }
  0xf3   : > { %1109 = vst.msk [vmem:[#allocation3 + $0x38] sm:$0xff] %vm1101_vm5, %v1020_v37  ;;  %807 = vrot.lane.b32.xlu0 %v8453_v27, %s8044_s23 }
  0xf4   : > { %2378 = vrot.lane.b32.xlu1 %v8743_v9, %s8051_s15 }
  0xf5   : > { %v1339_v39 = vpop.permute.xlu0 %1338 }
  0xf6   : > { %v1337_v14 = vpop.permute.xlu1 %1336  ;;  %1429 = vst.msk [vmem:[#allocation3 + $0x30] sm:$0xff] %vm1422_vm6, %v1339_v39  ;;  %v9086_v39 = vld [vmem:[#allocation2 + $0x148] sm:$0xff] }
  0xf7   : > { %1428 = vst.msk [vmem:[#allocation3 + $0x28] sm:$0xff] %vm1422_vm6, %v1337_v14  ;;  %1029 = vrot.lane.b32.xlu0 %v8679_v59, %s8045_s24  ;;  %v1170_v14 = vld [vmem:[#allocation2 + $0x140] sm:$0xff]  ;;  %v9096_v43 = vrot.slane %v9086_v39, 7  ;;  %v1645_v62 = vrot.slane %v9086_v39, 1 }
  0xf8   : > { %809 = vrot.lane.b32.xlu1 %v8461_v32, %s8044_s23 }
  0xf9   : > { %v1464_v42 = vpop.permute.xlu0 %1463 }
  0xfa   : > { %v1341_v41 = vpop.permute.xlu1 %1340  ;;  %1556 = vst.msk [vmem:[#allocation3 + $0x20] sm:$0xff] %vm1551_vm7, %v1464_v42  ;;  %v1291_v42 = vrot.slane %v1170_v14, 7 }
  0xfb   : > { %1430 = vst.msk [vmem:[#allocation3 + $0x38] sm:$0xff] %vm1422_vm6, %v1341_v41  ;;  %1033 = vrot.lane.b32.xlu0 %v8733_v33, %s8045_s24 }
  0xfc   : > { %1031 = vrot.lane.b32.xlu1 %v8690_v49, %s8045_s24 }
  0xfd   : > { %v1468_v30 = vpop.permute.xlu0 %1467 }
  0xfe   : > { %v1466_v44 = vpop.permute.xlu1 %1465  ;;  %1558 = vst.msk [vmem:[#allocation3 + $0x30] sm:$0xff] %vm1551_vm7, %v1468_v30 }
  0xff   : > { %1557 = vst.msk [vmem:[#allocation3 + $0x28] sm:$0xff] %vm1551_vm7, %v1466_v44  ;;  %1350 = vrot.lane.b32.xlu0 %v8459_v31, %s8046_s25  ;;  %v9098_v44 = vld [vmem:[#allocation2 + $0x150] sm:$0xff] }
 0x100   : > { %1035 = vrot.lane.b32.xlu1 %v8743_v9, %s8045_s24 }
 0x101   : > { %v1689_v10 = vpop.permute.xlu0 %1688 }
 0x102   : > { %v1470_v45 = vpop.permute.xlu1 %1469  ;;  %1781 = vst.msk [vmem:[#allocation3 + $0x20] sm:$0xff] %vm1776_vm8, %v1689_v10  ;;  %v1186_v10 = vld [vmem:[#allocation2 + $0x1c0] sm:$0xff] }
 0x103   : > { %1559 = vst.msk [vmem:[#allocation3 + $0x38] sm:$0xff] %vm1551_vm7, %v1470_v45  ;;  %1354 = vrot.lane.b32.xlu0 %v8524_v52, %s8046_s25  ;;  %v1294_v45 = vrot.slane %v9098_v44, 7 }
 0x104   : > { %1352 = vrot.lane.b32.xlu1 %v8469_v34, %s8046_s25 }
 0x105   : > { %v1693_v46 = vpop.permute.xlu0 %1692 }
 0x106   : > { %v1691_v11 = vpop.permute.xlu1 %1690  ;;  %1783 = vst.msk [vmem:[#allocation3 + $0x30] sm:$0xff] %vm1776_vm8, %v1693_v46 }
 0x107   : > { %1782 = vst.msk [vmem:[#allocation3 + $0x28] sm:$0xff] %vm1776_vm8, %v1691_v11  ;;  %1479 = vrot.lane.b32.xlu0 %v8453_v27, %s8047_s26  ;;  %v1165_v27 = vld [vmem:[#allocation2 + $0x118] sm:$0xff] }
 0x108   : > { %1356 = vrot.lane.b32.xlu1 %v8534_v56, %s8046_s25 }
 0x109   : > { %v2011_v34 = vpop.permute.xlu0 %2010 }
 0x10a   : > { %v1695_v31 = vpop.permute.xlu1 %1694  ;;  %2103 = vst.msk [vmem:[#allocation3 + $0x20] sm:$0xff] %vm2098_vm9, %v2011_v34  ;;  %v1311_v34 = vrot.slane %v1186_v10, 7 }
 0x10b   : > { %1784 = vst.msk [vmem:[#allocation3 + $0x38] sm:$0xff] %vm1776_vm8, %v1695_v31  ;;  %1483 = vrot.lane.b32.xlu0 %v8518_v47, %s8047_s26  ;;  %v1293_v31 = vsel %vm634_vm2, %v1291_v42, %v9096_v43 }
 0x10c   : > { %1481 = vrot.lane.b32.xlu1 %v8461_v32, %s8047_s26  ;;  %v1638_v32 = vrot.slane %v1165_v27, 1  ;;  %v9124_v27 = vsel %vm634_vm2, %v9096_v43, %v1294_v45 }
 0x10d   : > { %v2015_v54 = vpop.permute.xlu0 %2014  ;;  %768 = vst.msk [vmem:[#allocation3 + $0xa8] sm:$0xff] %vm416_vm0, %v9124_v27 }
 0x10e   : > { %v2013_v48 = vpop.permute.xlu1 %2012  ;;  %2105 = vst.msk [vmem:[#allocation3 + $0x30] sm:$0xff] %vm2098_vm9, %v2015_v54  ;;  %v8812_v63 = vsel %vm12135_vm1, %v1636_v61, %v1638_v32  ;;  %v9119_v61 = vld [vmem:[#allocation2 + $0x1d0] sm:$0xff] }
 0x10f   : > { %2104 = vst.msk [vmem:[#allocation3 + $0x28] sm:$0xff] %vm2098_vm9, %v2013_v48  ;;  %1704 = vrot.lane.b32.xlu0 %v8733_v33, %s8048_s27  ;;  %v1314_v54 = vrot.slane %v9119_v61, 7 }
 0x110   : > { %1485 = vrot.lane.b32.xlu1 %v8526_v53, %s8047_s26 }
 0x111   : > { %v2140_v59 = vpop.permute.xlu0 %2139 }
 0x112   : > { %v2017_v57 = vpop.permute.xlu1 %2016  ;;  %2232 = vst.msk [vmem:[#allocation3 + $0x20] sm:$0xff] %vm2227_vm10, %v2140_v59 }
 0x113   : > { %2106 = vst.msk [vmem:[#allocation3 + $0x38] sm:$0xff] %vm2098_vm9, %v2017_v57  ;;  %1708 = vrot.lane.b32.xlu0 %v8801_v58, %s8048_s27 }
 0x114   : > { %1706 = vrot.lane.b32.xlu1 %v8743_v9, %s8048_s27  ;;  %v410_v9 = vld [vmem:[%s8285_s22 + $0xd0] sm:$0xff] }
 0x115   : > { %v2144_v50 = vpop.permute.xlu0 %2143  ;;  %516 = vst.msk [vmem:[#allocation2 + $0x1c8] sm:$0xff] %vm416_vm0, %v410_v9 }
 0x116   : > { %v2142_v49 = vpop.permute.xlu1 %2141  ;;  %2234 = vst.msk [vmem:[#allocation3 + $0x30] sm:$0xff] %vm2227_vm10, %v2144_v50  ;;  %v412_v50 = vld [vmem:[%s8285_s22 + $0xe0] sm:$0xff] }
 0x117   : > { %2233 = vst.msk [vmem:[#allocation3 + $0x28] sm:$0xff] %vm2227_vm10, %v2142_v49  ;;  %2026 = vrot.lane.b32.xlu0 %v8524_v52, %s8049_s28  ;;  %v1173_v49 = vld [vmem:[#allocation2 + $0x158] sm:$0xff] }
 0x118   : > { %1710 = vrot.lane.b32.xlu1 %v8812_v63, %s8048_s27  ;;  %518 = vst.msk [vmem:[#allocation2 + $0x1e8] sm:$0xff] %vm416_vm0, %v412_v50 }
 0x119   : > { %v2365_v4 = vpop.permute.xlu0 %2364 }
 0x11a   : > { %v2146_v1 = vpop.permute.xlu1 %2145  ;;  %2457 = vst.msk [vmem:[#allocation3 + $0x20] sm:$0xff] %vm2452_vm11, %v2365_v4 }
 0x11b   : > { %2235 = vst.msk [vmem:[#allocation3 + $0x38] sm:$0xff] %vm2227_vm10, %v2146_v1  ;;  %2030 = vrot.lane.b32.xlu0 %v8574_v12, %s8049_s28 }
 0x11c   : > { %2028 = vrot.lane.b32.xlu1 %v8534_v56, %s8049_s28  ;;  %v9107_v11 = vld [vmem:[#allocation2 + $0x1c8] sm:$0xff] }
 0x11d   : > { %v796_v8 = vpop.permute.xlu0 %795  ;;  %v1312_v48 = vrot.slane %v9107_v11, 7 }
 0x11e   : > { %v2367_v6 = vpop.permute.xlu1 %2366  ;;  %884 = vst.msk [vmem:[#allocation3 + $0x40] sm:$0xff] %vm875_vm4, %v796_v8  ;;  %v1846_v8 = vld [vmem:[#allocation2 + $0x160] sm:$0xff] }
 0x11f   : > { %2458 = vst.msk [vmem:[#allocation3 + $0x28] sm:$0xff] %vm2452_vm11, %v2367_v6  ;;  %2155 = vrot.lane.b32.xlu0 %v8518_v47, %s8050_s29  ;;  %v9131_v2 = vsel %vm634_vm2, %v1312_v48, %v1314_v54  ;;  %v9181_v22 = vld [vmem:[#allocation2 + $0x1e8] sm:$0xff] }
 0x120   : > { %2032 = vrot.lane.b32.xlu1 %v8584_v3, %s8049_s28  ;;  %776 = vst.msk [vmem:[#allocation3 + $0xe8] sm:$0xff] %vm416_vm0, %v9131_v2 }
 0x121   : > { %v2369_v16 = vpop.permute.xlu0 %2368  ;;  %v2489_v56 = vld [vmem:[#allocation3 + $0x20] sm:$0xff] }
 0x122   : > { %v798_v52 = vpop.permute.xlu1 %797  ;;  %2459 = vst.msk [vmem:[#allocation3 + $0x30] sm:$0xff] %vm2452_vm11, %v2369_v16  ;;  %v413_v16 = vld [vmem:[%s8285_s22 + $0xe8] sm:$0xff] }
 0x123   : > { %885 = vst.msk [vmem:[#allocation3 + $0x48] sm:$0xff] %vm875_vm4, %v798_v52  ;;  %2159 = vrot.lane.b32.xlu0 %v8568_v5, %s8050_s29  ;;  %v9160_v52 = vld [vmem:[#allocation2 + $0x168] sm:$0xff] }
 0x124   : > { %2157 = vrot.lane.b32.xlu1 %v8526_v53, %s8050_s29  ;;  %519 = vst.msk [vmem:[#allocation2 + $0x1f0] sm:$0xff] %vm416_vm0, %v413_v16  ;;  %v415_v16 = vld [vmem:[%s8285_s22 + $0xf8] sm:$0xff] }
 0x125   : > { %v800_v17 = vpop.permute.xlu0 %799  ;;  %521 = vst.msk [vmem:[#allocation2 + $0x210] sm:$0xff] %vm416_vm0, %v415_v16 }
 0x126   : > { %v2371_v15 = vpop.permute.xlu1 %2370  ;;  %v2490_v7 = vld [vmem:[#allocation3 + $0x28] sm:$0xff]  ;;  %886 = vst.msk [vmem:[#allocation3 + $0x50] sm:$0xff] %vm875_vm4, %v800_v17  ;;  %v1968_v17 = vrot.slane %v9160_v52, 7 }
 0x127   : > { %2460 = vst.msk [vmem:[#allocation3 + $0x38] sm:$0xff] %vm2452_vm11, %v2371_v15  ;;  %v2519_v18 = vpack.c.bf16 %v2490_v7, %v2489_v56  ;;  %2380 = vrot.lane.b32.xlu0 %v8801_v58, %s8051_s15  ;;  %v1967_v7 = vrot.slane %v1846_v8, 7  ;;  %v9273_v8 = vld [vmem:[#allocation2 + $0x188] sm:$0xff] }
 0x128   : > { %2161 = vrot.lane.b32.xlu1 %v8576_v13, %s8050_s29 }
 0x129   : > { %7864 = vmatprep.mubr.msk.bf16.mxu0 %vm2560_vm12, %v2519_v18  ;;  %v1022_v23 = vpop.permute.xlu0 %1021  ;;  %v2491_v24 = vld [vmem:[#allocation3 + $0x30] sm:$0xff] }
 0x12a   : > { %v802_v19 = vpop.permute.xlu1 %801  ;;  %1110 = vst.msk [vmem:[#allocation3 + $0x40] sm:$0xff] %vm1101_vm5, %v1022_v23  ;;  %v9173_v18 = vld [vmem:[#allocation2 + $0x170] sm:$0xff] }
 0x12b   : > { %887 = vst.msk [vmem:[#allocation3 + $0x58] sm:$0xff] %vm875_vm4, %v802_v19  ;;  %811 = vrot.lane.b32.xlu0 %v8518_v47, %s8044_s23  ;;  %v8865_v47 = vsel %vm12135_vm1, %v2312_v21, %v2314_v25  ;;  %v1970_v20 = vrot.slane %v9173_v18, 7  ;;  %v1862_v21 = vld [vmem:[#allocation2 + $0x1e0] sm:$0xff] }
 0x12c   : > { %2382 = vrot.lane.b32.xlu1 %v8812_v63, %s8051_s15  ;;  %v1987_v25 = vrot.slane %v1862_v21, 7 }
 0x12d   : > { %v1026_v55 = vpop.permute.xlu0 %1025 }
 0x12e   : > { %v1024_v26 = vpop.permute.xlu1 %1023  ;;  %v2492_v29 = vld [vmem:[#allocation3 + $0x38] sm:$0xff]  ;;  %1112 = vst.msk [vmem:[#allocation3 + $0x50] sm:$0xff] %vm1101_vm5, %v1026_v55  ;;  %v9194_v55 = vld [vmem:[#allocation2 + $0x1f0] sm:$0xff] }
 0x12f   : > { %1111 = vst.msk [vmem:[#allocation3 + $0x48] sm:$0xff] %vm1101_vm5, %v1024_v26  ;;  %v2520_v33 = vpack.c.bf16 %v2492_v29, %v2491_v24  ;;  %2384 = vrot.lane.b32.xlu0 %v8855_v28, %s8051_s15  ;;  %v9184_v24 = vsel %vm634_vm2, %v1967_v7, %v1968_v17  ;;  %v1988_v26 = vrot.slane %v9181_v22, 7  ;;  %v9283_v7 = vrot.slane %v9273_v8, 7 }
 0x130   : > { %813 = vrot.lane.b32.xlu1 %v8526_v53, %s8044_s23 }
 0x131   : > { %7865 = vmatmul.mubr.msk.bf16.gmra.mxu0 %vm2560_vm12, %v2520_v33  ;;  %v1343_v60 = vpop.permute.xlu0 %1342  ;;  %v9192_v29 = vsel %vm634_vm2, %v1987_v25, %v1988_v26  ;;  %v9199_v33 = vsel %vm634_vm2, %v1968_v17, %v1970_v20 }
 0x132   : > { %v1028_v35 = vpop.permute.xlu1 %1027  ;;  %1431 = vst.msk [vmem:[#allocation3 + $0x40] sm:$0xff] %vm1422_vm6, %v1343_v60  ;;  %v562_v60 = vld [vmem:[#allocation2 + $0x140] sm:$0xff] }
 0x133   : > { %1113 = vst.msk [vmem:[#allocation3 + $0x58] sm:$0xff] %vm1101_vm5, %v1028_v35  ;;  %815 = vrot.lane.b32.xlu0 %v8568_v5, %s8044_s23 }
 0x134   : > { %2386 = vrot.lane.b32.xlu1 %v8865_v47, %s8051_s15  ;;  %777 = vst.msk [vmem:[#allocation3 + $0xf0] sm:$0xff] %vm416_vm0, %v9192_v29  ;;  %770 = vst.msk [vmem:[#allocation3 + $0xb8] sm:$0xff] %vm416_vm0, %v9199_v33 }
 0x135   : > { %v1347_v36 = vpop.permute.xlu0 %1346 }
 0x136   : > { %v1345_v53 = vpop.permute.xlu1 %1344  ;;  %1433 = vst.msk [vmem:[#allocation3 + $0x50] sm:$0xff] %vm1422_vm6, %v1347_v36  ;;  %v685_v36 = vrot.slane %v562_v60, 7 }
 0x137   : > { %1432 = vst.msk [vmem:[#allocation3 + $0x48] sm:$0xff] %vm1422_vm6, %v1345_v53  ;;  %1037 = vrot.lane.b32.xlu0 %v8801_v58, %s8045_s24 }
 0x138   : > { %817 = vrot.lane.b32.xlu1 %v8576_v13, %s8044_s23 }
 0x139   : > { %v1472_v38 = vpop.permute.xlu0 %1471 }
 0x13a   : > { %v1349_v37 = vpop.permute.xlu1 %1348  ;;  %1560 = vst.msk [vmem:[#allocation3 + $0x40] sm:$0xff] %vm1551_vm7, %v1472_v38 }
 0x13b   : > { %1434 = vst.msk [vmem:[#allocation3 + $0x58] sm:$0xff] %vm1422_vm6, %v1349_v37  ;;  %1041 = vrot.lane.b32.xlu0 %v8855_v28, %s8045_s24  ;;  %v687_v37 = vsel %vm634_vm2, %v685_v36, %v9096_v43  ;;  %v566_v43 = vld [vmem:[#allocation2 + $0x160] sm:$0xff] }
 0x13c   : > { %1039 = vrot.lane.b32.xlu1 %v8812_v63, %s8045_s24  ;;  %v1646_v63 = vrot.slane %v9098_v44, 1  ;;  %767 = vst.msk [vmem:[#allocation3 + $0xa0] sm:$0xff] %vm416_vm0, %v687_v37  ;;  %v690_v10 = vrot.slane %v566_v43, 7 }
 0x13d   : > { %v1476_v30 = vpop.permute.xlu0 %1475 }
 0x13e   : > { %v1474_v41 = vpop.permute.xlu1 %1473  ;;  %1562 = vst.msk [vmem:[#allocation3 + $0x50] sm:$0xff] %vm1551_vm7, %v1476_v30  ;;  %v9156_v4 = vsel %vm12135_vm1, %v1645_v62, %v1646_v63 }
 0x13f   : > { %1561 = vst.msk [vmem:[#allocation3 + $0x48] sm:$0xff] %vm1551_vm7, %v1474_v41  ;;  %1358 = vrot.lane.b32.xlu0 %v8574_v12, %s8046_s25  ;;  %v9117_v12 = vsel %vm634_vm2, %v1311_v34, %v1312_v48  ;;  %v2321_v34 = vrot.slane %v9160_v52, 1  ;;  %v2322_v48 = vrot.slane %v9173_v18, 1 }
 0x140   : > { %1043 = vrot.lane.b32.xlu1 %v8865_v47, %s8045_s24  ;;  %775 = vst.msk [vmem:[#allocation3 + $0xe0] sm:$0xff] %vm416_vm0, %v9117_v12 }
 0x141   : > { %v1697_v51 = vpop.permute.xlu0 %1696 }
 0x142   : > { %v1478_v46 = vpop.permute.xlu1 %1477  ;;  %1785 = vst.msk [vmem:[#allocation3 + $0x40] sm:$0xff] %vm1776_vm8, %v1697_v51  ;;  %v1849_v51 = vld [vmem:[#allocation2 + $0x178] sm:$0xff] }
 0x143   : > { %1563 = vst.msk [vmem:[#allocation3 + $0x58] sm:$0xff] %vm1551_vm7, %v1478_v46  ;;  %1362 = vrot.lane.b32.xlu0 %v1293_v31, %s8046_s25  ;;  %v692_v46 = vsel %vm634_vm2, %v690_v10, %v1968_v17  ;;  %v9285_v17 = vld [vmem:[#allocation2 + $0x190] sm:$0xff] }
 0x144   : > { %1360 = vrot.lane.b32.xlu1 %v8584_v3, %s8046_s25  ;;  %769 = vst.msk [vmem:[#allocation3 + $0xb0] sm:$0xff] %vm416_vm0, %v692_v46  ;;  %v1656_v60 = vrot.slane %v9285_v17, 1 }
 0x145   : > { %v1701_v3 = vpop.permute.xlu0 %1700 }
 0x146   : > { %v1699_v32 = vpop.permute.xlu1 %1698  ;;  %1787 = vst.msk [vmem:[#allocation3 + $0x50] sm:$0xff] %vm1776_vm8, %v1701_v3 }
 0x147   : > { %1786 = vst.msk [vmem:[#allocation3 + $0x48] sm:$0xff] %vm1776_vm8, %v1699_v32  ;;  %1487 = vrot.lane.b32.xlu0 %v8568_v5, %s8047_s26  ;;  %v2324_v32 = vrot.slane %v1849_v51, 1 }
 0x148   : > { %1364 = vrot.lane.b32.xlu1 %v9124_v27, %s8046_s25 }
 0x149   : > { %v2019_v58 = vpop.permute.xlu0 %2018 }
 0x14a   : > { %v1703_v57 = vpop.permute.xlu1 %1702  ;;  %2107 = vst.msk [vmem:[#allocation3 + $0x40] sm:$0xff] %vm2098_vm9, %v2019_v58 }
 0x14b   : > { %1788 = vst.msk [vmem:[#allocation3 + $0x58] sm:$0xff] %vm1776_vm8, %v1703_v57  ;;  %1491 = vrot.lane.b32.xlu0 %v9086_v39, %s8047_s26  ;;  %v9246_v57 = vsel %vm12135_vm1, %v2321_v34, %v2322_v48 }
 0x14c   : > { %1489 = vrot.lane.b32.xlu1 %v8576_v13, %s8047_s26  ;;  %v1648_v13 = vrot.slane %v1173_v49, 1 }
 0x14d   : > { %v2023_v5 = vpop.permute.xlu0 %2022 }
 0x14e   : > { %v2021_v59 = vpop.permute.xlu1 %2020  ;;  %2109 = vst.msk [vmem:[#allocation3 + $0x50] sm:$0xff] %vm2098_vm9, %v2023_v5  ;;  %v9169_v56 = vsel %vm12135_vm1, %v1646_v63, %v1648_v13  ;;  %v414_v13 = vld [vmem:[%s8285_s22 + $0xf0] sm:$0xff]  ;;  %s8052_s22 = smov 40  }
 0x14f   : > { %2108 = vst.msk [vmem:[#allocation3 + $0x48] sm:$0xff] %vm2098_vm9, %v2021_v59  ;;  %1712 = vrot.lane.b32.xlu0 %v8855_v28, %s8048_s27 }
 0x150   : > { %1493 = vrot.lane.b32.xlu1 %v9098_v44, %s8047_s26  ;;  %520 = vst.msk [vmem:[#allocation2 + $0x208] sm:$0xff] %vm416_vm0, %v414_v13 }
 0x151   : > { %v2148_v6 = vpop.permute.xlu0 %2147 }
 0x152   : > { %v2025_v1 = vpop.permute.xlu1 %2024  ;;  %2236 = vst.msk [vmem:[#allocation3 + $0x40] sm:$0xff] %vm2227_vm10, %v2148_v6  ;;  %v1178_v6 = vld [vmem:[#allocation2 + $0x180] sm:$0xff] }
 0x153   : > { %2110 = vst.msk [vmem:[#allocation3 + $0x58] sm:$0xff] %vm2098_vm9, %v2025_v1  ;;  %1716 = vrot.lane.b32.xlu0 %v9156_v4, %s8048_s27 }
 0x154   : > { %1714 = vrot.lane.b32.xlu1 %v8865_v47, %s8048_s27  ;;  %v1990_v47 = vrot.slane %v9194_v55, 7 }
 0x155   : > { %v2152_v19 = vpop.permute.xlu0 %2151 }
 0x156   : > { %v2150_v15 = vpop.permute.xlu1 %2149  ;;  %2238 = vst.msk [vmem:[#allocation3 + $0x50] sm:$0xff] %vm2227_vm10, %v2152_v19  ;;  %v9206_v9 = vsel %vm634_vm2, %v1988_v26, %v1990_v47 }
 0x157   : > { %2237 = vst.msk [vmem:[#allocation3 + $0x48] sm:$0xff] %vm2227_vm10, %v2150_v15  ;;  %2034 = vrot.lane.b32.xlu0 %v1293_v31, %s8049_s28  ;;  %v1301_v15 = vrot.slane %v1178_v6, 7 }
 0x158   : > { %1718 = vrot.lane.b32.xlu1 %v9169_v56, %s8048_s27  ;;  %778 = vst.msk [vmem:[#allocation3 + $0xf8] sm:$0xff] %vm416_vm0, %v9206_v9 }
 0x159   : > { %v2373_v28 = vpop.permute.xlu0 %2372  ;;  %v1303_v21 = vsel %vm634_vm2, %v1301_v15, %v9283_v7 }
 0x15a   : > { %v2154_v23 = vpop.permute.xlu1 %2153  ;;  %2461 = vst.msk [vmem:[#allocation3 + $0x40] sm:$0xff] %vm2452_vm11, %v2373_v28 }
 0x15b   : > { %2239 = vst.msk [vmem:[#allocation3 + $0x58] sm:$0xff] %vm2227_vm10, %v2154_v23  ;;  %2038 = vrot.lane.b32.xlu0 %v9184_v24, %s8049_s28 }
 0x15c   : > { %2036 = vrot.lane.b32.xlu1 %v9124_v27, %s8049_s28 }
 0x15d   : > { %v804_v53 = vpop.permute.xlu0 %803 }
 0x15e   : > { %v2375_v35 = vpop.permute.xlu1 %2374  ;;  %888 = vst.msk [vmem:[#allocation3 + $0x60] sm:$0xff] %vm875_vm4, %v804_v53  ;;  %v1181_v53 = vld [vmem:[#allocation2 + $0x198] sm:$0xff] }
 0x15f   : > { %2462 = vst.msk [vmem:[#allocation3 + $0x48] sm:$0xff] %vm2452_vm11, %v2375_v35  ;;  %2163 = vrot.lane.b32.xlu0 %v9086_v39, %s8050_s29  ;;  %v1655_v35 = vrot.slane %v9273_v8, 1 }
 0x160   : > { %2040 = vrot.lane.b32.xlu1 %v9199_v33, %s8049_s28 }
 0x161   : > { %v2377_v14 = vpop.permute.xlu0 %2376  ;;  %v2493_v40 = vld [vmem:[#allocation3 + $0x40] sm:$0xff]  ;;  %v9323_v37 = vsel %vm12135_vm1, %v1655_v35, %v1656_v60 }
 0x162   : > { %v806_v38 = vpop.permute.xlu1 %805  ;;  %2463 = vst.msk [vmem:[#allocation3 + $0x50] sm:$0xff] %vm2452_vm11, %v2377_v14  ;;  %v1854_v14 = vld [vmem:[#allocation2 + $0x1a0] sm:$0xff] }
 0x163   : > { %889 = vst.msk [vmem:[#allocation3 + $0x68] sm:$0xff] %vm875_vm4, %v806_v38  ;;  %2167 = vrot.lane.b32.xlu0 %v9160_v52, %s8050_s29  ;;  %v1977_v43 = vrot.slane %v1854_v14, 7 }
 0x164   : > { %2165 = vrot.lane.b32.xlu1 %v9098_v44, %s8050_s29 }
 0x165   : > { %v808_v30 = vpop.permute.xlu0 %807 }
 0x166   : > { %v2379_v41 = vpop.permute.xlu1 %2378  ;;  %v2494_v42 = vld [vmem:[#allocation3 + $0x48] sm:$0xff]  ;;  %890 = vst.msk [vmem:[#allocation3 + $0x70] sm:$0xff] %vm875_vm4, %v808_v30 }
 0x167   : > { %2464 = vst.msk [vmem:[#allocation3 + $0x58] sm:$0xff] %vm2452_vm11, %v2379_v41  ;;  %v2521_v45 = vpack.c.bf16 %v2494_v42, %v2493_v40  ;;  %2388 = vrot.lane.b32.xlu0 %v9156_v4, %s8051_s15  ;;  %v9326_v40 = vld [vmem:[#allocation2 + $0x1a8] sm:$0xff] }
 0x168   : > { %2169 = vrot.lane.b32.xlu1 %v9173_v18, %s8050_s29  ;;  %v1978_v30 = vrot.slane %v9326_v40, 7  ;;  %v2331_v6 = vrot.slane %v9326_v40, 1 }
 0x169   : > { %7868 = vmatprep.mubr.msk.bf16.mxu0 %vm2560_vm12, %v2521_v45  ;;  %v1030_v27 = vpop.permute.xlu0 %1029  ;;  %v2495_v54 = vld [vmem:[#allocation3 + $0x50] sm:$0xff] }
 0x16a   : > { %v810_v31 = vpop.permute.xlu1 %809  ;;  %1114 = vst.msk [vmem:[#allocation3 + $0x60] sm:$0xff] %vm1101_vm5, %v1030_v27  ;;  %v9337_v45 = vld [vmem:[#allocation2 + $0x1b0] sm:$0xff]  ;;  %v9346_v34 = vsel %vm634_vm2, %v1977_v43, %v1978_v30 }
 0x16b   : > { %891 = vst.msk [vmem:[#allocation3 + $0x78] sm:$0xff] %vm875_vm4, %v810_v31  ;;  %819 = vrot.lane.b32.xlu0 %v9086_v39, %s8044_s23  ;;  %v9256_v39 = vsel %vm12135_vm1, %v2322_v48, %v2324_v32  ;;  %v1980_v46 = vrot.slane %v9337_v45, 7  ;;  %v2332_v16 = vrot.slane %v9337_v45, 1 }
 0x16c   : > { %2390 = vrot.lane.b32.xlu1 %v9169_v56, %s8051_s15 }
 0x16d   : > { %v1034_v59 = vpop.permute.xlu0 %1033  ;;  %v9354_v51 = vsel %vm634_vm2, %v1978_v30, %v1980_v46 }
 0x16e   : > { %v1032_v3 = vpop.permute.xlu1 %1031  ;;  %v2496_v58 = vld [vmem:[#allocation3 + $0x58] sm:$0xff]  ;;  %1116 = vst.msk [vmem:[#allocation3 + $0x70] sm:$0xff] %vm1101_vm5, %v1034_v59 }
 0x16f   : > { %1115 = vst.msk [vmem:[#allocation3 + $0x68] sm:$0xff] %vm1101_vm5, %v1032_v3  ;;  %v2522_v62 = vpack.c.bf16 %v2496_v58, %v2495_v54  ;;  %2392 = vrot.lane.b32.xlu0 %v9246_v57, %s8051_s15  ;;  %v570_v54 = vld [vmem:[#allocation2 + $0x180] sm:$0xff] }
 0x170   : > { %821 = vrot.lane.b32.xlu1 %v9098_v44, %s8044_s23  ;;  %v695_v3 = vrot.slane %v570_v54, 7  ;;  %774 = vst.msk [vmem:[#allocation3 + $0xd8] sm:$0xff] %vm416_vm0, %v9354_v51 }
 0x171   : > { %7869 = vmatmul.mubr.msk.bf16.gmra.mxu0 %vm2560_vm12, %v2522_v62  ;;  %v1351_v49 = vpop.permute.xlu0 %1350 }
 0x172   : > { %v1036_v63 = vpop.permute.xlu1 %1035  ;;  %1435 = vst.msk [vmem:[#allocation3 + $0x60] sm:$0xff] %vm1422_vm6, %v1351_v49  ;;  %v574_v49 = vld [vmem:[#allocation2 + $0x1a0] sm:$0xff] }
 0x173   : > { %1117 = vst.msk [vmem:[#allocation3 + $0x78] sm:$0xff] %vm1101_vm5, %v1036_v63  ;;  %823 = vrot.lane.b32.xlu0 %v9160_v52, %s8044_s23  ;;  %v700_v13 = vrot.slane %v574_v49, 7 }
 0x174   : > { %2394 = vrot.lane.b32.xlu1 %v9256_v39, %s8051_s15 }
 0x175   : > { %v1355_v5 = vpop.permute.xlu0 %1354 }
 0x176   : > { %v1353_v44 = vpop.permute.xlu1 %1352  ;;  %1437 = vst.msk [vmem:[#allocation3 + $0x70] sm:$0xff] %vm1422_vm6, %v1355_v5 }
 0x177   : > { %1436 = vst.msk [vmem:[#allocation3 + $0x68] sm:$0xff] %vm1422_vm6, %v1353_v44  ;;  %1045 = vrot.lane.b32.xlu0 %v9156_v4, %s8045_s24 }
 0x178   : > { %825 = vrot.lane.b32.xlu1 %v9173_v18, %s8044_s23 }
 0x179   : > { %v1480_v1 = vpop.permute.xlu0 %1479 }
 0x17a   : > { %v1357_v50 = vpop.permute.xlu1 %1356  ;;  %1564 = vst.msk [vmem:[#allocation3 + $0x60] sm:$0xff] %vm1551_vm7, %v1480_v1 }
 0x17b   : > { %1438 = vst.msk [vmem:[#allocation3 + $0x78] sm:$0xff] %vm1422_vm6, %v1357_v50  ;;  %1049 = vrot.lane.b32.xlu0 %v9246_v57, %s8045_s24  ;;  %v702_v50 = vsel %vm634_vm2, %v700_v13, %v1978_v30  ;;  %v3526_v30 = vld [vmem:[#allocation4 + $0x40] sm:$0xff] }
 0x17c   : > { %1047 = vrot.lane.b32.xlu1 %v9169_v56, %s8045_s24  ;;  %v1304_v56 = vrot.slane %v9285_v17, 7  ;;  %773 = vst.msk [vmem:[#allocation3 + $0xd0] sm:$0xff] %vm416_vm0, %v702_v50 }
 0x17d   : > { %v1484_v19 = vpop.permute.xlu0 %1483 }
 0x17e   : > { %v1482_v4 = vpop.permute.xlu1 %1481  ;;  %1566 = vst.msk [vmem:[#allocation3 + $0x70] sm:$0xff] %vm1551_vm7, %v1484_v19  ;;  %v1305_v25 = vsel %vm634_vm2, %v9283_v7, %v1304_v56 }
 0x17f   : > { %1565 = vst.msk [vmem:[#allocation3 + $0x68] sm:$0xff] %vm1551_vm7, %v1482_v4  ;;  %1366 = vrot.lane.b32.xlu0 %v9184_v24, %s8046_s25  ;;  %v1857_v4 = vld [vmem:[#allocation2 + $0x1b8] sm:$0xff] }
 0x180   : > { %1051 = vrot.lane.b32.xlu1 %v9256_v39, %s8045_s24  ;;  %772 = vst.msk [vmem:[#allocation3 + $0xc8] sm:$0xff] %vm416_vm0, %v1305_v25  ;;  %v2334_v19 = vrot.slane %v1857_v4, 1 }
 0x181   : > { %v1705_v23 = vpop.permute.xlu0 %1704 }
 0x182   : > { %v1486_v20 = vpop.permute.xlu1 %1485  ;;  %1789 = vst.msk [vmem:[#allocation3 + $0x60] sm:$0xff] %vm1776_vm8, %v1705_v23 }
 0x183   : > { %1567 = vst.msk [vmem:[#allocation3 + $0x78] sm:$0xff] %vm1551_vm7, %v1486_v20  ;;  %1370 = vrot.lane.b32.xlu0 %v1303_v21, %s8046_s25  ;;  %v9392_v20 = vsel %vm12135_vm1, %v2331_v6, %v2332_v16 }
 0x184   : > { %1368 = vrot.lane.b32.xlu1 %v9199_v33, %s8046_s25 }
 0x185   : > { %v1709_v26 = vpop.permute.xlu0 %1708 }
 0x186   : > { %v1707_v24 = vpop.permute.xlu1 %1706  ;;  %1791 = vst.msk [vmem:[#allocation3 + $0x70] sm:$0xff] %vm1776_vm8, %v1709_v26  ;;  %v9407_v26 = vsel %vm12135_vm1, %v2332_v16, %v2334_v19  ;;  %v1189_v19 = vld [vmem:[#allocation2 + $0x1d8] sm:$0xff] }
 0x187   : > { %1790 = vst.msk [vmem:[#allocation3 + $0x68] sm:$0xff] %vm1776_vm8, %v1707_v24  ;;  %1495 = vrot.lane.b32.xlu0 %v9160_v52, %s8047_s26 }
 0x188   : > { %1372 = vrot.lane.b32.xlu1 %v1305_v25, %s8046_s25 }
 0x189   : > { %v2027_v33 = vpop.permute.xlu0 %2026 }
 0x18a   : > { %v1711_v28 = vpop.permute.xlu1 %1710  ;;  %2111 = vst.msk [vmem:[#allocation3 + $0x60] sm:$0xff] %vm2098_vm9, %v2027_v33 }
 0x18b   : > { %1792 = vst.msk [vmem:[#allocation3 + $0x78] sm:$0xff] %vm1776_vm8, %v1711_v28  ;;  %1499 = vrot.lane.b32.xlu0 %v9273_v8, %s8047_s26 }
 0x18c   : > { %1497 = vrot.lane.b32.xlu1 %v9173_v18, %s8047_s26  ;;  %v1658_v18 = vrot.slane %v1181_v53, 1 }
 0x18d   : > { %v2031_v52 = vpop.permute.xlu0 %2030 }
 0x18e   : > { %v2029_v47 = vpop.permute.xlu1 %2028  ;;  %2113 = vst.msk [vmem:[#allocation3 + $0x70] sm:$0xff] %vm2098_vm9, %v2031_v52  ;;  %v9334_v41 = vsel %vm12135_vm1, %v1656_v60, %v1658_v18 }
 0x18f   : > { %2112 = vst.msk [vmem:[#allocation3 + $0x68] sm:$0xff] %vm2098_vm9, %v2029_v47  ;;  %1720 = vrot.lane.b32.xlu0 %v9246_v57, %s8048_s27  ;;  %v697_v57 = vsel %vm634_vm2, %v695_v3, %v9283_v7 }
 0x190   : > { %1501 = vrot.lane.b32.xlu1 %v9285_v17, %s8047_s26  ;;  %771 = vst.msk [vmem:[#allocation3 + $0xc0] sm:$0xff] %vm416_vm0, %v697_v57  ;;  %vm12132_vm0 = vcmask 195712  }
 0x191   : > { %v2156_v38 = vpop.permute.xlu0 %2155 }
 0x192   : > { %v2033_v36 = vpop.permute.xlu1 %2032  ;;  %2240 = vst.msk [vmem:[#allocation3 + $0x60] sm:$0xff] %vm2227_vm10, %v2156_v38 }
 0x193   : > { %2114 = vst.msk [vmem:[#allocation3 + $0x78] sm:$0xff] %vm2098_vm9, %v2033_v36  ;;  %1724 = vrot.lane.b32.xlu0 %v9323_v37, %s8048_s27 }
 0x194   : > { %1722 = vrot.lane.b32.xlu1 %v9256_v39, %s8048_s27 }
 0x195   : > { %v2160_v10 = vpop.permute.xlu0 %2159 }
 0x196   : > { %v2158_v42 = vpop.permute.xlu1 %2157  ;;  %2242 = vst.msk [vmem:[#allocation3 + $0x70] sm:$0xff] %vm2227_vm10, %v2160_v10 }
 0x197   : > { %2241 = vst.msk [vmem:[#allocation3 + $0x68] sm:$0xff] %vm2227_vm10, %v2158_v42  ;;  %2042 = vrot.lane.b32.xlu0 %v1303_v21, %s8049_s28 }
 0x198   : > { %1726 = vrot.lane.b32.xlu1 %v9334_v41, %s8048_s27 }
 0x199   : > { %v2381_v48 = vpop.permute.xlu0 %2380 }
 0x19a   : > { %v2162_v31 = vpop.permute.xlu1 %2161  ;;  %2465 = vst.msk [vmem:[#allocation3 + $0x60] sm:$0xff] %vm2452_vm11, %v2381_v48  ;;  %v3522_v48 = vld [vmem:[#allocation4 + $0x20] sm:$0xff] }
 0x19b   : > { %2243 = vst.msk [vmem:[#allocation3 + $0x78] sm:$0xff] %vm2227_vm10, %v2162_v31  ;;  %2046 = vrot.lane.b32.xlu0 %v9346_v34, %s8049_s28 }
 0x19c   : > { %2044 = vrot.lane.b32.xlu1 %v1305_v25, %s8049_s28  ;;  %v9398_v25 = vld [vmem:[%s12121_s2] ss:$0 sm:$0xff] }
 0x19d   : > { %v812_v32 = vpop.permute.xlu0 %811 }
 0x19e   : > { %v2383_v27 = vpop.permute.xlu1 %2382  ;;  %892 = vst.msk [vmem:[#allocation3 + $0x80] sm:$0xff] %vm875_vm4, %v812_v32  ;;  %v3634_v32 = vrot.slane %v3522_v48, 7 }
 0x19f   : > { %2466 = vst.msk [vmem:[#allocation3 + $0x68] sm:$0xff] %vm2452_vm11, %v2383_v27  ;;  %2171 = vrot.lane.b32.xlu0 %v9273_v8, %s8050_s29  ;;  %v3639_v27 = vrot.slane %v3526_v30, 7 }
 0x1a0   : > { %2048 = vrot.lane.b32.xlu1 %v9354_v51, %s8049_s28 }
 0x1a1   : > { %v2385_v59 = vpop.permute.xlu0 %2384  ;;  %v2497_v62 = vld [vmem:[#allocation3 + $0x60] sm:$0xff] }
 0x1a2   : > { %v814_v58 = vpop.permute.xlu1 %813  ;;  %2467 = vst.msk [vmem:[#allocation3 + $0x70] sm:$0xff] %vm2452_vm11, %v2385_v59 }
 0x1a3   : > { %893 = vst.msk [vmem:[#allocation3 + $0x88] sm:$0xff] %vm875_vm4, %v814_v58  ;;  %2175 = vrot.lane.b32.xlu0 %v9326_v40, %s8050_s29 }
 0x1a4   : > { %2173 = vrot.lane.b32.xlu1 %v9285_v17, %s8050_s29 }
 0x1a5   : > { %v816_v44 = vpop.permute.xlu0 %815 }
 0x1a6   : > { %v2387_v39 = vpop.permute.xlu1 %2386  ;;  %v2498_v63 = vld [vmem:[#allocation3 + $0x68] sm:$0xff]  ;;  %894 = vst.msk [vmem:[#allocation3 + $0x90] sm:$0xff] %vm875_vm4, %v816_v44 }
 0x1a7   : > { %2468 = vst.msk [vmem:[#allocation3 + $0x78] sm:$0xff] %vm2452_vm11, %v2387_v39  ;;  %v2523_v5 = vpack.c.bf16 %v2498_v63, %v2497_v62  ;;  %2396 = vrot.lane.b32.xlu0 %v9323_v37, %s8051_s15 }
 0x1a8   : > { %2177 = vrot.lane.b32.xlu1 %v9337_v45, %s8050_s29 }
 0x1a9   : > { %7872 = vmatprep.mubr.msk.bf16.mxu0 %vm2560_vm12, %v2523_v5  ;;  %v1038_v15 = vpop.permute.xlu0 %1037  ;;  %v2499_v7 = vld [vmem:[#allocation3 + $0x70] sm:$0xff] }
 0x1aa   : > { %v818_v1 = vpop.permute.xlu1 %817  ;;  %1118 = vst.msk [vmem:[#allocation3 + $0x80] sm:$0xff] %vm1101_vm5, %v1038_v15  ;;  %v1665_v15 = vrot.slane %v9107_v11, 1 }
 0x1ab   : > { %895 = vst.msk [vmem:[#allocation3 + $0x98] sm:$0xff] %vm875_vm4, %v818_v1  ;;  %827 = vrot.lane.b32.xlu0 %v9273_v8, %s8044_s23 }
 0x1ac   : > { %2398 = vrot.lane.b32.xlu1 %v9334_v41, %s8051_s15 }
 0x1ad   : > { %v1042_v23 = vpop.permute.xlu0 %1041 }
 0x1ae   : > { %v1040_v56 = vpop.permute.xlu1 %1039  ;;  %v2500_v21 = vld [vmem:[#allocation3 + $0x78] sm:$0xff]  ;;  %1120 = vst.msk [vmem:[#allocation3 + $0x90] sm:$0xff] %vm1101_vm5, %v1042_v23 }
 0x1af   : > { %1119 = vst.msk [vmem:[#allocation3 + $0x88] sm:$0xff] %vm1101_vm5, %v1040_v56  ;;  %v2524_v24 = vpack.c.bf16 %v2500_v21, %v2499_v7  ;;  %2400 = vrot.lane.b32.xlu0 %v9392_v20, %s8051_s15  ;;  %v1666_v7 = vrot.slane %v9119_v61, 1 }
 0x1b0   : > { %829 = vrot.lane.b32.xlu1 %v9285_v17, %s8044_s23 }
 0x1b1   : > { %v7862_v8 = vpop.f32.mrf.mxu0  ;;  %7873 = vmatmul.mubr.msk.bf16.gmra.mxu0 %vm2560_vm12, %v2524_v24  ;;  %v1359_v47 = vpop.permute.xlu0 %1358  ;;  %v9500_v21 = vsel %vm12135_vm1, %v1665_v15, %v1666_v7  ;;  %v2928_v15 = vld [vmem:[#allocation4 + $0x80] sm:$0xff] }
 0x1b2   : > { %v2656_v28 = vadd.f32 %v7862_v8, %v9398_v25  ;;  %v1044_v33 = vpop.permute.xlu1 %1043  ;;  %1439 = vst.msk [vmem:[#allocation3 + $0x80] sm:$0xff] %vm1422_vm6, %v1359_v47 }
 0x1b3   : > { %1121 = vst.msk [vmem:[#allocation3 + $0x98] sm:$0xff] %vm1101_vm5, %v1044_v33  ;;  %v2647_v35 = vpop.f32.mrf.mxu0  ;;  %831 = vrot.lane.b32.xlu0 %v9326_v40, %s8044_s23 }
 0x1b4   : > { %v2776_v60 = vmax.f32 %v2656_v28, 0.0  ;;  %v2648_v17 = vadd.f32 %v9398_v25, %v2647_v35  ;;  %2402 = vrot.lane.b32.xlu1 %v9407_v26, %s8051_s15 }
 0x1b5   : > { %v7863_v53 = vpop.f32.mrf.mxu0  ;;  %v1363_v38 = vpop.permute.xlu0 %1362 }
 0x1b6   : > { %2882 = vst.msk [vmem:[#allocation4 + $0x48] sm:$0xff] %vm2806_vm13, %v2776_v60  ;;  %v2774_v52 = vmax.f32 %v2648_v17, 0.0  ;;  %v2659_v18 = vadd.f32 %v7863_v53, %v9398_v25  ;;  %v1361_v36 = vpop.permute.xlu1 %1360 }
 0x1b7   : > { %1440 = vst.msk [vmem:[#allocation3 + $0x88] sm:$0xff] %vm1422_vm6, %v1361_v36  ;;  %v2650_v14 = vpop.f32.mrf.mxu0  ;;  %1441 = vst.msk [vmem:[#allocation3 + $0x90] sm:$0xff] %vm1422_vm6, %v1363_v38  ;;  %1053 = vrot.lane.b32.xlu0 %v9323_v37, %s8045_s24  ;;  %v2341_v36 = vrot.slane %v9181_v22, 1  ;;  %v2342_v38 = vrot.slane %v9194_v55, 1 }
 0x1b8   : > { %2880 = vst.msk [vmem:[#allocation4 + $0x28] sm:$0xff] %vm2806_vm13, %v2774_v52  ;;  %v2777_v42 = vmax.f32 %v2659_v18, 0.0  ;;  %v2651_v43 = vadd.f32 %v9398_v25, %v2650_v14  ;;  %833 = vrot.lane.b32.xlu1 %v9337_v45, %s8044_s23  ;;  %v1865_v14 = vld [vmem:[#allocation2 + $0x1f8] sm:$0xff] }
 0x1b9   : > { %v1488_v31 = vpop.permute.xlu0 %1487  ;;  %v2344_v30 = vrot.slane %v1865_v14, 1 }
 0x1ba   : > { %2883 = vst.msk [vmem:[#allocation4 + $0x50] sm:$0xff] %vm2806_vm13, %v2777_v42  ;;  %v2775_v10 = vmax.f32 %v2651_v43, 0.0  ;;  %v1365_v46 = vpop.permute.xlu1 %1364 }
 0x1bb   : > { %1442 = vst.msk [vmem:[#allocation3 + $0x98] sm:$0xff] %vm1422_vm6, %v1365_v46  ;;  %1057 = vrot.lane.b32.xlu0 %v9392_v20, %s8045_s24  ;;  %v9551_v46 = vsel %vm12135_vm1, %v2341_v36, %v2342_v38 }
 0x1bc   : > { %2881 = vst.msk [vmem:[#allocation4 + $0x30] sm:$0xff] %vm2806_vm13, %v2775_v10  ;;  %1055 = vrot.lane.b32.xlu1 %v9334_v41, %s8045_s24 }
 0x1bd   : > { %1568 = vst.msk [vmem:[#allocation3 + $0x80] sm:$0xff] %vm1551_vm7, %v1488_v31  ;;  %v9435_v37 = vld [vmem:[#allocation4 + $0x48] sm:$0xff]  ;;  %v1492_v57 = vpop.permute.xlu0 %1491 }
 0x1be   : > { %v1490_v54 = vpop.permute.xlu1 %1489  ;;  %v3640_v3 = vrot.slane %v9435_v37, 7  ;;  %1570 = vst.msk [vmem:[#allocation3 + $0x90] sm:$0xff] %vm1551_vm7, %v1492_v57 }
 0x1bf   : > { %1569 = vst.msk [vmem:[#allocation3 + $0x88] sm:$0xff] %vm1551_vm7, %v1490_v54  ;;  %v9439_v58 = vld [vmem:[#allocation4 + $0x28] sm:$0xff]  ;;  %1374 = vrot.lane.b32.xlu0 %v9346_v34, %s8046_s25 }
 0x1c0   : > { %1059 = vrot.lane.b32.xlu1 %v9407_v26, %s8045_s24  ;;  %v3030_v41 = vrot.slane %v9439_v58, 7  ;;  %v9446_v59 = vsel %vm634_vm2, %v3639_v27, %v3640_v3 }
 0x1c1   : > { %v9450_v62 = vld [vmem:[#allocation4 + $0x50] sm:$0xff]  ;;  %3140 = vst.msk [vmem:[#allocation5 + $0x20] sm:$0xff] %vm2806_vm13, %v9446_v59  ;;  %v1713_v44 = vpop.permute.xlu0 %1712 }
 0x1c2   : > { %v1494_v39 = vpop.permute.xlu1 %1493  ;;  %v9455_v63 = vsel %vm634_vm2, %v3634_v32, %v3030_v41  ;;  %v3642_v49 = vrot.slane %v9450_v62, 7  ;;  %1793 = vst.msk [vmem:[#allocation3 + $0x80] sm:$0xff] %vm1776_vm8, %v1713_v44 }
 0x1c3   : > { %1571 = vst.msk [vmem:[#allocation3 + $0x98] sm:$0xff] %vm1551_vm7, %v1494_v39  ;;  %v9459_v5 = vld [vmem:[#allocation4 + $0x30] sm:$0xff]  ;;  %1378 = vrot.lane.b32.xlu0 %v9117_v12, %s8046_s25 }
 0x1c4   : > { %3138 = vst.msk [vmem:[#allocation5 + $0x10] sm:$0xff] %vm2806_vm13, %v9455_v63  ;;  %1376 = vrot.lane.b32.xlu1 %v9354_v51, %s8046_s25  ;;  %v3032_v34 = vrot.slane %v9459_v5, 7  ;;  %v9468_v13 = vsel %vm634_vm2, %v3640_v3, %v3642_v49 }
 0x1c5   : > { %3141 = vst.msk [vmem:[#allocation5 + $0x28] sm:$0xff] %vm2806_vm13, %v9468_v13  ;;  %v1717_v6 = vpop.permute.xlu0 %1716 }
 0x1c6   : > { %v1715_v50 = vpop.permute.xlu1 %1714  ;;  %v9475_v1 = vsel %vm634_vm2, %v3030_v41, %v3032_v34  ;;  %1795 = vst.msk [vmem:[#allocation3 + $0x90] sm:$0xff] %vm1776_vm8, %v1717_v6 }
 0x1c7   : > { %1794 = vst.msk [vmem:[#allocation3 + $0x88] sm:$0xff] %vm1776_vm8, %v1715_v50  ;;  %1503 = vrot.lane.b32.xlu0 %v9326_v40, %s8047_s26 }
 0x1c8   : > { %3139 = vst.msk [vmem:[#allocation5 + $0x18] sm:$0xff] %vm2806_vm13, %v9475_v1  ;;  %1380 = vrot.lane.b32.xlu1 %v9131_v2, %s8046_s25 }
 0x1c9   : > { %v2035_v16 = vpop.permute.xlu0 %2034 }
 0x1ca   : > { %v1719_v51 = vpop.permute.xlu1 %1718  ;;  %2115 = vst.msk [vmem:[#allocation3 + $0x80] sm:$0xff] %vm2098_vm9, %v2035_v16 }
 0x1cb   : > { %1796 = vst.msk [vmem:[#allocation3 + $0x98] sm:$0xff] %vm1776_vm8, %v1719_v51  ;;  %1507 = vrot.lane.b32.xlu0 %v9107_v11, %s8047_s26 }
 0x1cc   : > { %1505 = vrot.lane.b32.xlu1 %v9337_v45, %s8047_s26  ;;  %v1668_v45 = vrot.slane %v1189_v19, 1 }
 0x1cd   : > { %v2039_v40 = vpop.permute.xlu0 %2038 }
 0x1ce   : > { %v2037_v4 = vpop.permute.xlu1 %2036  ;;  %2117 = vst.msk [vmem:[#allocation3 + $0x90] sm:$0xff] %vm2098_vm9, %v2039_v40  ;;  %v9509_v24 = vsel %vm12135_vm1, %v1666_v7, %v1668_v45  ;;  %v1194_v45 = vld [vmem:[#allocation2 + $0x200] sm:$0xff] }
 0x1cf   : > { %2116 = vst.msk [vmem:[#allocation3 + $0x88] sm:$0xff] %vm2098_vm9, %v2037_v4  ;;  %1728 = vrot.lane.b32.xlu0 %v9392_v20, %s8048_s27 }
 0x1d0   : > { %1509 = vrot.lane.b32.xlu1 %v9119_v61, %s8047_s26 }
 0x1d1   : > { %v2164_v23 = vpop.permute.xlu0 %2163 }
 0x1d2   : > { %v2041_v56 = vpop.permute.xlu1 %2040  ;;  %2244 = vst.msk [vmem:[#allocation3 + $0x80] sm:$0xff] %vm2227_vm10, %v2164_v23  ;;  %v4202_v23 = vld [vmem:[#allocation4 + $0x60] sm:$0xff] }
 0x1d3   : > { %2118 = vst.msk [vmem:[#allocation3 + $0x98] sm:$0xff] %vm2098_vm9, %v2041_v56  ;;  %1732 = vrot.lane.b32.xlu0 %v9500_v21, %s8048_s27  ;;  %v9583_v56 = vld [vmem:[#allocation2 + $0x208] sm:$0xff] }
 0x1d4   : > { %1730 = vrot.lane.b32.xlu1 %v9407_v26, %s8048_s27 }
 0x1d5   : > { %v2168_v8 = vpop.permute.xlu0 %2167 }
 0x1d6   : > { %v2166_v20 = vpop.permute.xlu1 %2165  ;;  %2246 = vst.msk [vmem:[#allocation3 + $0x90] sm:$0xff] %vm2227_vm10, %v2168_v8 }
 0x1d7   : > { %2245 = vst.msk [vmem:[#allocation3 + $0x88] sm:$0xff] %vm2227_vm10, %v2166_v20  ;;  %2050 = vrot.lane.b32.xlu0 %v9117_v12, %s8049_s28 }
 0x1d8   : > { %1734 = vrot.lane.b32.xlu1 %v9509_v24, %s8048_s27 }
 0x1d9   : > { %v2389_v26 = vpop.permute.xlu0 %2388 }
 0x1da   : > { %v2170_v28 = vpop.permute.xlu1 %2169  ;;  %2469 = vst.msk [vmem:[#allocation3 + $0x80] sm:$0xff] %vm2452_vm11, %v2389_v26  ;;  %v1322_v26 = vrot.slane %v9583_v56, 7 }
 0x1db   : > { %2247 = vst.msk [vmem:[#allocation3 + $0x98] sm:$0xff] %vm2227_vm10, %v2170_v28  ;;  %2054 = vrot.lane.b32.xlu0 %v9192_v29, %s8049_s28  ;;  %v1321_v28 = vrot.slane %v1194_v45, 7 }
 0x1dc   : > { %2052 = vrot.lane.b32.xlu1 %v9131_v2, %s8049_s28 }
 0x1dd   : > { %v820_v47 = vpop.permute.xlu0 %819 }
 0x1de   : > { %v2391_v33 = vpop.permute.xlu1 %2390  ;;  %896 = vst.msk [vmem:[#allocation3 + $0xa0] sm:$0xff] %vm875_vm4, %v820_v47  ;;  %v4315_v47 = vrot.slane %v4202_v23, 7  ;;  %v9680_v23 = vld [vmem:[#allocation4 + $0x8] sm:$0xff] }
 0x1df   : > { %2470 = vst.msk [vmem:[#allocation3 + $0x88] sm:$0xff] %vm2452_vm11, %v2391_v33  ;;  %2179 = vrot.lane.b32.xlu0 %v9107_v11, %s8050_s29  ;;  %v9594_v33 = vld [vmem:[#allocation2 + $0x210] sm:$0xff] }
 0x1e0   : > { %2056 = vrot.lane.b32.xlu1 %v9206_v9, %s8049_s28 }
 0x1e1   : > { %v2393_v35 = vpop.permute.xlu0 %2392  ;;  %v2501_v2 = vld [vmem:[#allocation3 + $0x80] sm:$0xff] }
 0x1e2   : > { %v822_v12 = vpop.permute.xlu1 %821  ;;  %2471 = vst.msk [vmem:[#allocation3 + $0x90] sm:$0xff] %vm2452_vm11, %v2393_v35 }
 0x1e3   : > { %897 = vst.msk [vmem:[#allocation3 + $0xa8] sm:$0xff] %vm875_vm4, %v822_v12  ;;  %2183 = vrot.lane.b32.xlu0 %v9181_v22, %s8050_s29 }
 0x1e4   : > { %2181 = vrot.lane.b32.xlu1 %v9119_v61, %s8050_s29 }
 0x1e5   : > { %v824_v53 = vpop.permute.xlu0 %823 }
 0x1e6   : > { %v2395_v60 = vpop.permute.xlu1 %2394  ;;  %v2502_v17 = vld [vmem:[#allocation3 + $0x88] sm:$0xff]  ;;  %898 = vst.msk [vmem:[#allocation3 + $0xb0] sm:$0xff] %vm875_vm4, %v824_v53 }
 0x1e7   : > { %2472 = vst.msk [vmem:[#allocation3 + $0x98] sm:$0xff] %vm2452_vm11, %v2395_v60  ;;  %v2525_v52 = vpack.c.bf16 %v2502_v17, %v2501_v2  ;;  %2404 = vrot.lane.b32.xlu0 %v9500_v21, %s8051_s15  ;;  %v1324_v17 = vrot.slane %v9594_v33, 7 }
 0x1e8   : > { %2185 = vrot.lane.b32.xlu1 %v9194_v55, %s8050_s29 }
 0x1e9   : > { %7876 = vmatprep.mubr.msk.bf16.mxu0 %vm2560_vm12, %v2525_v52  ;;  %v1046_v42 = vpop.permute.xlu0 %1045  ;;  %v2503_v43 = vld [vmem:[#allocation3 + $0x90] sm:$0xff] }
 0x1ea   : > { %v826_v18 = vpop.permute.xlu1 %825  ;;  %1122 = vst.msk [vmem:[#allocation3 + $0xa0] sm:$0xff] %vm1101_vm5, %v1046_v42 }
 0x1eb   : > { %899 = vst.msk [vmem:[#allocation3 + $0xb8] sm:$0xff] %vm875_vm4, %v826_v18  ;;  %835 = vrot.lane.b32.xlu0 %v9107_v11, %s8044_s23  ;;  %v9561_v11 = vsel %vm12135_vm1, %v2342_v38, %v2344_v30  ;;  %v1323_v18 = vsel %vm634_vm2, %v1321_v28, %v1322_v26  ;;  %v1325_v30 = vsel %vm634_vm2, %v1322_v26, %v1324_v17 }
 0x1ec   : > { %2406 = vrot.lane.b32.xlu1 %v9509_v24, %s8051_s15 }
 0x1ed   : > { %v1050_v48 = vpop.permute.xlu0 %1049 }
 0x1ee   : > { %v1048_v10 = vpop.permute.xlu1 %1047  ;;  %v2504_v31 = vld [vmem:[#allocation3 + $0x98] sm:$0xff]  ;;  %1124 = vst.msk [vmem:[#allocation3 + $0xb0] sm:$0xff] %vm1101_vm5, %v1050_v48 }
 0x1ef   : > { %1123 = vst.msk [vmem:[#allocation3 + $0xa8] sm:$0xff] %vm1101_vm5, %v1048_v10  ;;  %v2526_v27 = vpack.c.bf16 %v2504_v31, %v2503_v43  ;;  %2408 = vrot.lane.b32.xlu0 %v9551_v46, %s8051_s15 }
 0x1f0   : > { %837 = vrot.lane.b32.xlu1 %v9119_v61, %s8044_s23 }
 0x1f1   : > { %v7866_v54 = vpop.f32.mrf.mxu0  ;;  %7877 = vmatmul.mubr.msk.bf16.gmra.mxu0 %vm2560_vm12, %v2526_v27  ;;  %v1367_v57 = vpop.permute.xlu0 %1366 }
 0x1f2   : > { %v2672_v32 = vadd.f32 %v7866_v54, %v9398_v25  ;;  %v1052_v3 = vpop.permute.xlu1 %1051  ;;  %1443 = vst.msk [vmem:[#allocation3 + $0xa0] sm:$0xff] %vm1422_vm6, %v1367_v57  ;;  %v1197_v57 = vld [vmem:[#allocation2 + $0x218] sm:$0xff] }
 0x1f3   : > { %1125 = vst.msk [vmem:[#allocation3 + $0xb8] sm:$0xff] %vm1101_vm5, %v1052_v3  ;;  %v2663_v41 = vpop.f32.mrf.mxu0  ;;  %839 = vrot.lane.b32.xlu0 %v9181_v22, %s8044_s23  ;;  %v1676_v3 = vrot.slane %v9594_v33, 1 }
 0x1f4   : > { %v2780_v39 = vmax.f32 %v2672_v32, 0.0  ;;  %v2664_v61 = vadd.f32 %v9398_v25, %v2663_v41  ;;  %2410 = vrot.lane.b32.xlu1 %v9561_v11, %s8051_s15  ;;  %v1675_v32 = vrot.slane %v9583_v56, 1 }
 0x1f5   : > { %v7867_v49 = vpop.f32.mrf.mxu0  ;;  %v1371_v6 = vpop.permute.xlu0 %1370 }
 0x1f6   : > { %2886 = vst.msk [vmem:[#allocation4 + $0x88] sm:$0xff] %vm2806_vm13, %v2780_v39  ;;  %v2778_v44 = vmax.f32 %v2664_v61, 0.0  ;;  %v2675_v34 = vadd.f32 %v7867_v49, %v9398_v25  ;;  %v1369_v50 = vpop.permute.xlu1 %1368  ;;  %v1677_v39 = vsel %vm12135_vm1, %v1675_v32, %v1676_v3  ;;  %v1870_v49 = vld [vmem:[#allocation2 + $0x220] sm:$0xff] }
 0x1f7   : > { %1444 = vst.msk [vmem:[#allocation3 + $0xa8] sm:$0xff] %vm1422_vm6, %v1369_v50  ;;  %v2666_v51 = vpop.f32.mrf.mxu0  ;;  %1445 = vst.msk [vmem:[#allocation3 + $0xb0] sm:$0xff] %vm1422_vm6, %v1371_v6  ;;  %1061 = vrot.lane.b32.xlu0 %v9500_v21, %s8045_s24  ;;  %v3044_v21 = vrot.slane %v2928_v15, 7 }
 0x1f8   : > { %2884 = vst.msk [vmem:[#allocation4 + $0x68] sm:$0xff] %vm2806_vm13, %v2778_v44  ;;  %v2781_v16 = vmax.f32 %v2675_v34, 0.0  ;;  %v2667_v4 = vadd.f32 %v9398_v25, %v2666_v51  ;;  %841 = vrot.lane.b32.xlu1 %v9194_v55, %s8044_s23  ;;  %v1871_v44 = vld [vmem:[#allocation2 + $0x228] sm:$0xff]  ;;  %v1872_v51 = vld [vmem:[#allocation2 + $0x230] sm:$0xff]  ;;  %s8053_s23 = smov 48  }
 0x1f9   : > { %v1496_v40 = vpop.permute.xlu0 %1495  ;;  %v1998_v6 = vrot.slane %v1871_v44, 7 }
 0x1fa   : > { %2887 = vst.msk [vmem:[#allocation4 + $0x90] sm:$0xff] %vm2806_vm13, %v2781_v16  ;;  %v2779_v7 = vmax.f32 %v2667_v4, 0.0  ;;  %v1373_v19 = vpop.permute.xlu1 %1372  ;;  %v2000_v4 = vrot.slane %v1872_v51, 7 }
 0x1fb   : > { %1446 = vst.msk [vmem:[#allocation3 + $0xb8] sm:$0xff] %vm1422_vm6, %v1373_v19  ;;  %1065 = vrot.lane.b32.xlu0 %v9551_v46, %s8045_s24 }
 0x1fc   : > { %2885 = vst.msk [vmem:[#allocation4 + $0x70] sm:$0xff] %vm2806_vm13, %v2779_v7  ;;  %1063 = vrot.lane.b32.xlu1 %v9509_v24, %s8045_s24  ;;  %v2001_v19 = vsel %vm634_vm2, %v1998_v6, %v2000_v4 }
 0x1fd   : > { %1572 = vst.msk [vmem:[#allocation3 + $0xa0] sm:$0xff] %vm1551_vm7, %v1496_v40  ;;  %v9591_v20 = vld [vmem:[#allocation4 + $0x88] sm:$0xff]  ;;  %v1500_v35 = vpop.permute.xlu0 %1499 }
 0x1fe   : > { %v1498_v8 = vpop.permute.xlu1 %1497  ;;  %v9597_v12 = vrot.slane %v9591_v20, 7  ;;  %1574 = vst.msk [vmem:[#allocation3 + $0xb0] sm:$0xff] %vm1551_vm7, %v1500_v35  ;;  %v2912_v35 = vld [vmem:[#allocation4] sm:$0xff] }
 0x1ff   : > { %1573 = vst.msk [vmem:[#allocation3 + $0xa8] sm:$0xff] %vm1551_vm7, %v1498_v8  ;;  %v9600_v24 = vld [vmem:[#allocation4 + $0x68] sm:$0xff]  ;;  %1382 = vrot.lane.b32.xlu0 %v9192_v29, %s8046_s25  ;;  %v3025_v8 = vrot.slane %v9680_v23, 7 }
 0x200   : > { %1067 = vrot.lane.b32.xlu1 %v9561_v11, %s8045_s24  ;;  %v4316_v2 = vrot.slane %v9600_v24, 7  ;;  %v3046_v60 = vsel %vm634_vm2, %v3044_v21, %v9597_v12  ;;  %v9682_v21 = vld [vmem:[#allocation4 + $0x10] sm:$0xff] }
 0x201   : > { %v9611_v53 = vld [vmem:[#allocation4 + $0x90] sm:$0xff]  ;;  %3144 = vst.msk [vmem:[#allocation5 + $0x40] sm:$0xff] %vm2806_vm13, %v3046_v60  ;;  %v1721_v14 = vpop.permute.xlu0 %1720  ;;  %v3027_v28 = vrot.slane %v9682_v21, 7  ;;  %v3024_v60 = vrot.slane %v2912_v35, 7  ;;  %v3318_v35 = vrot.slane %v9439_v58, 1 }
 0x202   : > { %v1502_v52 = vpop.permute.xlu1 %1501  ;;  %v9616_v36 = vsel %vm634_vm2, %v4315_v47, %v4316_v2  ;;  %v3652_v38 = vrot.slane %v9611_v53, 7  ;;  %1797 = vst.msk [vmem:[#allocation3 + $0xa0] sm:$0xff] %vm1776_vm8, %v1721_v14  ;;  %v1873_v14 = vld [vmem:[#allocation2 + $0x238] sm:$0xff] }
 0x203   : > { %1575 = vst.msk [vmem:[#allocation3 + $0xb8] sm:$0xff] %vm1551_vm7, %v1502_v52  ;;  %v9620_v42 = vld [vmem:[#allocation4 + $0x70] sm:$0xff]  ;;  %1386 = vrot.lane.b32.xlu0 %v1323_v18, %s8046_s25 }
 0x204   : > { %3142 = vst.msk [vmem:[#allocation5 + $0x30] sm:$0xff] %vm2806_vm13, %v9616_v36  ;;  %1384 = vrot.lane.b32.xlu1 %v9206_v9, %s8046_s25  ;;  %v4318_v29 = vrot.slane %v9620_v42, 7  ;;  %v9630_v43 = vsel %vm634_vm2, %v9597_v12, %v3652_v38  ;;  %v2352_v38 = vrot.slane %v1872_v51, 1 }
 0x205   : > { %3145 = vst.msk [vmem:[#allocation5 + $0x48] sm:$0xff] %vm2806_vm13, %v9630_v43  ;;  %v1725_v9 = vpop.permute.xlu0 %1724 }
 0x206   : > { %v1723_v10 = vpop.permute.xlu1 %1722  ;;  %v9635_v31 = vsel %vm634_vm2, %v4316_v2, %v4318_v29  ;;  %1799 = vst.msk [vmem:[#allocation3 + $0xb0] sm:$0xff] %vm1776_vm8, %v1725_v9  ;;  %v3026_v29 = vsel %vm634_vm2, %v3024_v60, %v3025_v8 }
 0x207   : > { %1798 = vst.msk [vmem:[#allocation3 + $0xa8] sm:$0xff] %vm1776_vm8, %v1723_v10  ;;  %1511 = vrot.lane.b32.xlu0 %v9181_v22, %s8047_s26 }
 0x208   : > { %3143 = vst.msk [vmem:[#allocation5 + $0x38] sm:$0xff] %vm2806_vm13, %v9635_v31  ;;  %1388 = vrot.lane.b32.xlu1 %v1325_v30, %s8046_s25  ;;  %3136 = vst.msk [vmem:[#allocation5] sm:$0xff] %vm2806_vm13, %v3026_v29 }
 0x209   : > { %v2043_v27 = vpop.permute.xlu0 %2042 }
 0x20a   : > { %v1727_v48 = vpop.permute.xlu1 %1726  ;;  %2119 = vst.msk [vmem:[#allocation3 + $0xa0] sm:$0xff] %vm2098_vm9, %v2043_v27 }
 0x20b   : > { %1800 = vst.msk [vmem:[#allocation3 + $0xb8] sm:$0xff] %vm1776_vm8, %v1727_v48  ;;  %1515 = vrot.lane.b32.xlu0 %v9583_v56, %s8047_s26 }
 0x20c   : > { %1513 = vrot.lane.b32.xlu1 %v9194_v55, %s8047_s26  ;;  %v1678_v55 = vrot.slane %v1197_v57, 1 }
 0x20d   : > { %v2047_v22 = vpop.permute.xlu0 %2046 }
 0x20e   : > { %v2045_v54 = vpop.permute.xlu1 %2044  ;;  %2121 = vst.msk [vmem:[#allocation3 + $0xb0] sm:$0xff] %vm2098_vm9, %v2047_v22  ;;  %v1679_v34 = vsel %vm12135_vm1, %v1676_v3, %v1678_v55 }
 0x20f   : > { %2120 = vst.msk [vmem:[#allocation3 + $0xa8] sm:$0xff] %vm2098_vm9, %v2045_v54  ;;  %1736 = vrot.lane.b32.xlu0 %v9551_v46, %s8048_s27  ;;  %v1997_v46 = vrot.slane %v1870_v49, 7 }
 0x210   : > { %1517 = vrot.lane.b32.xlu1 %v9594_v33, %s8047_s26 }
 0x211   : > { %v2172_v61 = vpop.permute.xlu0 %2171 }
 0x212   : > { %v2049_v41 = vpop.permute.xlu1 %2048  ;;  %2248 = vst.msk [vmem:[#allocation3 + $0xa0] sm:$0xff] %vm2227_vm10, %v2172_v61 }
 0x213   : > { %2122 = vst.msk [vmem:[#allocation3 + $0xb8] sm:$0xff] %vm2098_vm9, %v2049_v41  ;;  %1740 = vrot.lane.b32.xlu0 %v1677_v39, %s8048_s27 }
 0x214   : > { %1738 = vrot.lane.b32.xlu1 %v9561_v11, %s8048_s27  ;;  %v1999_v11 = vsel %vm634_vm2, %v1997_v46, %v1998_v6 }
 0x215   : > { %v2176_v16 = vpop.permute.xlu0 %2175 }
 0x216   : > { %v2174_v50 = vpop.permute.xlu1 %2173  ;;  %2250 = vst.msk [vmem:[#allocation3 + $0xb0] sm:$0xff] %vm2227_vm10, %v2176_v16 }
 0x217   : > { %2249 = vst.msk [vmem:[#allocation3 + $0xa8] sm:$0xff] %vm2227_vm10, %v2174_v50  ;;  %2058 = vrot.lane.b32.xlu0 %v1323_v18, %s8049_s28  ;;  %v2351_v18 = vrot.slane %v1871_v44, 1 }
 0x218   : > { %1742 = vrot.lane.b32.xlu1 %v1679_v34, %s8048_s27  ;;  %s382_s27 = scalar_lea.vmem %s12130_s11, %s12192_s18 }
 0x219   : > { %v2397_v7 = vpop.permute.xlu0 %2396  ;;  %v2353_v48 = vsel %vm12135_vm1, %v2351_v18, %v2352_v38 }
 0x21a   : > { %v2178_v15 = vpop.permute.xlu1 %2177  ;;  %2473 = vst.msk [vmem:[#allocation3 + $0xa0] sm:$0xff] %vm2452_vm11, %v2397_v7 }
 0x21b   : > { %2251 = vst.msk [vmem:[#allocation3 + $0xb8] sm:$0xff] %vm2227_vm10, %v2178_v15  ;;  %2062 = vrot.lane.b32.xlu0 %v1999_v11, %s8049_s28 }
 0x21c   : > { %2060 = vrot.lane.b32.xlu1 %v1325_v30, %s8049_s28 }
 0x21d   : > { %v828_v45 = vpop.permute.xlu0 %827 }
 0x21e   : > { %v2399_v40 = vpop.permute.xlu1 %2398  ;;  %900 = vst.msk [vmem:[#allocation3 + $0xc0] sm:$0xff] %vm875_vm4, %v828_v45 }
 0x21f   : > { %2474 = vst.msk [vmem:[#allocation3 + $0xa8] sm:$0xff] %vm2452_vm11, %v2399_v40  ;;  %2187 = vrot.lane.b32.xlu0 %v9583_v56, %s8050_s29  ;;  %v3028_v56 = vsel %vm634_vm2, %v3025_v8, %v3027_v28  ;;  %v3319_v8 = vrot.slane %v9459_v5, 1  ;;  %v2919_v28 = vld [vmem:[#allocation4 + $0x38] sm:$0xff] }
 0x220   : > { %2064 = vrot.lane.b32.xlu1 %v2001_v19, %s8049_s28  ;;  %3137 = vst.msk [vmem:[#allocation5 + $0x8] sm:$0xff] %vm2806_vm13, %v3028_v56  ;;  %v3321_v56 = vrot.slane %v2919_v28, 1 }
 0x221   : > { %v2401_v47 = vpop.permute.xlu0 %2400  ;;  %v2505_v2 = vld [vmem:[#allocation3 + $0xa0] sm:$0xff] }
 0x222   : > { %v830_v26 = vpop.permute.xlu1 %829  ;;  %2475 = vst.msk [vmem:[#allocation3 + $0xb0] sm:$0xff] %vm2452_vm11, %v2401_v47  ;;  %v2936_v47 = vld [vmem:[#allocation4 + $0xc0] sm:$0xff] }
 0x223   : > { %901 = vst.msk [vmem:[#allocation3 + $0xc8] sm:$0xff] %vm875_vm4, %v830_v26  ;;  %2191 = vrot.lane.b32.xlu0 %v1871_v44, %s8050_s29  ;;  %v3314_v44 = vrot.slane %v9682_v21, 1  ;;  %v3054_v18 = vrot.slane %v2936_v47, 7  ;;  %v7997_v47 = vld [vmem:[%s12122_s3 + $0x10] sm:$0xff]  }
 0x224   : > { %2189 = vrot.lane.b32.xlu1 %v9594_v33, %s8050_s29  ;;  %v2354_v33 = vrot.slane %v1873_v14, 1 }
 0x225   : > { %v832_v30 = vpop.permute.xlu0 %831 }
 0x226   : > { %v2403_v17 = vpop.permute.xlu1 %2402  ;;  %v2506_v52 = vld [vmem:[#allocation3 + $0xa8] sm:$0xff]  ;;  %902 = vst.msk [vmem:[#allocation3 + $0xd0] sm:$0xff] %vm875_vm4, %v832_v30  ;;  %v2355_v32 = vsel %vm12135_vm1, %v2352_v38, %v2354_v33  ;;  %v3322_v33 = vsel %vm12135_vm1, %v3319_v8, %v3321_v56 }
 0x227   : > { %2476 = vst.msk [vmem:[#allocation3 + $0xb8] sm:$0xff] %vm2452_vm11, %v2403_v17  ;;  %v2527_v10 = vpack.c.bf16 %v2506_v52, %v2505_v2  ;;  %2412 = vrot.lane.b32.xlu0 %v1677_v39, %s8051_s15  ;;  %v3313_v39 = vrot.slane %v9680_v23, 1  ;;  %v4210_v17 = vld [vmem:[#allocation4 + $0xa0] sm:$0xff]  ;;  %v3320_v52 = vsel %vm12135_vm1, %v3318_v35, %v3319_v8  ;;  %v7998_v56 = vld [vmem:[%s12122_s3 + $0x8] sm:$0xff]  }
 0x228   : > { %2193 = vrot.lane.b32.xlu1 %v1872_v51, %s8050_s29  ;;  %v4325_v29 = vrot.slane %v4210_v17, 7  ;;  %s8060_s29 = smov 80  }
 0x229   : > { %7880 = vmatprep.mubr.msk.bf16.mxu0 %vm2560_vm12, %v2527_v10  ;;  %v1054_v27 = vpop.permute.xlu0 %1053  ;;  %v2507_v54 = vld [vmem:[#allocation3 + $0xb0] sm:$0xff]  ;;  %v3315_v19 = vsel %vm12135_vm1, %v3313_v39, %v3314_v44 }
 0x22a   : > { %v834_v9 = vpop.permute.xlu1 %833  ;;  %1126 = vst.msk [vmem:[#allocation3 + $0xc0] sm:$0xff] %vm1101_vm5, %v1054_v27 }
 0x22b   : > { %903 = vst.msk [vmem:[#allocation3 + $0xd8] sm:$0xff] %vm875_vm4, %v834_v9  ;;  %2416 = vrot.lane.b32.xlu0 %v2353_v48, %s8051_s15 }
 0x22c   : > { %2414 = vrot.lane.b32.xlu1 %v1679_v34, %s8051_s15  ;;  %v2915_v34 = vld [vmem:[#allocation4 + $0x18] sm:$0xff] }
 0x22d   : > { %v1058_v22 = vpop.permute.xlu0 %1057  ;;  %v3316_v4 = vrot.slane %v2915_v34, 1 }
 0x22e   : > { %v1056_v3 = vpop.permute.xlu1 %1055  ;;  %v2508_v57 = vld [vmem:[#allocation3 + $0xb8] sm:$0xff]  ;;  %1128 = vst.msk [vmem:[#allocation3 + $0xd0] sm:$0xff] %vm1101_vm5, %v1058_v22 }
 0x22f   : > { %1127 = vst.msk [vmem:[#allocation3 + $0xc8] sm:$0xff] %vm1101_vm5, %v1056_v3  ;;  %v2528_v55 = vpack.c.bf16 %v2508_v57, %v2507_v54  ;;  %3168 = vrot.lane.b32.xlu0 %v9680_v23, %s8045_s24  ;;  %v3317_v26 = vsel %vm12135_vm1, %v3314_v44, %v3316_v4 }
 0x230   : > { %2418 = vrot.lane.b32.xlu1 %v2355_v32, %s8051_s15 }
 0x231   : > { %v7870_v41 = vpop.f32.mrf.mxu0  ;;  %7881 = vmatmul.mubr.msk.bf16.gmra.mxu0 %vm2560_vm12, %v2528_v55  ;;  %v1375_v50 = vpop.permute.xlu0 %1374 }
 0x232   : > { %v2688_v61 = vadd.f32 %v7870_v41, %v9398_v25  ;;  %v1060_v49 = vpop.permute.xlu1 %1059  ;;  %1447 = vst.msk [vmem:[#allocation3 + $0xc0] sm:$0xff] %vm1422_vm6, %v1375_v50 }
 0x233   : > { %1129 = vst.msk [vmem:[#allocation3 + $0xd8] sm:$0xff] %vm1101_vm5, %v1060_v49  ;;  %v2679_v46 = vpop.f32.mrf.mxu0  ;;  %3172 = vrot.lane.b32.xlu0 %v9439_v58, %s8045_s24 }
 0x234   : > { %v2784_v6 = vmax.f32 %v2688_v61, 0.0  ;;  %v2680_v51 = vadd.f32 %v9398_v25, %v2679_v46  ;;  %3170 = vrot.lane.b32.xlu1 %v9682_v21, %s8045_s24  ;;  %v3529_v46 = vld [vmem:[#allocation4 + $0x58] sm:$0xff] }
 0x235   : > { %v7871_v16 = vpop.f32.mrf.mxu0  ;;  %v1379_v40 = vpop.permute.xlu0 %1378 }
 0x236   : > { %2890 = vst.msk [vmem:[#allocation4 + $0xc8] sm:$0xff] %vm2806_vm13, %v2784_v6  ;;  %v2782_v15 = vmax.f32 %v2680_v51, 0.0  ;;  %v2691_v11 = vadd.f32 %v7871_v16, %v9398_v25  ;;  %v1377_v7 = vpop.permute.xlu1 %1376  ;;  %v3996_v16 = vrot.slane %v3529_v46, 1 }
 0x237   : > { %1448 = vst.msk [vmem:[#allocation3 + $0xc8] sm:$0xff] %vm1422_vm6, %v1377_v7  ;;  %v2682_v45 = vpop.f32.mrf.mxu0  ;;  %1449 = vst.msk [vmem:[#allocation3 + $0xd0] sm:$0xff] %vm1422_vm6, %v1379_v40  ;;  %3393 = vrot.lane.b32.xlu0 %v3315_v19, %s8047_s26 }
 0x238   : > { %2888 = vst.msk [vmem:[#allocation4 + $0xa8] sm:$0xff] %vm2806_vm13, %v2782_v15  ;;  %v2785_v23 = vmax.f32 %v2691_v11, 0.0  ;;  %v2683_v21 = vadd.f32 %v9398_v25, %v2682_v45  ;;  %3174 = vrot.lane.b32.xlu1 %v9459_v5, %s8045_s24  ;;  %v7995_v45 = vld [vmem:[%s12122_s3 + $0x20] ss:$0 sps:$4 sm:$0xff]  }
 0x239   : > { %v1504_v25 = vpop.permute.xlu0 %1503  ;;  %7960 = vmatprep.subr.msk.bf16.mxu1 %vm12134_vm14, %v7995_v45 }
 0x23a   : > { %2891 = vst.msk [vmem:[#allocation4 + $0xd0] sm:$0xff] %vm2806_vm13, %v2785_v23  ;;  %v2783_v2 = vmax.f32 %v2683_v21, 0.0  ;;  %v1381_v60 = vpop.permute.xlu1 %1380 }
 0x23b   : > { %1450 = vst.msk [vmem:[#allocation3 + $0xd8] sm:$0xff] %vm1422_vm6, %v1381_v60  ;;  %3397 = vrot.lane.b32.xlu0 %v3320_v52, %s8047_s26 }
 0x23c   : > { %2889 = vst.msk [vmem:[#allocation4 + $0xb0] sm:$0xff] %vm2806_vm13, %v2783_v2  ;;  %3395 = vrot.lane.b32.xlu1 %v3317_v26, %s8047_s26 }
 0x23d   : > { %1576 = vst.msk [vmem:[#allocation3 + $0xc0] sm:$0xff] %vm1551_vm7, %v1504_v25  ;;  %v9744_v38 = vld [vmem:[#allocation4 + $0xc8] sm:$0xff]  ;;  %v1508_v10 = vpop.permute.xlu0 %1507 }
 0x23e   : > { %v1506_v14 = vpop.permute.xlu1 %1505  ;;  %v9747_v30 = vrot.slane %v9744_v38, 7  ;;  %1578 = vst.msk [vmem:[#allocation3 + $0xd0] sm:$0xff] %vm1551_vm7, %v1508_v10  ;;  %v7999_v10 = vld [vmem:[%s12122_s3] sm:$0xff]  }
 0x23f   : > { %1577 = vst.msk [vmem:[#allocation3 + $0xc8] sm:$0xff] %vm1551_vm7, %v1506_v14  ;;  %v9751_v9 = vld [vmem:[#allocation4 + $0xa8] sm:$0xff]  ;;  %3714 = vrot.lane.b32.xlu0 %v9455_v63, %s8049_s28  ;;  %v4670_v14 = vrot.slane %v9620_v42, 1 }
 0x240   : > { %3399 = vrot.lane.b32.xlu1 %v3322_v33, %s8047_s26  ;;  %v4326_v48 = vrot.slane %v9751_v9, 7  ;;  %v3056_v27 = vsel %vm634_vm2, %v3054_v18, %v9747_v30 }
 0x241   : > { %v9760_v54 = vld [vmem:[#allocation4 + $0xd0] sm:$0xff]  ;;  %3148 = vst.msk [vmem:[#allocation5 + $0x60] sm:$0xff] %vm2806_vm13, %v3056_v27  ;;  %v1729_v22 = vpop.permute.xlu0 %1728  ;;  %v4669_v27 = vrot.slane %v9600_v24, 1 }
 0x242   : > { %v1510_v32 = vpop.permute.xlu1 %1509  ;;  %v9764_v3 = vsel %vm634_vm2, %v4325_v29, %v4326_v48  ;;  %v3662_v57 = vrot.slane %v9760_v54, 7  ;;  %1801 = vst.msk [vmem:[#allocation3 + $0xc0] sm:$0xff] %vm1776_vm8, %v1729_v22  ;;  %v4205_v29 = vld [vmem:[#allocation4 + $0x78] sm:$0xff] }
 0x243   : > { %1579 = vst.msk [vmem:[#allocation3 + $0xd8] sm:$0xff] %vm1551_vm7, %v1510_v32  ;;  %v9768_v55 = vld [vmem:[#allocation4 + $0xb0] sm:$0xff]  ;;  %3718 = vrot.lane.b32.xlu0 %v9446_v59, %s8049_s28  ;;  %v4672_v22 = vrot.slane %v4205_v29, 1 }
 0x244   : > { %3146 = vst.msk [vmem:[#allocation5 + $0x50] sm:$0xff] %vm2806_vm13, %v9764_v3  ;;  %3716 = vrot.lane.b32.xlu1 %v9475_v1, %s8049_s28  ;;  %v4328_v63 = vrot.slane %v9768_v55, 7  ;;  %v9778_v41 = vsel %vm634_vm2, %v9747_v30, %v3662_v57 }
 0x245   : > { %3149 = vst.msk [vmem:[#allocation5 + $0x68] sm:$0xff] %vm2806_vm13, %v9778_v41  ;;  %v1733_v49 = vpop.permute.xlu0 %1732 }
 0x246   : > { %v1731_v39 = vpop.permute.xlu1 %1730  ;;  %v9783_v61 = vsel %vm634_vm2, %v4326_v48, %v4328_v63  ;;  %1803 = vst.msk [vmem:[#allocation3 + $0xd0] sm:$0xff] %vm1776_vm8, %v1733_v49  ;;  %v9880_v63 = vsel %vm12135_vm1, %v4669_v27, %v4670_v14 }
 0x247   : > { %1802 = vst.msk [vmem:[#allocation3 + $0xc8] sm:$0xff] %vm1776_vm8, %v1731_v39  ;;  %3843 = vrot.lane.b32.xlu0 %v9439_v58, %s8051_s15  ;;  %v3994_v58 = vrot.slane %v9450_v62, 1  ;;  %v9888_v39 = vld [vmem:[%s12121_s2] ss:$0 sm:$0xff] }
 0x248   : > { %3147 = vst.msk [vmem:[#allocation5 + $0x58] sm:$0xff] %vm2806_vm13, %v9783_v61  ;;  %3720 = vrot.lane.b32.xlu1 %v9468_v13, %s8049_s28 }
 0x249   : > { %v2051_v44 = vpop.permute.xlu0 %2050  ;;  %v9818_v7 = vsel %vm12135_vm1, %v3994_v58, %v3996_v16 }
 0x24a   : > { %v1735_v1 = vpop.permute.xlu1 %1734  ;;  %2123 = vst.msk [vmem:[#allocation3 + $0xc0] sm:$0xff] %vm2098_vm9, %v2051_v44 }
 0x24b   : > { %1804 = vst.msk [vmem:[#allocation3 + $0xd8] sm:$0xff] %vm1776_vm8, %v1735_v1  ;;  %3847 = vrot.lane.b32.xlu0 %v9435_v37, %s8051_s15 }
 0x24c   : > { %3845 = vrot.lane.b32.xlu1 %v9459_v5, %s8051_s15  ;;  %v3993_v5 = vrot.slane %v9435_v37, 1 }
 0x24d   : > { %v2055_v50 = vpop.permute.xlu0 %2054 }
 0x24e   : > { %v2053_v34 = vpop.permute.xlu1 %2052  ;;  %2125 = vst.msk [vmem:[#allocation3 + $0xd0] sm:$0xff] %vm2098_vm9, %v2055_v50  ;;  %v9812_v4 = vsel %vm12135_vm1, %v3993_v5, %v3994_v58 }
 0x24f   : > { %2124 = vst.msk [vmem:[#allocation3 + $0xc8] sm:$0xff] %vm2098_vm9, %v2053_v34  ;;  %4068 = vrot.lane.b32.xlu0 %v3320_v52, %s8052_s22  ;;  %v9893_v34 = vsel %vm12135_vm1, %v4670_v14, %v4672_v22 }
 0x250   : > { %3849 = vrot.lane.b32.xlu1 %v9450_v62, %s8051_s15 }
 0x251   : > { %v2180_v51 = vpop.permute.xlu0 %2179 }
 0x252   : > { %v2057_v6 = vpop.permute.xlu1 %2056  ;;  %2252 = vst.msk [vmem:[#allocation3 + $0xc0] sm:$0xff] %vm2227_vm10, %v2180_v51 }
 0x253   : > { %2126 = vst.msk [vmem:[#allocation3 + $0xd8] sm:$0xff] %vm2098_vm9, %v2057_v6  ;;  %4072 = vrot.lane.b32.xlu0 %v9812_v4, %s8052_s22 }
 0x254   : > { %4070 = vrot.lane.b32.xlu1 %v3322_v33, %s8052_s22 }
 0x255   : > { %v2184_v11 = vpop.permute.xlu0 %2183 }
 0x256   : > { %v2182_v15 = vpop.permute.xlu1 %2181  ;;  %2254 = vst.msk [vmem:[#allocation3 + $0xd0] sm:$0xff] %vm2227_vm10, %v2184_v11 }
 0x257   : > { %2253 = vst.msk [vmem:[#allocation3 + $0xc8] sm:$0xff] %vm2227_vm10, %v2182_v15  ;;  %4390 = vrot.lane.b32.xlu0 %v9446_v59, %s8053_s23  ;;  %v5015_v59 = vsel %vm12134_vm14, %v7995_v45, 0 }
 0x258   : > { %4074 = vrot.lane.b32.xlu1 %v9818_v7, %s8052_s22  ;;  %7893 = vmatpush3.bf16.msra.mxu1 %v5015_v59 }
 0x259   : > { %v2405_v40 = vpop.permute.xlu0 %2404 }
 0x25a   : > { %v2186_v19 = vpop.permute.xlu1 %2185  ;;  %2477 = vst.msk [vmem:[#allocation3 + $0xc0] sm:$0xff] %vm2452_vm11, %v2405_v40  ;;  %v3550_v40 = vld [vmem:[#allocation4 + $0x100] sm:$0xff] }
 0x25b   : > { %2255 = vst.msk [vmem:[#allocation3 + $0xd8] sm:$0xff] %vm2227_vm10, %v2186_v19  ;;  %4394 = vrot.lane.b32.xlu0 %v9616_v36, %s8053_s23 }
 0x25c   : > { %4392 = vrot.lane.b32.xlu1 %v9468_v13, %s8053_s23  ;;  %v7996_v13 = vld [vmem:[%s12122_s3 + $0x18] sm:$0xff]  }
 0x25d   : > { %v836_v21 = vpop.permute.xlu0 %835  ;;  %7894 = vmatprep.subr.bf16.mxu1 %v7996_v13 }
 0x25e   : > { %v2407_v23 = vpop.permute.xlu1 %2406  ;;  %904 = vst.msk [vmem:[#allocation3 + $0xe0] sm:$0xff] %vm875_vm4, %v836_v21  ;;  %7895 = vmatpush3.bf16.msra.mxu1 %v7996_v13  ;;  %v4218_v21 = vld [vmem:[#allocation4 + $0xe0] sm:$0xff]  ;;  %v3669_v13 = vrot.slane %v3550_v40, 7 }
 0x25f   : > { %2478 = vst.msk [vmem:[#allocation3 + $0xc8] sm:$0xff] %vm2452_vm11, %v2407_v23  ;;  %4519 = vrot.lane.b32.xlu0 %v9435_v37, %s8054_s12  ;;  %7896 = vmatprep.subr.bf16.mxu1 %v7997_v47 }
 0x260   : > { %4396 = vrot.lane.b32.xlu1 %v9635_v31, %s8053_s23 }
 0x261   : > { %v2409_v28 = vpop.permute.xlu0 %2408  ;;  %v2509_v26 = vld [vmem:[#allocation3 + $0xc0] sm:$0xff] }
 0x262   : > { %v838_v8 = vpop.permute.xlu1 %837  ;;  %2479 = vst.msk [vmem:[#allocation3 + $0xd0] sm:$0xff] %vm2452_vm11, %v2409_v28  ;;  %7897 = vmatpush3.bf16.msra.mxu1 %v7997_v47 }
 0x263   : > { %905 = vst.msk [vmem:[#allocation3 + $0xe8] sm:$0xff] %vm875_vm4, %v838_v8  ;;  %4523 = vrot.lane.b32.xlu0 %v9600_v24, %s8054_s12  ;;  %7898 = vmatprep.subr.bf16.mxu1 %v7998_v56 }
 0x264   : > { %4521 = vrot.lane.b32.xlu1 %v9450_v62, %s8054_s12 }
 0x265   : > { %v840_v60 = vpop.permute.xlu0 %839 }
 0x266   : > { %v2411_v35 = vpop.permute.xlu1 %2410  ;;  %v2510_v2 = vld [vmem:[#allocation3 + $0xc8] sm:$0xff]  ;;  %906 = vst.msk [vmem:[#allocation3 + $0xf0] sm:$0xff] %vm875_vm4, %v840_v60  ;;  %7899 = vmatpush3.bf16.msra.mxu1 %v7998_v56 }
 0x267   : > { %2480 = vst.msk [vmem:[#allocation3 + $0xd8] sm:$0xff] %vm2452_vm11, %v2411_v35  ;;  %v2529_v25 = vpack.c.bf16 %v2510_v2, %v2509_v26  ;;  %4744 = vrot.lane.b32.xlu0 %v9812_v4, %s8055_s20  ;;  %7900 = vmatprep.subr.bf16.mxu1 %v7999_v10  ;;  %v4335_v26 = vrot.slane %v4218_v21, 7 }
 0x268   : > { %4525 = vrot.lane.b32.xlu1 %v9620_v42, %s8054_s12 }
 0x269   : > { %7884 = vmatprep.mubr.msk.bf16.mxu0 %vm2560_vm12, %v2529_v25  ;;  %v1062_v52 = vpop.permute.xlu0 %1061  ;;  %v2511_v18 = vld [vmem:[#allocation3 + $0xd0] sm:$0xff] }
 0x26a   : > { %v842_v17 = vpop.permute.xlu1 %841  ;;  %1130 = vst.msk [vmem:[#allocation3 + $0xe0] sm:$0xff] %vm1101_vm5, %v1062_v52  ;;  %7901 = vmatpush3.bf16.msra.mxu1 %v7999_v10 }
 0x26b   : > { %907 = vst.msk [vmem:[#allocation3 + $0xf8] sm:$0xff] %vm875_vm4, %v842_v17  ;;  %3176 = vrot.lane.b32.xlu0 %v9435_v37, %s8045_s24  ;;  %vm12136_vm4 = vcmask 326912  }
 0x26c   : > { %4746 = vrot.lane.b32.xlu1 %v9818_v7, %s8055_s20 }
 0x26d   : > { %v1066_v32 = vpop.permute.xlu0 %1065 }
 0x26e   : > { %v1064_v33 = vpop.permute.xlu1 %1063  ;;  %v2512_v48 = vld [vmem:[#allocation3 + $0xd8] sm:$0xff]  ;;  %1132 = vst.msk [vmem:[#allocation3 + $0xf0] sm:$0xff] %vm1101_vm5, %v1066_v32 }
 0x26f   : > { %1131 = vst.msk [vmem:[#allocation3 + $0xe8] sm:$0xff] %vm1101_vm5, %v1064_v33  ;;  %v2530_v57 = vpack.c.bf16 %v2512_v48, %v2511_v18  ;;  %4748 = vrot.lane.b32.xlu0 %v9880_v63, %s8055_s20 }
 0x270   : > { %3178 = vrot.lane.b32.xlu1 %v9450_v62, %s8045_s24 }
 0x271   : > { %v7874_v37 = vpop.f32.mrf.mxu0  ;;  %7885 = vmatmul.mubr.msk.bf16.gmra.mxu0 %vm2560_vm12, %v2530_v57  ;;  %v1383_v62 = vpop.permute.xlu0 %1382 }
 0x272   : > { %v2704_v49 = vadd.f32 %v9888_v39, %v7874_v37  ;;  %v1068_v1 = vpop.permute.xlu1 %1067  ;;  %1451 = vst.msk [vmem:[#allocation3 + $0xe0] sm:$0xff] %vm1422_vm6, %v1383_v62  ;;  %v3537_v37 = vld [vmem:[#allocation4 + $0x98] sm:$0xff] }
 0x273   : > { %1133 = vst.msk [vmem:[#allocation3 + $0xf8] sm:$0xff] %vm1101_vm5, %v1068_v1  ;;  %v2695_v44 = vpop.f32.mrf.mxu0  ;;  %3180 = vrot.lane.b32.xlu0 %v9600_v24, %s8045_s24  ;;  %v4006_v62 = vrot.slane %v3537_v37, 1  ;;  %vm4164_vm5 = vcmask 392512  }
 0x274   : > { %v2788_v50 = vmax.f32 %v2704_v49, 0.0  ;;  %v2696_v58 = vadd.f32 %v9888_v39, %v2695_v44  ;;  %4750 = vrot.lane.b32.xlu1 %v9893_v34, %s8055_s20 }
 0x275   : > { %v7875_v46 = vpop.f32.mrf.mxu0  ;;  %v1387_v16 = vpop.permute.xlu0 %1386 }
 0x276   : > { %2894 = vst.msk [vmem:[#allocation4 + $0x108] sm:$0xff] %vm2806_vm13, %v2788_v50  ;;  %v2786_v6 = vmax.f32 %v2696_v58, 0.0  ;;  %v2707_v5 = vadd.f32 %v9888_v39, %v7875_v46  ;;  %v1385_v51 = vpop.permute.xlu1 %1384 }
 0x277   : > { %1452 = vst.msk [vmem:[#allocation3 + $0xe8] sm:$0xff] %vm1422_vm6, %v1385_v51  ;;  %v2698_v15 = vpop.f32.mrf.mxu0  ;;  %1453 = vst.msk [vmem:[#allocation3 + $0xf0] sm:$0xff] %vm1422_vm6, %v1387_v16  ;;  %3401 = vrot.lane.b32.xlu0 %v9812_v4, %s8047_s26  ;;  %v3534_v4 = vld [vmem:[#allocation4 + $0x80] sm:$0xff] }
 0x278   : > { %2892 = vst.msk [vmem:[#allocation4 + $0xe8] sm:$0xff] %vm2806_vm13, %v2786_v6  ;;  %v2789_v11 = vmax.f32 %v2707_v5, 0.0  ;;  %v2699_v19 = vadd.f32 %v9888_v39, %v2698_v15  ;;  %3182 = vrot.lane.b32.xlu1 %v9620_v42, %s8045_s24 }
 0x279   : > { %v1512_v59 = vpop.permute.xlu0 %1511 }
 0x27a   : > { %2895 = vst.msk [vmem:[#allocation4 + $0x110] sm:$0xff] %vm2806_vm13, %v2789_v11  ;;  %v2787_v45 = vmax.f32 %v2699_v19, 0.0  ;;  %v1389_v23 = vpop.permute.xlu1 %1388 }
 0x27b   : > { %1454 = vst.msk [vmem:[#allocation3 + $0xf8] sm:$0xff] %vm1422_vm6, %v1389_v23  ;;  %3405 = vrot.lane.b32.xlu0 %v9880_v63, %s8047_s26  ;;  %vm4486_vm6 = vcmask 458112  }
 0x27c   : > { %2893 = vst.msk [vmem:[#allocation4 + $0xf0] sm:$0xff] %vm2806_vm13, %v2787_v45  ;;  %3403 = vrot.lane.b32.xlu1 %v9818_v7, %s8047_s26  ;;  %v3649_v7 = vrot.slane %v3534_v4, 7  ;;  %v4680_v4 = vrot.slane %v9768_v55, 1 }
 0x27d   : > { %1580 = vst.msk [vmem:[#allocation3 + $0xe0] sm:$0xff] %vm1551_vm7, %v1512_v59  ;;  %v9919_v8 = vld [vmem:[#allocation4 + $0x108] sm:$0xff]  ;;  %v1516_v35 = vpop.permute.xlu0 %1515 }
 0x27e   : > { %v1514_v28 = vpop.permute.xlu1 %1513  ;;  %v3670_v47 = vrot.slane %v9919_v8, 7  ;;  %1582 = vst.msk [vmem:[#allocation3 + $0xf0] sm:$0xff] %vm1551_vm7, %v1516_v35 }
 0x27f   : > { %1581 = vst.msk [vmem:[#allocation3 + $0xe8] sm:$0xff] %vm1551_vm7, %v1514_v28  ;;  %v9923_v2 = vld [vmem:[#allocation4 + $0xe8] sm:$0xff]  ;;  %3722 = vrot.lane.b32.xlu0 %v9616_v36, %s8049_s28  ;;  %v3651_v36 = vsel %vm634_vm2, %v3649_v7, %v9597_v12  ;;  %v4213_v28 = vld [vmem:[#allocation4 + $0xb8] sm:$0xff] }
 0x280   : > { %3407 = vrot.lane.b32.xlu1 %v9893_v34, %s8047_s26  ;;  %v4336_v60 = vrot.slane %v9923_v2, 7  ;;  %v9930_v25 = vsel %vm634_vm2, %v3669_v13, %v3670_v47  ;;  %v4682_v7 = vrot.slane %v4213_v28, 1 }
 0x281   : > { %v9934_v56 = vld [vmem:[#allocation4 + $0x110] sm:$0xff]  ;;  %3152 = vst.msk [vmem:[#allocation5 + $0x80] sm:$0xff] %vm2806_vm13, %v9930_v25  ;;  %v1737_v14 = vpop.permute.xlu0 %1736 }
 0x282   : > { %v1518_v17 = vpop.permute.xlu1 %1517  ;;  %v9939_v52 = vsel %vm634_vm2, %v4335_v26, %v4336_v60  ;;  %v3672_v18 = vrot.slane %v9934_v56, 7  ;;  %1805 = vst.msk [vmem:[#allocation3 + $0xe0] sm:$0xff] %vm1776_vm8, %v1737_v14 }
 0x283   : > { %1583 = vst.msk [vmem:[#allocation3 + $0xf8] sm:$0xff] %vm1551_vm7, %v1518_v17  ;;  %v9943_v29 = vld [vmem:[#allocation4 + $0xf0] sm:$0xff]  ;;  %3726 = vrot.lane.b32.xlu0 %v3651_v36, %s8049_s28  ;;  %vm4615_vm7 = vcmask 523712  }
 0x284   : > { %3150 = vst.msk [vmem:[#allocation5 + $0x70] sm:$0xff] %vm2806_vm13, %v9939_v52  ;;  %3724 = vrot.lane.b32.xlu1 %v9635_v31, %s8049_s28  ;;  %v4338_v10 = vrot.slane %v9943_v29, 7  ;;  %v9954_v33 = vsel %vm634_vm2, %v3670_v47, %v3672_v18  ;;  %v4679_v47 = vrot.slane %v9751_v9, 1 }
 0x285   : > { %3153 = vst.msk [vmem:[#allocation5 + $0x88] sm:$0xff] %vm2806_vm13, %v9954_v33  ;;  %v1741_v31 = vpop.permute.xlu0 %1740 }
 0x286   : > { %v1739_v48 = vpop.permute.xlu1 %1738  ;;  %v9960_v27 = vsel %vm634_vm2, %v4336_v60, %v4338_v10  ;;  %1807 = vst.msk [vmem:[#allocation3 + $0xf0] sm:$0xff] %vm1776_vm8, %v1741_v31  ;;  %v10040_v60 = vsel %vm12135_vm1, %v4679_v47, %v4680_v4  ;;  %v10047_v10 = vsel %vm12135_vm1, %v4680_v4, %v4682_v7 }
 0x287   : > { %1806 = vst.msk [vmem:[#allocation3 + $0xe8] sm:$0xff] %vm1776_vm8, %v1739_v48  ;;  %3851 = vrot.lane.b32.xlu0 %v9600_v24, %s8051_s15  ;;  %v4004_v24 = vrot.slane %v9611_v53, 1 }
 0x288   : > { %3151 = vst.msk [vmem:[#allocation5 + $0x78] sm:$0xff] %vm2806_vm13, %v9960_v27  ;;  %3728 = vrot.lane.b32.xlu1 %v9630_v43, %s8049_s28 }
 0x289   : > { %v2059_v32 = vpop.permute.xlu0 %2058  ;;  %v9995_v58 = vsel %vm12135_vm1, %v4004_v24, %v4006_v62 }
 0x28a   : > { %v1743_v12 = vpop.permute.xlu1 %1742  ;;  %2127 = vst.msk [vmem:[#allocation3 + $0xe0] sm:$0xff] %vm2098_vm9, %v2059_v32 }
 0x28b   : > { %1808 = vst.msk [vmem:[#allocation3 + $0xf8] sm:$0xff] %vm1776_vm8, %v1743_v12  ;;  %3855 = vrot.lane.b32.xlu0 %v9591_v20, %s8051_s15  ;;  %vm4840_vm8 = vcmask 589312  }
 0x28c   : > { %3853 = vrot.lane.b32.xlu1 %v9620_v42, %s8051_s15  ;;  %v4003_v42 = vrot.slane %v9591_v20, 1 }
 0x28d   : > { %v2063_v22 = vpop.permute.xlu0 %2062 }
 0x28e   : > { %v2061_v57 = vpop.permute.xlu1 %2060  ;;  %2129 = vst.msk [vmem:[#allocation3 + $0xf0] sm:$0xff] %vm2098_vm9, %v2063_v22  ;;  %v9989_v44 = vsel %vm12135_vm1, %v4003_v42, %v4004_v24  ;;  %v2952_v42 = vld [vmem:[#allocation4 + $0x140] sm:$0xff] }
 0x28f   : > { %2128 = vst.msk [vmem:[#allocation3 + $0xe8] sm:$0xff] %vm2098_vm9, %v2061_v57  ;;  %4076 = vrot.lane.b32.xlu0 %v9880_v63, %s8052_s22 }
 0x290   : > { %3857 = vrot.lane.b32.xlu1 %v9611_v53, %s8051_s15 }
 0x291   : > { %v2188_v1 = vpop.permute.xlu0 %2187 }
 0x292   : > { %v2065_v49 = vpop.permute.xlu1 %2064  ;;  %2256 = vst.msk [vmem:[#allocation3 + $0xe0] sm:$0xff] %vm2227_vm10, %v2188_v1 }
 0x293   : > { %2130 = vst.msk [vmem:[#allocation3 + $0xf8] sm:$0xff] %vm2098_vm9, %v2065_v49  ;;  %4080 = vrot.lane.b32.xlu0 %v9989_v44, %s8052_s22  ;;  %vm4964_vm9 = vcmask 588800  }
 0x294   : > { %4078 = vrot.lane.b32.xlu1 %v9893_v34, %s8052_s22 }
 0x295   : > { %v2192_v63 = vpop.permute.xlu0 %2191 }
 0x296   : > { %v2190_v50 = vpop.permute.xlu1 %2189  ;;  %2258 = vst.msk [vmem:[#allocation3 + $0xf0] sm:$0xff] %vm2227_vm10, %v2192_v63  ;;  %v4226_v63 = vld [vmem:[#allocation4 + $0x120] sm:$0xff] }
 0x297   : > { %2257 = vst.msk [vmem:[#allocation3 + $0xe8] sm:$0xff] %vm2227_vm10, %v2190_v50  ;;  %4398 = vrot.lane.b32.xlu0 %v3651_v36, %s8053_s23 }
 0x298   : > { %4082 = vrot.lane.b32.xlu1 %v9995_v58, %s8052_s22 }
 0x299   : > { %v2413_v46 = vpop.permute.xlu0 %2412 }
 0x29a   : > { %v2194_v34 = vpop.permute.xlu1 %2193  ;;  %2481 = vst.msk [vmem:[#allocation3 + $0xe0] sm:$0xff] %vm2452_vm11, %v2413_v46 }
 0x29b   : > { %2259 = vst.msk [vmem:[#allocation3 + $0xf8] sm:$0xff] %vm2227_vm10, %v2194_v34  ;;  %4402 = vrot.lane.b32.xlu0 %v9764_v3, %s8053_s23  ;;  %v3074_v34 = vrot.slane %v2952_v42, 7  ;;  %vm5210_vm10 = vcmask 72704  }
 0x29c   : > { %4400 = vrot.lane.b32.xlu1 %v9630_v43, %s8053_s23  ;;  %5215 = vst.msk [vmem:[#allocation6 + $0x18] sm:$0xff] %vm5210_vm10, %v8043_v0  ;;  %5211 = vst.msk [vmem:[#allocation6] sm:$0xff] %vm5210_vm10, %v8043_v0 }
 0x29d   : > { %v2417_v5 = vpop.permute.xlu0 %2416  ;;  %5212 = vst.msk [vmem:[#allocation6 + $0x8] sm:$0xff] %vm5210_vm10, %v8043_v0  ;;  %5216 = vst.msk [vmem:[#allocation6 + $0x20] sm:$0xff] %vm5210_vm10, %v8043_v0 }
 0x29e   : > { %v2415_v6 = vpop.permute.xlu1 %2414  ;;  %2483 = vst.msk [vmem:[#allocation3 + $0xf0] sm:$0xff] %vm2452_vm11, %v2417_v5  ;;  %v4345_v5 = vrot.slane %v4226_v63, 7  ;;  %v4221_v63 = vld [vmem:[#allocation4 + $0xf8] sm:$0xff] }
 0x29f   : > { %2482 = vst.msk [vmem:[#allocation3 + $0xe8] sm:$0xff] %vm2452_vm11, %v2415_v6  ;;  %4527 = vrot.lane.b32.xlu0 %v9591_v20, %s8054_s12 }
 0x2a0   : > { %4404 = vrot.lane.b32.xlu1 %v9783_v61, %s8053_s23  ;;  %5218 = vst.msk [vmem:[#allocation6 + $0x30] sm:$0xff] %vm5210_vm10, %v8043_v0  ;;  %5219 = vst.msk [vmem:[#allocation6 + $0x38] sm:$0xff] %vm5210_vm10, %v8043_v0 }
 0x2a1   : > { %v3169_v43 = vpop.permute.xlu0 %3168  ;;  %v2513_v16 = vld [vmem:[#allocation3 + $0xe0] sm:$0xff]  ;;  %5221 = vst.msk [vmem:[#allocation6 + $0x48] sm:$0xff] %vm5210_vm10, %v8043_v0  ;;  %5222 = vst.msk [vmem:[#allocation6 + $0x50] sm:$0xff] %vm5210_vm10, %v8043_v0 }
 0x2a2   : > { %v2419_v51 = vpop.permute.xlu1 %2418  ;;  %3265 = vst.msk [vmem:[#allocation5] sm:$0xff] %vm12133_vm15, %v3169_v43 }
 0x2a3   : > { %2484 = vst.msk [vmem:[#allocation3 + $0xf8] sm:$0xff] %vm2452_vm11, %v2419_v51  ;;  %4531 = vrot.lane.b32.xlu0 %v9751_v9, %s8054_s12  ;;  %vm5298_vm11 = vcmask 72768  }
 0x2a4   : > { %4529 = vrot.lane.b32.xlu1 %v9611_v53, %s8054_s12  ;;  %5224 = vst.msk [vmem:[#allocation6 + $0x60] sm:$0xff] %vm5210_vm10, %v8043_v0  ;;  %5225 = vst.msk [vmem:[#allocation6 + $0x68] sm:$0xff] %vm5210_vm10, %v8043_v0 }
 0x2a5   : > { %v3173_v19 = vpop.permute.xlu0 %3172  ;;  %v2515_v45 = vld [vmem:[#allocation3 + $0xf0] sm:$0xff]  ;;  %5227 = vst.msk [vmem:[#allocation6 + $0x78] sm:$0xff] %vm5210_vm10, %v8043_v0  ;;  %5228 = vst.msk [vmem:[#allocation6 + $0x80] sm:$0xff] %vm5210_vm10, %v8043_v0 }
 0x2a6   : > { %v3171_v15 = vpop.permute.xlu1 %3170  ;;  %v2514_v11 = vld [vmem:[#allocation3 + $0xe8] sm:$0xff]  ;;  %3267 = vst.msk [vmem:[#allocation5 + $0x10] sm:$0xff] %vm12133_vm15, %v3173_v19 }
 0x2a7   : > { %3266 = vst.msk [vmem:[#allocation5 + $0x8] sm:$0xff] %vm12133_vm15, %v3171_v15  ;;  %v2531_v40 = vpack.c.bf16 %v2514_v11, %v2513_v16  ;;  %4752 = vrot.lane.b32.xlu0 %v9989_v44, %s8055_s20 }
 0x2a8   : > { %4533 = vrot.lane.b32.xlu1 %v9768_v55, %s8054_s12  ;;  %5230 = vst.msk [vmem:[#allocation6 + $0x90] sm:$0xff] %vm5210_vm10, %v8043_v0  ;;  %5231 = vst.msk [vmem:[#allocation6 + $0x98] sm:$0xff] %vm5210_vm10, %v8043_v0 }
 0x2a9   : > { %7888 = vmatprep.mubr.msk.bf16.mxu0 %vm2560_vm12, %v2531_v40  ;;  %v3394_v21 = vpop.permute.xlu0 %3393  ;;  %5233 = vst.msk [vmem:[#allocation6 + $0xa8] sm:$0xff] %vm5210_vm10, %v8043_v0  ;;  %5234 = vst.msk [vmem:[#allocation6 + $0xb0] sm:$0xff] %vm5210_vm10, %v8043_v0 }
 0x2aa   : > { %v3175_v23 = vpop.permute.xlu1 %3174  ;;  %v2516_v59 = vld [vmem:[#allocation3 + $0xf8] sm:$0xff]  ;;  %3490 = vst.msk [vmem:[#allocation5] sm:$0xff] %vm12132_vm0, %v3394_v21 }
 0x2ab   : > { %3268 = vst.msk [vmem:[#allocation5 + $0x18] sm:$0xff] %vm12133_vm15, %v3175_v23  ;;  %v2532_v13 = vpack.c.bf16 %v2516_v59, %v2515_v45  ;;  %3184 = vrot.lane.b32.xlu0 %v9591_v20, %s8045_s24 }
 0x2ac   : > { %4754 = vrot.lane.b32.xlu1 %v9995_v58, %s8055_s20  ;;  %5236 = vst.msk [vmem:[#allocation6 + $0xc0] sm:$0xff] %vm5210_vm10, %v8043_v0  ;;  %5237 = vst.msk [vmem:[#allocation6 + $0xc8] sm:$0xff] %vm5210_vm10, %v8043_v0 }
 0x2ad   : > { %7889 = vmatmul.mubr.msk.bf16.gmra.mxu0 %vm2560_vm12, %v2532_v13  ;;  %v3398_v35 = vpop.permute.xlu0 %3397  ;;  %5239 = vst.msk [vmem:[#allocation6 + $0xd8] sm:$0xff] %vm5210_vm10, %v8043_v0  ;;  %5240 = vst.msk [vmem:[#allocation6 + $0xe0] sm:$0xff] %vm5210_vm10, %v8043_v0  ;;  %vm5213_vm12 = vcmask 65536  }
 0x2ae   : > { %v3396_v26 = vpop.permute.xlu1 %3395  ;;  %3492 = vst.msk [vmem:[#allocation5 + $0x10] sm:$0xff] %vm12132_vm0, %v3398_v35 }
 0x2af   : > { %3491 = vst.msk [vmem:[#allocation5 + $0x8] sm:$0xff] %vm12132_vm0, %v3396_v26  ;;  %4756 = vrot.lane.b32.xlu0 %v10040_v60, %s8055_s20 }
 0x2b0   : > { %3186 = vrot.lane.b32.xlu1 %v9611_v53, %s8045_s24  ;;  %5242 = vst.msk [vmem:[#allocation6 + $0xf0] sm:$0xff] %vm5210_vm10, %v8043_v0  ;;  %5243 = vst.msk [vmem:[#allocation6 + $0xf8] sm:$0xff] %vm5210_vm10, %v8043_v0 }
 0x2b1   : > { %v7878_v17 = vpop.f32.mrf.mxu0  ;;  %v3715_v36 = vpop.permute.xlu0 %3714  ;;  %5245 = vst.msk [vmem:[#allocation6 + $0x108] sm:$0xff] %vm5210_vm10, %v8043_v0  ;;  %5246 = vst.msk [vmem:[#allocation6 + $0x110] sm:$0xff] %vm5210_vm10, %v8043_v0 }
 0x2b2   : > { %v2720_v20 = vadd.f32 %v9888_v39, %v7878_v17  ;;  %v3400_v18 = vpop.permute.xlu1 %3399  ;;  %3811 = vst.msk [vmem:[#allocation5] sm:$0xff] %vm12131_vm3, %v3715_v36  ;;  %v3545_v17 = vld [vmem:[#allocation4 + $0xd8] sm:$0xff] }
 0x2b3   : > { %3493 = vst.msk [vmem:[#allocation5 + $0x18] sm:$0xff] %vm12132_vm0, %v3400_v18  ;;  %v2711_v14 = vpop.f32.mrf.mxu0  ;;  %3188 = vrot.lane.b32.xlu0 %v9751_v9, %s8045_s24 }
 0x2b4   : > { %v2792_v48 = vmax.f32 %v2720_v20, 0.0  ;;  %v2712_v53 = vadd.f32 %v9888_v39, %v2711_v14  ;;  %4758 = vrot.lane.b32.xlu1 %v10047_v10, %s8055_s20  ;;  %v4013_v20 = vrot.slane %v9744_v38, 1  ;;  %v4016_v14 = vrot.slane %v3545_v17, 1  ;;  %5248 = vst.msk [vmem:[#allocation6 + $0x120] sm:$0xff] %vm5210_vm10, %v8043_v0  ;;  %5249 = vst.msk [vmem:[#allocation6 + $0x128] sm:$0xff] %vm5210_vm10, %v8043_v0 }
 0x2b5   : > { %v7879_v31 = vpop.f32.mrf.mxu0  ;;  %v3719_v24 = vpop.permute.xlu0 %3718  ;;  %5251 = vst.msk [vmem:[#allocation6 + $0x138] sm:$0xff] %vm5210_vm10, %v8043_v0  ;;  %5252 = vst.msk [vmem:[#allocation6 + $0x140] sm:$0xff] %vm5210_vm10, %v8043_v0 }
 0x2b6   : > { %2898 = vst.msk [vmem:[#allocation4 + $0x148] sm:$0xff] %vm2806_vm13, %v2792_v48  ;;  %v2790_v12 = vmax.f32 %v2712_v53, 0.0  ;;  %v2723_v32 = vadd.f32 %v9888_v39, %v7879_v31  ;;  %v3717_v57 = vpop.permute.xlu1 %3716 }
 0x2b7   : > { %3812 = vst.msk [vmem:[#allocation5 + $0x8] sm:$0xff] %vm12131_vm3, %v3717_v57  ;;  %v2714_v22 = vpop.f32.mrf.mxu0  ;;  %3813 = vst.msk [vmem:[#allocation5 + $0x10] sm:$0xff] %vm12131_vm3, %v3719_v24  ;;  %3409 = vrot.lane.b32.xlu0 %v9989_v44, %s8047_s26  ;;  %v3542_v44 = vld [vmem:[#allocation4 + $0xc0] sm:$0xff] }
 0x2b8   : > { %2896 = vst.msk [vmem:[#allocation4 + $0x128] sm:$0xff] %vm2806_vm13, %v2790_v12  ;;  %v2793_v37 = vmax.f32 %v2723_v32, 0.0  ;;  %v2715_v49 = vadd.f32 %v9888_v39, %v2714_v22  ;;  %3190 = vrot.lane.b32.xlu1 %v9768_v55, %s8045_s24 }
 0x2b9   : > { %v3844_v50 = vpop.permute.xlu0 %3843  ;;  %5254 = vst.msk [vmem:[#allocation6 + $0x150] sm:$0xff] %vm5210_vm10, %v8043_v0  ;;  %5255 = vst.msk [vmem:[#allocation6 + $0x158] sm:$0xff] %vm5210_vm10, %v8043_v0 }
 0x2ba   : > { %2899 = vst.msk [vmem:[#allocation4 + $0x150] sm:$0xff] %vm2806_vm13, %v2793_v37  ;;  %v2791_v1 = vmax.f32 %v2715_v49, 0.0  ;;  %v3721_v62 = vpop.permute.xlu1 %3720 }
 0x2bb   : > { %3814 = vst.msk [vmem:[#allocation5 + $0x18] sm:$0xff] %vm12131_vm3, %v3721_v62  ;;  %3413 = vrot.lane.b32.xlu0 %v10040_v60, %s8047_s26 }
 0x2bc   : > { %2897 = vst.msk [vmem:[#allocation4 + $0x130] sm:$0xff] %vm2806_vm13, %v2791_v1  ;;  %3411 = vrot.lane.b32.xlu1 %v9995_v58, %s8047_s26  ;;  %v3659_v58 = vrot.slane %v3542_v44, 7  ;;  %v4689_v44 = vrot.slane %v9923_v2, 1 }
 0x2bd   : > { %3940 = vst.msk [vmem:[#allocation5] sm:$0xff] %vm12136_vm4, %v3844_v50  ;;  %v10073_v46 = vld [vmem:[#allocation4 + $0x148] sm:$0xff]  ;;  %v3848_v43 = vpop.permute.xlu0 %3847  ;;  %v4690_v50 = vrot.slane %v9943_v29, 1 }
 0x2be   : > { %v3846_v6 = vpop.permute.xlu1 %3845  ;;  %v10076_v51 = vrot.slane %v10073_v46, 7  ;;  %3942 = vst.msk [vmem:[#allocation5 + $0x10] sm:$0xff] %vm12136_vm4, %v3848_v43 }
 0x2bf   : > { %3941 = vst.msk [vmem:[#allocation5 + $0x8] sm:$0xff] %vm12136_vm4, %v3846_v6  ;;  %v10079_v16 = vld [vmem:[#allocation4 + $0x128] sm:$0xff]  ;;  %3730 = vrot.lane.b32.xlu0 %v9764_v3, %s8049_s28  ;;  %v3661_v3 = vsel %vm634_vm2, %v3659_v58, %v9747_v30 }
 0x2c0   : > { %3415 = vrot.lane.b32.xlu1 %v10047_v10, %s8047_s26  ;;  %v4346_v15 = vrot.slane %v10079_v16, 7  ;;  %v3076_v11 = vsel %vm634_vm2, %v3074_v34, %v10076_v51  ;;  %5257 = vst.msk [vmem:[#allocation6 + $0x168] sm:$0xff] %vm5210_vm10, %v8043_v0  ;;  %5258 = vst.msk [vmem:[#allocation6 + $0x170] sm:$0xff] %vm5210_vm10, %v8043_v0 }
 0x2c1   : > { %v10089_v19 = vld [vmem:[#allocation4 + $0x150] sm:$0xff]  ;;  %3156 = vst.msk [vmem:[#allocation5 + $0xa0] sm:$0xff] %vm2806_vm13, %v3076_v11  ;;  %v4069_v59 = vpop.permute.xlu0 %4068  ;;  %v10194_v11 = vsel %vm12135_vm1, %v4689_v44, %v4690_v50 }
 0x2c2   : > { %v3850_v40 = vpop.permute.xlu1 %3849  ;;  %v10093_v45 = vsel %vm634_vm2, %v4345_v5, %v4346_v15  ;;  %v3682_v23 = vrot.slane %v10089_v19, 7  ;;  %4165 = vst.msk [vmem:[#allocation5] sm:$0xff] %vm4164_vm5, %v4069_v59 }
 0x2c3   : > { %3943 = vst.msk [vmem:[#allocation5 + $0x18] sm:$0xff] %vm12136_vm4, %v3850_v40  ;;  %v10097_v21 = vld [vmem:[#allocation4 + $0x130] sm:$0xff]  ;;  %3734 = vrot.lane.b32.xlu0 %v3661_v3, %s8049_s28 }
 0x2c4   : > { %3154 = vst.msk [vmem:[#allocation5 + $0x90] sm:$0xff] %vm2806_vm13, %v10093_v45  ;;  %3732 = vrot.lane.b32.xlu1 %v9783_v61, %s8049_s28  ;;  %v4348_v13 = vrot.slane %v10097_v21, 7  ;;  %v10109_v4 = vsel %vm634_vm2, %v10076_v51, %v3682_v23 }
 0x2c5   : > { %3157 = vst.msk [vmem:[#allocation5 + $0xa8] sm:$0xff] %vm2806_vm13, %v10109_v4  ;;  %v4073_v61 = vpop.permute.xlu0 %4072 }
 0x2c6   : > { %v4071_v28 = vpop.permute.xlu1 %4070  ;;  %v10113_v26 = vsel %vm634_vm2, %v4346_v15, %v4348_v13  ;;  %4167 = vst.msk [vmem:[#allocation5 + $0x10] sm:$0xff] %vm4164_vm5, %v4073_v61  ;;  %v4692_v15 = vrot.slane %v4221_v63, 1 }
 0x2c7   : > { %4166 = vst.msk [vmem:[#allocation5 + $0x8] sm:$0xff] %vm4164_vm5, %v4071_v28  ;;  %3859 = vrot.lane.b32.xlu0 %v9751_v9, %s8051_s15  ;;  %v4014_v9 = vrot.slane %v9760_v54, 1 }
 0x2c8   : > { %3155 = vst.msk [vmem:[#allocation5 + $0x98] sm:$0xff] %vm2806_vm13, %v10113_v26  ;;  %3736 = vrot.lane.b32.xlu1 %v9778_v41, %s8049_s28  ;;  %v10202_v13 = vsel %vm12135_vm1, %v4690_v50, %v4692_v15 }
 0x2c9   : > { %v4391_v47 = vpop.permute.xlu0 %4390  ;;  %v10144_v36 = vsel %vm12135_vm1, %v4013_v20, %v4014_v9  ;;  %v10150_v53 = vsel %vm12135_vm1, %v4014_v9, %v4016_v14  ;;  %v2960_v20 = vld [vmem:[#allocation4 + $0x180] sm:$0xff]  ;;  %5260 = vst.msk [vmem:[#allocation6 + $0x180] sm:$0xff] %vm5210_vm10, %v8043_v0  ;;  %5261 = vst.msk [vmem:[#allocation6 + $0x188] sm:$0xff] %vm5210_vm10, %v8043_v0 }
 0x2ca   : > { %v4075_v30 = vpop.permute.xlu1 %4074  ;;  %4487 = vst.msk [vmem:[#allocation5] sm:$0xff] %vm4486_vm6, %v4391_v47 }
 0x2cb   : > { %4168 = vst.msk [vmem:[#allocation5 + $0x18] sm:$0xff] %vm4164_vm5, %v4075_v30  ;;  %3863 = vrot.lane.b32.xlu0 %v9744_v38, %s8051_s15 }
 0x2cc   : > { %3861 = vrot.lane.b32.xlu1 %v9768_v55, %s8051_s15  ;;  %5220 = vst.msk [vmem:[#allocation6 + $0x40] sm:$0x1] %vm5213_vm12, %v8043_v0  ;;  %5223 = vst.msk [vmem:[#allocation6 + $0x58] sm:$0x1] %vm5213_vm12, %v8043_v0 }
 0x2cd   : > { %v4395_v7 = vpop.permute.xlu0 %4394  ;;  %5226 = vst.msk [vmem:[#allocation6 + $0x70] sm:$0x1] %vm5213_vm12, %v8043_v0  ;;  %5214 = vst.msk [vmem:[#allocation6 + $0x10] sm:$0x1] %vm5213_vm12, %v8043_v0 }
 0x2ce   : > { %v4393_v35 = vpop.permute.xlu1 %4392  ;;  %4489 = vst.msk [vmem:[#allocation5 + $0x10] sm:$0xff] %vm4486_vm6, %v4395_v7 }
 0x2cf   : > { %4488 = vst.msk [vmem:[#allocation5 + $0x8] sm:$0xff] %vm4486_vm6, %v4393_v35  ;;  %4084 = vrot.lane.b32.xlu0 %v10040_v60, %s8052_s22 }
 0x2d0   : > { %3865 = vrot.lane.b32.xlu1 %v9760_v54, %s8051_s15  ;;  %5217 = vst.msk [vmem:[#allocation6 + $0x28] sm:$0x1] %vm5213_vm12, %v8043_v0  ;;  %5229 = vst.msk [vmem:[#allocation6 + $0x88] sm:$0x1] %vm5213_vm12, %v8043_v0 }
 0x2d1   : > { %v4520_v18 = vpop.permute.xlu0 %4519  ;;  %5232 = vst.msk [vmem:[#allocation6 + $0xa0] sm:$0x1] %vm5213_vm12, %v8043_v0  ;;  %5235 = vst.msk [vmem:[#allocation6 + $0xb8] sm:$0x1] %vm5213_vm12, %v8043_v0 }
 0x2d2   : > { %v4397_v55 = vpop.permute.xlu1 %4396  ;;  %4616 = vst.msk [vmem:[#allocation5] sm:$0xff] %vm4615_vm7, %v4520_v18 }
 0x2d3   : > { %4490 = vst.msk [vmem:[#allocation5 + $0x18] sm:$0xff] %vm4486_vm6, %v4397_v55  ;;  %4088 = vrot.lane.b32.xlu0 %v10144_v36, %s8052_s22 }
 0x2d4   : > { %4086 = vrot.lane.b32.xlu1 %v10047_v10, %s8052_s22  ;;  %5238 = vst.msk [vmem:[#allocation6 + $0xd0] sm:$0x1] %vm5213_vm12, %v8043_v0  ;;  %5241 = vst.msk [vmem:[#allocation6 + $0xe8] sm:$0x1] %vm5213_vm12, %v8043_v0 }
 0x2d5   : > { %v4524_v48 = vpop.permute.xlu0 %4523  ;;  %5244 = vst.msk [vmem:[#allocation6 + $0x100] sm:$0x1] %vm5213_vm12, %v8043_v0  ;;  %5247 = vst.msk [vmem:[#allocation6 + $0x118] sm:$0x1] %vm5213_vm12, %v8043_v0 }
 0x2d6   : > { %v4522_v60 = vpop.permute.xlu1 %4521  ;;  %4618 = vst.msk [vmem:[#allocation5 + $0x10] sm:$0xff] %vm4615_vm7, %v4524_v48  ;;  %v4234_v48 = vld [vmem:[#allocation4 + $0x160] sm:$0xff] }
 0x2d7   : > { %4617 = vst.msk [vmem:[#allocation5 + $0x8] sm:$0xff] %vm4615_vm7, %v4522_v60  ;;  %4406 = vrot.lane.b32.xlu0 %v3661_v3, %s8053_s23 }
 0x2d8   : > { %4090 = vrot.lane.b32.xlu1 %v10150_v53, %s8052_s22  ;;  %5250 = vst.msk [vmem:[#allocation6 + $0x130] sm:$0x1] %vm5213_vm12, %v8043_v0  ;;  %5253 = vst.msk [vmem:[#allocation6 + $0x148] sm:$0x1] %vm5213_vm12, %v8043_v0 }
 0x2d9   : > { %v4745_v31 = vpop.permute.xlu0 %4744  ;;  %5256 = vst.msk [vmem:[#allocation6 + $0x160] sm:$0x1] %vm5213_vm12, %v8043_v0  ;;  %5259 = vst.msk [vmem:[#allocation6 + $0x178] sm:$0x1] %vm5213_vm12, %v8043_v0 }
 0x2da   : > { %v4526_v10 = vpop.permute.xlu1 %4525  ;;  %4841 = vst.msk [vmem:[#allocation5] sm:$0xff] %vm4840_vm8, %v4745_v31 }
 0x2db   : > { %4619 = vst.msk [vmem:[#allocation5 + $0x18] sm:$0xff] %vm4615_vm7, %v4526_v10  ;;  %4410 = vrot.lane.b32.xlu0 %v9939_v52, %s8053_s23  ;;  %v3084_v10 = vrot.slane %v2960_v20, 7  ;;  %v4700_v20 = vrot.slane %v10097_v21, 1 }
 0x2dc   : > { %4408 = vrot.lane.b32.xlu1 %v9778_v41, %s8053_s23  ;;  %5262 = vst.msk [vmem:[#allocation6 + $0x190] sm:$0x1] %vm5213_vm12, %v8043_v0 }
 0x2dd   : > { %v3177_v32 = vpop.permute.xlu0 %3176 }
 0x2de   : > { %v4747_v12 = vpop.permute.xlu1 %4746  ;;  %3269 = vst.msk [vmem:[#allocation5 + $0x20] sm:$0xff] %vm12133_vm15, %v3177_v32 }
 0x2df   : > { %4842 = vst.msk [vmem:[#allocation5 + $0x8] sm:$0xff] %vm4840_vm8, %v4747_v12  ;;  %4535 = vrot.lane.b32.xlu0 %v9744_v38, %s8054_s12  ;;  %v4355_v12 = vrot.slane %v4234_v48, 7 }
 0x2e0   : > { %4412 = vrot.lane.b32.xlu1 %v9960_v27, %s8053_s23 }
 0x2e1   : > { %v4749_v22 = vpop.permute.xlu0 %4748  ;;  %v4873_v24 = vld [vmem:[#allocation5] sm:$0xff] }
 0x2e2   : > { %v3179_v57 = vpop.permute.xlu1 %3178  ;;  %4843 = vst.msk [vmem:[#allocation5 + $0x10] sm:$0xff] %vm4840_vm8, %v4749_v22 }
 0x2e3   : > { %3270 = vst.msk [vmem:[#allocation5 + $0x28] sm:$0xff] %vm12133_vm15, %v3179_v57  ;;  %4539 = vrot.lane.b32.xlu0 %v9923_v2, %s8054_s12 }
 0x2e4   : > { %4537 = vrot.lane.b32.xlu1 %v9760_v54, %s8054_s12 }
 0x2e5   : > { %v3181_v49 = vpop.permute.xlu0 %3180 }
 0x2e6   : > { %v4751_v41 = vpop.permute.xlu1 %4750  ;;  %v4874_v37 = vld [vmem:[#allocation5 + $0x8] sm:$0xff]  ;;  %3271 = vst.msk [vmem:[#allocation5 + $0x30] sm:$0xff] %vm12133_vm15, %v3181_v49 }
 0x2e7   : > { %4844 = vst.msk [vmem:[#allocation5 + $0x18] sm:$0xff] %vm4840_vm8, %v4751_v41  ;;  %v4905_v42 = vpack.c.bf16 %v4874_v37, %v4873_v24  ;;  %4760 = vrot.lane.b32.xlu0 %v10144_v36, %s8055_s20 }
 0x2e8   : > { %4541 = vrot.lane.b32.xlu1 %v9943_v29, %s8054_s12 }
 0x2e9   : > { %7902 = vmatprep.mubr.msk.bf16.mxu1 %vm4964_vm9, %v4905_v42  ;;  %v3402_v62 = vpop.permute.xlu0 %3401  ;;  %v4875_v6 = vld [vmem:[#allocation5 + $0x10] sm:$0xff] }
 0x2ea   : > { %v3183_v1 = vpop.permute.xlu1 %3182  ;;  %3494 = vst.msk [vmem:[#allocation5 + $0x20] sm:$0xff] %vm12132_vm0, %v3402_v62 }
 0x2eb   : > { %3272 = vst.msk [vmem:[#allocation5 + $0x38] sm:$0xff] %vm12133_vm15, %v3183_v1  ;;  %3192 = vrot.lane.b32.xlu0 %v9744_v38, %s8045_s24 }
 0x2ec   : > { %4762 = vrot.lane.b32.xlu1 %v10150_v53, %s8055_s20 }
 0x2ed   : > { %v3406_v43 = vpop.permute.xlu0 %3405 }
 0x2ee   : > { %v3404_v34 = vpop.permute.xlu1 %3403  ;;  %v4876_v5 = vld [vmem:[#allocation5 + $0x18] sm:$0xff]  ;;  %3496 = vst.msk [vmem:[#allocation5 + $0x30] sm:$0xff] %vm12132_vm0, %v3406_v43 }
 0x2ef   : > { %3495 = vst.msk [vmem:[#allocation5 + $0x28] sm:$0xff] %vm12132_vm0, %v3404_v34  ;;  %v4906_v58 = vpack.c.bf16 %v4876_v5, %v4875_v6  ;;  %4764 = vrot.lane.b32.xlu0 %v10194_v11, %s8055_s20 }
 0x2f0   : > { %3194 = vrot.lane.b32.xlu1 %v9760_v54, %s8045_s24 }
 0x2f1   : > { %v7882_v40 = vpop.f32.mrf.mxu0  ;;  %7903 = vmatmul.mubr.msk.bf16.vlgmr.msra.gmra.mxu1 %vm4964_vm9, %v4906_v58  ;;  %v3723_v3 = vpop.permute.xlu0 %3722  ;;  %v3553_v58 = vld [vmem:[#allocation4 + $0x118] sm:$0xff] }
 0x2f2   : > { %v2736_v38 = vadd.f32 %v9888_v39, %v7882_v40  ;;  %v3408_v23 = vpop.permute.xlu1 %3407  ;;  %3815 = vst.msk [vmem:[#allocation5 + $0x20] sm:$0xff] %vm12131_vm3, %v3723_v3 }
 0x2f3   : > { %3497 = vst.msk [vmem:[#allocation5 + $0x38] sm:$0xff] %vm12132_vm0, %v3408_v23  ;;  %v2727_v59 = vpop.f32.mrf.mxu0  ;;  %3196 = vrot.lane.b32.xlu0 %v9923_v2, %s8045_s24 }
 0x2f4   : > { %v2796_v54 = vmax.f32 %v2736_v38, 0.0  ;;  %v2728_v28 = vadd.f32 %v9888_v39, %v2727_v59  ;;  %4766 = vrot.lane.b32.xlu1 %v10202_v13, %s8055_s20  ;;  %v4026_v38 = vrot.slane %v3553_v58, 1 }
 0x2f5   : > { %v7883_v61 = vpop.f32.mrf.mxu0  ;;  %v3727_v9 = vpop.permute.xlu0 %3726 }
 0x2f6   : > { %2902 = vst.msk [vmem:[#allocation4 + $0x188] sm:$0xff] %vm2806_vm13, %v2796_v54  ;;  %v2794_v30 = vmax.f32 %v2728_v28, 0.0  ;;  %v2739_v47 = vadd.f32 %v9888_v39, %v7883_v61  ;;  %v3725_v35 = vpop.permute.xlu1 %3724 }
 0x2f7   : > { %3816 = vst.msk [vmem:[#allocation5 + $0x28] sm:$0xff] %vm12131_vm3, %v3725_v35  ;;  %v2730_v7 = vpop.f32.mrf.mxu0  ;;  %3817 = vst.msk [vmem:[#allocation5 + $0x30] sm:$0xff] %vm12131_vm3, %v3727_v9  ;;  %3417 = vrot.lane.b32.xlu0 %v10144_v36, %s8047_s26 }
 0x2f8   : > { %2900 = vst.msk [vmem:[#allocation4 + $0x168] sm:$0xff] %vm2806_vm13, %v2794_v30  ;;  %v2797_v17 = vmax.f32 %v2739_v47, 0.0  ;;  %v2731_v55 = vadd.f32 %v9888_v39, %v2730_v7  ;;  %3198 = vrot.lane.b32.xlu1 %v9943_v29, %s8045_s24 }
 0x2f9   : > { %v3852_v60 = vpop.permute.xlu0 %3851 }
 0x2fa   : > { %2903 = vst.msk [vmem:[#allocation4 + $0x190] sm:$0xff] %vm2806_vm13, %v2797_v17  ;;  %v2795_v18 = vmax.f32 %v2731_v55, 0.0  ;;  %v3729_v14 = vpop.permute.xlu1 %3728 }
 0x2fb   : > { %3818 = vst.msk [vmem:[#allocation5 + $0x38] sm:$0xff] %vm12131_vm3, %v3729_v14  ;;  %3421 = vrot.lane.b32.xlu0 %v10194_v11, %s8047_s26 }
 0x2fc   : > { %2901 = vst.msk [vmem:[#allocation4 + $0x170] sm:$0xff] %vm2806_vm13, %v2795_v18  ;;  %3419 = vrot.lane.b32.xlu1 %v10150_v53, %s8047_s26  ;;  %v4229_v18 = vld [vmem:[#allocation4 + $0x138] sm:$0xff] }
 0x2fd   : > { %3944 = vst.msk [vmem:[#allocation5 + $0x20] sm:$0xff] %vm12136_vm4, %v3852_v60  ;;  %v10228_v36 = vld [vmem:[#allocation4 + $0x188] sm:$0xff]  ;;  %v3856_v57 = vpop.permute.xlu0 %3855  ;;  %v4699_v60 = vrot.slane %v10079_v16, 1 }
 0x2fe   : > { %v3854_v31 = vpop.permute.xlu1 %3853  ;;  %v10231_v32 = vrot.slane %v10228_v36, 7  ;;  %3946 = vst.msk [vmem:[#allocation5 + $0x30] sm:$0xff] %vm12136_vm4, %v3856_v57  ;;  %v4702_v57 = vrot.slane %v4229_v18, 1 }
 0x2ff   : > { %3945 = vst.msk [vmem:[#allocation5 + $0x28] sm:$0xff] %vm12136_vm4, %v3854_v31  ;;  %v10234_v22 = vld [vmem:[#allocation4 + $0x168] sm:$0xff]  ;;  %3738 = vrot.lane.b32.xlu0 %v9939_v52, %s8049_s28 }
 0x300   : > { %3423 = vrot.lane.b32.xlu1 %v10202_v13, %s8047_s26  ;;  %v4356_v53 = vrot.slane %v10234_v22, 7  ;;  %v3086_v41 = vsel %vm634_vm2, %v3084_v10, %v10231_v32 }
 0x301   : > { %v10244_v24 = vld [vmem:[#allocation4 + $0x190] sm:$0xff]  ;;  %3160 = vst.msk [vmem:[#allocation5 + $0xc0] sm:$0xff] %vm2806_vm13, %v3086_v41  ;;  %v4077_v1 = vpop.permute.xlu0 %4076 }
 0x302   : > { %v3858_v37 = vpop.permute.xlu1 %3857  ;;  %v10248_v49 = vsel %vm634_vm2, %v4355_v12, %v4356_v53  ;;  %v3692_v42 = vrot.slane %v10244_v24, 7  ;;  %4169 = vst.msk [vmem:[#allocation5 + $0x20] sm:$0xff] %vm4164_vm5, %v4077_v1 }
 0x303   : > { %3947 = vst.msk [vmem:[#allocation5 + $0x38] sm:$0xff] %vm12136_vm4, %v3858_v37  ;;  %v10252_v62 = vld [vmem:[#allocation4 + $0x170] sm:$0xff]  ;;  %3742 = vrot.lane.b32.xlu0 %v9930_v25, %s8049_s28 }
 0x304   : > { %3158 = vst.msk [vmem:[#allocation5 + $0xb0] sm:$0xff] %vm2806_vm13, %v10248_v49  ;;  %3740 = vrot.lane.b32.xlu1 %v9960_v27, %s8049_s28  ;;  %v4358_v52 = vrot.slane %v10252_v62, 7  ;;  %v10262_v50 = vsel %vm634_vm2, %v10231_v32, %v3692_v42 }
 0x305   : > { %3161 = vst.msk [vmem:[#allocation5 + $0xc8] sm:$0xff] %vm2806_vm13, %v10262_v50  ;;  %v4081_v44 = vpop.permute.xlu0 %4080 }
 0x306   : > { %v4079_v63 = vpop.permute.xlu1 %4078  ;;  %v10267_v34 = vsel %vm634_vm2, %v4356_v53, %v4358_v52  ;;  %4171 = vst.msk [vmem:[#allocation5 + $0x30] sm:$0xff] %vm4164_vm5, %v4081_v44  ;;  %v10349_v53 = vsel %vm12135_vm1, %v4699_v60, %v4700_v20  ;;  %v10357_v52 = vsel %vm12135_vm1, %v4700_v20, %v4702_v57 }
 0x307   : > { %4170 = vst.msk [vmem:[#allocation5 + $0x28] sm:$0xff] %vm4164_vm5, %v4079_v63  ;;  %3867 = vrot.lane.b32.xlu0 %v9923_v2, %s8051_s15  ;;  %v4024_v2 = vrot.slane %v9934_v56, 1 }
 0x308   : > { %3159 = vst.msk [vmem:[#allocation5 + $0xb8] sm:$0xff] %vm2806_vm13, %v10267_v34  ;;  %3744 = vrot.lane.b32.xlu1 %v9954_v33, %s8049_s28 }
 0x309   : > { %v4399_v6 = vpop.permute.xlu0 %4398  ;;  %v10304_v3 = vsel %vm12135_vm1, %v4024_v2, %v4026_v38 }
 0x30a   : > { %v4083_v27 = vpop.permute.xlu1 %4082  ;;  %4491 = vst.msk [vmem:[#allocation5 + $0x20] sm:$0xff] %vm4486_vm6, %v4399_v6 }
 0x30b   : > { %4172 = vst.msk [vmem:[#allocation5 + $0x38] sm:$0xff] %vm4164_vm5, %v4083_v27  ;;  %3871 = vrot.lane.b32.xlu0 %v9919_v8, %s8051_s15  ;;  %v10437_v27 = vld [vmem:[%s12121_s2] ss:$0 sm:$0xff] }
 0x30c   : > { %3869 = vrot.lane.b32.xlu1 %v9943_v29, %s8051_s15  ;;  %v4023_v29 = vrot.slane %v9919_v8, 1 }
 0x30d   : > { %v4403_v43 = vpop.permute.xlu0 %4402 }
 0x30e   : > { %v4401_v5 = vpop.permute.xlu1 %4400  ;;  %4493 = vst.msk [vmem:[#allocation5 + $0x30] sm:$0xff] %vm4486_vm6, %v4403_v43  ;;  %v10298_v23 = vsel %vm12135_vm1, %v4023_v29, %v4024_v2  ;;  %v3574_v29 = vld [vmem:[#allocation4 + $0x1c0] sm:$0xff] }
 0x30f   : > { %4492 = vst.msk [vmem:[#allocation5 + $0x28] sm:$0xff] %vm4486_vm6, %v4401_v5  ;;  %4092 = vrot.lane.b32.xlu0 %v10194_v11, %s8052_s22 }
 0x310   : > { %3873 = vrot.lane.b32.xlu1 %v9934_v56, %s8051_s15 }
 0x311   : > { %v4528_v40 = vpop.permute.xlu0 %4527 }
 0x312   : > { %v4405_v15 = vpop.permute.xlu1 %4404  ;;  %4620 = vst.msk [vmem:[#allocation5 + $0x20] sm:$0xff] %vm4615_vm7, %v4528_v40 }
 0x313   : > { %4494 = vst.msk [vmem:[#allocation5 + $0x38] sm:$0xff] %vm4486_vm6, %v4405_v15  ;;  %4096 = vrot.lane.b32.xlu0 %v10298_v23, %s8052_s22 }
 0x314   : > { %4094 = vrot.lane.b32.xlu1 %v10202_v13, %s8052_s22 }
 0x315   : > { %v4532_v11 = vpop.permute.xlu0 %4531 }
 0x316   : > { %v4530_v59 = vpop.permute.xlu1 %4529  ;;  %4622 = vst.msk [vmem:[#allocation5 + $0x30] sm:$0xff] %vm4615_vm7, %v4532_v11  ;;  %v4242_v11 = vld [vmem:[#allocation4 + $0x1a0] sm:$0xff] }
 0x317   : > { %4621 = vst.msk [vmem:[#allocation5 + $0x28] sm:$0xff] %vm4615_vm7, %v4530_v59  ;;  %4414 = vrot.lane.b32.xlu0 %v9930_v25, %s8053_s23 }
 0x318   : > { %4098 = vrot.lane.b32.xlu1 %v10304_v3, %s8052_s22 }
 0x319   : > { %v4753_v54 = vpop.permute.xlu0 %4752 }
 0x31a   : > { %v4534_v13 = vpop.permute.xlu1 %4533  ;;  %4845 = vst.msk [vmem:[#allocation5 + $0x20] sm:$0xff] %vm4840_vm8, %v4753_v54 }
 0x31b   : > { %4623 = vst.msk [vmem:[#allocation5 + $0x38] sm:$0xff] %vm4615_vm7, %v4534_v13  ;;  %4418 = vrot.lane.b32.xlu0 %v10093_v45, %s8053_s23  ;;  %v3699_v13 = vrot.slane %v3574_v29, 7 }
 0x31c   : > { %4416 = vrot.lane.b32.xlu1 %v9954_v33, %s8053_s23 }
 0x31d   : > { %v3185_v61 = vpop.permute.xlu0 %3184 }
 0x31e   : > { %v4755_v28 = vpop.permute.xlu1 %4754  ;;  %3273 = vst.msk [vmem:[#allocation5 + $0x40] sm:$0xff] %vm12133_vm15, %v3185_v61  ;;  %v4365_v61 = vrot.slane %v4242_v11, 7  ;;  %v4237_v11 = vld [vmem:[#allocation4 + $0x178] sm:$0xff] }
 0x31f   : > { %4846 = vst.msk [vmem:[#allocation5 + $0x28] sm:$0xff] %vm4840_vm8, %v4755_v28  ;;  %4543 = vrot.lane.b32.xlu0 %v9919_v8, %s8054_s12 }
 0x320   : > { %4420 = vrot.lane.b32.xlu1 %v10113_v26, %s8053_s23 }
 0x321   : > { %v4757_v30 = vpop.permute.xlu0 %4756  ;;  %v4877_v47 = vld [vmem:[#allocation5 + $0x20] sm:$0xff] }
 0x322   : > { %v3187_v25 = vpop.permute.xlu1 %3186  ;;  %4847 = vst.msk [vmem:[#allocation5 + $0x30] sm:$0xff] %vm4840_vm8, %v4757_v30 }
 0x323   : > { %3274 = vst.msk [vmem:[#allocation5 + $0x48] sm:$0xff] %vm12133_vm15, %v3187_v25  ;;  %4547 = vrot.lane.b32.xlu0 %v10079_v16, %s8054_s12 }
 0x324   : > { %4545 = vrot.lane.b32.xlu1 %v9934_v56, %s8054_s12 }
 0x325   : > { %v3189_v7 = vpop.permute.xlu0 %3188 }
 0x326   : > { %v4759_v33 = vpop.permute.xlu1 %4758  ;;  %v4878_v35 = vld [vmem:[#allocation5 + $0x28] sm:$0xff]  ;;  %3275 = vst.msk [vmem:[#allocation5 + $0x50] sm:$0xff] %vm12133_vm15, %v3189_v7 }
 0x327   : > { %4848 = vst.msk [vmem:[#allocation5 + $0x38] sm:$0xff] %vm4840_vm8, %v4759_v33  ;;  %v4907_v9 = vpack.c.bf16 %v4878_v35, %v4877_v47  ;;  %4768 = vrot.lane.b32.xlu0 %v10298_v23, %s8055_s20 }
 0x328   : > { %4549 = vrot.lane.b32.xlu1 %v10097_v21, %s8054_s12 }
 0x329   : > { %7906 = vmatprep.mubr.msk.bf16.mxu1 %vm4964_vm9, %v4907_v9  ;;  %v3410_v55 = vpop.permute.xlu0 %3409  ;;  %v4879_v48 = vld [vmem:[#allocation5 + $0x30] sm:$0xff] }
 0x32a   : > { %v3191_v17 = vpop.permute.xlu1 %3190  ;;  %3498 = vst.msk [vmem:[#allocation5 + $0x40] sm:$0xff] %vm12132_vm0, %v3410_v55 }
 0x32b   : > { %3276 = vst.msk [vmem:[#allocation5 + $0x58] sm:$0xff] %vm12133_vm15, %v3191_v17  ;;  %3200 = vrot.lane.b32.xlu0 %v9919_v8, %s8045_s24 }
 0x32c   : > { %4770 = vrot.lane.b32.xlu1 %v10304_v3, %s8055_s20 }
 0x32d   : > { %v3414_v31 = vpop.permute.xlu0 %3413 }
 0x32e   : > { %v3412_v14 = vpop.permute.xlu1 %3411  ;;  %v4880_v10 = vld [vmem:[#allocation5 + $0x38] sm:$0xff]  ;;  %3500 = vst.msk [vmem:[#allocation5 + $0x50] sm:$0xff] %vm12132_vm0, %v3414_v31 }
 0x32f   : > { %3499 = vst.msk [vmem:[#allocation5 + $0x48] sm:$0xff] %vm12132_vm0, %v3412_v14  ;;  %v4908_v12 = vpack.c.bf16 %v4880_v10, %v4879_v48  ;;  %4772 = vrot.lane.b32.xlu0 %v10349_v53, %s8055_s20 }
 0x330   : > { %3202 = vrot.lane.b32.xlu1 %v9934_v56, %s8045_s24 }
 0x331   : > { %v7886_v41 = vpop.f32.mrf.mxu0  ;;  %7907 = vmatmul.mubr.msk.bf16.gmra.mxu1 %vm4964_vm9, %v4908_v12  ;;  %v3731_v1 = vpop.permute.xlu0 %3730 }
 0x332   : > { %v2752_v8 = vadd.f32 %v9888_v39, %v7886_v41  ;;  %v3416_v37 = vpop.permute.xlu1 %3415  ;;  %3819 = vst.msk [vmem:[#allocation5 + $0x40] sm:$0xff] %vm12131_vm3, %v3731_v1  ;;  %v3561_v41 = vld [vmem:[#allocation4 + $0x158] sm:$0xff] }
 0x333   : > { %3501 = vst.msk [vmem:[#allocation5 + $0x58] sm:$0xff] %vm12132_vm0, %v3416_v37  ;;  %v2743_v42 = vpop.f32.mrf.mxu0  ;;  %3204 = vrot.lane.b32.xlu0 %v10079_v16, %s8045_s24 }
 0x334   : > { %v2800_v56 = vmax.f32 %v2752_v8, 0.0  ;;  %v2744_v63 = vadd.f32 %v9888_v39, %v2743_v42  ;;  %4774 = vrot.lane.b32.xlu1 %v10357_v52, %s8055_s20  ;;  %v4036_v42 = vrot.slane %v3561_v41, 1 }
 0x335   : > { %v7887_v44 = vpop.f32.mrf.mxu0  ;;  %v3735_v2 = vpop.permute.xlu0 %3734 }
 0x336   : > { %2906 = vst.msk [vmem:[#allocation4 + $0x1c8] sm:$0xff] %vm2806_vm13, %v2800_v56  ;;  %v2798_v39 = vmax.f32 %v2744_v63, 0.0  ;;  %v2755_v6 = vadd.f32 %v10437_v27, %v7887_v44  ;;  %v3733_v5 = vpop.permute.xlu1 %3732 }
 0x337   : > { %3820 = vst.msk [vmem:[#allocation5 + $0x48] sm:$0xff] %vm12131_vm3, %v3733_v5  ;;  %v2746_v43 = vpop.f32.mrf.mxu0  ;;  %3821 = vst.msk [vmem:[#allocation5 + $0x50] sm:$0xff] %vm12131_vm3, %v3735_v2  ;;  %3425 = vrot.lane.b32.xlu0 %v10298_v23, %s8047_s26  ;;  %v3558_v23 = vld [vmem:[#allocation4 + $0x140] sm:$0xff] }
 0x338   : > { %2904 = vst.msk [vmem:[#allocation4 + $0x1a8] sm:$0xff] %vm2806_vm13, %v2798_v39  ;;  %v2801_v58 = vmax.f32 %v2755_v6, 0.0  ;;  %v2747_v15 = vadd.f32 %v10437_v27, %v2746_v43  ;;  %3206 = vrot.lane.b32.xlu1 %v10097_v21, %s8045_s24 }
 0x339   : > { %v3860_v59 = vpop.permute.xlu0 %3859 }
 0x33a   : > { %2907 = vst.msk [vmem:[#allocation4 + $0x1d0] sm:$0xff] %vm2806_vm13, %v2801_v58  ;;  %v2799_v40 = vmax.f32 %v2747_v15, 0.0  ;;  %v3737_v38 = vpop.permute.xlu1 %3736 }
 0x33b   : > { %3822 = vst.msk [vmem:[#allocation5 + $0x58] sm:$0xff] %vm12131_vm3, %v3737_v38  ;;  %3429 = vrot.lane.b32.xlu0 %v10349_v53, %s8047_s26 }
 0x33c   : > { %2905 = vst.msk [vmem:[#allocation4 + $0x1b0] sm:$0xff] %vm2806_vm13, %v2799_v40  ;;  %3427 = vrot.lane.b32.xlu1 %v10304_v3, %s8047_s26  ;;  %v3679_v3 = vrot.slane %v3558_v23, 7 }
 0x33d   : > { %3948 = vst.msk [vmem:[#allocation5 + $0x40] sm:$0xff] %vm12136_vm4, %v3860_v59  ;;  %v10456_v54 = vld [vmem:[#allocation4 + $0x1c8] sm:$0xff]  ;;  %v3864_v30 = vpop.permute.xlu0 %3863  ;;  %v4710_v59 = vrot.slane %v10252_v62, 1 }
 0x33e   : > { %v3862_v28 = vpop.permute.xlu1 %3861  ;;  %v3700_v25 = vrot.slane %v10456_v54, 7  ;;  %3950 = vst.msk [vmem:[#allocation5 + $0x50] sm:$0xff] %vm12136_vm4, %v3864_v30 }
 0x33f   : > { %3949 = vst.msk [vmem:[#allocation5 + $0x48] sm:$0xff] %vm12136_vm4, %v3862_v28  ;;  %v10460_v33 = vld [vmem:[#allocation4 + $0x1a8] sm:$0xff]  ;;  %3746 = vrot.lane.b32.xlu0 %v10093_v45, %s8049_s28  ;;  %v3681_v45 = vsel %vm634_vm2, %v3679_v3, %v10076_v51 }
 0x340   : > { %3431 = vrot.lane.b32.xlu1 %v10357_v52, %s8047_s26  ;;  %v4366_v47 = vrot.slane %v10460_v33, 7  ;;  %v10467_v35 = vsel %vm634_vm2, %v3699_v13, %v3700_v25 }
 0x341   : > { %v10471_v7 = vld [vmem:[#allocation4 + $0x1d0] sm:$0xff]  ;;  %3164 = vst.msk [vmem:[#allocation5 + $0xe0] sm:$0xff] %vm2806_vm13, %v10467_v35  ;;  %v4085_v20 = vpop.permute.xlu0 %4084 }
 0x342   : > { %v3866_v9 = vpop.permute.xlu1 %3865  ;;  %v10476_v17 = vsel %vm634_vm2, %v4365_v61, %v4366_v47  ;;  %v3702_v55 = vrot.slane %v10471_v7, 7  ;;  %4173 = vst.msk [vmem:[#allocation5 + $0x40] sm:$0xff] %vm4164_vm5, %v4085_v20  ;;  %v4709_v61 = vrot.slane %v10234_v22, 1 }
 0x343   : > { %3951 = vst.msk [vmem:[#allocation5 + $0x58] sm:$0xff] %vm12136_vm4, %v3866_v9  ;;  %v10480_v18 = vld [vmem:[#allocation4 + $0x1b0] sm:$0xff]  ;;  %3750 = vrot.lane.b32.xlu0 %v3681_v45, %s8049_s28 }
 0x344   : > { %3162 = vst.msk [vmem:[#allocation5 + $0xd0] sm:$0xff] %vm2806_vm13, %v10476_v17  ;;  %3748 = vrot.lane.b32.xlu1 %v10113_v26, %s8049_s28  ;;  %v4368_v14 = vrot.slane %v10480_v18, 7  ;;  %v10491_v60 = vsel %vm634_vm2, %v3700_v25, %v3702_v55  ;;  %v4712_v55 = vrot.slane %v4237_v11, 1 }
 0x345   : > { %3165 = vst.msk [vmem:[#allocation5 + $0xe8] sm:$0xff] %vm2806_vm13, %v10491_v60  ;;  %v4089_v26 = vpop.permute.xlu0 %4088 }
 0x346   : > { %v4087_v48 = vpop.permute.xlu1 %4086  ;;  %v10497_v10 = vsel %vm634_vm2, %v4366_v47, %v4368_v14  ;;  %4175 = vst.msk [vmem:[#allocation5 + $0x50] sm:$0xff] %vm4164_vm5, %v4089_v26 }
 0x347   : > { %4174 = vst.msk [vmem:[#allocation5 + $0x48] sm:$0xff] %vm4164_vm5, %v4087_v48  ;;  %3875 = vrot.lane.b32.xlu0 %v10079_v16, %s8051_s15  ;;  %v4034_v16 = vrot.slane %v10089_v19, 1 }
 0x348   : > { %3163 = vst.msk [vmem:[#allocation5 + $0xd8] sm:$0xff] %vm2806_vm13, %v10497_v10  ;;  %3752 = vrot.lane.b32.xlu1 %v10109_v4, %s8049_s28 }
 0x349   : > { %v4407_v31 = vpop.permute.xlu0 %4406  ;;  %v10532_v63 = vsel %vm12135_vm1, %v4034_v16, %v4036_v42 }
 0x34a   : > { %v4091_v51 = vpop.permute.xlu1 %4090  ;;  %4495 = vst.msk [vmem:[#allocation5 + $0x40] sm:$0xff] %vm4486_vm6, %v4407_v31 }
 0x34b   : > { %4176 = vst.msk [vmem:[#allocation5 + $0x58] sm:$0xff] %vm4164_vm5, %v4091_v51  ;;  %3879 = vrot.lane.b32.xlu0 %v10073_v46, %s8051_s15 }
 0x34c   : > { %3877 = vrot.lane.b32.xlu1 %v10097_v21, %s8051_s15  ;;  %v4033_v21 = vrot.slane %v10073_v46, 1 }
 0x34d   : > { %v4411_v57 = vpop.permute.xlu0 %4410 }
 0x34e   : > { %v4409_v12 = vpop.permute.xlu1 %4408  ;;  %4497 = vst.msk [vmem:[#allocation5 + $0x50] sm:$0xff] %vm4486_vm6, %v4411_v57  ;;  %v10526_v1 = vsel %vm12135_vm1, %v4033_v21, %v4034_v16 }
 0x34f   : > { %4496 = vst.msk [vmem:[#allocation5 + $0x48] sm:$0xff] %vm4486_vm6, %v4409_v12  ;;  %4100 = vrot.lane.b32.xlu0 %v10349_v53, %s8052_s22 }
 0x350   : > { %3881 = vrot.lane.b32.xlu1 %v10089_v19, %s8051_s15 }
 0x351   : > { %v4536_v37 = vpop.permute.xlu0 %4535 }
 0x352   : > { %v4413_v8 = vpop.permute.xlu1 %4412  ;;  %4624 = vst.msk [vmem:[#allocation5 + $0x40] sm:$0xff] %vm4615_vm7, %v4536_v37  ;;  %v4250_v37 = vld [vmem:[#allocation4 + $0x1e0] sm:$0xff] }
 0x353   : > { %4498 = vst.msk [vmem:[#allocation5 + $0x58] sm:$0xff] %vm4486_vm6, %v4413_v8  ;;  %4104 = vrot.lane.b32.xlu0 %v10526_v1, %s8052_s22  ;;  %v4375_v42 = vrot.slane %v4250_v37, 7  ;;  %v10713_v37 = vld [vmem:[%s12123_s4] ss:$0 sm:$0xff] }
 0x354   : > { %4102 = vrot.lane.b32.xlu1 %v10357_v52, %s8052_s22 }
 0x355   : > { %v4540_v53 = vpop.permute.xlu0 %4539 }
 0x356   : > { %v4538_v56 = vpop.permute.xlu1 %4537  ;;  %4626 = vst.msk [vmem:[#allocation5 + $0x50] sm:$0xff] %vm4615_vm7, %v4540_v53 }
 0x357   : > { %4625 = vst.msk [vmem:[#allocation5 + $0x48] sm:$0xff] %vm4615_vm7, %v4538_v56  ;;  %4422 = vrot.lane.b32.xlu0 %v3681_v45, %s8053_s23 }
 0x358   : > { %4106 = vrot.lane.b32.xlu1 %v10532_v63, %s8052_s22 }
 0x359   : > { %v4761_v44 = vpop.permute.xlu0 %4760 }
 0x35a   : > { %v4542_v52 = vpop.permute.xlu1 %4541  ;;  %4849 = vst.msk [vmem:[#allocation5 + $0x40] sm:$0xff] %vm4840_vm8, %v4761_v44  ;;  %v3566_v44 = vld [vmem:[#allocation4 + $0x180] sm:$0xff] }
 0x35b   : > { %4627 = vst.msk [vmem:[#allocation5 + $0x58] sm:$0xff] %vm4615_vm7, %v4542_v52  ;;  %4426 = vrot.lane.b32.xlu0 %v10248_v49, %s8053_s23 }
 0x35c   : > { %4424 = vrot.lane.b32.xlu1 %v10109_v4, %s8053_s23 }
 0x35d   : > { %v3193_v6 = vpop.permute.xlu0 %3192 }
 0x35e   : > { %v4763_v39 = vpop.permute.xlu1 %4762  ;;  %3277 = vst.msk [vmem:[#allocation5 + $0x60] sm:$0xff] %vm12133_vm15, %v3193_v6 }
 0x35f   : > { %4850 = vst.msk [vmem:[#allocation5 + $0x48] sm:$0xff] %vm4840_vm8, %v4763_v39  ;;  %4551 = vrot.lane.b32.xlu0 %v10073_v46, %s8054_s12 }
 0x360   : > { %4428 = vrot.lane.b32.xlu1 %v10267_v34, %s8053_s23 }
 0x361   : > { %v4765_v43 = vpop.permute.xlu0 %4764  ;;  %v4881_v2 = vld [vmem:[#allocation5 + $0x40] sm:$0xff] }
 0x362   : > { %v3195_v5 = vpop.permute.xlu1 %3194  ;;  %4851 = vst.msk [vmem:[#allocation5 + $0x50] sm:$0xff] %vm4840_vm8, %v4765_v43 }
 0x363   : > { %3278 = vst.msk [vmem:[#allocation5 + $0x68] sm:$0xff] %vm12133_vm15, %v3195_v5  ;;  %4555 = vrot.lane.b32.xlu0 %v10234_v22, %s8054_s12 }
 0x364   : > { %4553 = vrot.lane.b32.xlu1 %v10089_v19, %s8054_s12 }
 0x365   : > { %v3197_v15 = vpop.permute.xlu0 %3196 }
 0x366   : > { %v4767_v4 = vpop.permute.xlu1 %4766  ;;  %v4882_v58 = vld [vmem:[#allocation5 + $0x48] sm:$0xff]  ;;  %3279 = vst.msk [vmem:[#allocation5 + $0x70] sm:$0xff] %vm12133_vm15, %v3197_v15 }
 0x367   : > { %4852 = vst.msk [vmem:[#allocation5 + $0x58] sm:$0xff] %vm4840_vm8, %v4767_v4  ;;  %v4909_v29 = vpack.c.bf16 %v4882_v58, %v4881_v2  ;;  %4776 = vrot.lane.b32.xlu0 %v10526_v1, %s8055_s20 }
 0x368   : > { %4557 = vrot.lane.b32.xlu1 %v10252_v62, %s8054_s12 }
 0x369   : > { %7910 = vmatprep.mubr.msk.bf16.mxu1 %vm4964_vm9, %v4909_v29  ;;  %v3418_v38 = vpop.permute.xlu0 %3417  ;;  %v4883_v25 = vld [vmem:[#allocation5 + $0x50] sm:$0xff] }
 0x36a   : > { %v3199_v40 = vpop.permute.xlu1 %3198  ;;  %3502 = vst.msk [vmem:[#allocation5 + $0x60] sm:$0xff] %vm12132_vm0, %v3418_v38 }
 0x36b   : > { %3280 = vst.msk [vmem:[#allocation5 + $0x78] sm:$0xff] %vm12133_vm15, %v3199_v40  ;;  %3208 = vrot.lane.b32.xlu0 %v10073_v46, %s8045_s24  ;;  %v10578_v46 = vsel %vm12135_vm1, %v4709_v61, %v4710_v59 }
 0x36c   : > { %4778 = vrot.lane.b32.xlu1 %v10532_v63, %s8055_s20 }
 0x36d   : > { %v7890_v13 = vpop.f32.mrf.mxu0  ;;  %v3422_v47 = vpop.permute.xlu0 %3421 }
 0x36e   : > { %v2768_v23 = vadd.f32 %v10437_v27, %v7890_v13  ;;  %v3420_v28 = vpop.permute.xlu1 %3419  ;;  %v4884_v30 = vld [vmem:[#allocation5 + $0x58] sm:$0xff]  ;;  %3504 = vst.msk [vmem:[#allocation5 + $0x70] sm:$0xff] %vm12132_vm0, %v3422_v47 }
 0x36f   : > { %3503 = vst.msk [vmem:[#allocation5 + $0x68] sm:$0xff] %vm12132_vm0, %v3420_v28  ;;  %v2759_v3 = vpop.f32.mrf.mxu0  ;;  %v4910_v9 = vpack.c.bf16 %v4884_v30, %v4883_v25  ;;  %4780 = vrot.lane.b32.xlu0 %v10578_v46, %s8055_s20 }
 0x370   : > { %v2804_v20 = vmax.f32 %v2768_v23, 0.0  ;;  %v2760_v45 = vadd.f32 %v10437_v27, %v2759_v3  ;;  %3210 = vrot.lane.b32.xlu1 %v10089_v19, %s8045_s24  ;;  %v10587_v19 = vsel %vm12135_vm1, %v4710_v59, %v4712_v55  ;;  %v3569_v59 = vld [vmem:[#allocation4 + $0x198] sm:$0xff] }
 0x371   : > { %v7891_v14 = vpop.f32.mrf.mxu0  ;;  %7911 = vmatmul.mubr.msk.bf16.gmra.mxu1 %vm4964_vm9, %v4910_v9  ;;  %v3739_v12 = vpop.permute.xlu0 %3738  ;;  %v4046_v23 = vrot.slane %v3569_v59, 1 }
 0x372   : > { %2910 = vst.msk [vmem:[#allocation4 + $0x208] sm:$0xff] %vm2806_vm13, %v2804_v20  ;;  %v2802_v48 = vmax.f32 %v2760_v45, 0.0  ;;  %v2771_v26 = vadd.f32 %v10437_v27, %v7891_v14  ;;  %v3424_v51 = vpop.permute.xlu1 %3423 }
 0x373   : > { %3505 = vst.msk [vmem:[#allocation5 + $0x78] sm:$0xff] %vm12132_vm0, %v3424_v51  ;;  %v2762_v31 = vpop.f32.mrf.mxu0  ;;  %3212 = vrot.lane.b32.xlu0 %v10234_v22, %s8045_s24 }
 0x374   : > { %2908 = vst.msk [vmem:[#allocation4 + $0x1e8] sm:$0xff] %vm2806_vm13, %v2802_v48  ;;  %v2805_v57 = vmax.f32 %v2771_v26, 0.0  ;;  %v2763_v16 = vadd.f32 %v10437_v27, %v2762_v31  ;;  %4782 = vrot.lane.b32.xlu1 %v10587_v19, %s8055_s20 }
 0x375   : > { %3823 = vst.msk [vmem:[#allocation5 + $0x60] sm:$0xff] %vm12131_vm3, %v3739_v12  ;;  %v3743_v21 = vpop.permute.xlu0 %3742  ;;  %v4720_v12 = vrot.slane %v10480_v18, 1 }
 0x376   : > { %2911 = vst.msk [vmem:[#allocation4 + $0x210] sm:$0xff] %vm2806_vm13, %v2805_v57  ;;  %v2803_v41 = vmax.f32 %v2763_v16, 0.0  ;;  %v3741_v8 = vpop.permute.xlu1 %3740  ;;  %v4719_v16 = vrot.slane %v10460_v33, 1 }
 0x377   : > { %3824 = vst.msk [vmem:[#allocation5 + $0x68] sm:$0xff] %vm12131_vm3, %v3741_v8  ;;  %3825 = vst.msk [vmem:[#allocation5 + $0x70] sm:$0xff] %vm12131_vm3, %v3743_v21  ;;  %3433 = vrot.lane.b32.xlu0 %v10526_v1, %s8047_s26 }
 0x378   : > { %2909 = vst.msk [vmem:[#allocation4 + $0x1f0] sm:$0xff] %vm2806_vm13, %v2803_v41  ;;  %3214 = vrot.lane.b32.xlu1 %v10252_v62, %s8045_s24 }
 0x379   : > { %v3868_v56 = vpop.permute.xlu0 %3867 }
 0x37a   : > { %v3745_v27 = vpop.permute.xlu1 %3744  ;;  %3952 = vst.msk [vmem:[#allocation5 + $0x60] sm:$0xff] %vm12136_vm4, %v3868_v56 }
 0x37b   : > { %3826 = vst.msk [vmem:[#allocation5 + $0x78] sm:$0xff] %vm12131_vm3, %v3745_v27  ;;  %v10605_v53 = vld [vmem:[#allocation4 + $0x1e8] sm:$0xff]  ;;  %3437 = vrot.lane.b32.xlu0 %v10578_v46, %s8047_s26 }
 0x37c   : > { %3435 = vrot.lane.b32.xlu1 %v10532_v63, %s8047_s26  ;;  %v4376_v52 = vrot.slane %v10605_v53, 7  ;;  %v3689_v63 = vrot.slane %v3566_v44, 7 }
 0x37d   : > { %v3872_v6 = vpop.permute.xlu0 %3871 }
 0x37e   : > { %v3870_v39 = vpop.permute.xlu1 %3869  ;;  %v10614_v1 = vsel %vm634_vm2, %v4375_v42, %v4376_v52  ;;  %3954 = vst.msk [vmem:[#allocation5 + $0x70] sm:$0xff] %vm12136_vm4, %v3872_v6  ;;  %v3691_v15 = vsel %vm634_vm2, %v3689_v63, %v10231_v32 }
 0x37f   : > { %3953 = vst.msk [vmem:[#allocation5 + $0x68] sm:$0xff] %vm12136_vm4, %v3870_v39  ;;  %v10617_v5 = vld [vmem:[#allocation4 + $0x1f0] sm:$0xff]  ;;  %3754 = vrot.lane.b32.xlu0 %v10248_v49, %s8049_s28 }
 0x380   : > { %3166 = vst.msk [vmem:[#allocation5 + $0xf0] sm:$0xff] %vm2806_vm13, %v10614_v1  ;;  %3439 = vrot.lane.b32.xlu1 %v10587_v19, %s8047_s26  ;;  %v4378_v43 = vrot.slane %v10617_v5, 7 }
 0x381   : > { %v4093_v58 = vpop.permute.xlu0 %4092 }
 0x382   : > { %v3874_v4 = vpop.permute.xlu1 %3873  ;;  %v10628_v2 = vsel %vm634_vm2, %v4376_v52, %v4378_v43  ;;  %4177 = vst.msk [vmem:[#allocation5 + $0x60] sm:$0xff] %vm4164_vm5, %v4093_v58 }
 0x383   : > { %3955 = vst.msk [vmem:[#allocation5 + $0x78] sm:$0xff] %vm12136_vm4, %v3874_v4  ;;  %3758 = vrot.lane.b32.xlu0 %v3691_v15, %s8049_s28 }
 0x384   : > { %3167 = vst.msk [vmem:[#allocation5 + $0xf8] sm:$0xff] %vm2806_vm13, %v10628_v2  ;;  %3756 = vrot.lane.b32.xlu1 %v10267_v34, %s8049_s28 }
 0x385   : > { %v4097_v29 = vpop.permute.xlu0 %4096 }
 0x386   : > { %v4095_v49 = vpop.permute.xlu1 %4094  ;;  %4179 = vst.msk [vmem:[#allocation5 + $0x70] sm:$0xff] %vm4164_vm5, %v4097_v29  ;;  %v8056_v29 = vmov 1.0  }
 0x387   : > { %4178 = vst.msk [vmem:[#allocation5 + $0x68] sm:$0xff] %vm4164_vm5, %v4095_v49  ;;  %3883 = vrot.lane.b32.xlu0 %v10234_v22, %s8051_s15  ;;  %v4044_v22 = vrot.slane %v10244_v24, 1 }
 0x388   : > { %3760 = vrot.lane.b32.xlu1 %v10262_v50, %s8049_s28 }
 0x389   : > { %v4415_v34 = vpop.permute.xlu0 %4414  ;;  %v10670_v30 = vsel %vm12135_vm1, %v4044_v22, %v4046_v23 }
 0x38a   : > { %v4099_v40 = vpop.permute.xlu1 %4098  ;;  %4499 = vst.msk [vmem:[#allocation5 + $0x60] sm:$0xff] %vm4486_vm6, %v4415_v34 }
 0x38b   : > { %4180 = vst.msk [vmem:[#allocation5 + $0x78] sm:$0xff] %vm4164_vm5, %v4099_v40  ;;  %3887 = vrot.lane.b32.xlu0 %v10228_v36, %s8051_s15 }
 0x38c   : > { %3885 = vrot.lane.b32.xlu1 %v10252_v62, %s8051_s15  ;;  %v4043_v62 = vrot.slane %v10228_v36, 1 }
 0x38d   : > { %v4419_v38 = vpop.permute.xlu0 %4418 }
 0x38e   : > { %v4417_v32 = vpop.permute.xlu1 %4416  ;;  %4501 = vst.msk [vmem:[#allocation5 + $0x70] sm:$0xff] %vm4486_vm6, %v4419_v38  ;;  %v10664_v28 = vsel %vm12135_vm1, %v4043_v62, %v4044_v22 }
 0x38f   : > { %4500 = vst.msk [vmem:[#allocation5 + $0x68] sm:$0xff] %vm4486_vm6, %v4417_v32  ;;  %4108 = vrot.lane.b32.xlu0 %v10578_v46, %s8052_s22 }
 0x390   : > { %3889 = vrot.lane.b32.xlu1 %v10244_v24, %s8051_s15 }
 0x391   : > { %v4544_v13 = vpop.permute.xlu0 %4543 }
 0x392   : > { %v4421_v11 = vpop.permute.xlu1 %4420  ;;  %4628 = vst.msk [vmem:[#allocation5 + $0x60] sm:$0xff] %vm4615_vm7, %v4544_v13 }
 0x393   : > { %4502 = vst.msk [vmem:[#allocation5 + $0x78] sm:$0xff] %vm4486_vm6, %v4421_v11  ;;  %4112 = vrot.lane.b32.xlu0 %v10664_v28, %s8052_s22 }
 0x394   : > { %4110 = vrot.lane.b32.xlu1 %v10587_v19, %s8052_s22  ;;  %v4245_v19 = vld [vmem:[#allocation4 + $0x1b8] sm:$0xff] }
 0x395   : > { %v4548_v25 = vpop.permute.xlu0 %4547  ;;  %v4722_v42 = vrot.slane %v4245_v19, 1 }
 0x396   : > { %v4546_v61 = vpop.permute.xlu1 %4545  ;;  %4630 = vst.msk [vmem:[#allocation5 + $0x70] sm:$0xff] %vm4615_vm7, %v4548_v25 }
 0x397   : > { %4629 = vst.msk [vmem:[#allocation5 + $0x68] sm:$0xff] %vm4615_vm7, %v4546_v61  ;;  %4430 = vrot.lane.b32.xlu0 %v3691_v15, %s8053_s23  ;;  %v10727_v63 = vsel %vm12135_vm1, %v4720_v12, %v4722_v42  ;;  %v4253_v42 = vld [vmem:[#allocation4 + $0x1f8] sm:$0xff] }
 0x398   : > { %4114 = vrot.lane.b32.xlu1 %v10670_v30, %s8052_s22 }
 0x399   : > { %v4769_v47 = vpop.permute.xlu0 %4768 }
 0x39a   : > { %v4550_v3 = vpop.permute.xlu1 %4549  ;;  %4853 = vst.msk [vmem:[#allocation5 + $0x60] sm:$0xff] %vm4840_vm8, %v4769_v47  ;;  %v3577_v47 = vld [vmem:[#allocation4 + $0x1d8] sm:$0xff] }
 0x39b   : > { %4631 = vst.msk [vmem:[#allocation5 + $0x78] sm:$0xff] %vm4615_vm7, %v4550_v3  ;;  %4434 = vrot.lane.b32.xlu0 %v10476_v17, %s8053_s23 }
 0x39c   : > { %4432 = vrot.lane.b32.xlu1 %v10262_v50, %s8053_s23 }
 0x39d   : > { %v3201_v55 = vpop.permute.xlu0 %3200 }
 0x39e   : > { %v4771_v9 = vpop.permute.xlu1 %4770  ;;  %3281 = vst.msk [vmem:[#allocation5 + $0x80] sm:$0xff] %vm12133_vm15, %v3201_v55 }
 0x39f   : > { %4854 = vst.msk [vmem:[#allocation5 + $0x68] sm:$0xff] %vm4840_vm8, %v4771_v9  ;;  %4559 = vrot.lane.b32.xlu0 %v10228_v36, %s8054_s12 }
 0x3a0   : > { %4436 = vrot.lane.b32.xlu1 %v10497_v10, %s8053_s23 }
 0x3a1   : > { %v4773_v45 = vpop.permute.xlu0 %4772  ;;  %v4885_v46 = vld [vmem:[#allocation5 + $0x60] sm:$0xff] }
 0x3a2   : > { %v3203_v20 = vpop.permute.xlu1 %3202  ;;  %4855 = vst.msk [vmem:[#allocation5 + $0x70] sm:$0xff] %vm4840_vm8, %v4773_v45 }
 0x3a3   : > { %3282 = vst.msk [vmem:[#allocation5 + $0x88] sm:$0xff] %vm12133_vm15, %v3203_v20  ;;  %4563 = vrot.lane.b32.xlu0 %v10460_v33, %s8054_s12  ;;  %v4056_v20 = vrot.slane %v3577_v47, 1  ;;  %v10898_v47 = vld [vmem:[#allocation4 + $0x210] sm:$0xff] }
 0x3a4   : > { %4561 = vrot.lane.b32.xlu1 %v10244_v24, %s8054_s12 }
 0x3a5   : > { %v3205_v48 = vpop.permute.xlu0 %3204 }
 0x3a6   : > { %v4775_v50 = vpop.permute.xlu1 %4774  ;;  %v4886_v14 = vld [vmem:[#allocation5 + $0x68] sm:$0xff]  ;;  %3283 = vst.msk [vmem:[#allocation5 + $0x90] sm:$0xff] %vm12133_vm15, %v3205_v48 }
 0x3a7   : > { %4856 = vst.msk [vmem:[#allocation5 + $0x78] sm:$0xff] %vm4840_vm8, %v4775_v50  ;;  %v4911_v26 = vpack.c.bf16 %v4886_v14, %v4885_v46  ;;  %4784 = vrot.lane.b32.xlu0 %v10664_v28, %s8055_s20 }
 0x3a8   : > { %4565 = vrot.lane.b32.xlu1 %v10480_v18, %s8054_s12 }
 0x3a9   : > { %7914 = vmatprep.mubr.msk.bf16.mxu1 %vm4964_vm9, %v4911_v26  ;;  %v3426_v31 = vpop.permute.xlu0 %3425  ;;  %v4887_v41 = vld [vmem:[#allocation5 + $0x70] sm:$0xff] }
 0x3aa   : > { %v3207_v51 = vpop.permute.xlu1 %3206  ;;  %3506 = vst.msk [vmem:[#allocation5 + $0x80] sm:$0xff] %vm12132_vm0, %v3426_v31 }
 0x3ab   : > { %3284 = vst.msk [vmem:[#allocation5 + $0x98] sm:$0xff] %vm12133_vm15, %v3207_v51  ;;  %3216 = vrot.lane.b32.xlu0 %v10228_v36, %s8045_s24  ;;  %v10719_v36 = vsel %vm12135_vm1, %v4719_v16, %v4720_v12 }
 0x3ac   : > { %4786 = vrot.lane.b32.xlu1 %v10670_v30, %s8055_s20 }
 0x3ad   : > { %v3430_v21 = vpop.permute.xlu0 %3429 }
 0x3ae   : > { %v3428_v57 = vpop.permute.xlu1 %3427  ;;  %v4888_v8 = vld [vmem:[#allocation5 + $0x78] sm:$0xff]  ;;  %3508 = vst.msk [vmem:[#allocation5 + $0x90] sm:$0xff] %vm12132_vm0, %v3430_v21 }
 0x3af   : > { %3507 = vst.msk [vmem:[#allocation5 + $0x88] sm:$0xff] %vm12132_vm0, %v3428_v57  ;;  %v4912_v27 = vpack.c.bf16 %v4888_v8, %v4887_v41  ;;  %4788 = vrot.lane.b32.xlu0 %v10719_v36, %s8055_s20 }
 0x3b0   : > { %3218 = vrot.lane.b32.xlu1 %v10244_v24, %s8045_s24 }
 0x3b1   : > { %v7904_v56 = vpop.f32.mrf.mxu1  ;;  %7915 = vmatmul.mubr.msk.bf16.gmra.mxu1 %vm4964_vm9, %v4912_v27  ;;  %v3747_v39 = vpop.permute.xlu0 %3746  ;;  %v4730_v27 = vrot.slane %v10617_v5, 1 }
 0x3b2   : > { %v5060_v52 = vadd.f32 %v7904_v56, %v10713_v37  ;;  %v3432_v44 = vpop.permute.xlu1 %3431  ;;  %3827 = vst.msk [vmem:[#allocation5 + $0x80] sm:$0xff] %vm12131_vm3, %v3747_v39  ;;  %v4729_v56 = vrot.slane %v10605_v53, 1 }
 0x3b3   : > { %3509 = vst.msk [vmem:[#allocation5 + $0x98] sm:$0xff] %vm12132_vm0, %v3432_v44  ;;  %v5051_v6 = vpop.f32.mrf.mxu1  ;;  %3220 = vrot.lane.b32.xlu0 %v10460_v33, %s8045_s24 }
 0x3b4   : > { %v5180_v24 = vmax.f32 %v5060_v52, 0.0  ;;  %v5052_v43 = vadd.f32 %v10713_v37, %v5051_v6  ;;  %4790 = vrot.lane.b32.xlu1 %v10727_v63, %s8055_s20 }
 0x3b5   : > { %v7905_v4 = vpop.f32.mrf.mxu1  ;;  %v3751_v40 = vpop.permute.xlu0 %3750 }
 0x3b6   : > { %5268 = vst.msk [vmem:[#allocation6 + $0x18] sm:$0xff] %vm2806_vm13, %v5180_v24  ;;  %v5178_v58 = vmax.f32 %v5052_v43, 0.0  ;;  %v5063_v15 = vadd.f32 %v7905_v4, %v10713_v37  ;;  %v3749_v49 = vpop.permute.xlu1 %3748  ;;  %v10849_v24 = vsel %vm12135_vm1, %v4729_v56, %v4730_v27 }
 0x3b7   : > { %5301 = vst.msk [vmem:[#allocation6 + $0x18] sm:$0xff] %vm5298_vm11, %v8056_v29  ;;  %v5054_v34 = vpop.f32.mrf.mxu1  ;;  %3441 = vrot.lane.b32.xlu0 %v10664_v28, %s8047_s26 }
 0x3b8   : > { %3828 = vst.msk [vmem:[#allocation5 + $0x88] sm:$0xff] %vm12131_vm3, %v3749_v49  ;;  %v5181_v32 = vmax.f32 %v5063_v15, 0.0  ;;  %3829 = vst.msk [vmem:[#allocation5 + $0x90] sm:$0xff] %vm12131_vm3, %v3751_v40  ;;  %v5055_v38 = vadd.f32 %v10713_v37, %v5054_v34  ;;  %3222 = vrot.lane.b32.xlu1 %v10480_v18, %s8045_s24 }
 0x3b9   : > { %5266 = vst.msk [vmem:[#allocation6] sm:$0xff] %vm2806_vm13, %v5178_v58  ;;  %v3876_v11 = vpop.permute.xlu0 %3875 }
 0x3ba   : > { %5299 = vst.msk [vmem:[#allocation6] sm:$0xff] %vm5298_vm11, %v8056_v29  ;;  %v5179_v22 = vmax.f32 %v5055_v38, 0.0  ;;  %v3753_v59 = vpop.permute.xlu1 %3752 }
 0x3bb   : > { %5269 = vst.msk [vmem:[#allocation6 + $0x20] sm:$0xff] %vm2806_vm13, %v5181_v32  ;;  %3445 = vrot.lane.b32.xlu0 %v10719_v36, %s8047_s26 }
 0x3bc   : > { %5302 = vst.msk [vmem:[#allocation6 + $0x20] sm:$0xff] %vm5298_vm11, %v8056_v29  ;;  %3443 = vrot.lane.b32.xlu1 %v10670_v30, %s8047_s26 }
 0x3bd   : > { %3830 = vst.msk [vmem:[#allocation5 + $0x98] sm:$0xff] %vm12131_vm3, %v3753_v59  ;;  %v3880_v13 = vpop.permute.xlu0 %3879 }
 0x3be   : > { %5267 = vst.msk [vmem:[#allocation6 + $0x8] sm:$0xff] %vm2806_vm13, %v5179_v22  ;;  %v3878_v62 = vpop.permute.xlu1 %3877 }
 0x3bf   : > { %3956 = vst.msk [vmem:[#allocation5 + $0x80] sm:$0xff] %vm12136_vm4, %v3876_v11  ;;  %3957 = vst.msk [vmem:[#allocation5 + $0x88] sm:$0xff] %vm12136_vm4, %v3878_v62  ;;  %3762 = vrot.lane.b32.xlu0 %v10476_v17, %s8049_s28 }
 0x3c0   : > { %5300 = vst.msk [vmem:[#allocation6 + $0x8] sm:$0xff] %vm5298_vm11, %v8056_v29  ;;  %3447 = vrot.lane.b32.xlu1 %v10727_v63, %s8047_s26 }
 0x3c1   : > { %3958 = vst.msk [vmem:[#allocation5 + $0x90] sm:$0xff] %vm12136_vm4, %v3880_v13  ;;  %v4101_v28 = vpop.permute.xlu0 %4100 }
 0x3c2   : > { %v3882_v23 = vpop.permute.xlu1 %3881  ;;  %4181 = vst.msk [vmem:[#allocation5 + $0x80] sm:$0xff] %vm4164_vm5, %v4101_v28 }
 0x3c3   : > { %3959 = vst.msk [vmem:[#allocation5 + $0x98] sm:$0xff] %vm12136_vm4, %v3882_v23  ;;  %3766 = vrot.lane.b32.xlu0 %v10467_v35, %s8049_s28 }
 0x3c4   : > { %3764 = vrot.lane.b32.xlu1 %v10497_v10, %s8049_s28 }
 0x3c5   : > { %v4105_v25 = vpop.permute.xlu0 %4104 }
 0x3c6   : > { %v4103_v61 = vpop.permute.xlu1 %4102  ;;  %4183 = vst.msk [vmem:[#allocation5 + $0x90] sm:$0xff] %vm4164_vm5, %v4105_v25  ;;  %v3582_v25 = vld [vmem:[#allocation4 + $0x200] sm:$0xff] }
 0x3c7   : > { %4182 = vst.msk [vmem:[#allocation5 + $0x88] sm:$0xff] %vm4164_vm5, %v4103_v61  ;;  %3891 = vrot.lane.b32.xlu0 %v10460_v33, %s8051_s15  ;;  %v4054_v33 = vrot.slane %v10471_v7, 1 }
 0x3c8   : > { %3768 = vrot.lane.b32.xlu1 %v10491_v60, %s8049_s28 }
 0x3c9   : > { %v4423_v30 = vpop.permute.xlu0 %4422  ;;  %v10804_v14 = vsel %vm12135_vm1, %v4054_v33, %v4056_v20 }
 0x3ca   : > { %v4107_v17 = vpop.permute.xlu1 %4106  ;;  %4503 = vst.msk [vmem:[#allocation5 + $0x80] sm:$0xff] %vm4486_vm6, %v4423_v30 }
 0x3cb   : > { %4184 = vst.msk [vmem:[#allocation5 + $0x98] sm:$0xff] %vm4164_vm5, %v4107_v17  ;;  %3895 = vrot.lane.b32.xlu0 %v10456_v54, %s8051_s15  ;;  %v10891_v17 = vld [vmem:[#allocation4 + $0x208] sm:$0xff] }
 0x3cc   : > { %3893 = vrot.lane.b32.xlu1 %v10480_v18, %s8051_s15  ;;  %v4053_v18 = vrot.slane %v10456_v54, 1 }
 0x3cd   : > { %v4427_v3 = vpop.permute.xlu0 %4426 }
 0x3ce   : > { %v4425_v10 = vpop.permute.xlu1 %4424  ;;  %4505 = vst.msk [vmem:[#allocation5 + $0x90] sm:$0xff] %vm4486_vm6, %v4427_v3  ;;  %v10798_v45 = vsel %vm12135_vm1, %v4053_v18, %v4054_v33  ;;  %v3709_v3 = vrot.slane %v3582_v25, 7  ;;  %v3710_v33 = vrot.slane %v10891_v17, 7 }
 0x3cf   : > { %4504 = vst.msk [vmem:[#allocation5 + $0x88] sm:$0xff] %vm4486_vm6, %v4425_v10  ;;  %4116 = vrot.lane.b32.xlu0 %v10719_v36, %s8052_s22 }
 0x3d0   : > { %3897 = vrot.lane.b32.xlu1 %v10471_v7, %s8051_s15  ;;  %v3711_v20 = vsel %vm634_vm2, %v3709_v3, %v3710_v33 }
 0x3d1   : > { %v4552_v55 = vpop.permute.xlu0 %4551 }
 0x3d2   : > { %v4429_v9 = vpop.permute.xlu1 %4428  ;;  %4632 = vst.msk [vmem:[#allocation5 + $0x80] sm:$0xff] %vm4615_vm7, %v4552_v55  ;;  %v3712_v55 = vrot.slane %v10898_v47, 7 }
 0x3d3   : > { %4506 = vst.msk [vmem:[#allocation5 + $0x98] sm:$0xff] %vm4486_vm6, %v4429_v9  ;;  %4120 = vrot.lane.b32.xlu0 %v10798_v45, %s8052_s22 }
 0x3d4   : > { %4118 = vrot.lane.b32.xlu1 %v10727_v63, %s8052_s22  ;;  %v4732_v63 = vrot.slane %v4253_v42, 1 }
 0x3d5   : > { %v4556_v46 = vpop.permute.xlu0 %4555 }
 0x3d6   : > { %v4554_v50 = vpop.permute.xlu1 %4553  ;;  %4634 = vst.msk [vmem:[#allocation5 + $0x90] sm:$0xff] %vm4615_vm7, %v4556_v46  ;;  %v10857_v49 = vsel %vm12135_vm1, %v4730_v27, %v4732_v63 }
 0x3d7   : > { %4633 = vst.msk [vmem:[#allocation5 + $0x88] sm:$0xff] %vm4615_vm7, %v4554_v50  ;;  %4438 = vrot.lane.b32.xlu0 %v10467_v35, %s8053_s23 }
 0x3d8   : > { %4122 = vrot.lane.b32.xlu1 %v10804_v14, %s8052_s22 }
 0x3d9   : > { %v4777_v26 = vpop.permute.xlu0 %4776 }
 0x3da   : > { %v4558_v48 = vpop.permute.xlu1 %4557  ;;  %4857 = vst.msk [vmem:[#allocation5 + $0x80] sm:$0xff] %vm4840_vm8, %v4777_v26  ;;  %v3585_v26 = vld [vmem:[#allocation4 + $0x218] sm:$0xff] }
 0x3db   : > { %4635 = vst.msk [vmem:[#allocation5 + $0x98] sm:$0xff] %vm4615_vm7, %v4558_v48  ;;  %4442 = vrot.lane.b32.xlu0 %v10614_v1, %s8053_s23 }
 0x3dc   : > { %4440 = vrot.lane.b32.xlu1 %v10491_v60, %s8053_s23 }
 0x3dd   : > { %v3209_v31 = vpop.permute.xlu0 %3208 }
 0x3de   : > { %v4779_v51 = vpop.permute.xlu1 %4778  ;;  %3285 = vst.msk [vmem:[#allocation5 + $0xa0] sm:$0xff] %vm12133_vm15, %v3209_v31 }
 0x3df   : > { %4858 = vst.msk [vmem:[#allocation5 + $0x88] sm:$0xff] %vm4840_vm8, %v4779_v51  ;;  %4567 = vrot.lane.b32.xlu0 %v10456_v54, %s8054_s12 }
 0x3e0   : > { %4444 = vrot.lane.b32.xlu1 %v10628_v2, %s8053_s23 }
 0x3e1   : > { %v4781_v12 = vpop.permute.xlu0 %4780  ;;  %v4889_v19 = vld [vmem:[#allocation5 + $0x80] sm:$0xff] }
 0x3e2   : > { %v3211_v35 = vpop.permute.xlu1 %3210  ;;  %4859 = vst.msk [vmem:[#allocation5 + $0x90] sm:$0xff] %vm4840_vm8, %v4781_v12  ;;  %v4258_v12 = vld [vmem:[#allocation4 + $0x220] sm:$0xff] }
 0x3e3   : > { %3286 = vst.msk [vmem:[#allocation5 + $0xa8] sm:$0xff] %vm12133_vm15, %v3211_v35  ;;  %4571 = vrot.lane.b32.xlu0 %v10605_v53, %s8054_s12  ;;  %v4066_v35 = vrot.slane %v3585_v26, 1 }
 0x3e4   : > { %4569 = vrot.lane.b32.xlu1 %v10471_v7, %s8054_s12 }
 0x3e5   : > { %v3213_v16 = vpop.permute.xlu0 %3212 }
 0x3e6   : > { %v4783_v60 = vpop.permute.xlu1 %4782  ;;  %v4890_v57 = vld [vmem:[#allocation5 + $0x88] sm:$0xff]  ;;  %3287 = vst.msk [vmem:[#allocation5 + $0xb0] sm:$0xff] %vm12133_vm15, %v3213_v16  ;;  %v4385_v16 = vrot.slane %v4258_v12, 7 }
 0x3e7   : > { %4860 = vst.msk [vmem:[#allocation5 + $0x98] sm:$0xff] %vm4840_vm8, %v4783_v60  ;;  %v4913_v41 = vpack.c.bf16 %v4890_v57, %v4889_v19  ;;  %4792 = vrot.lane.b32.xlu0 %v10798_v45, %s8055_s20  ;;  %v4259_v60 = vld [vmem:[#allocation4 + $0x228] sm:$0xff] }
 0x3e8   : > { %4573 = vrot.lane.b32.xlu1 %v10617_v5, %s8054_s12 }
 0x3e9   : > { %7918 = vmatprep.mubr.msk.bf16.mxu1 %vm4964_vm9, %v4913_v41  ;;  %v3434_v21 = vpop.permute.xlu0 %3433  ;;  %v4891_v52 = vld [vmem:[#allocation5 + $0x90] sm:$0xff]  ;;  %v4386_v41 = vrot.slane %v4259_v60, 7 }
 0x3ea   : > { %v3215_v8 = vpop.permute.xlu1 %3214  ;;  %3510 = vst.msk [vmem:[#allocation5 + $0xa0] sm:$0xff] %vm12132_vm0, %v3434_v21 }
 0x3eb   : > { %3288 = vst.msk [vmem:[#allocation5 + $0xb8] sm:$0xff] %vm12133_vm15, %v3215_v8  ;;  %3224 = vrot.lane.b32.xlu0 %v10456_v54, %s8045_s24  ;;  %v4260_v8 = vld [vmem:[#allocation4 + $0x230] sm:$0xff]  ;;  %v4387_v56 = vsel %vm634_vm2, %v4385_v16, %v4386_v41 }
 0x3ec   : > { %4794 = vrot.lane.b32.xlu1 %v10804_v14, %s8055_s20  ;;  %v4388_v42 = vrot.slane %v4260_v8, 7 }
 0x3ed   : > { %v3438_v39 = vpop.permute.xlu0 %3437 }
 0x3ee   : > { %v3436_v36 = vpop.permute.xlu1 %3435  ;;  %v4892_v44 = vld [vmem:[#allocation5 + $0x98] sm:$0xff]  ;;  %3512 = vst.msk [vmem:[#allocation5 + $0xb0] sm:$0xff] %vm12132_vm0, %v3438_v39 }
 0x3ef   : > { %3511 = vst.msk [vmem:[#allocation5 + $0xa8] sm:$0xff] %vm12132_vm0, %v3436_v36  ;;  %v4914_v6 = vpack.c.bf16 %v4892_v44, %v4891_v52  ;;  %4796 = vrot.lane.b32.xlu0 %v10849_v24, %s8055_s20  ;;  %v4389_v44 = vsel %vm634_vm2, %v4386_v41, %v4388_v42 }
 0x3f0   : > { %3226 = vrot.lane.b32.xlu1 %v10471_v7, %s8045_s24 }
 0x3f1   : > { %v7908_v54 = vpop.f32.mrf.mxu1  ;;  %7919 = vmatmul.mubr.msk.bf16.gmra.mxu1 %vm4964_vm9, %v4914_v6  ;;  %v3755_v58 = vpop.permute.xlu0 %3754 }
 0x3f2   : > { %v5076_v43 = vadd.f32 %v7908_v54, %v10713_v37  ;;  %v3440_v4 = vpop.permute.xlu1 %3439  ;;  %3831 = vst.msk [vmem:[#allocation5 + $0xa0] sm:$0xff] %vm12131_vm3, %v3755_v58  ;;  %v4261_v58 = vld [vmem:[#allocation4 + $0x238] sm:$0xff] }
 0x3f3   : > { %3513 = vst.msk [vmem:[#allocation5 + $0xb8] sm:$0xff] %vm12132_vm0, %v3440_v4  ;;  %v5067_v15 = vpop.f32.mrf.mxu1  ;;  %3228 = vrot.lane.b32.xlu0 %v10605_v53, %s8045_s24 }
 0x3f4   : > { %v5184_v7 = vmax.f32 %v5076_v43, 0.0  ;;  %v5068_v40 = vadd.f32 %v10713_v37, %v5067_v15  ;;  %4798 = vrot.lane.b32.xlu1 %v10857_v49, %s8055_s20  ;;  %v4740_v15 = vrot.slane %v4260_v8, 1 }
 0x3f5   : > { %v7909_v34 = vpop.f32.mrf.mxu1  ;;  %v3759_v59 = vpop.permute.xlu0 %3758 }
 0x3f6   : > { %5272 = vst.msk [vmem:[#allocation6 + $0x48] sm:$0xff] %vm2806_vm13, %v5184_v7  ;;  %v5182_v32 = vmax.f32 %v5068_v40, 0.0  ;;  %v5079_v38 = vadd.f32 %v7909_v34, %v10713_v37  ;;  %v3757_v22 = vpop.permute.xlu1 %3756  ;;  %v4742_v34 = vrot.slane %v4261_v58, 1 }
 0x3f7   : > { %5305 = vst.msk [vmem:[#allocation6 + $0x48] sm:$0xff] %vm5298_vm11, %v8056_v29  ;;  %v5070_v11 = vpop.f32.mrf.mxu1  ;;  %3449 = vrot.lane.b32.xlu0 %v10798_v45, %s8047_s26 }
 0x3f8   : > { %3832 = vst.msk [vmem:[#allocation5 + $0xa8] sm:$0xff] %vm12131_vm3, %v3757_v22  ;;  %v5185_v62 = vmax.f32 %v5079_v38, 0.0  ;;  %3833 = vst.msk [vmem:[#allocation5 + $0xb0] sm:$0xff] %vm12131_vm3, %v3759_v59  ;;  %v5071_v13 = vadd.f32 %v10713_v37, %v5070_v11  ;;  %3230 = vrot.lane.b32.xlu1 %v10617_v5, %s8045_s24  ;;  %v4743_v59 = vsel %vm12135_vm1, %v4740_v15, %v4742_v34 }
 0x3f9   : > { %5270 = vst.msk [vmem:[#allocation6 + $0x30] sm:$0xff] %vm2806_vm13, %v5182_v32  ;;  %v3884_v61 = vpop.permute.xlu0 %3883 }
 0x3fa   : > { %5303 = vst.msk [vmem:[#allocation6 + $0x30] sm:$0xff] %vm5298_vm11, %v8056_v29  ;;  %v5183_v23 = vmax.f32 %v5071_v13, 0.0  ;;  %v3761_v28 = vpop.permute.xlu1 %3760 }
 0x3fb   : > { %5273 = vst.msk [vmem:[#allocation6 + $0x50] sm:$0xff] %vm2806_vm13, %v5185_v62  ;;  %3453 = vrot.lane.b32.xlu0 %v10849_v24, %s8047_s26 }
 0x3fc   : > { %5306 = vst.msk [vmem:[#allocation6 + $0x50] sm:$0xff] %vm5298_vm11, %v8056_v29  ;;  %3451 = vrot.lane.b32.xlu1 %v10804_v14, %s8047_s26 }
 0x3fd   : > { %3834 = vst.msk [vmem:[#allocation5 + $0xb8] sm:$0xff] %vm12131_vm3, %v3761_v28  ;;  %v3888_v10 = vpop.permute.xlu0 %3887 }
 0x3fe   : > { %5271 = vst.msk [vmem:[#allocation6 + $0x38] sm:$0xff] %vm2806_vm13, %v5183_v23  ;;  %v3886_v30 = vpop.permute.xlu1 %3885 }
 0x3ff   : > { %3960 = vst.msk [vmem:[#allocation5 + $0xa0] sm:$0xff] %vm12136_vm4, %v3884_v61  ;;  %3961 = vst.msk [vmem:[#allocation5 + $0xa8] sm:$0xff] %vm12136_vm4, %v3886_v30  ;;  %3770 = vrot.lane.b32.xlu0 %v10614_v1, %s8049_s28  ;;  %v3713_v1 = vsel %vm634_vm2, %v3710_v33, %v3712_v55 }
 0x400   : > { %5304 = vst.msk [vmem:[#allocation6 + $0x38] sm:$0xff] %vm5298_vm11, %v8056_v29  ;;  %3455 = vrot.lane.b32.xlu1 %v10857_v49, %s8047_s26 }
 0x401   : > { %3962 = vst.msk [vmem:[#allocation5 + $0xb0] sm:$0xff] %vm12136_vm4, %v3888_v10  ;;  %v4109_v18 = vpop.permute.xlu0 %4108 }
 0x402   : > { %v3890_v9 = vpop.permute.xlu1 %3889  ;;  %4185 = vst.msk [vmem:[#allocation5 + $0xa0] sm:$0xff] %vm4164_vm5, %v4109_v18 }
 0x403   : > { %3963 = vst.msk [vmem:[#allocation5 + $0xb8] sm:$0xff] %vm12136_vm4, %v3890_v9  ;;  %3774 = vrot.lane.b32.xlu0 %v3711_v20, %s8049_s28 }
 0x404   : > { %3772 = vrot.lane.b32.xlu1 %v10628_v2, %s8049_s28 }
 0x405   : > { %v4113_v50 = vpop.permute.xlu0 %4112 }
 0x406   : > { %v4111_v45 = vpop.permute.xlu1 %4110  ;;  %4187 = vst.msk [vmem:[#allocation5 + $0xb0] sm:$0xff] %vm4164_vm5, %v4113_v50 }
 0x407   : > { %4186 = vst.msk [vmem:[#allocation5 + $0xa8] sm:$0xff] %vm4164_vm5, %v4111_v45  ;;  %3899 = vrot.lane.b32.xlu0 %v10605_v53, %s8051_s15  ;;  %v4064_v53 = vrot.slane %v10898_v47, 1 }
 0x408   : > { %3776 = vrot.lane.b32.xlu1 %v3713_v1, %s8049_s28 }
 0x409   : > { %v4431_v2 = vpop.permute.xlu0 %4430  ;;  %v4067_v27 = vsel %vm12135_vm1, %v4064_v53, %v4066_v35 }
 0x40a   : > { %v4115_v46 = vpop.permute.xlu1 %4114  ;;  %4507 = vst.msk [vmem:[#allocation5 + $0xa0] sm:$0xff] %vm4486_vm6, %v4431_v2 }
 0x40b   : > { %4188 = vst.msk [vmem:[#allocation5 + $0xb8] sm:$0xff] %vm4164_vm5, %v4115_v46  ;;  %3903 = vrot.lane.b32.xlu0 %v10891_v17, %s8051_s15 }
 0x40c   : > { %3901 = vrot.lane.b32.xlu1 %v10617_v5, %s8051_s15  ;;  %v4063_v5 = vrot.slane %v10891_v17, 1 }
 0x40d   : > { %v4435_v48 = vpop.permute.xlu0 %4434 }
 0x40e   : > { %v4433_v14 = vpop.permute.xlu1 %4432  ;;  %4509 = vst.msk [vmem:[#allocation5 + $0xb0] sm:$0xff] %vm4486_vm6, %v4435_v48  ;;  %v4065_v19 = vsel %vm12135_vm1, %v4063_v5, %v4064_v53 }
 0x40f   : > { %4508 = vst.msk [vmem:[#allocation5 + $0xa8] sm:$0xff] %vm4486_vm6, %v4433_v14  ;;  %4124 = vrot.lane.b32.xlu0 %v10849_v24, %s8052_s22 }
 0x410   : > { %3905 = vrot.lane.b32.xlu1 %v10898_v47, %s8051_s15 }
 0x411   : > { %v4560_v31 = vpop.permute.xlu0 %4559 }
 0x412   : > { %v4437_v51 = vpop.permute.xlu1 %4436  ;;  %4636 = vst.msk [vmem:[#allocation5 + $0xa0] sm:$0xff] %vm4615_vm7, %v4560_v31 }
 0x413   : > { %4510 = vst.msk [vmem:[#allocation5 + $0xb8] sm:$0xff] %vm4486_vm6, %v4437_v51  ;;  %4128 = vrot.lane.b32.xlu0 %v4065_v19, %s8052_s22 }
 0x414   : > { %4126 = vrot.lane.b32.xlu1 %v10857_v49, %s8052_s22  ;;  %v4739_v49 = vrot.slane %v4259_v60, 1 }
 0x415   : > { %v4564_v21 = vpop.permute.xlu0 %4563 }
 0x416   : > { %v4562_v57 = vpop.permute.xlu1 %4561  ;;  %4638 = vst.msk [vmem:[#allocation5 + $0xb0] sm:$0xff] %vm4615_vm7, %v4564_v21  ;;  %v4741_v38 = vsel %vm12135_vm1, %v4739_v49, %v4740_v15 }
 0x417   : > { %4637 = vst.msk [vmem:[#allocation5 + $0xa8] sm:$0xff] %vm4615_vm7, %v4562_v57  ;;  %4446 = vrot.lane.b32.xlu0 %v3711_v20, %s8053_s23 }
 0x418   : > { %4130 = vrot.lane.b32.xlu1 %v4067_v27, %s8052_s22 }
 0x419   : > { %v4785_v52 = vpop.permute.xlu0 %4784 }
 0x41a   : > { %v4566_v36 = vpop.permute.xlu1 %4565  ;;  %4861 = vst.msk [vmem:[#allocation5 + $0xa0] sm:$0xff] %vm4840_vm8, %v4785_v52 }
 0x41b   : > { %4639 = vst.msk [vmem:[#allocation5 + $0xb8] sm:$0xff] %vm4615_vm7, %v4566_v36  ;;  %4450 = vrot.lane.b32.xlu0 %v4387_v56, %s8053_s23 }
 0x41c   : > { %4448 = vrot.lane.b32.xlu1 %v3713_v1, %s8053_s23 }
 0x41d   : > { %v3217_v6 = vpop.permute.xlu0 %3216 }
 0x41e   : > { %v4787_v39 = vpop.permute.xlu1 %4786  ;;  %3289 = vst.msk [vmem:[#allocation5 + $0xc0] sm:$0xff] %vm12133_vm15, %v3217_v6 }
 0x41f   : > { %4862 = vst.msk [vmem:[#allocation5 + $0xa8] sm:$0xff] %vm4840_vm8, %v4787_v39  ;;  %4575 = vrot.lane.b32.xlu0 %v10891_v17, %s8054_s12 }
 0x420   : > { %4452 = vrot.lane.b32.xlu1 %v4389_v44, %s8053_s23 }
 0x421   : > { %v4789_v24 = vpop.permute.xlu0 %4788  ;;  %v4893_v43 = vld [vmem:[#allocation5 + $0xa0] sm:$0xff] }
 0x422   : > { %v3219_v63 = vpop.permute.xlu1 %3218  ;;  %4863 = vst.msk [vmem:[#allocation5 + $0xb0] sm:$0xff] %vm4840_vm8, %v4789_v24 }
 0x423   : > { %3290 = vst.msk [vmem:[#allocation5 + $0xc8] sm:$0xff] %vm12133_vm15, %v3219_v63  ;;  %4579 = vrot.lane.b32.xlu0 %v4259_v60, %s8054_s12 }
 0x424   : > { %4577 = vrot.lane.b32.xlu1 %v10898_v47, %s8054_s12 }
 0x425   : > { %v3221_v7 = vpop.permute.xlu0 %3220 }
 0x426   : > { %v4791_v54 = vpop.permute.xlu1 %4790  ;;  %v4894_v4 = vld [vmem:[#allocation5 + $0xa8] sm:$0xff]  ;;  %3291 = vst.msk [vmem:[#allocation5 + $0xd0] sm:$0xff] %vm12133_vm15, %v3221_v7 }
 0x427   : > { %4864 = vst.msk [vmem:[#allocation5 + $0xb8] sm:$0xff] %vm4840_vm8, %v4791_v54  ;;  %v4915_v40 = vpack.c.bf16 %v4894_v4, %v4893_v43  ;;  %4800 = vrot.lane.b32.xlu0 %v4065_v19, %s8055_s20 }
 0x428   : > { %4581 = vrot.lane.b32.xlu1 %v4260_v8, %s8054_s12 }
 0x429   : > { %7922 = vmatprep.mubr.msk.bf16.mxu1 %vm4964_vm9, %v4915_v40  ;;  %v3442_v22 = vpop.permute.xlu0 %3441  ;;  %v4895_v62 = vld [vmem:[#allocation5 + $0xb0] sm:$0xff] }
 0x42a   : > { %v3223_v32 = vpop.permute.xlu1 %3222  ;;  %3514 = vst.msk [vmem:[#allocation5 + $0xc0] sm:$0xff] %vm12132_vm0, %v3442_v22 }
 0x42b   : > { %3292 = vst.msk [vmem:[#allocation5 + $0xd8] sm:$0xff] %vm12133_vm15, %v3223_v32  ;;  %4804 = vrot.lane.b32.xlu0 %v4741_v38, %s8055_s20 }
 0x42c   : > { %4802 = vrot.lane.b32.xlu1 %v4067_v27, %s8055_s20 }
 0x42d   : > { %v3446_v23 = vpop.permute.xlu0 %3445 }
 0x42e   : > { %v3444_v11 = vpop.permute.xlu1 %3443  ;;  %v4896_v13 = vld [vmem:[#allocation5 + $0xb8] sm:$0xff]  ;;  %3516 = vst.msk [vmem:[#allocation5 + $0xd0] sm:$0xff] %vm12132_vm0, %v3446_v23 }
 0x42f   : > { %3515 = vst.msk [vmem:[#allocation5 + $0xc8] sm:$0xff] %vm12132_vm0, %v3444_v11  ;;  %v4916_v28 = vpack.c.bf16 %v4896_v13, %v4895_v62 }
 0x430   : > { %4806 = vrot.lane.b32.xlu1 %v4743_v59, %s8055_s20 }
 0x431   : > { %v7912_v61 = vpop.f32.mrf.mxu1  ;;  %7923 = vmatmul.mubr.msk.bf16.gmra.mxu1 %vm4964_vm9, %v4916_v28  ;;  %v3763_v30 = vpop.permute.xlu0 %3762 }
 0x432   : > { %v5092_v25 = vadd.f32 %v7912_v61, %v10713_v37  ;;  %v3448_v17 = vpop.permute.xlu1 %3447  ;;  %3835 = vst.msk [vmem:[#allocation5 + $0xc0] sm:$0xff] %vm12131_vm3, %v3763_v30  ;;  %v5337_v61 = vld [vmem:[#allocation6 + $0x30] sm:$0xff] }
 0x433   : > { %3517 = vst.msk [vmem:[#allocation5 + $0xd8] sm:$0xff] %vm12132_vm0, %v3448_v17  ;;  %v5083_v10 = vpop.f32.mrf.mxu1  ;;  %v5331_v17 = vld [vmem:[#allocation6] sm:$0xff] }
 0x434   : > { %v5188_v3 = vmax.f32 %v5092_v25, 0.0  ;;  %v5084_v33 = vadd.f32 %v10713_v37, %v5083_v10  ;;  %v5340_v25 = vld [vmem:[#allocation6 + $0x48] sm:$0xff] }
 0x435   : > { %v7913_v47 = vpop.f32.mrf.mxu1  ;;  %v3767_v20 = vpop.permute.xlu0 %3766 }
 0x436   : > { %5276 = vst.msk [vmem:[#allocation6 + $0x78] sm:$0xff] %vm2806_vm13, %v5188_v3  ;;  %v5186_v9 = vmax.f32 %v5084_v33, 0.0  ;;  %v5095_v18 = vadd.f32 %v7913_v47, %v10713_v37  ;;  %v3765_v55 = vpop.permute.xlu1 %3764  ;;  %v5385_v3 = vadd.f32 %v5340_v25, %v5337_v61  ;;  %v5334_v33 = vld [vmem:[#allocation6 + $0x18] sm:$0xff] }
 0x437   : > { %5309 = vst.msk [vmem:[#allocation6 + $0x78] sm:$0xff] %vm5298_vm11, %v8056_v29  ;;  %v5086_v45 = vpop.f32.mrf.mxu1 }
 0x438   : > { %3836 = vst.msk [vmem:[#allocation5 + $0xc8] sm:$0xff] %vm12131_vm3, %v3765_v55  ;;  %v5189_v50 = vmax.f32 %v5095_v18, 0.0  ;;  %3837 = vst.msk [vmem:[#allocation5 + $0xd0] sm:$0xff] %vm12131_vm3, %v3767_v20  ;;  %v5087_v1 = vadd.f32 %v10713_v37, %v5086_v45  ;;  %v5382_v55 = vadd.f32 %v5334_v33, %v5331_v17  ;;  %v5333_v17 = vld [vmem:[#allocation6 + $0x10] sm:$0x1] }
 0x439   : > { %5274 = vst.msk [vmem:[#allocation6 + $0x60] sm:$0xff] %vm2806_vm13, %v5186_v9  ;;  %v3892_v14 = vpop.permute.xlu0 %3891 }
 0x43a   : > { %5307 = vst.msk [vmem:[#allocation6 + $0x60] sm:$0xff] %vm5298_vm11, %v8056_v29  ;;  %v5187_v46 = vmax.f32 %v5087_v1, 0.0  ;;  %v3769_v2 = vpop.permute.xlu1 %3768  ;;  %v11036_v1 = vadd.f32 %v5382_v55, %v5337_v61 }
 0x43b   : > { %5277 = vst.msk [vmem:[#allocation6 + $0x80] sm:$0xff] %vm2806_vm13, %v5189_v50 }
 0x43c   : > { %5310 = vst.msk [vmem:[#allocation6 + $0x80] sm:$0xff] %vm5298_vm11, %v8056_v29 }
 0x43d   : > { %3838 = vst.msk [vmem:[#allocation5 + $0xd8] sm:$0xff] %vm12131_vm3, %v3769_v2  ;;  %v3896_v53 = vpop.permute.xlu0 %3895 }
 0x43e   : > { %5275 = vst.msk [vmem:[#allocation6 + $0x68] sm:$0xff] %vm2806_vm13, %v5187_v46  ;;  %v3894_v48 = vpop.permute.xlu1 %3893  ;;  %v5346_v46 = vld [vmem:[#allocation6 + $0x78] sm:$0xff] }
 0x43f   : > { %3964 = vst.msk [vmem:[#allocation5 + $0xc0] sm:$0xff] %vm12136_vm4, %v3892_v14  ;;  %3965 = vst.msk [vmem:[#allocation5 + $0xc8] sm:$0xff] %vm12136_vm4, %v3894_v48  ;;  %v11043_v48 = vld [vmem:[#allocation6 + $0x38] sm:$0xff] }
 0x440   : > { %5308 = vst.msk [vmem:[#allocation6 + $0x68] sm:$0xff] %vm5298_vm11, %v8056_v29 }
 0x441   : > { %3966 = vst.msk [vmem:[#allocation5 + $0xd0] sm:$0xff] %vm12136_vm4, %v3896_v53  ;;  %v4117_v51 = vpop.permute.xlu0 %4116  ;;  %v5343_v18 = vld [vmem:[#allocation6 + $0x60] sm:$0xff]  ;;  %v5341_v53 = vld [vmem:[#allocation6 + $0x50] sm:$0xff] }
 0x442   : > { %v3898_v26 = vpop.permute.xlu1 %3897  ;;  %4189 = vst.msk [vmem:[#allocation5 + $0xc0] sm:$0xff] %vm4164_vm5, %v4117_v51  ;;  %v5409_v20 = vadd.f32 %v5385_v3, %v5343_v18  ;;  %v5440_v51 = vrot.slane %v11036_v1, 1 }
 0x443   : > { %3967 = vst.msk [vmem:[#allocation5 + $0xd8] sm:$0xff] %vm12136_vm4, %v3898_v26  ;;  %v5332_v26 = vld [vmem:[#allocation6 + $0x8] sm:$0xff] }
 0x444   : > { %v5441_v14 = vrot.slane %v5409_v20, 1 }
 0x445   : > { %v4121_v31 = vpop.permute.xlu0 %4120 }
 0x446   : > { %v4119_v5 = vpop.permute.xlu1 %4118  ;;  %4191 = vst.msk [vmem:[#allocation5 + $0xd0] sm:$0xff] %vm4164_vm5, %v4121_v31 }
 0x447   : > { %4190 = vst.msk [vmem:[#allocation5 + $0xc8] sm:$0xff] %vm4164_vm5, %v4119_v5  ;;  %v11046_v5 = vadd.f32 %v5346_v46, %v5343_v18  ;;  %v5344_v31 = vld [vmem:[#allocation6 + $0x68] sm:$0xff] }
 0x449   : > { %v4439_v12 = vpop.permute.xlu0 %4438 }
 0x44a   : > { %v4123_v35 = vpop.permute.xlu1 %4122  ;;  %4511 = vst.msk [vmem:[#allocation5 + $0xc0] sm:$0xff] %vm4486_vm6, %v4439_v12 }
 0x44b   : > { %4192 = vst.msk [vmem:[#allocation5 + $0xd8] sm:$0xff] %vm4164_vm5, %v4123_v35  ;;  %v5386_v35 = vadd.f32 %v5341_v53, %v11043_v48 }
 0x44d   : > { %v4443_v19 = vpop.permute.xlu0 %4442 }
 0x44e   : > { %v4441_v60 = vpop.permute.xlu1 %4440  ;;  %4513 = vst.msk [vmem:[#allocation5 + $0xd0] sm:$0xff] %vm4486_vm6, %v4443_v19  ;;  %v5335_v19 = vld [vmem:[#allocation6 + $0x20] sm:$0xff] }
 0x44f   : > { %4512 = vst.msk [vmem:[#allocation5 + $0xc8] sm:$0xff] %vm4486_vm6, %v4441_v60  ;;  %v5457_v60 = vadd.f32 %v5441_v14, %v5409_v20 }
 0x451   : > { %v4568_v16 = vpop.permute.xlu0 %4567 }
 0x452   : > { %v4445_v57 = vpop.permute.xlu1 %4444  ;;  %4640 = vst.msk [vmem:[#allocation5 + $0xc0] sm:$0xff] %vm4615_vm7, %v4568_v16  ;;  %v8057_v16 = vmov 8  }
 0x453   : > { %4514 = vst.msk [vmem:[#allocation5 + $0xd8] sm:$0xff] %vm4486_vm6, %v4445_v57  ;;  %7991 = vset.pattern.permute.xlu1 %v8057_v16  ;;  %7990 = vset.pattern.permute.xlu0 %v8057_v16 }
 0x455   : > { %v4572_v8 = vpop.permute.xlu0 %4571 }
 0x456   : > { %v4570_v41 = vpop.permute.xlu1 %4569  ;;  %4642 = vst.msk [vmem:[#allocation5 + $0xd0] sm:$0xff] %vm4615_vm7, %v4572_v8  ;;  %v5383_v8 = vadd.f32 %v5335_v19, %v5332_v26  ;;  %v5348_v19 = vld [vmem:[#allocation6 + $0x88] sm:$0x1] }
 0x457   : > { %4641 = vst.msk [vmem:[#allocation5 + $0xc8] sm:$0xff] %vm4615_vm7, %v4570_v41  ;;  %v5465_v41 = vrot.slane %v5409_v20, 2 }
 0x459   : > { %v4793_v27 = vpop.permute.xlu0 %4792 }
 0x45a   : > { %v4574_v21 = vpop.permute.xlu1 %4573  ;;  %4865 = vst.msk [vmem:[#allocation5 + $0xc0] sm:$0xff] %vm4840_vm8, %v4793_v27  ;;  %v5464_v27 = vrot.slane %v11036_v1, 2 }
 0x45b   : > { %4643 = vst.msk [vmem:[#allocation5 + $0xd8] sm:$0xff] %vm4615_vm7, %v4574_v21  ;;  %v11089_v21 = vadd.f32 %v5440_v51, %v11036_v1 }
 0x45d   : > { %v3225_v36 = vpop.permute.xlu0 %3224 }
 0x45e   : > { %v4795_v42 = vpop.permute.xlu1 %4794  ;;  %3293 = vst.msk [vmem:[#allocation5 + $0xe0] sm:$0xff] %vm12133_vm15, %v3225_v36  ;;  %v5410_v36 = vadd.f32 %v5386_v35, %v5344_v31 }
 0x45f   : > { %4866 = vst.msk [vmem:[#allocation5 + $0xc8] sm:$0xff] %vm4840_vm8, %v4795_v42 }
 0x461   : > { %v4797_v52 = vpop.permute.xlu0 %4796  ;;  %v4897_v39 = vld [vmem:[#allocation5 + $0xc0] sm:$0xff] }
 0x462   : > { %v3227_v56 = vpop.permute.xlu1 %3226  ;;  %4867 = vst.msk [vmem:[#allocation5 + $0xd0] sm:$0xff] %vm4840_vm8, %v4797_v52  ;;  %v5481_v52 = vadd.f32 %v5465_v41, %v5457_v60 }
 0x463   : > { %3294 = vst.msk [vmem:[#allocation5 + $0xe8] sm:$0xff] %vm12133_vm15, %v3227_v56 }
 0x465   : > { %v3229_v63 = vpop.permute.xlu0 %3228 }
 0x466   : > { %v4799_v44 = vpop.permute.xlu1 %4798  ;;  %v4898_v6 = vld [vmem:[#allocation5 + $0xc8] sm:$0xff]  ;;  %3295 = vst.msk [vmem:[#allocation5 + $0xf0] sm:$0xff] %vm12133_vm15, %v3229_v63 }
 0x467   : > { %4868 = vst.msk [vmem:[#allocation5 + $0xd8] sm:$0xff] %vm4840_vm8, %v4799_v44  ;;  %v4917_v24 = vpack.c.bf16 %v4898_v6, %v4897_v39  ;;  %v5650_v6 = vrot.slane %v5410_v36, 2 }
 0x469   : > { %7926 = vmatprep.mubr.msk.bf16.mxu1 %vm4964_vm9, %v4917_v24  ;;  %v3450_v43 = vpop.permute.xlu0 %3449  ;;  %v4899_v58 = vld [vmem:[#allocation5 + $0xd0] sm:$0xff]  ;;  %v5725_v24 = vrot.slane %v5410_v36, 1 }
 0x46a   : > { %v3231_v54 = vpop.permute.xlu1 %3230  ;;  %3518 = vst.msk [vmem:[#allocation5 + $0xe0] sm:$0xff] %vm12132_vm0, %v3450_v43 }
 0x46b   : > { %3296 = vst.msk [vmem:[#allocation5 + $0xf8] sm:$0xff] %vm12133_vm15, %v3231_v54  ;;  %v5347_v54 = vld [vmem:[#allocation6 + $0x80] sm:$0xff] }
 0x46d   : > { %v3454_v49 = vpop.permute.xlu0 %3453 }
 0x46e   : > { %v3452_v4 = vpop.permute.xlu1 %3451  ;;  %v4900_v15 = vld [vmem:[#allocation5 + $0xd8] sm:$0xff]  ;;  %3520 = vst.msk [vmem:[#allocation5 + $0xf0] sm:$0xff] %vm12132_vm0, %v3454_v49 }
 0x46f   : > { %3519 = vst.msk [vmem:[#allocation5 + $0xe8] sm:$0xff] %vm12132_vm0, %v3452_v4  ;;  %v4918_v7 = vpack.c.bf16 %v4900_v15, %v4899_v58 }
 0x471   : > { %v7916_v40 = vpop.f32.mrf.mxu1  ;;  %7927 = vmatmul.mubr.msk.bf16.gmra.mxu1 %vm4964_vm9, %v4918_v7  ;;  %v3771_v38 = vpop.permute.xlu0 %3770 }
 0x472   : > { %v5108_v34 = vadd.f32 %v7916_v40, %v10713_v37  ;;  %v3456_v32 = vpop.permute.xlu1 %3455  ;;  %3839 = vst.msk [vmem:[#allocation5 + $0xe0] sm:$0xff] %vm12131_vm3, %v3771_v38  ;;  %v5666_v40 = vadd.f32 %v5650_v6, %v5457_v60  ;;  %v5342_v38 = vld [vmem:[#allocation6 + $0x58] sm:$0x1] }
 0x473   : > { %3521 = vst.msk [vmem:[#allocation5 + $0xf8] sm:$0xff] %vm12132_vm0, %v3456_v32  ;;  %v5099_v22 = vpop.f32.mrf.mxu1  ;;  %v5339_v32 = vld [vmem:[#allocation6 + $0x40] sm:$0x1] }
 0x474   : > { %v5192_v59 = vmax.f32 %v5108_v34, 0.0  ;;  %v5100_v11 = vadd.f32 %v10713_v37, %v5099_v22  ;;  %v5741_v34 = vadd.f32 %v5725_v24, %v5410_v36  ;;  %v5345_v22 = vld [vmem:[#allocation6 + $0x70] sm:$0x1] }
 0x475   : > { %v7917_v62 = vpop.f32.mrf.mxu1  ;;  %v3775_v30 = vpop.permute.xlu0 %3774 }
 0x476   : > { %5280 = vst.msk [vmem:[#allocation6 + $0xa8] sm:$0xff] %vm2806_vm13, %v5192_v59  ;;  %v5190_v13 = vmax.f32 %v5100_v11, 0.0  ;;  %v5111_v23 = vadd.f32 %v7917_v62, %v10713_v37  ;;  %v3773_v28 = vpop.permute.xlu1 %3772  ;;  %v11121_v59 = vadd.f32 %v5383_v8, %v11043_v48  ;;  %v5480_v11 = vadd.f32 %v5464_v27, %v11089_v21 }
 0x477   : > { %5313 = vst.msk [vmem:[#allocation6 + $0xa8] sm:$0xff] %vm5298_vm11, %v8056_v29  ;;  %v5102_v10 = vpop.f32.mrf.mxu1  ;;  %v5389_v62 = vadd.f32 %v5347_v54, %v5344_v31  ;;  %v5749_v33 = vadd.f32 %v5741_v34, %v5650_v6 }
 0x478   : > { %3840 = vst.msk [vmem:[#allocation5 + $0xe8] sm:$0xff] %vm12131_vm3, %v3773_v28  ;;  %v5193_v47 = vmax.f32 %v5111_v23, 0.0  ;;  %3841 = vst.msk [vmem:[#allocation5 + $0xf0] sm:$0xff] %vm12131_vm3, %v3775_v30  ;;  %v5103_v9 = vadd.f32 %v10713_v37, %v5102_v10  ;;  %v5430_v37 = vlaneseq  ;;  %v5387_v23 = vadd.f32 %v5342_v38, %v5339_v32 }
 0x479   : > { %5278 = vst.msk [vmem:[#allocation6 + $0x90] sm:$0xff] %vm2806_vm13, %v5190_v13  ;;  %v3900_v2 = vpop.permute.xlu0 %3899  ;;  %v5724_v6 = vrot.slane %v11121_v59, 1 }
 0x47a   : > { %5311 = vst.msk [vmem:[#allocation6 + $0x90] sm:$0xff] %vm5298_vm11, %v8056_v29  ;;  %v5191_v45 = vmax.f32 %v5103_v9, 0.0  ;;  %v3777_v50 = vpop.permute.xlu1 %3776  ;;  %v11058_v12 = vshrl.u32 %v5430_v37, 7  ;;  %v5411_v18 = vadd.f32 %v5387_v23, %v5345_v22 }
 0x47b   : > { %5281 = vst.msk [vmem:[#allocation6 + $0xb0] sm:$0xff] %vm2806_vm13, %v5193_v47  ;;  %v5336_v47 = vld [vmem:[#allocation6 + $0x28] sm:$0x1] }
 0x47c   : > { %5314 = vst.msk [vmem:[#allocation6 + $0xb0] sm:$0xff] %vm5298_vm11, %v8056_v29  ;;  %vm5488_vm10 = vcmp.eq.s32.totalorder %v11058_v12, 0  ;;  %v11095_v56 = vsub.s32 0, %v11058_v12  ;;  %vm5539_vm12 = vcmp.eq.s32.totalorder %v11058_v12, 1  ;;  %v11100_v44 = vsub.s32 2, %v11058_v12 }
 0x47d   : > { %3842 = vst.msk [vmem:[#allocation5 + $0xf8] sm:$0xff] %vm12131_vm3, %v3777_v50  ;;  %v3904_v42 = vpop.permute.xlu0 %3903  ;;  %vm5590_vm3 = vcmp.eq.s32.totalorder %v11058_v12, 2  ;;  %v11104_v39 = vsub.s32 4, %v11058_v12  ;;  %vm5673_vm0 = vcmp.eq.s32.totalorder %v11058_v12, 3  ;;  %v11108_v63 = vsub.s32 6, %v11058_v12 }
 0x47e   : > { %5279 = vst.msk [vmem:[#allocation6 + $0x98] sm:$0xff] %vm2806_vm13, %v5191_v45  ;;  %v3902_v57 = vpop.permute.xlu1 %3901  ;;  %v5498_v58 = vrot.slane %v5481_v52, %v11095_v56  ;;  %v5549_v15 = vrot.slane %v5481_v52, %v11100_v44  ;;  %vm5756_vm15 = vcmp.eq.s32.totalorder %v11058_v12, 4  ;;  %vm5807_vm14 = vcmp.eq.s32.totalorder %v11058_v12, 5 }
 0x47f   : > { %3968 = vst.msk [vmem:[#allocation5 + $0xe0] sm:$0xff] %vm12136_vm4, %v3900_v2  ;;  %3969 = vst.msk [vmem:[#allocation5 + $0xe8] sm:$0xff] %vm12136_vm4, %v3902_v57  ;;  %v5600_v49 = vrot.slane %v5481_v52, %v11104_v39  ;;  %vm5858_vm1 = vcmp.eq.s32.totalorder %v11058_v12, 6  ;;  %v5683_v3 = vrot.slane %v5666_v40, %v11108_v63  ;;  %v5384_v55 = vadd.f32 %v5336_v47, %v5333_v17 }
 0x480   : > { %5312 = vst.msk [vmem:[#allocation6 + $0x98] sm:$0xff] %vm5298_vm11, %v8056_v29  ;;  %v5524_v28 = vsel %vm5488_vm10, %v5498_v58, 0.0  ;;  %v5575_v61 = vsel %vm5539_vm12, %v5549_v15, 0.0  ;;  %v5494_v20 = vrot.slane %v5480_v11, %v11095_v56  ;;  %v5545_v45 = vrot.slane %v5480_v11, %v11100_v44 }
 0x481   : > { %3970 = vst.msk [vmem:[#allocation5 + $0xf0] sm:$0xff] %vm12136_vm4, %v3904_v42  ;;  %v11110_v43 = vld [vmem:[#allocation6 + $0x90] sm:$0xff]  ;;  %v4125_v7 = vpop.permute.xlu0 %4124  ;;  %v5626_v25 = vsel %vm5590_vm3, %v5600_v49, 0.0  ;;  %v5583_v10 = vadd.f32 %v5575_v61, %v5524_v28  ;;  %v5709_v1 = vsel %vm5673_vm0, %v5683_v3, 0.0  ;;  %v5766_v46 = vrot.slane %v5749_v33, %v11095_v56 }
 0x482   : > { %v3906_v4 = vpop.permute.xlu1 %3905  ;;  %4193 = vst.msk [vmem:[#allocation5 + $0xe0] sm:$0xff] %vm4164_vm5, %v4125_v7  ;;  %v11126_v13 = vadd.f32 %v11046_v5, %v11110_v43  ;;  %v5817_v2 = vrot.slane %v5749_v33, %v11100_v44  ;;  %v5868_v14 = vrot.slane %v5749_v33, %v11104_v39  ;;  %v5918_v48 = vrot.slane %v5411_v18, 2 }
 0x483   : > { %3971 = vst.msk [vmem:[#allocation5 + $0xf8] sm:$0xff] %vm12136_vm4, %v3906_v4  ;;  %vm5941_vm4 = vcmp.eq.s32.totalorder %v11058_v12, 7  ;;  %v5634_v50 = vadd.f32 %v5626_v25, %v5583_v10  ;;  %v5408_v53 = vadd.f32 %v5384_v55, %v5339_v32  ;;  %v5523_v26 = vsel %vm5488_vm10, %v5494_v20, 0.0  ;;  %v11168_v32 = vld [vmem:[#allocation6 + $0xa0] sm:$0x1] }
 0x484   : > { %v5792_v31 = vsel %vm5756_vm15, %v5766_v46, 0.0  ;;  %v5843_v35 = vsel %vm5807_vm14, %v5817_v2, 0.0  ;;  %v5574_v60 = vsel %vm5539_vm12, %v5545_v45, 0.0  ;;  %v5894_v41 = vsel %vm5858_vm1, %v5868_v14, 0.0 }
 0x485   : > { %v4129_v9 = vpop.permute.xlu0 %4128  ;;  %v5717_v5 = vadd.f32 %v5709_v1, %v5634_v50  ;;  %v5934_v8 = vadd.f32 %v5918_v48, %v5741_v34  ;;  %v5582_v27 = vadd.f32 %v5574_v60, %v5523_v26  ;;  %v5596_v42 = vrot.slane %v5480_v11, %v11104_v39 }
 0x486   : > { %v4127_v30 = vpop.permute.xlu1 %4126  ;;  %4195 = vst.msk [vmem:[#allocation5 + $0xf0] sm:$0xff] %vm4164_vm5, %v4129_v9  ;;  %v5649_v52 = vrot.slane %v11121_v59, 2  ;;  %v5917_v24 = vrot.slane %v5408_v53, 2  ;;  %v5390_v58 = vadd.f32 %v5348_v19, %v5345_v22  ;;  %v5740_v34 = vadd.f32 %v5724_v6, %v11121_v59 }
 0x487   : > { %4194 = vst.msk [vmem:[#allocation5 + $0xe8] sm:$0xff] %vm4164_vm5, %v4127_v30  ;;  %v11153_v57 = vld [vmem:[#allocation6 + $0x98] sm:$0xff]  ;;  %v5800_v36 = vadd.f32 %v5792_v31, %v5717_v5  ;;  %v5951_v54 = vrot.slane %v5934_v8, %v11108_v63  ;;  %v5625_v4 = vsel %vm5590_vm3, %v5596_v42, 0.0  ;;  %v5442_v28 = vrot.slane %v11126_v13, 1 }
 0x488   : > { %v5413_v15 = vadd.f32 %v5389_v62, %v11153_v57  ;;  %v5665_v40 = vadd.f32 %v5649_v52, %v11089_v21  ;;  %v5633_v23 = vadd.f32 %v5625_v4, %v5582_v27  ;;  %v5466_v22 = vrot.slane %v11126_v13, 2 }
 0x489   : > { %v4447_v16 = vpop.permute.xlu0 %4446  ;;  %v5851_v7 = vadd.f32 %v5843_v35, %v5800_v36  ;;  %v5977_v11 = vsel %vm5941_vm4, %v5951_v54, 0.0  ;;  %v5748_v61 = vadd.f32 %v5740_v34, %v5649_v52  ;;  %v5933_v59 = vadd.f32 %v5917_v24, %v5740_v34 }
 0x48a   : > { %v4131_v51 = vpop.permute.xlu1 %4130  ;;  %4515 = vst.msk [vmem:[#allocation5 + $0xe0] sm:$0xff] %vm4486_vm6, %v4447_v16  ;;  %v5679_v21 = vrot.slane %v5665_v40, %v11108_v63  ;;  %v5414_v25 = vadd.f32 %v5390_v58, %v11168_v32  ;;  %v5458_v17 = vadd.f32 %v5442_v28, %v11126_v13  ;;  %v5651_v30 = vrot.slane %v5413_v15, 2 }
 0x48b   : > { %4196 = vst.msk [vmem:[#allocation5 + $0xf8] sm:$0xff] %vm4164_vm5, %v4131_v51  ;;  %v5902_v62 = vadd.f32 %v5894_v41, %v5851_v7  ;;  %v5726_v10 = vrot.slane %v5413_v15, 1  ;;  %v5762_v9 = vrot.slane %v5748_v61, %v11095_v56  ;;  %v5813_v18 = vrot.slane %v5748_v61, %v11100_v44 }
 0x48c   : > { %v5708_v47 = vsel %vm5673_vm0, %v5679_v21, 0.0  ;;  %v5864_v45 = vrot.slane %v5748_v61, %v11104_v39  ;;  %v5947_v13 = vrot.slane %v5933_v59, %v11108_v63  ;;  %v5482_v50 = vadd.f32 %v5466_v22, %v5458_v17 }
 0x48d   : > { %v4451_v38 = vpop.permute.xlu0 %4450  ;;  %v11179_v33 = vadd.f32 %v5977_v11, %v5902_v62  ;;  %v5716_v20 = vadd.f32 %v5708_v47, %v5633_v23  ;;  %v5791_v1 = vsel %vm5756_vm15, %v5762_v9, 0.0  ;;  %v5842_v46 = vsel %vm5807_vm14, %v5813_v18, 0.0 }
 0x48e   : > { %v4449_v49 = vpop.permute.xlu1 %4448  ;;  %4517 = vst.msk [vmem:[#allocation5 + $0xf0] sm:$0xff] %vm4486_vm6, %v4451_v38  ;;  %v5667_v2 = vadd.f32 %v5651_v30, %v5458_v17  ;;  %v5742_v14 = vadd.f32 %v5726_v10, %v5413_v15  ;;  %v5893_v53 = vsel %vm5858_vm1, %v5864_v45, 0.0  ;;  %v5502_v26 = vrot.slane %v5482_v50, %v11095_v56 }
 0x48f   : > { %4516 = vst.msk [vmem:[#allocation5 + $0xe8] sm:$0xff] %vm4486_vm6, %v4449_v49  ;;  %5999 = vperm.xlu1 %7991, %v11179_v33   ;;  %v5799_v48 = vadd.f32 %v5791_v1, %v5716_v20  ;;  %v5919_v51 = vrot.slane %v5414_v25, 2  ;;  %v5553_v31 = vrot.slane %v5482_v50, %v11100_v44  ;;  %v5604_v35 = vrot.slane %v5482_v50, %v11104_v39 }
 0x490   : > { %v5687_v60 = vrot.slane %v5667_v2, %v11108_v63  ;;  %v5750_v19 = vadd.f32 %v5742_v14, %v5651_v30  ;;  %v5525_v8 = vsel %vm5488_vm10, %v5502_v26, 0.0  ;;  %v5976_v27 = vsel %vm5941_vm4, %v5947_v13, 0.0  ;;  %v11240_v13 = vld [vmem:[%s12123_s4] ss:$0 sm:$0xff] }
 0x491   : > { %v4576_v55 = vpop.permute.xlu0 %4575  ;;  %v5850_v41 = vadd.f32 %v5842_v46, %v5799_v48  ;;  %v5576_v42 = vsel %vm5539_vm12, %v5553_v31, 0.0  ;;  %v5627_v36 = vsel %vm5590_vm3, %v5604_v35, 0.0  ;;  %v5935_v15 = vadd.f32 %v5919_v51, %v5742_v14  ;;  %v5352_v35 = vld [vmem:[#allocation6 + $0xa8] sm:$0xff] }
 0x492   : > { %v4453_v3 = vpop.permute.xlu1 %4452  ;;  %4644 = vst.msk [vmem:[#allocation5 + $0xe0] sm:$0xff] %vm4615_vm7, %v4576_v55  ;;  %v5770_v52 = vrot.slane %v5750_v19, %v11095_v56  ;;  %v5584_v24 = vadd.f32 %v5576_v42, %v5525_v8  ;;  %v5710_v4 = vsel %vm5673_vm0, %v5687_v60, 0.0  ;;  %v5821_v58 = vrot.slane %v5750_v19, %v11100_v44  ;;  %v5354_v60 = vld [vmem:[#allocation6 + $0xb8] sm:$0x1] }
 0x493   : > { %4518 = vst.msk [vmem:[#allocation5 + $0xf8] sm:$0xff] %vm4486_vm6, %v4453_v3  ;;  %v5901_v6 = vadd.f32 %v5893_v53, %v5850_v41  ;;  %v5872_v38 = vrot.slane %v5750_v19, %v11104_v39  ;;  %v5955_v22 = vrot.slane %v5935_v15, %v11108_v63  ;;  %v5391_v19 = vadd.f32 %v5352_v35, %v11110_v43 }
 0x494   : > { %v5635_v40 = vadd.f32 %v5627_v36, %v5584_v24  ;;  %v5793_v34 = vsel %vm5756_vm15, %v5770_v52, 0.0  ;;  %v5844_v28 = vsel %vm5807_vm14, %v5821_v58, 0.0  ;;  %v5393_v8 = vadd.f32 %v5354_v60, %v11168_v32 }
 0x495   : > { %v4580_v16 = vpop.permute.xlu0 %4579  ;;  %v11215_v7 = vadd.f32 %v5976_v27, %v5901_v6  ;;  %v5895_v61 = vsel %vm5858_vm1, %v5872_v38, 0.0  ;;  %v5978_v17 = vsel %vm5941_vm4, %v5955_v22, 0.0  ;;  %v11262_v27 = vld [vmem:[#allocation6 + $0xd0] sm:$0x1] }
 0x496   : > { %v4578_v5 = vpop.permute.xlu1 %4577  ;;  %4646 = vst.msk [vmem:[#allocation5 + $0xf0] sm:$0xff] %vm4615_vm7, %v4580_v16  ;;  %v5718_v11 = vadd.f32 %v5710_v4, %v5635_v40  ;;  %v5353_v16 = vld [vmem:[#allocation6 + $0xb0] sm:$0xff] }
 0x497   : > { %4645 = vst.msk [vmem:[#allocation5 + $0xe8] sm:$0xff] %vm4615_vm7, %v4578_v5  ;;  %5994 = vperm.xlu0 %7990, %v11215_v7   ;;  %v5392_v42 = vadd.f32 %v5353_v16, %v11153_v57 }
 0x498   : > { %v5801_v21 = vadd.f32 %v5793_v34, %v5718_v11 }
 0x499   : > { %v4801_v49 = vpop.permute.xlu0 %4800 }
 0x49a   : > { %v4582_v54 = vpop.permute.xlu1 %4581  ;;  %4869 = vst.msk [vmem:[#allocation5 + $0xe0] sm:$0xff] %vm4840_vm8, %v4801_v49  ;;  %v5852_v59 = vadd.f32 %v5844_v28, %v5801_v21 }
 0x49b   : > { %4647 = vst.msk [vmem:[#allocation5 + $0xf8] sm:$0xff] %vm4615_vm7, %v4582_v54  ;;  %v5417_v54 = vadd.f32 %v5393_v8, %v11262_v27 }
 0x49c   : > { %v5903_v30 = vadd.f32 %v5895_v61, %v5852_v59 }
 0x49d   : > { %v4805_v62 = vpop.permute.xlu0 %4804  ;;  %v5920_v40 = vrot.slane %v5417_v54, 2 }
 0x49e   : > { %v4803_v23 = vpop.permute.xlu1 %4802  ;;  %4871 = vst.msk [vmem:[#allocation5 + $0xf0] sm:$0xff] %vm4840_vm8, %v4805_v62  ;;  %v11232_v10 = vadd.f32 %v5978_v17, %v5903_v30 }
 0x49f   : > { %4870 = vst.msk [vmem:[#allocation5 + $0xe8] sm:$0xff] %vm4840_vm8, %v4803_v23 }
 0x4a0   : > { %6004 = vperm.xlu1 %7991, %v11232_v10  }
 0x4a1   : > { %v4901_v3 = vld [vmem:[#allocation5 + $0xe0] sm:$0xff] }
 0x4a2   : > { %v4807_v25 = vpop.permute.xlu1 %4806 }
 0x4a3   : > { %4872 = vst.msk [vmem:[#allocation5 + $0xf8] sm:$0xff] %vm4840_vm8, %v4807_v25 }
 0x4a5   : > { %v4903_v18 = vld [vmem:[#allocation5 + $0xf0] sm:$0xff] }
 0x4a6   : > { %v4902_v47 = vld [vmem:[#allocation5 + $0xe8] sm:$0xff] }
 0x4a7   : > { %v4919_v9 = vpack.c.bf16 %v4902_v47, %v4901_v3 }
 0x4a9   : > { %7930 = vmatprep.mubr.msk.bf16.mxu1 %vm4964_vm9, %v4919_v9 }
 0x4aa   : > { %v4904_v55 = vld [vmem:[#allocation5 + $0xf8] sm:$0xff] }
 0x4ab   : > { %v4920_v20 = vpack.c.bf16 %v4904_v55, %v4903_v18 }
 0x4ad   : > { %7931 = vmatmul.mubr.msk.bf16.gmra.mxu1 %vm4964_vm9, %v4920_v20 }
 0x4b1   : > { %v7920_v45 = vpop.f32.mrf.mxu1 }
 0x4b2   : > { %v5124_v50 = vadd.f32 %v11240_v13, %v7920_v45 }
 0x4b3   : > { %v5115_v1 = vpop.f32.mrf.mxu1 }
 0x4b4   : > { %v5196_v46 = vmax.f32 %v5124_v50, 0.0  ;;  %v5116_v2 = vadd.f32 %v11240_v13, %v5115_v1 }
 0x4b5   : > { %v7921_v14 = vpop.f32.mrf.mxu1 }
 0x4b6   : > { %5284 = vst.msk [vmem:[#allocation6 + $0xd8] sm:$0xff] %vm2806_vm13, %v5196_v46  ;;  %v5194_v48 = vmax.f32 %v5116_v2, 0.0  ;;  %v5127_v53 = vadd.f32 %v11240_v13, %v7921_v14 }
 0x4b7   : > { %5317 = vst.msk [vmem:[#allocation6 + $0xd8] sm:$0xff] %vm5298_vm11, %v8056_v29  ;;  %v5118_v26 = vpop.f32.mrf.mxu1 }
 0x4b8   : > { %5282 = vst.msk [vmem:[#allocation6 + $0xc0] sm:$0xff] %vm2806_vm13, %v5194_v48  ;;  %v5197_v51 = vmax.f32 %v5127_v53, 0.0  ;;  %v5119_v5 = vadd.f32 %v11240_v13, %v5118_v26 }
 0x4b9   : > { %5315 = vst.msk [vmem:[#allocation6 + $0xc0] sm:$0xff] %vm5298_vm11, %v8056_v29 }
 0x4ba   : > { %5285 = vst.msk [vmem:[#allocation6 + $0xe0] sm:$0xff] %vm2806_vm13, %v5197_v51  ;;  %v5195_v31 = vmax.f32 %v5119_v5, 0.0 }
 0x4bb   : > { %5318 = vst.msk [vmem:[#allocation6 + $0xe0] sm:$0xff] %vm5298_vm11, %v8056_v29 }
 0x4bc   : > { %5283 = vst.msk [vmem:[#allocation6 + $0xc8] sm:$0xff] %vm2806_vm13, %v5195_v31 }
 0x4bd   : > { %5316 = vst.msk [vmem:[#allocation6 + $0xc8] sm:$0xff] %vm5298_vm11, %v8056_v29 }
 0x4c0   : > { %v11259_v41 = vld [vmem:[#allocation6 + $0xc0] sm:$0xff] }
 0x4c1   : > { %v5415_v36 = vadd.f32 %v5391_v19, %v11259_v41 }
 0x4c2   : > { %v5359_v54 = vld [vmem:[#allocation6 + $0xe0] sm:$0xff] }
 0x4c3   : > { %v5443_v52 = vrot.slane %v5415_v36, 1  ;;  %v5467_v6 = vrot.slane %v5415_v36, 2 }
 0x4c4   : > { %v11266_v24 = vld [vmem:[#allocation6 + $0xc8] sm:$0xff] }
 0x4c5   : > { %v5416_v4 = vadd.f32 %v5392_v42, %v11266_v24  ;;  %v5459_v43 = vadd.f32 %v5443_v52, %v5415_v36  ;;  %v5358_v36 = vld [vmem:[#allocation6 + $0xd8] sm:$0xff]  ;;  %v5360_v52 = vld [vmem:[#allocation6 + $0xe8] sm:$0x1] }
 0x4c7   : > { %v5483_v58 = vadd.f32 %v5467_v6, %v5459_v43  ;;  %v5652_v15 = vrot.slane %v5416_v4, 2  ;;  %v5727_v49 = vrot.slane %v5416_v4, 1  ;;  %v5394_v6 = vadd.f32 %v5358_v36, %v11259_v41 }
 0x4c9   : > { %v5506_v32 = vrot.slane %v5483_v58, %v11095_v56  ;;  %v5557_v34 = vrot.slane %v5483_v58, %v11100_v44  ;;  %v5608_v57 = vrot.slane %v5483_v58, %v11104_v39  ;;  %v5668_v38 = vadd.f32 %v5652_v15, %v5459_v43  ;;  %v11317_v58 = vld [vmem:[#allocation6 + $0x100] sm:$0x1] }
 0x4ca   : > { %v5743_v11 = vadd.f32 %v5727_v49, %v5416_v4  ;;  %v5396_v43 = vadd.f32 %v5360_v52, %v11262_v27 }
 0x4cb   : > { %v5526_v23 = vsel %vm5488_vm10, %v5506_v32, 0.0  ;;  %v5577_v28 = vsel %vm5539_vm12, %v5557_v34, 0.0  ;;  %v5628_v22 = vsel %vm5590_vm3, %v5608_v57, 0.0  ;;  %v5691_v62 = vrot.slane %v5668_v38, %v11108_v63 }
 0x4cc   : > { %v5585_v21 = vadd.f32 %v5577_v28, %v5526_v23  ;;  %v5751_v61 = vadd.f32 %v5743_v11, %v5652_v15  ;;  %v5936_v25 = vadd.f32 %v5920_v40, %v5743_v11  ;;  %v5395_v15 = vadd.f32 %v5359_v54, %v11266_v24 }
 0x4cd   : > { %v5711_v59 = vsel %vm5673_vm0, %v5691_v62, 0.0  ;;  %v5420_v57 = vadd.f32 %v5396_v43, %v11317_v58  ;;  %v6263_v43 = vld [vmem:[#allocation7 + $0x18] sm:$0xff] }
 0x4ce   : > { %v5636_v17 = vadd.f32 %v5628_v22, %v5585_v21  ;;  %v5774_v30 = vrot.slane %v5751_v61, %v11095_v56  ;;  %v5825_v3 = vrot.slane %v5751_v61, %v11100_v44  ;;  %v5876_v47 = vrot.slane %v5751_v61, %v11104_v39 }
 0x4cf   : > { %v5959_v20 = vrot.slane %v5936_v25, %v11108_v63  ;;  %v5921_v22 = vrot.slane %v5420_v57, 2 }
 0x4d0   : > { %v5719_v9 = vadd.f32 %v5711_v59, %v5636_v17  ;;  %v5794_v18 = vsel %vm5756_vm15, %v5774_v30, 0.0  ;;  %v5845_v55 = vsel %vm5807_vm14, %v5825_v3, 0.0  ;;  %v5896_v50 = vsel %vm5858_vm1, %v5876_v47, 0.0 }
 0x4d1   : > { %v5979_v46 = vsel %vm5941_vm4, %v5959_v20, 0.0 }
 0x4d2   : > { %v5802_v45 = vadd.f32 %v5794_v18, %v5719_v9 }
 0x4d4   : > { %v5853_v1 = vadd.f32 %v5845_v55, %v5802_v45 }
 0x4d6   : > { %v5904_v2 = vadd.f32 %v5896_v50, %v5853_v1 }
 0x4d8   : > { %v11294_v14 = vadd.f32 %v5979_v46, %v5904_v2 }
 0x4da   : > { %6009 = vperm.xlu0 %7990, %v11294_v14  }
 0x4f1   : > { %v7924_v48 = vpop.f32.mrf.mxu1 }
 0x4f2   : > { %v5140_v53 = vadd.f32 %v11240_v13, %v7924_v48 }
 0x4f3   : > { %v5131_v26 = vpop.f32.mrf.mxu1 }
 0x4f4   : > { %v5200_v51 = vmax.f32 %v5140_v53, 0.0  ;;  %v5132_v5 = vadd.f32 %v11240_v13, %v5131_v26 }
 0x4f5   : > { %v7925_v31 = vpop.f32.mrf.mxu1 }
 0x4f6   : > { %5288 = vst.msk [vmem:[#allocation6 + $0x108] sm:$0xff] %vm2806_vm13, %v5200_v51  ;;  %v5198_v35 = vmax.f32 %v5132_v5, 0.0  ;;  %v5143_v60 = vadd.f32 %v11240_v13, %v7925_v31 }
 0x4f7   : > { %5321 = vst.msk [vmem:[#allocation6 + $0x108] sm:$0xff] %vm5298_vm11, %v8056_v29  ;;  %v5134_v19 = vpop.f32.mrf.mxu1 }
 0x4f8   : > { %5286 = vst.msk [vmem:[#allocation6 + $0xf0] sm:$0xff] %vm2806_vm13, %v5198_v35  ;;  %v5201_v16 = vmax.f32 %v5143_v60, 0.0  ;;  %v5135_v8 = vadd.f32 %v11240_v13, %v5134_v19 }
 0x4f9   : > { %5319 = vst.msk [vmem:[#allocation6 + $0xf0] sm:$0xff] %vm5298_vm11, %v8056_v29 }
 0x4fa   : > { %5289 = vst.msk [vmem:[#allocation6 + $0x110] sm:$0xff] %vm2806_vm13, %v5201_v16  ;;  %v5199_v42 = vmax.f32 %v5135_v8, 0.0 }
 0x4fb   : > { %5322 = vst.msk [vmem:[#allocation6 + $0x110] sm:$0xff] %vm5298_vm11, %v8056_v29 }
 0x4fc   : > { %5287 = vst.msk [vmem:[#allocation6 + $0xf8] sm:$0xff] %vm2806_vm13, %v5199_v42 }
 0x4fd   : > { %5320 = vst.msk [vmem:[#allocation6 + $0xf8] sm:$0xff] %vm5298_vm11, %v8056_v29 }
 0x500   : > { %v11314_v4 = vld [vmem:[#allocation6 + $0xf0] sm:$0xff] }
 0x501   : > { %v5418_v49 = vadd.f32 %v5394_v6, %v11314_v4 }
 0x503   : > { %v5444_v40 = vrot.slane %v5418_v49, 1  ;;  %v5468_v32 = vrot.slane %v5418_v49, 2 }
 0x504   : > { %v11321_v34 = vld [vmem:[#allocation6 + $0xf8] sm:$0xff] }
 0x505   : > { %v5419_v38 = vadd.f32 %v5395_v15, %v11321_v34  ;;  %v5460_v41 = vadd.f32 %v5444_v40, %v5418_v49  ;;  %v6266_v15 = vld [vmem:[#allocation7 + $0x30] sm:$0xff]  ;;  %v6303_v40 = vrot.slane %v6263_v43, 7 }
 0x506   : > { %v6306_v49 = vrot.slane %v6266_v15, 7 }
 0x507   : > { %v5484_v11 = vadd.f32 %v5468_v32, %v5460_v41  ;;  %v5653_v23 = vrot.slane %v5419_v38, 2  ;;  %v5728_v28 = vrot.slane %v5419_v38, 1 }
 0x509   : > { %v5510_v27 = vrot.slane %v5484_v11, %v11095_v56  ;;  %v5561_v62 = vrot.slane %v5484_v11, %v11100_v44  ;;  %v5612_v24 = vrot.slane %v5484_v11, %v11104_v39  ;;  %v5669_v21 = vadd.f32 %v5653_v23, %v5460_v41 }
 0x50a   : > { %v5744_v61 = vadd.f32 %v5728_v28, %v5419_v38  ;;  %v6000_v2 = vpop.permute.xlu1 %5999 }
 0x50b   : > { %v5527_v59 = vsel %vm5488_vm10, %v5510_v27, 0.0  ;;  %v5578_v25 = vsel %vm5539_vm12, %v5561_v62, 0.0  ;;  %v5629_v17 = vsel %vm5590_vm3, %v5612_v24, 0.0  ;;  %v5695_v30 = vrot.slane %v5669_v21, %v11108_v63  ;;  %v6269_v21 = vld [vmem:[#allocation7 + $0x48] sm:$0xff] }
 0x50c   : > { %v5586_v3 = vadd.f32 %v5578_v25, %v5527_v59  ;;  %v5752_v47 = vadd.f32 %v5744_v61, %v5653_v23  ;;  %v5937_v18 = vadd.f32 %v5921_v22, %v5744_v61  ;;  %8014 = vrcp.f32 %v6000_v2 }
 0x50d   : > { %v5712_v9 = vsel %vm5673_vm0, %v5695_v30, 0.0 }
 0x50e   : > { %v5637_v55 = vadd.f32 %v5629_v17, %v5586_v3  ;;  %v5778_v20 = vrot.slane %v5752_v47, %v11095_v56  ;;  %v5829_v45 = vrot.slane %v5752_v47, %v11100_v44  ;;  %v5880_v50 = vrot.slane %v5752_v47, %v11104_v39  ;;  %v5364_v3 = vld [vmem:[#allocation6 + $0x108] sm:$0xff] }
 0x50f   : > { %v5963_v53 = vrot.slane %v5937_v18, %v11108_v63  ;;  %v6309_v17 = vrot.slane %v6269_v21, 7  ;;  %v5366_v18 = vld [vmem:[#allocation6 + $0x118] sm:$0x1] }
 0x510   : > { %v5720_v1 = vadd.f32 %v5712_v9, %v5637_v55  ;;  %v5795_v46 = vsel %vm5756_vm15, %v5778_v20, 0.0  ;;  %v5846_v48 = vsel %vm5807_vm14, %v5829_v45, 0.0  ;;  %v5897_v51 = vsel %vm5858_vm1, %v5880_v50, 0.0  ;;  %v5365_v45 = vld [vmem:[#allocation6 + $0x110] sm:$0xff] }
 0x511   : > { %v5980_v31 = vsel %vm5941_vm4, %v5963_v53, 0.0  ;;  %v5397_v55 = vadd.f32 %v5364_v3, %v11314_v4  ;;  %v5398_v2 = vadd.f32 %v5365_v45, %v11321_v34 }
 0x512   : > { %v5803_v26 = vadd.f32 %v5795_v46, %v5720_v1  ;;  %v5995_v19 = vpop.permute.xlu0 %5994  ;;  %v5399_v1 = vadd.f32 %v5366_v18, %v11317_v58  ;;  %v11402_v46 = vld [vmem:[#allocation6 + $0x130] sm:$0x1] }
 0x513   : > { %8016 = vrcp.f32 %v5995_v19 }
 0x514   : > { %v5854_v5 = vadd.f32 %v5846_v48, %v5803_v26 }
 0x516   : > { %v5905_v35 = vadd.f32 %v5897_v51, %v5854_v5  ;;  %v5423_v51 = vadd.f32 %v5399_v1, %v11402_v46 }
 0x518   : > { %v11349_v60 = vadd.f32 %v5980_v31, %v5905_v35 }
 0x519   : > { %v8015_v16 = vpop.eup %8014 }
 0x51a   : > { %6014 = vperm.xlu1 %7991, %v11349_v60   ;;  %v6035_v8 = vmul.f32 %v8015_v16, %v11179_v33 }
 0x51b   : > { %v6005_v42 = vpop.permute.xlu1 %6004 }
 0x51c   : > { %6080 = vst.msk [vmem:[#allocation7 + $0x38] sm:$0xff] %vm2806_vm13, %v6035_v8  ;;  %8018 = vrcp.f32 %v6005_v42  ;;  %v5922_v8 = vrot.slane %v5423_v51, 2 }
 0x520   : > { %v8017_v36 = vpop.eup %8016 }
 0x521   : > { %v6033_v52 = vmul.f32 %v8017_v36, %v11215_v7 }
 0x523   : > { %6079 = vst.msk [vmem:[#allocation7 + $0x20] sm:$0xff] %vm2806_vm13, %v6033_v52  ;;  %v11356_v6 = vld [vmem:[#allocation7 + $0x38] sm:$0xff] }
 0x524   : > { %v6134_v54 = vrot.slane %v11356_v6, 7 }
 0x526   : > { %v11360_v32 = vsel %vm634_vm2, %v6306_v49, %v6134_v54 }
 0x527   : > { %6161 = vst.msk [vmem:[#allocation8 + $0x10] sm:$0xff] %vm2806_vm13, %v11360_v32 }
 0x529   : > { %v8019_v33 = vpop.eup %8018 }
 0x52a   : > { %v11362_v57 = vld [vmem:[#allocation7 + $0x20] sm:$0xff]  ;;  %v6037_v38 = vmul.f32 %v8019_v33, %v11232_v10 }
 0x52b   : > { %v6131_v41 = vrot.slane %v11362_v57, 7 }
 0x52c   : > { %6081 = vst.msk [vmem:[#allocation7 + $0x50] sm:$0xff] %vm2806_vm13, %v6037_v38 }
 0x52d   : > { %v11371_v28 = vsel %vm634_vm2, %v6303_v40, %v6131_v41 }
 0x52e   : > { %6160 = vst.msk [vmem:[#allocation8 + $0x8] sm:$0xff] %vm2806_vm13, %v11371_v28 }
 0x531   : > { %v7928_v7 = vpop.f32.mrf.mxu1 }
 0x532   : > { %v5156_v11 = vadd.f32 %v11240_v13, %v7928_v7 }
 0x533   : > { %v5147_v23 = vpop.f32.mrf.mxu1  ;;  %v11385_v47 = vld [vmem:[#allocation7 + $0x50] sm:$0xff] }
 0x534   : > { %v5204_v22 = vmax.f32 %v5156_v11, 0.0  ;;  %v5148_v27 = vadd.f32 %v11240_v13, %v5147_v23  ;;  %v6137_v9 = vrot.slane %v11385_v47, 7 }
 0x535   : > { %v7929_v62 = vpop.f32.mrf.mxu1 }
 0x536   : > { %5292 = vst.msk [vmem:[#allocation6 + $0x138] sm:$0xff] %vm2806_vm13, %v5204_v22  ;;  %v5202_v10 = vmax.f32 %v5148_v27, 0.0  ;;  %v5159_v24 = vadd.f32 %v11240_v13, %v7929_v62  ;;  %v11395_v20 = vsel %vm634_vm2, %v6309_v17, %v6137_v9 }
 0x537   : > { %5325 = vst.msk [vmem:[#allocation6 + $0x138] sm:$0xff] %vm5298_vm11, %v8056_v29  ;;  %v5150_v61 = vpop.f32.mrf.mxu1 }
 0x538   : > { %5290 = vst.msk [vmem:[#allocation6 + $0x120] sm:$0xff] %vm2806_vm13, %v5202_v10  ;;  %v5205_v59 = vmax.f32 %v5159_v24, 0.0  ;;  %v5151_v25 = vadd.f32 %v11240_v13, %v5150_v61  ;;  %6162 = vst.msk [vmem:[#allocation8 + $0x18] sm:$0xff] %vm2806_vm13, %v11395_v20 }
 0x539   : > { %5323 = vst.msk [vmem:[#allocation6 + $0x120] sm:$0xff] %vm5298_vm11, %v8056_v29 }
 0x53a   : > { %5293 = vst.msk [vmem:[#allocation6 + $0x140] sm:$0xff] %vm2806_vm13, %v5205_v59  ;;  %v5203_v30 = vmax.f32 %v5151_v25, 0.0 }
 0x53b   : > { %5326 = vst.msk [vmem:[#allocation6 + $0x140] sm:$0xff] %vm5298_vm11, %v8056_v29 }
 0x53c   : > { %5291 = vst.msk [vmem:[#allocation6 + $0x128] sm:$0xff] %vm2806_vm13, %v5203_v30 }
 0x53d   : > { %5324 = vst.msk [vmem:[#allocation6 + $0x128] sm:$0xff] %vm5298_vm11, %v8056_v29 }
 0x540   : > { %v11399_v50 = vld [vmem:[#allocation6 + $0x120] sm:$0xff] }
 0x541   : > { %v5421_v48 = vadd.f32 %v5397_v55, %v11399_v50  ;;  %v6272_v55 = vld [vmem:[#allocation7 + $0x60] sm:$0xff] }
 0x542   : > { %v6312_v45 = vrot.slane %v6272_v55, 7 }
 0x543   : > { %v5445_v53 = vrot.slane %v5421_v48, 1  ;;  %v5469_v26 = vrot.slane %v5421_v48, 2 }
 0x544   : > { %v11406_v4 = vld [vmem:[#allocation6 + $0x128] sm:$0xff] }
 0x545   : > { %v5422_v5 = vadd.f32 %v5398_v2, %v11406_v4  ;;  %v5461_v31 = vadd.f32 %v5445_v53, %v5421_v48 }
 0x547   : > { %v5485_v35 = vadd.f32 %v5469_v26, %v5461_v31  ;;  %v5654_v19 = vrot.slane %v5422_v5, 2  ;;  %v5729_v16 = vrot.slane %v5422_v5, 1 }
 0x549   : > { %v5514_v58 = vrot.slane %v5485_v35, %v11095_v56  ;;  %v5565_v42 = vrot.slane %v5485_v35, %v11100_v44  ;;  %v5616_v34 = vrot.slane %v5485_v35, %v11104_v39  ;;  %v5670_v36 = vadd.f32 %v5654_v19, %v5461_v31 }
 0x54a   : > { %v5745_v52 = vadd.f32 %v5729_v16, %v5422_v5 }
 0x54b   : > { %v5528_v54 = vsel %vm5488_vm10, %v5514_v58, 0.0  ;;  %v5579_v43 = vsel %vm5539_vm12, %v5565_v42, 0.0  ;;  %v5630_v15 = vsel %vm5590_vm3, %v5616_v34, 0.0  ;;  %v5699_v49 = vrot.slane %v5670_v36, %v11108_v63  ;;  %v5370_v34 = vld [vmem:[#allocation6 + $0x138] sm:$0xff]  ;;  %v5372_v36 = vld [vmem:[#allocation6 + $0x148] sm:$0x1] }
 0x54c   : > { %v5587_v40 = vadd.f32 %v5579_v43, %v5528_v54  ;;  %v5753_v33 = vadd.f32 %v5745_v52, %v5654_v19  ;;  %v5938_v38 = vadd.f32 %v5922_v8, %v5745_v52  ;;  %v5400_v52 = vadd.f32 %v5370_v34, %v11399_v50  ;;  %v5371_v54 = vld [vmem:[#allocation6 + $0x140] sm:$0xff] }
 0x54d   : > { %v5713_v7 = vsel %vm5673_vm0, %v5699_v49, 0.0  ;;  %v5379_v49 = vld [vmem:[#allocation6 + $0x180] sm:$0xff] }
 0x54e   : > { %v5638_v41 = vadd.f32 %v5630_v15, %v5587_v40  ;;  %v5782_v11 = vrot.slane %v5753_v33, %v11095_v56  ;;  %v5833_v23 = vrot.slane %v5753_v33, %v11100_v44  ;;  %v5884_v22 = vrot.slane %v5753_v33, %v11104_v39  ;;  %v5375_v40 = vld [vmem:[#allocation6 + $0x160] sm:$0x1] }
 0x54f   : > { %v5967_v24 = vrot.slane %v5938_v38, %v11108_v63  ;;  %v5402_v15 = vadd.f32 %v5372_v36, %v11402_v46  ;;  %v5401_v33 = vadd.f32 %v5371_v54, %v11406_v4  ;;  %v5378_v38 = vld [vmem:[#allocation6 + $0x178] sm:$0x1] }
 0x550   : > { %v5721_v27 = vadd.f32 %v5713_v7, %v5638_v41  ;;  %v5796_v62 = vsel %vm5756_vm15, %v5782_v11, 0.0  ;;  %v5847_v10 = vsel %vm5807_vm14, %v5833_v23, 0.0  ;;  %v5898_v61 = vsel %vm5858_vm1, %v5884_v22, 0.0 }
 0x551   : > { %v5981_v25 = vsel %vm5941_vm4, %v5967_v24, 0.0  ;;  %v5405_v50 = vadd.f32 %v5378_v38, %v5375_v40 }
 0x552   : > { %v5804_v21 = vadd.f32 %v5796_v62, %v5721_v27  ;;  %v5426_v62 = vadd.f32 %v5402_v15, %v5375_v40 }
 0x554   : > { %v5855_v59 = vadd.f32 %v5847_v10, %v5804_v21  ;;  %v5380_v10 = vld [vmem:[#allocation6 + $0x188] sm:$0xff] }
 0x555   : > { %v6010_v17 = vpop.permute.xlu0 %6009 }
 0x556   : > { %v5906_v30 = vadd.f32 %v5898_v61, %v5855_v59  ;;  %8020 = vrcp.f32 %v6010_v17  ;;  %v5381_v61 = vld [vmem:[#allocation6 + $0x190] sm:$0x1] }
 0x557   : > { %v5429_v55 = vadd.f32 %v5405_v50, %v5381_v61 }
 0x558   : > { %v11434_v3 = vadd.f32 %v5981_v25, %v5906_v30 }
 0x55a   : > { %6019 = vperm.xlu0 %7990, %v11434_v3  }
 0x563   : > { %v8021_v9 = vpop.eup %8020 }
 0x564   : > { %v6039_v18 = vmul.f32 %v8021_v9, %v11294_v14 }
 0x566   : > { %6082 = vst.msk [vmem:[#allocation7 + $0x68] sm:$0xff] %vm2806_vm13, %v6039_v18  ;;  %v5923_v18 = vrot.slane %v5426_v62, 2 }
 0x56d   : > { %v7932_v1 = vpop.f32.mrf.mxu1  ;;  %v11439_v2 = vld [vmem:[#allocation7 + $0x68] sm:$0xff] }
 0x56e   : > { %v5172_v48 = vadd.f32 %v11240_v13, %v7932_v1  ;;  %v6313_v53 = vrot.slane %v11439_v2, 7 }
 0x56f   : > { %v5163_v26 = vpop.f32.mrf.mxu1 }
 0x570   : > { %v5208_v51 = vmax.f32 %v5172_v48, 0.0  ;;  %v5164_v5 = vadd.f32 %v11240_v13, %v5163_v26  ;;  %v11445_v31 = vsel %vm634_vm2, %v6312_v45, %v6313_v53 }
 0x571   : > { %v7933_v35 = vpop.f32.mrf.mxu1  ;;  %6163 = vst.msk [vmem:[#allocation8 + $0x20] sm:$0xff] %vm2806_vm13, %v11445_v31 }
 0x572   : > { %5296 = vst.msk [vmem:[#allocation6 + $0x168] sm:$0xff] %vm2806_vm13, %v5208_v51  ;;  %v5206_v14 = vmax.f32 %v5164_v5, 0.0  ;;  %v5175_v19 = vadd.f32 %v11240_v13, %v7933_v35 }
 0x573   : > { %5329 = vst.msk [vmem:[#allocation6 + $0x168] sm:$0xff] %vm5298_vm11, %v8056_v29  ;;  %v5166_v16 = vpop.f32.mrf.mxu1 }
 0x574   : > { %5294 = vst.msk [vmem:[#allocation6 + $0x150] sm:$0xff] %vm2806_vm13, %v5206_v14  ;;  %v5209_v8 = vmax.f32 %v5175_v19, 0.0  ;;  %v5167_v58 = vadd.f32 %v11240_v13, %v5166_v16 }
 0x575   : > { %5327 = vst.msk [vmem:[#allocation6 + $0x150] sm:$0xff] %vm5298_vm11, %v8056_v29 }
 0x576   : > { %5297 = vst.msk [vmem:[#allocation6 + $0x170] sm:$0xff] %vm2806_vm13, %v5209_v8  ;;  %v5207_v42 = vmax.f32 %v5167_v58, 0.0 }
 0x577   : > { %5330 = vst.msk [vmem:[#allocation6 + $0x170] sm:$0xff] %vm5298_vm11, %v8056_v29 }
 0x578   : > { %5295 = vst.msk [vmem:[#allocation6 + $0x158] sm:$0xff] %vm2806_vm13, %v5207_v42 }
 0x579   : > { %5328 = vst.msk [vmem:[#allocation6 + $0x158] sm:$0xff] %vm5298_vm11, %v8056_v29 }
 0x57a   : > { %v5376_v13 = vld [vmem:[#allocation6 + $0x168] sm:$0xff] }
 0x57c   : > { %v5373_v43 = vld [vmem:[#allocation6 + $0x150] sm:$0xff] }
 0x57d   : > { %v5424_v7 = vadd.f32 %v5400_v52, %v5373_v43  ;;  %v5403_v41 = vadd.f32 %v5376_v13, %v5373_v43 }
 0x57e   : > { %v5377_v11 = vld [vmem:[#allocation6 + $0x170] sm:$0xff] }
 0x57f   : > { %v5446_v23 = vrot.slane %v5424_v7, 1  ;;  %v5470_v22 = vrot.slane %v5424_v7, 2  ;;  %v5427_v27 = vadd.f32 %v5403_v41, %v5379_v49 }
 0x580   : > { %v5374_v29 = vld [vmem:[#allocation6 + $0x158] sm:$0xff] }
 0x581   : > { %v5425_v24 = vadd.f32 %v5401_v33, %v5374_v29  ;;  %v5462_v21 = vadd.f32 %v5446_v23, %v5424_v7  ;;  %v5404_v59 = vadd.f32 %v5377_v11, %v5374_v29  ;;  %v5447_v46 = vrot.slane %v5427_v27, 1 }
 0x582   : > { %v5471_v25 = vrot.slane %v5427_v27, 2  ;;  %v5924_v11 = vrot.slane %v5429_v55, 2 }
 0x583   : > { %v5486_v17 = vadd.f32 %v5470_v22, %v5462_v21  ;;  %v5655_v30 = vrot.slane %v5425_v24, 2  ;;  %v5730_v4 = vrot.slane %v5425_v24, 1  ;;  %v5428_v9 = vadd.f32 %v5404_v59, %v5380_v10 }
 0x584   : > { %v5463_v45 = vadd.f32 %v5447_v46, %v5427_v27 }
 0x585   : > { %v5518_v1 = vrot.slane %v5486_v17, %v11095_v56  ;;  %v5569_v48 = vrot.slane %v5486_v17, %v11100_v44  ;;  %v5620_v53 = vrot.slane %v5486_v17, %v11104_v39  ;;  %v5671_v26 = vadd.f32 %v5655_v30, %v5462_v21 }
 0x586   : > { %v5746_v51 = vadd.f32 %v5730_v4, %v5425_v24  ;;  %v5487_v5 = vadd.f32 %v5471_v25, %v5463_v45  ;;  %v5656_v35 = vrot.slane %v5428_v9, 2  ;;  %v5731_v14 = vrot.slane %v5428_v9, 1 }
 0x587   : > { %v5529_v19 = vsel %vm5488_vm10, %v5518_v1, 0.0  ;;  %v5580_v16 = vsel %vm5539_vm12, %v5569_v48, 0.0  ;;  %v5631_v8 = vsel %vm5590_vm3, %v5620_v53, 0.0  ;;  %v5703_v58 = vrot.slane %v5671_v26, %v11108_v63 }
 0x588   : > { %v5588_v42 = vadd.f32 %v5580_v16, %v5529_v19  ;;  %v5754_v34 = vadd.f32 %v5746_v51, %v5655_v30  ;;  %v5939_v36 = vadd.f32 %v5923_v18, %v5746_v51  ;;  %v5522_v52 = vrot.slane %v5487_v5, %v11095_v56  ;;  %v6089_v16 = vld [vmem:[#allocation7 + $0x10] sm:$0xff] }
 0x589   : > { %v5714_v54 = vsel %vm5673_vm0, %v5703_v58, 0.0  ;;  %v5573_v13 = vrot.slane %v5487_v5, %v11100_v44  ;;  %v5624_v43 = vrot.slane %v5487_v5, %v11104_v39  ;;  %v5672_v15 = vadd.f32 %v5656_v35, %v5463_v45 }
 0x58a   : > { %v5639_v49 = vadd.f32 %v5631_v8, %v5588_v42  ;;  %v5786_v40 = vrot.slane %v5754_v34, %v11095_v56  ;;  %v5837_v33 = vrot.slane %v5754_v34, %v11100_v44  ;;  %v5888_v7 = vrot.slane %v5754_v34, %v11104_v39  ;;  %v6095_v42 = vld [vmem:[#allocation7 + $0x40] sm:$0xff]  ;;  %v6092_v34 = vld [vmem:[#allocation7 + $0x28] sm:$0xff] }
 0x58b   : > { %v5530_v38 = vsel %vm5488_vm10, %v5522_v52, 0.0  ;;  %v5581_v41 = vsel %vm5539_vm12, %v5573_v13, 0.0  ;;  %v5971_v27 = vrot.slane %v5939_v36, %v11108_v63  ;;  %v5632_v29 = vsel %vm5590_vm3, %v5624_v43, 0.0  ;;  %v6098_v43 = vld [vmem:[#allocation7 + $0x58] sm:$0xff] }
 0x58c   : > { %v5722_v23 = vadd.f32 %v5714_v54, %v5639_v49  ;;  %v5797_v22 = vsel %vm5756_vm15, %v5786_v40, 0.0  ;;  %v5848_v62 = vsel %vm5807_vm14, %v5837_v33, 0.0  ;;  %v5589_v10 = vadd.f32 %v5581_v41, %v5530_v38 }
 0x58d   : > { %v5707_v50 = vrot.slane %v5672_v15, %v11108_v63  ;;  %v5747_v24 = vadd.f32 %v5731_v14, %v5428_v9  ;;  %v5899_v61 = vsel %vm5858_vm1, %v5888_v7, 0.0  ;;  %v5982_v4 = vsel %vm5941_vm4, %v5971_v27, 0.0  ;;  %v6088_v14 = vld [vmem:[#allocation7 + $0x8] sm:$0xff] }
 0x58e   : > { %v5805_v21 = vadd.f32 %v5797_v22, %v5722_v23  ;;  %v5640_v59 = vadd.f32 %v5632_v29, %v5589_v10  ;;  %v6208_v58 = vrot.slane %v6089_v16, 1  ;;  %v6213_v36 = vrot.slane %v11356_v6, 1  ;;  %v6465_v22 = vld [vmem:[#allocation7 + $0x78] sm:$0xff] }
 0x58f   : > { %v5715_v46 = vsel %vm5673_vm0, %v5707_v50, 0.0  ;;  %v5755_v25 = vadd.f32 %v5747_v24, %v5656_v35  ;;  %v5940_v17 = vadd.f32 %v5924_v11, %v5747_v24  ;;  %v6214_v52 = vrot.slane %v6095_v42, 1  ;;  %v6087_v11 = vld [vmem:[#allocation7] sm:$0xff] }
 0x590   : > { %v5856_v30 = vadd.f32 %v5848_v62, %v5805_v21  ;;  %v5723_v18 = vadd.f32 %v5715_v46, %v5640_v59  ;;  %v6210_v54 = vrot.slane %v11362_v57, 1  ;;  %v6211_v13 = vrot.slane %v6092_v34, 1 }
 0x591   : > { %v5790_v55 = vrot.slane %v5755_v25, %v11095_v56  ;;  %v5841_v45 = vrot.slane %v5755_v25, %v11100_v44  ;;  %v5892_v9 = vrot.slane %v5755_v25, %v11104_v39  ;;  %v5975_v26 = vrot.slane %v5940_v17, %v11108_v63  ;;  %v8003_v25 = vld [vmem:[%s12124_s5 + $0x8] sm:$0xff]  }
 0x592   : > { %v5907_v1 = vadd.f32 %v5899_v61, %v5856_v30  ;;  %v6207_v63 = vrot.slane %v6088_v14, 1  ;;  %v6216_v33 = vrot.slane %v11385_v47, 1  ;;  %v6217_v38 = vrot.slane %v6098_v43, 1  ;;  %v8000_v61 = vld [vmem:[%s12124_s5 + $0x20] ss:$0 sps:$4 sm:$0xff]  }
 0x593   : > { %v5798_v48 = vsel %vm5756_vm15, %v5790_v55, 0.0  ;;  %v5849_v53 = vsel %vm5807_vm14, %v5841_v45, 0.0  ;;  %v5900_v35 = vsel %vm5858_vm1, %v5892_v9, 0.0  ;;  %v5983_v39 = vsel %vm5941_vm4, %v5975_v26, 0.0  ;;  %v8004_v30 = vld [vmem:[%s12124_s5] sm:$0xff]  }
 0x594   : > { %v11510_v51 = vadd.f32 %v5982_v4, %v5907_v1  ;;  %v5806_v5 = vadd.f32 %v5798_v48, %v5723_v18  ;;  %vm12137_vm1 = vcmask 1046528   ;;  %v6128_v41 = vrot.slane %v6088_v14, 7  ;;  %v6107_v1 = vld [vmem:[#allocation7 + $0xa0] sm:$0xff] }
 0x595   : > { %v6015_v56 = vpop.permute.xlu1 %6014  ;;  %v6209_v12 = vsel %vm12137_vm1, %v6207_v63, %v6208_v58  ;;  %vm12138_vm14 = vmmov %vm12137_vm1  ;;  %v6127_v27 = vrot.slane %v6087_v11, 7  ;;  %v6505_v29 = vrot.slane %v6465_v22, 7  ;;  %v6408_v24 = vrot.slane %v11439_v2, 1  ;;  %v6284_v22 = vld [vmem:[#allocation7 + $0xc0] sm:$0xff] }
 0x596   : > { %6024 = vperm.xlu1 %7991, %v11510_v51   ;;  %v5857_v44 = vadd.f32 %v5849_v53, %v5806_v5  ;;  %8022 = vrcp.f32 %v6015_v56  ;;  %v6215_v49 = vsel %vm12138_vm14, %v6213_v36, %v6214_v52  ;;  %vm12139_vm15 = vmmov %vm12137_vm1  ;;  %vm12142_vm4 = vcmask 1043456  }
 0x597   : > { %v6212_v7 = vsel %vm12139_vm15, %v6210_v54, %v6211_v13  ;;  %vm12140_vm0 = vmmov %vm12137_vm1  ;;  %7961 = vmatprep.subr.msk.bf16.mxu0 %vm12142_vm4, %v8000_v61  ;;  %v6226_v26 = vrot.slane %v6107_v1, 1  ;;  %vm12146_vm1 = vcmask 130112  }
 0x598   : > { %v5908_v19 = vadd.f32 %v5900_v35, %v5857_v44  ;;  %v6218_v23 = vsel %vm12140_vm0, %v6216_v33, %v6217_v38  ;;  %vm12141_vm3 = vmmov %vm12140_vm0 }
 0x599   : > { %vm12143_vm11 = vmmov %vm12142_vm4 }
 0x59a   : > { %v11517_v8 = vadd.f32 %v5983_v39, %v5908_v19  ;;  %6167 = vrot.lane.b32.xlu1 %v6088_v14, %s8045_s24  ;;  %vm12144_vm10 = vmmov %vm12140_vm0 }
 0x59b   : > { %vm12145_vm12 = vmmov %vm12140_vm0  ;;  %vm12149_vm0 = vcmask 195712  }
 0x59c   : > { %6029 = vperm.xlu0 %7990, %v11517_v8   ;;  %vm12147_vm14 = vmmov %vm12146_vm1 }
 0x59d   : > { %vm12148_vm15 = vmmov %vm12146_vm1 }
 0x59e   : > { %6171 = vrot.lane.b32.xlu1 %v11356_v6, %s8045_s24  ;;  %vm12151_vm4 = vmmov %vm12149_vm0 }
 0x5a0   : > { %6169 = vrot.lane.b32.xlu0 %v11362_v57, %s8045_s24 }
 0x5a2   : > { %6231 = vrot.lane.b32.xlu1 %v6209_v12, %s8047_s26  ;;  %v6281_v12 = vld [vmem:[#allocation7 + $0xa8] sm:$0xff] }
 0x5a3   : > { %v8023_v15 = vpop.eup %8022 }
 0x5a4   : > { %6173 = vrot.lane.b32.xlu0 %v11385_v47, %s8045_s24  ;;  %v6041_v40 = vmul.f32 %v8023_v15, %v11349_v60  ;;  %v6129_v60 = vsel %vm634_vm2, %v6127_v27, %v6128_v41 }
 0x5a5   : > { %6159 = vst.msk [vmem:[#allocation8] sm:$0xff] %vm2806_vm13, %v6129_v60 }
 0x5a6   : > { %6235 = vrot.lane.b32.xlu1 %v6215_v49, %s8047_s26  ;;  %6083 = vst.msk [vmem:[#allocation7 + $0x80] sm:$0xff] %vm2806_vm13, %v6041_v40 }
 0x5a8   : > { %6233 = vrot.lane.b32.xlu0 %v6212_v7, %s8047_s26 }
 0x5aa   : > { %6327 = vrot.lane.b32.xlu1 %v11371_v28, %s8049_s28  ;;  %v6274_v28 = vld [vmem:[#allocation7 + $0x70] sm:$0xff] }
 0x5ab   : > { %v6409_v21 = vrot.slane %v6274_v28, 1 }
 0x5ac   : > { %6237 = vrot.lane.b32.xlu0 %v6218_v23, %s8047_s26 }
 0x5ad   : > { %v11544_v62 = vld [vmem:[#allocation7 + $0x80] sm:$0xff] }
 0x5ae   : > { %6331 = vrot.lane.b32.xlu1 %v11395_v20, %s8049_s28  ;;  %v6506_v10 = vrot.slane %v11544_v62, 7  ;;  %v6601_v46 = vrot.slane %v11544_v62, 1 }
 0x5b0   : > { %6329 = vrot.lane.b32.xlu0 %v11360_v32, %s8049_s28  ;;  %v11552_v50 = vsel %vm634_vm2, %v6505_v29, %v6506_v10  ;;  %v6324_v10 = vrot.slane %v6284_v22, 7 }
 0x5b1   : > { %6164 = vst.msk [vmem:[#allocation8 + $0x28] sm:$0xff] %vm2806_vm13, %v11552_v50 }
 0x5b2   : > { %6359 = vrot.lane.b32.xlu1 %v11362_v57, %s8051_s15  ;;  %v6410_v57 = vsel %vm12141_vm3, %v6408_v24, %v6409_v21  ;;  %vm12150_vm3 = vmmov %vm12146_vm1 }
 0x5b4   : > { %6333 = vrot.lane.b32.xlu0 %v11445_v31, %s8049_s28 }
 0x5b6   : > { %6363 = vrot.lane.b32.xlu1 %v11385_v47, %s8051_s15 }
 0x5b8   : > { %6361 = vrot.lane.b32.xlu0 %v11356_v6, %s8051_s15 }
 0x5ba   : > { %6423 = vrot.lane.b32.xlu1 %v6212_v7, %s8052_s22 }
 0x5bc   : > { %6365 = vrot.lane.b32.xlu0 %v11439_v2, %s8051_s15 }
 0x5be   : > { %6427 = vrot.lane.b32.xlu1 %v6218_v23, %s8052_s22 }
 0x5c0   : > { %6425 = vrot.lane.b32.xlu0 %v6215_v49, %s8052_s22 }
 0x5c2   : > { %6520 = vrot.lane.b32.xlu1 %v11360_v32, %s8053_s23  ;;  %v6716_v32 = vsel %vm12143_vm11, %v8000_v61, 0  ;;  %vm12152_vm11 = vmmov %vm12149_vm0 }
 0x5c3   : > { %7935 = vmatpush3.bf16.msra.mxu0 %v6716_v32 }
 0x5c4   : > { %6429 = vrot.lane.b32.xlu0 %v6410_v57, %s8052_s22 }
 0x5c6   : > { %6524 = vrot.lane.b32.xlu1 %v11445_v31, %s8053_s23  ;;  %v8002_v31 = vld [vmem:[%s12124_s5 + $0x10] sm:$0xff]  }
 0x5c8   : > { %6522 = vrot.lane.b32.xlu0 %v11395_v20, %s8053_s23  ;;  %v6467_v20 = vld [vmem:[#allocation7 + $0x88] sm:$0xff] }
 0x5ca   : > { %6552 = vrot.lane.b32.xlu1 %v11356_v6, %s8054_s12  ;;  %v8001_v6 = vld [vmem:[%s12124_s5 + $0x18] sm:$0xff]  }
 0x5cb   : > { %7936 = vmatprep.subr.bf16.mxu0 %v8001_v6 }
 0x5cc   : > { %6526 = vrot.lane.b32.xlu0 %v11552_v50, %s8053_s23  ;;  %7937 = vmatpush3.bf16.msra.mxu0 %v8001_v6  ;;  %v6286_v6 = vld [vmem:[#allocation7 + $0xd0] sm:$0xff] }
 0x5cd   : > { %7938 = vmatprep.subr.bf16.mxu0 %v8002_v31 }
 0x5ce   : > { %6556 = vrot.lane.b32.xlu1 %v11439_v2, %s8054_s12 }
 0x5d0   : > { %6554 = vrot.lane.b32.xlu0 %v11385_v47, %s8054_s12  ;;  %v6602_v47 = vrot.slane %v6467_v20, 1  ;;  %7939 = vmatpush3.bf16.msra.mxu0 %v8002_v31 }
 0x5d1   : > { %7940 = vmatprep.subr.bf16.mxu0 %v8003_v25 }
 0x5d2   : > { %6616 = vrot.lane.b32.xlu1 %v6215_v49, %s8055_s20  ;;  %v11607_v17 = vsel %vm12144_vm10, %v6601_v46, %v6602_v47  ;;  %vm12153_vm10 = vcmask 261312   ;;  %v6110_v49 = vld [vmem:[#allocation7 + $0xb8] sm:$0xff]  ;;  %v6421_v46 = vrot.slane %v6286_v6, 1 }
 0x5d3   : > { %v6229_v38 = vrot.slane %v6110_v49, 1 }
 0x5d4   : > { %6558 = vrot.lane.b32.xlu0 %v11544_v62, %s8054_s12  ;;  %7941 = vmatpush3.bf16.msra.mxu0 %v8003_v25  ;;  %v6477_v25 = vld [vmem:[#allocation7 + $0xd8] sm:$0xff] }
 0x5d5   : > { %v6020_v59 = vpop.permute.xlu0 %6019  ;;  %7942 = vmatprep.subr.bf16.mxu0 %v8004_v30 }
 0x5d6   : > { %8024 = vrcp.f32 %v6020_v59  ;;  %6620 = vrot.lane.b32.xlu1 %v6410_v57, %s8055_s20 }
 0x5d8   : > { %6618 = vrot.lane.b32.xlu0 %v6218_v23, %s8055_s20  ;;  %7943 = vmatpush3.bf16.msra.mxu0 %v8004_v30 }
 0x5d9   : > { %7952 = vmatprep.subr.mxu0 %v8043_v0 }
 0x5da   : > { %6175 = vrot.lane.b32.xlu1 %v11439_v2, %s8045_s24  ;;  %v6278_v2 = vld [vmem:[#allocation7 + $0x90] sm:$0xff] }
 0x5db   : > { %v6318_v55 = vrot.slane %v6278_v2, 7  ;;  %v6517_v2 = vrot.slane %v6477_v25, 7 }
 0x5dc   : > { %6622 = vrot.lane.b32.xlu0 %v11607_v17, %s8055_s20 }
 0x5e0   : > { %6177 = vrot.lane.b32.xlu0 %v11544_v62, %s8045_s24 }
 0x5e3   : > { %v8025_v4 = vpop.eup %8024 }
 0x5e4   : > { %v6043_v18 = vmul.f32 %v8025_v4, %v11434_v3 }
 0x5e6   : > { %6084 = vst.msk [vmem:[#allocation7 + $0x98] sm:$0xff] %vm2806_vm13, %v6043_v18 }
 0x5ed   : > { %v11621_v45 = vld [vmem:[#allocation7 + $0x98] sm:$0xff] }
 0x5ee   : > { %6179 = vrot.lane.b32.xlu1 %v11621_v45, %s8045_s24  ;;  %v6146_v9 = vrot.slane %v11621_v45, 7  ;;  %v6225_v53 = vrot.slane %v11621_v45, 1 }
 0x5f0   : > { %v11627_v48 = vsel %vm634_vm2, %v6318_v55, %v6146_v9  ;;  %v11634_v3 = vsel %vm12145_vm12, %v6225_v53, %v6226_v26  ;;  %vm12154_vm12 = vmmov %vm12149_vm0 }
 0x5f1   : > { %6165 = vst.msk [vmem:[#allocation8 + $0x30] sm:$0xff] %vm2806_vm13, %v11627_v48 }
 0x5f2   : > { %6239 = vrot.lane.b32.xlu1 %v6410_v57, %s8047_s26 }
 0x5f6   : > { %6243 = vrot.lane.b32.xlu1 %v11634_v3, %s8047_s26 }
 0x5fa   : > { %6335 = vrot.lane.b32.xlu1 %v11552_v50, %s8049_s28 }
 0x611   : > { %v6025_v5 = vpop.permute.xlu1 %6024 }
 0x612   : > { %8026 = vrcp.f32 %v6025_v5 }
 0x615   : > { %v6168_v35 = vpop.permute.xlu1 %6167 }
 0x616   : > { %6191 = vst.msk [vmem:[#allocation8] sm:$0xff] %vm12146_vm1, %v6168_v35  ;;  %vm12155_vm1 = vmmov %vm12153_vm10 }
 0x617   : > { %v6030_v56 = vpop.permute.xlu0 %6029 }
 0x618   : > { %8028 = vrcp.f32 %v6030_v56 }
 0x619   : > { %v6172_v44 = vpop.permute.xlu1 %6171 }
 0x61a   : > { %6193 = vst.msk [vmem:[#allocation8 + $0x10] sm:$0xff] %vm12147_vm14, %v6172_v44  ;;  %vm12156_vm14 = vmmov %vm12155_vm1 }
 0x61b   : > { %v6170_v39 = vpop.permute.xlu0 %6169 }
 0x61c   : > { %6192 = vst.msk [vmem:[#allocation8 + $0x8] sm:$0xff] %vm12148_vm15, %v6170_v39  ;;  %vm12157_vm15 = vcmask 326912  }
 0x61d   : > { %v6232_v14 = vpop.permute.xlu1 %6231 }
 0x61e   : > { %6255 = vst.msk [vmem:[#allocation8] sm:$0xff] %vm12149_vm0, %v6232_v14  ;;  %vm12158_vm0 = vmmov %vm12155_vm1 }
 0x61f   : > { %v8027_v19 = vpop.eup %8026  ;;  %v6174_v16 = vpop.permute.xlu0 %6173 }
 0x620   : > { %v6045_v63 = vmul.f32 %v8027_v19, %v11510_v51  ;;  %6194 = vst.msk [vmem:[#allocation8 + $0x18] sm:$0xff] %vm12150_vm3, %v6174_v16  ;;  %v6321_v51 = vrot.slane %v6281_v12, 7  ;;  %vm12159_vm3 = vcmask 1046528  }
 0x621   : > { %v6236_v58 = vpop.permute.xlu1 %6235 }
 0x622   : > { %6085 = vst.msk [vmem:[#allocation7 + $0xb0] sm:$0xff] %vm2806_vm13, %v6045_v63 }
 0x623   : > { %6257 = vst.msk [vmem:[#allocation8 + $0x10] sm:$0xff] %vm12151_vm4, %v6236_v58  ;;  %v6234_v42 = vpop.permute.xlu0 %6233  ;;  %vm12160_vm4 = vmmov %vm12157_vm15 }
 0x624   : > { %6256 = vst.msk [vmem:[#allocation8 + $0x8] sm:$0xff] %vm12152_vm11, %v6234_v42  ;;  %vm12162_vm11 = vmmov %vm12160_vm4 }
 0x625   : > { %v8029_v34 = vpop.eup %8028  ;;  %v6328_v36 = vpop.permute.xlu1 %6327 }
 0x626   : > { %v6047_v52 = vmul.f32 %v8029_v34, %v11517_v8  ;;  %6351 = vst.msk [vmem:[#allocation8] sm:$0xff] %vm12153_vm10, %v6328_v36  ;;  %vm12163_vm10 = vmmov %vm12159_vm3 }
 0x627   : > { %v6238_v54 = vpop.permute.xlu0 %6237 }
 0x628   : > { %6086 = vst.msk [vmem:[#allocation7 + $0xc8] sm:$0xff] %vm2806_vm13, %v6047_v52 }
 0x629   : > { %6258 = vst.msk [vmem:[#allocation8 + $0x18] sm:$0xff] %vm12154_vm12, %v6238_v54  ;;  %v11653_v13 = vld [vmem:[#allocation7 + $0xb0] sm:$0xff]  ;;  %v6332_v43 = vpop.permute.xlu1 %6331  ;;  %vm12164_vm12 = vcmask 130112  }
 0x62a   : > { %v6149_v15 = vrot.slane %v11653_v13, 7  ;;  %6181 = vrot.lane.b32.xlu0 %v11653_v13, %s8045_s24  ;;  %6353 = vst.msk [vmem:[#allocation8 + $0x10] sm:$0xff] %vm12155_vm1, %v6332_v43  ;;  %v6228_v33 = vrot.slane %v11653_v13, 1  ;;  %vm12165_vm1 = vmmov %vm12164_vm12 }
 0x62b   : > { %v6330_v8 = vpop.permute.xlu0 %6329 }
 0x62c   : > { %6352 = vst.msk [vmem:[#allocation8 + $0x8] sm:$0xff] %vm12156_vm14, %v6330_v8  ;;  %v11661_v40 = vsel %vm634_vm2, %v6321_v51, %v6149_v15  ;;  %v11675_v11 = vsel %vm12159_vm3, %v6228_v33, %v6229_v38  ;;  %vm12166_vm14 = vmmov %vm12159_vm3 }
 0x62d   : > { %6339 = vrot.lane.b32.xlu1 %v11661_v40, %s8049_s28  ;;  %v6360_v7 = vpop.permute.xlu1 %6359  ;;  %6166 = vst.msk [vmem:[#allocation8 + $0x38] sm:$0xff] %vm2806_vm13, %v11661_v40  ;;  %vm12161_vm13 = vmmov %vm12160_vm4 }
 0x62e   : > { %6241 = vrot.lane.b32.xlu0 %v11607_v17, %s8047_s26  ;;  %6383 = vst.msk [vmem:[#allocation8] sm:$0xff] %vm12157_vm15, %v6360_v7  ;;  %vm12167_vm15 = vmmov %vm12165_vm1 }
 0x62f   : > { %v6334_v41 = vpop.permute.xlu0 %6333  ;;  %v6285_v27 = vld [vmem:[#allocation7 + $0xc8] sm:$0xff] }
 0x630   : > { %6354 = vst.msk [vmem:[#allocation8 + $0x18] sm:$0xff] %vm12158_vm0, %v6334_v41  ;;  %v6420_v59 = vrot.slane %v6285_v27, 1  ;;  %vm12168_vm0 = vcmask 195712  }
 0x631   : > { %6367 = vrot.lane.b32.xlu1 %v11544_v62, %s8051_s15  ;;  %v6364_v23 = vpop.permute.xlu1 %6363  ;;  %v6325_v62 = vrot.slane %v6285_v27, 7  ;;  %vm12169_vm3 = vmmov %vm12168_vm0 }
 0x632   : > { %6245 = vrot.lane.b32.xlu0 %v11675_v11, %s8047_s26  ;;  %6385 = vst.msk [vmem:[#allocation8 + $0x10] sm:$0xff] %vm12160_vm4, %v6364_v23  ;;  %v6422_v30 = vsel %vm12163_vm10, %v6420_v59, %v6421_v46  ;;  %vm12170_vm4 = vcmask 261312  }
 0x633   : > { %v6362_v60 = vpop.permute.xlu0 %6361  ;;  %v6326_v28 = vsel %vm634_vm2, %v6324_v10, %v6325_v62  ;;  %vm12172_vm10 = vmmov %vm12170_vm4 }
 0x634   : > { %6384 = vst.msk [vmem:[#allocation8 + $0x8] sm:$0xff] %vm12161_vm13, %v6362_v60  ;;  %vm12171_vm13 = vmmov %vm12165_vm1 }
 0x635   : > { %6371 = vrot.lane.b32.xlu1 %v11653_v13, %s8051_s15  ;;  %v6424_v29 = vpop.permute.xlu1 %6423 }
 0x636   : > { %6337 = vrot.lane.b32.xlu0 %v11627_v48, %s8049_s28  ;;  %6447 = vst.msk [vmem:[#allocation8] sm:$0xff] %vm4164_vm5, %v6424_v29 }
 0x637   : > { %v6366_v50 = vpop.permute.xlu0 %6365 }
 0x638   : > { %6386 = vst.msk [vmem:[#allocation8 + $0x18] sm:$0xff] %vm12162_vm11, %v6366_v50  ;;  %vm6791_vm11 = vcmask 130048  }
 0x639   : > { %6431 = vrot.lane.b32.xlu1 %v11607_v17, %s8052_s22  ;;  %v6428_v24 = vpop.permute.xlu1 %6427  ;;  %v6478_v17 = vld [vmem:[#allocation7 + $0xe0] sm:$0xff]  ;;  %6802 = vst.msk [vmem:[#allocation9 + $0x50] sm:$0xff] %vm6791_vm11, %v8043_v0  ;;  %6792 = vst.msk [vmem:[#allocation9] sm:$0xff] %vm6791_vm11, %v8043_v0 }
 0x63a   : > { %6341 = vrot.lane.b32.xlu0 %v6326_v28, %s8049_s28  ;;  %6449 = vst.msk [vmem:[#allocation8 + $0x10] sm:$0xff] %vm4164_vm5, %v6428_v24  ;;  %v6518_v55 = vrot.slane %v6478_v17, 7  ;;  %v6613_v39 = vrot.slane %v6478_v17, 1 }
 0x63b   : > { %v6426_v21 = vpop.permute.xlu0 %6425  ;;  %6793 = vst.msk [vmem:[#allocation9 + $0x8] sm:$0xff] %vm6791_vm11, %v8043_v0  ;;  %6794 = vst.msk [vmem:[#allocation9 + $0x10] sm:$0xff] %vm6791_vm11, %v8043_v0 }
 0x63c   : > { %6448 = vst.msk [vmem:[#allocation8 + $0x8] sm:$0xff] %vm4164_vm5, %v6426_v21  ;;  %v6519_v1 = vsel %vm634_vm2, %v6517_v2, %v6518_v55 }
 0x63d   : > { %6435 = vrot.lane.b32.xlu1 %v11675_v11, %s8052_s22  ;;  %v6521_v57 = vpop.permute.xlu1 %6520  ;;  %6795 = vst.msk [vmem:[#allocation9 + $0x18] sm:$0xff] %vm6791_vm11, %v8043_v0  ;;  %6796 = vst.msk [vmem:[#allocation9 + $0x20] sm:$0xff] %vm6791_vm11, %v8043_v0 }
 0x63e   : > { %6369 = vrot.lane.b32.xlu0 %v11621_v45, %s8051_s15  ;;  %6544 = vst.msk [vmem:[#allocation8] sm:$0xff] %vm4486_vm6, %v6521_v57 }
 0x63f   : > { %v6430_v61 = vpop.permute.xlu0 %6429  ;;  %6797 = vst.msk [vmem:[#allocation9 + $0x28] sm:$0xff] %vm6791_vm11, %v8043_v0  ;;  %6798 = vst.msk [vmem:[#allocation9 + $0x30] sm:$0xff] %vm6791_vm11, %v8043_v0 }
 0x640   : > { %6450 = vst.msk [vmem:[#allocation8 + $0x18] sm:$0xff] %vm4164_vm5, %v6430_v61  ;;  %v6831_v2 = vld [vmem:[#allocation9] sm:$0xff] }
 0x641   : > { %6528 = vrot.lane.b32.xlu1 %v11627_v48, %s8053_s23  ;;  %v6525_v32 = vpop.permute.xlu1 %6524  ;;  %6799 = vst.msk [vmem:[#allocation9 + $0x38] sm:$0xff] %vm6791_vm11, %v8043_v0  ;;  %6800 = vst.msk [vmem:[#allocation9 + $0x40] sm:$0xff] %vm6791_vm11, %v8043_v0  ;;  %v6871_v55 = vrot.slane %v6831_v2, 7  ;;  %v8007_v2 = vld [vmem:[%s12126_s7 + $0x28] sm:$0xff]  }
 0x642   : > { %6373 = vrot.lane.b32.xlu0 %v6285_v27, %s8051_s15  ;;  %6546 = vst.msk [vmem:[#allocation8 + $0x10] sm:$0xff] %vm4486_vm6, %v6525_v32  ;;  %v6832_v49 = vld [vmem:[#allocation9 + $0x8] sm:$0xff] }
 0x643   : > { %v6523_v20 = vpop.permute.xlu0 %6522  ;;  %6801 = vst.msk [vmem:[#allocation9 + $0x48] sm:$0xff] %vm6791_vm11, %v8043_v0  ;;  %6803 = vst.msk [vmem:[#allocation9 + $0x58] sm:$0xff] %vm6791_vm11, %v8043_v0  ;;  %v6952_v7 = vrot.slane %v6832_v49, 1 }
 0x644   : > { %6545 = vst.msk [vmem:[#allocation8 + $0x8] sm:$0xff] %vm4486_vm6, %v6523_v20 }
 0x645   : > { %6532 = vrot.lane.b32.xlu1 %v6326_v28, %s8053_s23  ;;  %v6553_v31 = vpop.permute.xlu1 %6552  ;;  %6804 = vst.msk [vmem:[#allocation9 + $0x60] sm:$0xff] %vm6791_vm11, %v8043_v0  ;;  %6805 = vst.msk [vmem:[#allocation9 + $0x68] sm:$0xff] %vm6791_vm11, %v8043_v0 }
 0x646   : > { %6433 = vrot.lane.b32.xlu0 %v11634_v3, %s8052_s22  ;;  %6576 = vst.msk [vmem:[#allocation8] sm:$0xff] %vm4615_vm7, %v6553_v31 }
 0x647   : > { %v6527_v47 = vpop.permute.xlu0 %6526  ;;  %6806 = vst.msk [vmem:[#allocation9 + $0x70] sm:$0xff] %vm6791_vm11, %v8043_v0  ;;  %6807 = vst.msk [vmem:[#allocation9 + $0x78] sm:$0xff] %vm6791_vm11, %v8043_v0 }
 0x648   : > { %6547 = vst.msk [vmem:[#allocation8 + $0x18] sm:$0xff] %vm4486_vm6, %v6527_v47 }
 0x649   : > { %6560 = vrot.lane.b32.xlu1 %v11621_v45, %s8054_s12  ;;  %v6557_v4 = vpop.permute.xlu1 %6556  ;;  %6808 = vst.msk [vmem:[#allocation9 + $0x80] sm:$0xff] %vm6791_vm11, %v8043_v0  ;;  %6809 = vst.msk [vmem:[#allocation9 + $0x88] sm:$0xff] %vm6791_vm11, %v8043_v0 }
 0x64a   : > { %6437 = vrot.lane.b32.xlu0 %v6422_v30, %s8052_s22  ;;  %6578 = vst.msk [vmem:[#allocation8 + $0x10] sm:$0xff] %vm4615_vm7, %v6557_v4  ;;  %s8058_s22 = smov 112  }
 0x64b   : > { %v6555_v18 = vpop.permute.xlu0 %6554  ;;  %6810 = vst.msk [vmem:[#allocation9 + $0x90] sm:$0xff] %vm6791_vm11, %v8043_v0  ;;  %6811 = vst.msk [vmem:[#allocation9 + $0x98] sm:$0xff] %vm6791_vm11, %v8043_v0 }
 0x64c   : > { %6577 = vst.msk [vmem:[#allocation8 + $0x8] sm:$0xff] %vm4615_vm7, %v6555_v18  ;;  %v6872_v18 = vrot.slane %v6832_v49, 7 }
 0x64d   : > { %6564 = vrot.lane.b32.xlu1 %v6285_v27, %s8054_s12  ;;  %v6617_v9 = vpop.permute.xlu1 %6616  ;;  %6812 = vst.msk [vmem:[#allocation9 + $0xa0] sm:$0xff] %vm6791_vm11, %v8043_v0  ;;  %6813 = vst.msk [vmem:[#allocation9 + $0xa8] sm:$0xff] %vm6791_vm11, %v8043_v0 }
 0x64e   : > { %6530 = vrot.lane.b32.xlu0 %v11661_v40, %s8053_s23  ;;  %6640 = vst.msk [vmem:[#allocation8] sm:$0xff] %vm4840_vm8, %v6617_v9  ;;  %v6833_v40 = vld [vmem:[#allocation9 + $0x10] sm:$0xff]  ;;  %v6873_v9 = vsel %vm634_vm2, %v6871_v55, %v6872_v18 }
 0x64f   : > { %v6559_v45 = vpop.permute.xlu0 %6558  ;;  %6814 = vst.msk [vmem:[#allocation9 + $0xb0] sm:$0xff] %vm6791_vm11, %v8043_v0  ;;  %6815 = vst.msk [vmem:[#allocation9 + $0xb8] sm:$0xff] %vm6791_vm11, %v8043_v0  ;;  %v6953_v38 = vrot.slane %v6833_v40, 1 }
 0x650   : > { %6579 = vst.msk [vmem:[#allocation8 + $0x18] sm:$0xff] %vm4615_vm7, %v6559_v45 }
 0x651   : > { %6624 = vrot.lane.b32.xlu1 %v11634_v3, %s8055_s20  ;;  %v6621_v48 = vpop.permute.xlu1 %6620  ;;  %v6479_v3 = vld [vmem:[#allocation7 + $0xe8] sm:$0xff]  ;;  %6816 = vst.msk [vmem:[#allocation9 + $0xc0] sm:$0xff] %vm6791_vm11, %v8043_v0  ;;  %6817 = vst.msk [vmem:[#allocation9 + $0xc8] sm:$0xff] %vm6791_vm11, %v8043_v0 }
 0x652   : > { %6534 = vrot.lane.b32.xlu0 %v6519_v1, %s8053_s23  ;;  %6642 = vst.msk [vmem:[#allocation8 + $0x10] sm:$0xff] %vm4840_vm8, %v6621_v48  ;;  %v6614_v14 = vrot.slane %v6479_v3, 1  ;;  %v11841_v48 = vld [vmem:[%s12125_s6] ss:$0 sm:$0xff] }
 0x653   : > { %v6619_v53 = vpop.permute.xlu0 %6618  ;;  %6818 = vst.msk [vmem:[#allocation9 + $0xd0] sm:$0xff] %vm6791_vm11, %v8043_v0  ;;  %6819 = vst.msk [vmem:[#allocation9 + $0xd8] sm:$0xff] %vm6791_vm11, %v8043_v0 }
 0x654   : > { %6641 = vst.msk [vmem:[#allocation8 + $0x8] sm:$0xff] %vm4840_vm8, %v6619_v53  ;;  %v6615_v58 = vsel %vm12166_vm14, %v6613_v39, %v6614_v14  ;;  %vm12175_vm14 = vmmov %vm12168_vm0 }
 0x655   : > { %6628 = vrot.lane.b32.xlu1 %v6422_v30, %s8055_s20  ;;  %v6176_v26 = vpop.permute.xlu1 %6175  ;;  %v6648_v35 = vld [vmem:[#allocation8] sm:$0xff]  ;;  %6820 = vst.msk [vmem:[#allocation9 + $0xe0] sm:$0xff] %vm6791_vm11, %v8043_v0  ;;  %6821 = vst.msk [vmem:[#allocation9 + $0xe8] sm:$0xff] %vm6791_vm11, %v8043_v0 }
 0x656   : > { %6562 = vrot.lane.b32.xlu0 %v11653_v13, %s8054_s12  ;;  %6195 = vst.msk [vmem:[#allocation8 + $0x20] sm:$0xff] %vm12164_vm12, %v6176_v26  ;;  %vm12173_vm12 = vmmov %vm12168_vm0 }
 0x657   : > { %v6623_v5 = vpop.permute.xlu0 %6622  ;;  %6903 = vst.msk [vmem:[#allocation10] sm:$0xff] %vm6791_vm11, %v6873_v9 }
 0x658   : > { %6643 = vst.msk [vmem:[#allocation8 + $0x18] sm:$0xff] %vm4840_vm8, %v6623_v5 }
 0x659   : > { %v6650_v16 = vld [vmem:[#allocation8 + $0x10] sm:$0xff]  ;;  %6911 = vrot.lane.b32.xlu1 %v6832_v49, %s8047_s26 }
 0x65a   : > { %6566 = vrot.lane.b32.xlu0 %v6478_v17, %s8054_s12 }
 0x65b   : > { %v6178_v56 = vpop.permute.xlu0 %6177  ;;  %v6649_v44 = vld [vmem:[#allocation8 + $0x8] sm:$0xff] }
 0x65c   : > { %6196 = vst.msk [vmem:[#allocation8 + $0x28] sm:$0xff] %vm12165_vm1, %v6178_v56  ;;  %v6656_v19 = vpack.c.bf16 %v6649_v44, %v6648_v35  ;;  %vm12174_vm1 = vcmask 326912  }
 0x65e   : > { %7944 = vmatprep.mubr.msk.bf16.mxu0 %vm4964_vm9, %v6656_v19  ;;  %6626 = vrot.lane.b32.xlu0 %v11675_v11, %s8055_s20 }
 0x65f   : > { %v6651_v63 = vld [vmem:[#allocation8 + $0x18] sm:$0xff] }
 0x660   : > { %v6657_v42 = vpack.c.bf16 %v6651_v63, %v6650_v16  ;;  %v6180_v34 = vpop.permute.xlu1 %6179  ;;  %v7210_v63 = vld [vmem:[#allocation9 + $0x58] sm:$0xff] }
 0x661   : > { %6197 = vst.msk [vmem:[#allocation8 + $0x30] sm:$0xff] %vm12167_vm15, %v6180_v34  ;;  %vm12176_vm15 = vmmov %vm12174_vm1  ;;  %v7009_v34 = vld [vmem:[#allocation9 + $0x18] sm:$0xff] }
 0x662   : > { %7945 = vmatmul.mubr.msk.bf16.vlgmr.msra.gmra.mxu0 %vm4964_vm9, %v6657_v42  ;;  %6630 = vrot.lane.b32.xlu0 %v6615_v58, %s8055_s20  ;;  %v7015_v58 = vld [vmem:[#allocation9 + $0x48] sm:$0xff]  ;;  %v7049_v49 = vrot.slane %v7009_v34, 7 }
 0x664   : > { %v6240_v36 = vpop.permute.xlu1 %6239 }
 0x665   : > { %6259 = vst.msk [vmem:[#allocation8 + $0x20] sm:$0xff] %vm12168_vm0, %v6240_v36  ;;  %vm12177_vm0 = vmmov %vm12170_vm4  ;;  %v7347_v36 = vrot.slane %v7210_v63, 1 }
 0x668   : > { %v6244_v12 = vpop.permute.xlu1 %6243 }
 0x669   : > { %6261 = vst.msk [vmem:[#allocation8 + $0x30] sm:$0xff] %vm12169_vm3, %v6244_v12  ;;  %vm12178_vm3 = vcmask 1046528   ;;  %v7055_v12 = vrot.slane %v7015_v58, 7 }
 0x66a   : > { %v6954_v41 = vsel %vm12178_vm3, %v6952_v7, %v6953_v38 }
 0x66b   : > { %6976 = vrot.lane.b32.xlu1 %v6954_v41, %s8051_s15 }
 0x66c   : > { %v6336_v52 = vpop.permute.xlu1 %6335 }
 0x66d   : > { %6355 = vst.msk [vmem:[#allocation8 + $0x20] sm:$0xff] %vm12170_vm4, %v6336_v52  ;;  %vm12179_vm4 = vmmov %vm12177_vm0  ;;  %v7213_v52 = vld [vmem:[#allocation9 + $0x70] sm:$0xff] }
 0x66e   : > { %v7350_v40 = vrot.slane %v7213_v52, 1 }
 0x69c   : > { %v6182_v54 = vpop.permute.xlu0 %6181 }
 0x69d   : > { %6198 = vst.msk [vmem:[#allocation8 + $0x38] sm:$0xff] %vm12171_vm13, %v6182_v54  ;;  %vm12180_vm13 = vmmov %vm12174_vm1 }
 0x69f   : > { %v6340_v51 = vpop.permute.xlu1 %6339 }
 0x6a0   : > { %6357 = vst.msk [vmem:[#allocation8 + $0x30] sm:$0xff] %vm12172_vm10, %v6340_v51  ;;  %v6242_v13 = vpop.permute.xlu0 %6241  ;;  %vm12181_vm10 = vmmov %vm12174_vm1  ;;  %v7018_v51 = vld [vmem:[#allocation9 + $0x60] sm:$0xff] }
 0x6a1   : > { %6260 = vst.msk [vmem:[#allocation8 + $0x28] sm:$0xff] %vm12173_vm12, %v6242_v13  ;;  %vm12185_vm12 = vmmov %vm12178_vm3 }
 0x6a3   : > { %v6368_v43 = vpop.permute.xlu1 %6367 }
 0x6a4   : > { %6387 = vst.msk [vmem:[#allocation8 + $0x20] sm:$0xff] %vm12174_vm1, %v6368_v43  ;;  %v6246_v15 = vpop.permute.xlu0 %6245  ;;  %vm12186_vm1 = vmmov %vm12178_vm3 }
 0x6a5   : > { %6262 = vst.msk [vmem:[#allocation8 + $0x38] sm:$0xff] %vm12175_vm14, %v6246_v15  ;;  %v7207_v15 = vld [vmem:[#allocation9 + $0x40] sm:$0xff]  ;;  %vm12187_vm14 = vmmov %vm12186_vm1 }
 0x6a7   : > { %v6372_v8 = vpop.permute.xlu1 %6371 }
 0x6a8   : > { %6389 = vst.msk [vmem:[#allocation8 + $0x30] sm:$0xff] %vm12176_vm15, %v6372_v8  ;;  %v6338_v33 = vpop.permute.xlu0 %6337  ;;  %vm12188_vm15 = vmmov %vm12186_vm1 }
 0x6a9   : > { %6356 = vst.msk [vmem:[#allocation8 + $0x28] sm:$0xff] %vm12177_vm0, %v6338_v33  ;;  %v7012_v33 = vld [vmem:[#allocation9 + $0x30] sm:$0xff]  ;;  %vm12189_vm0 = vmmov %vm12186_vm1 }
 0x6ab   : > { %v6432_v11 = vpop.permute.xlu1 %6431 }
 0x6ac   : > { %6451 = vst.msk [vmem:[#allocation8 + $0x20] sm:$0xff] %vm4164_vm5, %v6432_v11  ;;  %v6342_v23 = vpop.permute.xlu0 %6341  ;;  %v7058_v11 = vrot.slane %v7018_v51, 7 }
 0x6ad   : > { %6358 = vst.msk [vmem:[#allocation8 + $0x38] sm:$0xff] %vm12179_vm4, %v6342_v23  ;;  %vm7097_vm4 = vcmask 523648  }
 0x6af   : > { %v6436_v22 = vpop.permute.xlu1 %6435 }
 0x6b0   : > { %6453 = vst.msk [vmem:[#allocation8 + $0x30] sm:$0xff] %vm4164_vm5, %v6436_v22  ;;  %v6370_v27 = vpop.permute.xlu0 %6369  ;;  %v7344_v22 = vrot.slane %v7207_v15, 1 }
 0x6b1   : > { %6388 = vst.msk [vmem:[#allocation8 + $0x28] sm:$0xff] %vm12180_vm13, %v6370_v27  ;;  %vm7130_vm13 = vcmask 654848  }
 0x6b3   : > { %v6529_v60 = vpop.permute.xlu1 %6528 }
 0x6b4   : > { %6548 = vst.msk [vmem:[#allocation8 + $0x20] sm:$0xff] %vm4486_vm6, %v6529_v60  ;;  %v6374_v29 = vpop.permute.xlu0 %6373 }
 0x6b5   : > { %6390 = vst.msk [vmem:[#allocation8 + $0x38] sm:$0xff] %vm12181_vm10, %v6374_v29  ;;  %vm7195_vm10 = vcmask 786048  }
 0x6b7   : > { %v6533_v10 = vpop.permute.xlu1 %6532 }
 0x6b8   : > { %6550 = vst.msk [vmem:[#allocation8 + $0x30] sm:$0xff] %vm4486_vm6, %v6533_v10  ;;  %v6434_v62 = vpop.permute.xlu0 %6433  ;;  %v7052_v10 = vrot.slane %v7012_v33, 7  ;;  %v7216_v33 = vld [vmem:[#allocation9 + $0x88] sm:$0xff] }
 0x6b9   : > { %6452 = vst.msk [vmem:[#allocation8 + $0x28] sm:$0xff] %vm4164_vm5, %v6434_v62  ;;  %v11864_v62 = vld [vmem:[#allocation9 + $0xe0] sm:$0xff] }
 0x6bb   : > { %v6561_v50 = vpop.permute.xlu1 %6560 }
 0x6bc   : > { %6580 = vst.msk [vmem:[#allocation8 + $0x20] sm:$0xff] %vm4615_vm7, %v6561_v50  ;;  %v6438_v28 = vpop.permute.xlu0 %6437 }
 0x6bd   : > { %6454 = vst.msk [vmem:[#allocation8 + $0x38] sm:$0xff] %vm4164_vm5, %v6438_v28  ;;  %vm6935_vm5 = vcmask 261248   ;;  %v7228_v28 = vld [vmem:[#allocation9 + $0xe8] sm:$0xff] }
 0x6bf   : > { %v6565_v24 = vpop.permute.xlu1 %6564 }
 0x6c0   : > { %6582 = vst.msk [vmem:[#allocation8 + $0x30] sm:$0xff] %vm4615_vm7, %v6565_v24  ;;  %v6531_v21 = vpop.permute.xlu0 %6530  ;;  %v7364_v24 = vrot.slane %v11864_v62, 1 }
 0x6c1   : > { %6549 = vst.msk [vmem:[#allocation8 + $0x28] sm:$0xff] %vm4486_vm6, %v6531_v21 }
 0x6c3   : > { %v6625_v57 = vpop.permute.xlu1 %6624 }
 0x6c4   : > { %6644 = vst.msk [vmem:[#allocation8 + $0x20] sm:$0xff] %vm4840_vm8, %v6625_v57  ;;  %v6535_v61 = vpop.permute.xlu0 %6534 }
 0x6c5   : > { %6551 = vst.msk [vmem:[#allocation8 + $0x38] sm:$0xff] %vm4486_vm6, %v6535_v61  ;;  %vm7000_vm6 = vcmask 392448  }
 0x6c7   : > { %v6629_v32 = vpop.permute.xlu1 %6628 }
 0x6c8   : > { %6646 = vst.msk [vmem:[#allocation8 + $0x30] sm:$0xff] %vm4840_vm8, %v6629_v32  ;;  %v6563_v6 = vpop.permute.xlu0 %6562 }
 0x6c9   : > { %6581 = vst.msk [vmem:[#allocation8 + $0x28] sm:$0xff] %vm4615_vm7, %v6563_v6 }
 0x6cb   : > { %v6652_v46 = vld [vmem:[#allocation8 + $0x20] sm:$0xff]  ;;  %v6912_v45 = vpop.permute.xlu1 %6911 }
 0x6cc   : > { %v6567_v20 = vpop.permute.xlu0 %6566  ;;  %6936 = vst.msk [vmem:[#allocation10] sm:$0xff] %vm6935_vm5, %v6912_v45  ;;  %v8008_v45 = vld [vmem:[%s12126_s7 + $0x20] sm:$0xff]  }
 0x6cd   : > { %6583 = vst.msk [vmem:[#allocation8 + $0x38] sm:$0xff] %vm4615_vm7, %v6567_v20  ;;  %vm12182_vm7 = vmmov %vm12178_vm3 }
 0x6cf   : > { %v6654_v17 = vld [vmem:[#allocation8 + $0x30] sm:$0xff] }
 0x6d0   : > { %v6627_v31 = vpop.permute.xlu0 %6626 }
 0x6d1   : > { %6645 = vst.msk [vmem:[#allocation8 + $0x28] sm:$0xff] %vm4840_vm8, %v6627_v31  ;;  %v7365_v31 = vrot.slane %v7228_v28, 1 }
 0x6d4   : > { %v6631_v59 = vpop.permute.xlu0 %6630 }
 0x6d5   : > { %6647 = vst.msk [vmem:[#allocation8 + $0x38] sm:$0xff] %vm4840_vm8, %v6631_v59  ;;  %vm12183_vm8 = vmmov %vm12178_vm3  ;;  %v8059_v59 = vmov 0  }
 0x6d6   : > { %7498 = vmatprep.subr.bf16.mxu1 %v8059_v59 }
 0x6d8   : > { %v6653_v47 = vld [vmem:[#allocation8 + $0x28] sm:$0xff] }
 0x6d9   : > { %v6658_v25 = vpack.c.bf16 %v6653_v47, %v6652_v46  ;;  %v8005_v46 = vld [vmem:[%s12126_s7 + $0x38] sm:$0xff]   ;;  %v7366_v47 = vsel %vm12185_vm12, %v7364_v24, %v7365_v31 }
 0x6da   : > { %7499 = vmatpush1.bf16.msra.mxu1 %v8005_v46  ;;  %7382 = vst.msk [vmem:[#allocation10 + $0x78] sm:$0xff] %vm6791_vm11, %v7366_v47 }
 0x6db   : > { %7948 = vmatprep.mubr.msk.bf16.mxu0 %vm4964_vm9, %v6658_v25  ;;  %7500 = vmatprep.subr.bf16.mxu1 %v8059_v59  ;;  %v8006_v25 = vld [vmem:[%s12126_s7 + $0x30] sm:$0xff]  }
 0x6dc   : > { %v6655_v30 = vld [vmem:[#allocation8 + $0x38] sm:$0xff] }
 0x6dd   : > { %v6659_v4 = vpack.c.bf16 %v6655_v30, %v6654_v17  ;;  %v6977_v1 = vpop.permute.xlu1 %6976 }
 0x6de   : > { %7001 = vst.msk [vmem:[#allocation10] sm:$0xff] %vm7000_vm6, %v6977_v1  ;;  %7501 = vmatpush1.bf16.msra.mxu1 %v8006_v25 }
 0x6df   : > { %7949 = vmatmul.mubr.msk.bf16.gmra.mxu0 %vm4964_vm9, %v6659_v4  ;;  %vm12184_vm9 = vmmov %vm12178_vm3  ;;  %v6836_v4 = vld [vmem:[#allocation9 + $0x28] sm:$0xff]  ;;  %7502 = vmatprep.subr.bf16.mxu1 %v8059_v59 }
 0x6e0   : > { %v6956_v9 = vrot.slane %v6836_v4, 1  ;;  %vm12190_vm3 = vmmov %vm12189_vm0 }
 0x6e2   : > { %7503 = vmatpush1.bf16.msra.mxu1 %v8007_v2 }
 0x6e3   : > { %7504 = vmatprep.subr.bf16.mxu1 %v8059_v59 }
 0x6e6   : > { %7505 = vmatpush1.bf16.msra.mxu1 %v8008_v45 }
 0x6e7   : > { %7506 = vmatprep.subr.bf16.mxu1 %v8059_v59 }
 0x722   : > { %v7946_v53 = vpop.f32.mrf.mxu0 }
 0x723   : > { %v6761_v26 = vadd.f32 %v7946_v53, %v11841_v48  ;;  %v8009_v53 = vld [vmem:[%s12126_s7 + $0x18] sm:$0xff]  }
 0x724   : > { %v6752_v5 = vpop.f32.mrf.mxu0  ;;  %7507 = vmatpush1.bf16.msra.mxu1 %v8009_v53 }
 0x725   : > { %v6785_v3 = vmax.f32 %v6761_v26, 0.0  ;;  %v6753_v35 = vadd.f32 %v11841_v48, %v6752_v5  ;;  %7508 = vmatprep.subr.bf16.mxu1 %v8059_v59  ;;  %v8010_v26 = vld [vmem:[%s12126_s7 + $0x10] sm:$0xff]   ;;  %v8011_v5 = vld [vmem:[%s12126_s7 + $0x8] sm:$0xff]  }
 0x726   : > { %v7947_v56 = vpop.f32.mrf.mxu0 }
 0x727   : > { %6825 = vst.msk [vmem:[#allocation9 + $0x50] sm:$0xff] %vm6791_vm11, %v6785_v3  ;;  %v6783_v44 = vmax.f32 %v6753_v35, 0.0  ;;  %v6764_v39 = vadd.f32 %v7947_v56, %v11841_v48  ;;  %v8012_v3 = vld [vmem:[%s12126_s7] sm:$0xff]  }
 0x728   : > { %v6755_v14 = vpop.f32.mrf.mxu0  ;;  %7509 = vmatpush1.bf16.msra.mxu1 %v8010_v26  ;;  %v8013_v35 = vld [vmem:[%s12126_s7 + $0x40] sm:$0xff]  }
 0x729   : > { %6823 = vst.msk [vmem:[#allocation9 + $0x20] sm:$0xff] %vm6791_vm11, %v6783_v44  ;;  %v6786_v19 = vmax.f32 %v6764_v39, 0.0  ;;  %v6756_v16 = vadd.f32 %v11841_v48, %v6755_v14  ;;  %7510 = vmatprep.subr.bf16.mxu1 %v8059_v59 }
 0x72b   : > { %6826 = vst.msk [vmem:[#allocation9 + $0x68] sm:$0xff] %vm6791_vm11, %v6786_v19  ;;  %v6784_v42 = vmax.f32 %v6756_v16, 0.0 }
 0x72c   : > { %7511 = vmatpush1.bf16.msra.mxu1 %v8011_v5 }
 0x72d   : > { %6824 = vst.msk [vmem:[#allocation9 + $0x38] sm:$0xff] %vm6791_vm11, %v6784_v42  ;;  %7512 = vmatprep.subr.bf16.mxu1 %v8059_v59 }
 0x72e   : > { %v7209_v54 = vld [vmem:[#allocation9 + $0x50] sm:$0xff] }
 0x72f   : > { %7304 = vrot.lane.b32.xlu0 %v7209_v54, %s8058_s22  ;;  %v7249_v13 = vrot.slane %v7209_v54, 7  ;;  %v7346_v43 = vrot.slane %v7209_v54, 1  ;;  %7110 = vrot.lane.b32.xlu1 %v7209_v54, %s8055_s20 }
 0x730   : > { %v11853_v8 = vld [vmem:[#allocation9 + $0x20] sm:$0xff]  ;;  %7513 = vmatpush1.bf16.msra.mxu1 %v8012_v3 }
 0x731   : > { %v7348_v7 = vsel %vm12182_vm7, %v7346_v43, %v7347_v36  ;;  %v7050_v38 = vrot.slane %v11853_v8, 7  ;;  %v7057_v41 = vsel %vm634_vm2, %v7055_v12, %v7249_v13  ;;  %v7147_v55 = vrot.slane %v11853_v8, 1  ;;  %7528 = vmatprep.subr.bf16.mxu1 %v8059_v59  ;;  %v7222_v13 = vld [vmem:[#allocation9 + $0xb8] sm:$0xff]  ;;  %v7027_v43 = vld [vmem:[#allocation9 + $0xa8] sm:$0xff] }
 0x732   : > { %7376 = vst.msk [vmem:[#allocation10 + $0x18] sm:$0xff] %vm6791_vm11, %v7348_v7  ;;  %v7212_v23 = vld [vmem:[#allocation9 + $0x68] sm:$0xff]  ;;  %6906 = vst.msk [vmem:[#allocation10 + $0x30] sm:$0xff] %vm6791_vm11, %v7057_v41  ;;  %vm7293_vm7 = vcmask 917248  }
 0x733   : > { %6917 = vrot.lane.b32.xlu0 %v7209_v54, %s8047_s26  ;;  %7106 = vrot.lane.b32.xlu1 %v11853_v8, %s8055_s20  ;;  %v7252_v27 = vrot.slane %v7212_v23, 7  ;;  %v7349_v60 = vrot.slane %v7212_v23, 1  ;;  %v7051_v29 = vsel %vm634_vm2, %v7049_v49, %v7050_v38  ;;  %v6957_v1 = vsel %vm12186_vm1, %v7147_v55, %v6956_v9  ;;  %v7021_v38 = vld [vmem:[#allocation9 + $0x78] sm:$0xff] }
 0x734   : > { %v7206_v50 = vld [vmem:[#allocation9 + $0x38] sm:$0xff]  ;;  %6904 = vst.msk [vmem:[#allocation10 + $0x10] sm:$0xff] %vm6791_vm11, %v7051_v29  ;;  %7529 = vmatpush2.bf16.msra.mxu1 %v8013_v35 }
 0x735   : > { %v7343_v21 = vrot.slane %v7206_v50, 1  ;;  %v11869_v57 = vsel %vm12183_vm8, %v7349_v60, %v7350_v40  ;;  %v7053_v61 = vrot.slane %v7206_v50, 7  ;;  %v7060_v32 = vsel %vm634_vm2, %v7058_v11, %v7252_v27 }
 0x736   : > { %7377 = vst.msk [vmem:[#allocation10 + $0x28] sm:$0xff] %vm6791_vm11, %v11869_v57  ;;  %6907 = vst.msk [vmem:[#allocation10 + $0x40] sm:$0xff] %vm6791_vm11, %v7060_v32  ;;  %v7359_v40 = vrot.slane %v7222_v13, 1  ;;  %v7353_v60 = vrot.slane %v7216_v33, 1  ;;  %vm7326_vm8 = vcmask 1048448   ;;  %v7267_v33 = vrot.slane %v11864_v62, 7 }
 0x737   : > { %7077 = vrot.lane.b32.xlu1 %v7057_v41, %s8053_s23  ;;  %6913 = vrot.lane.b32.xlu0 %v11853_v8, %s8047_s26  ;;  %v11879_v6 = vsel %vm12184_vm9, %v7343_v21, %v7344_v22  ;;  %v7054_v20 = vsel %vm634_vm2, %v7052_v10, %v7053_v61  ;;  %v7219_v10 = vld [vmem:[#allocation9 + $0xa0] sm:$0xff]  ;;  %v7217_v21 = vld [vmem:[#allocation9 + $0x90] sm:$0xff] }
 0x738   : > { %7375 = vst.msk [vmem:[#allocation10 + $0x8] sm:$0xff] %vm6791_vm11, %v11879_v6  ;;  %6905 = vst.msk [vmem:[#allocation10 + $0x20] sm:$0xff] %vm6791_vm11, %v7054_v20 }
 0x739   : > { %v7386_v17 = vld [vmem:[#allocation10 + $0x18] sm:$0xff] }
 0x73b   : > { %7175 = vrot.lane.b32.xlu1 %v7348_v7, %s8060_s29  ;;  %7271 = vrot.lane.b32.xlu0 %v7057_v41, %s8061_s30 }
 0x73f   : > { %7306 = vrot.lane.b32.xlu1 %v7212_v23, %s8058_s22  ;;  %6982 = vrot.lane.b32.xlu0 %v7348_v7, %s8051_s15  ;;  %v7384_v30 = vld [vmem:[#allocation10 + $0x8] sm:$0xff]  ;;  %v7067_v7 = vrot.slane %v7027_v43, 7 }
 0x740   : > { %v7400_v18 = vpack.c.bf16 %v7386_v17, %v7384_v30  ;;  %v7257_v17 = vrot.slane %v7217_v21, 7 }
 0x742   : > { %7794 = vmatprep.mubr.msk.bf16.mxu1 %vm6791_vm11, %v7400_v18 }
 0x743   : > { %6919 = vrot.lane.b32.xlu1 %v7212_v23, %s8047_s26  ;;  %7112 = vrot.lane.b32.xlu0 %v7212_v23, %s8055_s20  ;;  %v7225_v23 = vld [vmem:[#allocation9 + $0xd0] sm:$0xff] }
 0x747   : > { %7073 = vrot.lane.b32.xlu1 %v7051_v29, %s8053_s23  ;;  %6978 = vrot.lane.b32.xlu0 %v6957_v1, %s8051_s15  ;;  %v7061_v29 = vrot.slane %v7021_v38, 7 }
 0x74b   : > { %7171 = vrot.lane.b32.xlu1 %v6957_v1, %s8060_s29  ;;  %7108 = vrot.lane.b32.xlu0 %v7206_v50, %s8055_s20 }
 0x74f   : > { %7302 = vrot.lane.b32.xlu1 %v7206_v50, %s8058_s22  ;;  %7079 = vrot.lane.b32.xlu0 %v7060_v32, %s8053_s23 }
 0x753   : > { %6915 = vrot.lane.b32.xlu1 %v7206_v50, %s8047_s26  ;;  %7177 = vrot.lane.b32.xlu0 %v11869_v57, %s8060_s29 }
 0x757   : > { %7273 = vrot.lane.b32.xlu1 %v7060_v32, %s8061_s30  ;;  %7075 = vrot.lane.b32.xlu0 %v7054_v20, %s8053_s23  ;;  %v7362_v32 = vrot.slane %v7225_v23, 1 }
 0x75b   : > { %6984 = vrot.lane.b32.xlu1 %v11869_v57, %s8051_s15  ;;  %7173 = vrot.lane.b32.xlu0 %v11879_v6, %s8060_s29 }
 0x75f   : > { %7269 = vrot.lane.b32.xlu1 %v7054_v20, %s8061_s30 }
 0x763   : > { %6980 = vrot.lane.b32.xlu1 %v11879_v6, %s8051_s15  ;;  %v7356_v6 = vrot.slane %v7219_v10, 1 }
 0x79f   : > { %v7950_v56 = vpop.f32.mrf.mxu0 }
 0x7a0   : > { %v6777_v44 = vadd.f32 %v7950_v56, %v11841_v48 }
 0x7a1   : > { %v11942_v39 = vpop.permute.xlu1 %7110  ;;  %v11944_v14 = vpop.permute.xlu0 %7304 }
 0x7a2   : > { %v6789_v19 = vmax.f32 %v6777_v44, 0.0  ;;  %v6768_v16 = vpop.f32.mrf.mxu0 }
 0x7a3   : > { %v6769_v63 = vadd.f32 %v11841_v48, %v6768_v16 }
 0x7a4   : > { %6829 = vst.msk [vmem:[#allocation9 + $0xb0] sm:$0xff] %vm6791_vm11, %v6789_v19  ;;  %v7951_v58 = vpop.f32.mrf.mxu0 }
 0x7a5   : > { %v11948_v42 = vpop.permute.xlu1 %7106  ;;  %v6787_v34 = vmax.f32 %v6769_v63, 0.0  ;;  %v6918_v36 = vpop.permute.xlu0 %6917  ;;  %v6780_v12 = vadd.f32 %v7951_v58, %v11841_v48  ;;  %v7223_v58 = vld [vmem:[#allocation9 + $0xc0] sm:$0xff] }
 0x7a6   : > { %6939 = vst.msk [vmem:[#allocation10 + $0x30] sm:$0xff] %vm6935_vm5, %v6918_v36  ;;  %v6771_v52 = vpop.f32.mrf.mxu0 }
 0x7a7   : > { %6827 = vst.msk [vmem:[#allocation9 + $0x80] sm:$0xff] %vm6791_vm11, %v6787_v34  ;;  %v6790_v54 = vmax.f32 %v6780_v12, 0.0  ;;  %v6772_v51 = vadd.f32 %v11841_v48, %v6771_v52  ;;  %v7263_v12 = vrot.slane %v7223_v58, 7 }
 0x7a9   : > { %6830 = vst.msk [vmem:[#allocation9 + $0xc8] sm:$0xff] %vm6791_vm11, %v6790_v54  ;;  %v11955_v15 = vpop.permute.xlu1 %7077  ;;  %v6788_v49 = vmax.f32 %v6772_v51, 0.0  ;;  %v6914_v8 = vpop.permute.xlu0 %6913 }
 0x7aa   : > { %6937 = vst.msk [vmem:[#allocation10 + $0x10] sm:$0xff] %vm6935_vm5, %v6914_v8  ;;  %v7388_v8 = vld [vmem:[#allocation10 + $0x28] sm:$0xff] }
 0x7ab   : > { %6828 = vst.msk [vmem:[#allocation9 + $0x98] sm:$0xff] %vm6791_vm11, %v6788_v49  ;;  %v7221_v41 = vld [vmem:[#allocation9 + $0xb0] sm:$0xff]  ;;  %v7226_v49 = vld [vmem:[#allocation9 + $0xd8] sm:$0xff] }
 0x7ac   : > { %7312 = vrot.lane.b32.xlu0 %v7221_v41, %s8058_s22  ;;  %v7261_v48 = vrot.slane %v7221_v41, 7  ;;  %v7358_v11 = vrot.slane %v7221_v41, 1  ;;  %7118 = vrot.lane.b32.xlu1 %v7221_v41, %s8055_s20 }
 0x7ad   : > { %v11961_v22 = vpop.permute.xlu1 %7175  ;;  %v11963_v27 = vpop.permute.xlu0 %7271 }
 0x7ae   : > { %v7360_v50 = vsel %vm12187_vm14, %v7358_v11, %v7359_v40  ;;  %v7022_v28 = vld [vmem:[#allocation9 + $0x80] sm:$0xff]  ;;  %v7069_v24 = vsel %vm634_vm2, %v7067_v7, %v7261_v48  ;;  %v7266_v40 = vrot.slane %v7226_v49, 7  ;;  %v7595_v49 = vld [vmem:[%s12128_s9 + $0x8] sm:$0xff] }
 0x7af   : > { %7380 = vst.msk [vmem:[#allocation10 + $0x58] sm:$0xff] %vm6791_vm11, %v7360_v50  ;;  %v7062_v57 = vrot.slane %v7022_v28, 7  ;;  %v7159_v61 = vrot.slane %v7022_v28, 1  ;;  %6910 = vst.msk [vmem:[#allocation10 + $0x70] sm:$0xff] %vm6791_vm11, %v7069_v24  ;;  %7953 = vmatpush3.msra.mxu0 %v7595_v49 }
 0x7b0   : > { %6925 = vrot.lane.b32.xlu0 %v7221_v41, %s8047_s26  ;;  %7114 = vrot.lane.b32.xlu1 %v7022_v28, %s8055_s20  ;;  %v11971_v20 = vld [vmem:[#allocation9 + $0xc8] sm:$0xff]  ;;  %v7268_v7 = vsel %vm634_vm2, %v7266_v40, %v7267_v33 }
 0x7b1   : > { %v11973_v31 = vpop.permute.xlu1 %7306  ;;  %v6983_v59 = vpop.permute.xlu0 %6982  ;;  %v7354_v46 = vsel %vm12188_vm15, %v7159_v61, %v7353_v60  ;;  %v7063_v47 = vsel %vm634_vm2, %v7061_v29, %v7062_v57  ;;  %v7168_v25 = vrot.slane %v11971_v20, 1  ;;  %v7071_v36 = vrot.slane %v11971_v20, 7  ;;  %7954 = vmatprep.subr.mxu0 %v8043_v0 }
 0x7b2   : > { %7004 = vst.msk [vmem:[#allocation10 + $0x30] sm:$0xff] %vm7000_vm6, %v6983_v59  ;;  %v7218_v30 = vld [vmem:[#allocation9 + $0x98] sm:$0xff] }
 0x7b3   : > { %7378 = vst.msk [vmem:[#allocation10 + $0x38] sm:$0xff] %vm6791_vm11, %v7354_v46  ;;  %6908 = vst.msk [vmem:[#allocation10 + $0x50] sm:$0xff] %vm6791_vm11, %v7063_v47  ;;  %v7258_v4 = vrot.slane %v7218_v30, 7  ;;  %v7355_v18 = vrot.slane %v7218_v30, 1  ;;  %v11982_v2 = vsel %vm12189_vm0, %v7168_v25, %v7362_v32  ;;  %v7265_v54 = vsel %vm634_vm2, %v7263_v12, %v7071_v36 }
 0x7b4   : > { %7308 = vrot.lane.b32.xlu0 %v7022_v28, %s8058_s22  ;;  %7085 = vrot.lane.b32.xlu1 %v7069_v24, %s8053_s23  ;;  %7381 = vst.msk [vmem:[#allocation10 + $0x68] sm:$0xff] %vm6791_vm11, %v11982_v2 }
 0x7b5   : > { %v6920_v55 = vpop.permute.xlu1 %6919  ;;  %v7113_v9 = vpop.permute.xlu0 %7112  ;;  %v11989_v45 = vsel %vm12190_vm3, %v7355_v18, %v7356_v6  ;;  %v7259_v1 = vsel %vm634_vm2, %v7257_v17, %v7258_v4  ;;  %vm8062_vm2 = vmmov 0  }
 0x7b6   : > { %6940 = vst.msk [vmem:[#allocation10 + $0x40] sm:$0xff] %vm6935_vm5, %v6920_v55  ;;  %v7394_v25 = vld [vmem:[#allocation10 + $0x58] sm:$0xff]  ;;  %7956 = vmatprep.mubr.msk.f32.mxu0 %vm8062_vm2, %v8043_v0 }
 0x7b7   : > { %7379 = vst.msk [vmem:[#allocation10 + $0x48] sm:$0xff] %vm6791_vm11, %v11989_v45  ;;  %6909 = vst.msk [vmem:[#allocation10 + $0x60] sm:$0xff] %vm6791_vm11, %v7259_v1 }
 0x7b8   : > { %7183 = vrot.lane.b32.xlu1 %v7360_v50, %s8060_s29  ;;  %6921 = vrot.lane.b32.xlu0 %v7022_v28, %s8047_s26 }
 0x7b9   : > { %v7074_v53 = vpop.permute.xlu1 %7073  ;;  %v6979_v26 = vpop.permute.xlu0 %6978 }
 0x7ba   : > { %7098 = vst.msk [vmem:[#allocation10] sm:$0xff] %vm7097_vm4, %v7074_v53  ;;  %v7398_v53 = vld [vmem:[#allocation10 + $0x78] sm:$0xff] }
 0x7bb   : > { %7002 = vst.msk [vmem:[#allocation10 + $0x10] sm:$0xff] %vm7000_vm6, %v6979_v26 }
 0x7bc   : > { %7131 = vst.msk [vmem:[#allocation10] sm:$0xff] %vm7130_vm13, %v11948_v42  ;;  %7081 = vrot.lane.b32.xlu1 %v7063_v47, %s8053_s23  ;;  %7279 = vrot.lane.b32.xlu0 %v7069_v24, %s8061_s30 }
 0x7bd   : > { %v7172_v5 = vpop.permute.xlu1 %7171  ;;  %v7109_v3 = vpop.permute.xlu0 %7108 }
 0x7be   : > { %7196 = vst.msk [vmem:[#allocation10] sm:$0xff] %vm7195_vm10, %v7172_v5 }
 0x7c0   : > { %7179 = vrot.lane.b32.xlu1 %v7354_v46, %s8060_s29  ;;  %6990 = vrot.lane.b32.xlu0 %v7360_v50, %s8051_s15 }
 0x7c1   : > { %v7303_v35 = vpop.permute.xlu1 %7302  ;;  %v7080_v56 = vpop.permute.xlu0 %7079 }
 0x7c2   : > { %7101 = vst.msk [vmem:[#allocation10 + $0x30] sm:$0xff] %vm7097_vm4, %v7080_v56 }
 0x7c3   : > { %7134 = vst.msk [vmem:[#allocation10 + $0x30] sm:$0xff] %vm7130_vm13, %v7113_v9 }
 0x7c4   : > { %7310 = vrot.lane.b32.xlu1 %v7218_v30, %s8058_s22  ;;  %7120 = vrot.lane.b32.xlu0 %v11971_v20, %s8055_s20 }
 0x7c5   : > { %v6916_v44 = vpop.permute.xlu1 %6915  ;;  %v7178_v19 = vpop.permute.xlu0 %7177 }
 0x7c6   : > { %6938 = vst.msk [vmem:[#allocation10 + $0x20] sm:$0xff] %vm6935_vm5, %v6916_v44 }
 0x7c7   : > { %7199 = vst.msk [vmem:[#allocation10 + $0x30] sm:$0xff] %vm7195_vm10, %v7178_v19 }
 0x7c8   : > { %6923 = vrot.lane.b32.xlu1 %v7218_v30, %s8047_s26  ;;  %7275 = vrot.lane.b32.xlu0 %v7063_v47, %s8061_s30 }
 0x7c9   : > { %v7274_v16 = vpop.permute.xlu1 %7273  ;;  %v7076_v63 = vpop.permute.xlu0 %7075 }
 0x7ca   : > { %7099 = vst.msk [vmem:[#allocation10 + $0x10] sm:$0xff] %vm7097_vm4, %v7076_v63  ;;  %v7784_v63 = vld [vmem:[%s12127_s8] ss:$0 sm:$0xff] }
 0x7cb   : > { %7132 = vst.msk [vmem:[#allocation10 + $0x10] sm:$0xff] %vm7130_vm13, %v7109_v3 }
 0x7cc   : > { %7277 = vrot.lane.b32.xlu1 %v7259_v1, %s8061_s30  ;;  %6986 = vrot.lane.b32.xlu0 %v7354_v46, %s8051_s15 }
 0x7cd   : > { %v6985_v42 = vpop.permute.xlu1 %6984  ;;  %v7174_v34 = vpop.permute.xlu0 %7173 }
 0x7ce   : > { %7005 = vst.msk [vmem:[#allocation10 + $0x40] sm:$0xff] %vm7000_vm6, %v6985_v42 }
 0x7cf   : > { %7197 = vst.msk [vmem:[#allocation10 + $0x10] sm:$0xff] %vm7195_vm10, %v7174_v34 }
 0x7d0   : > { %7295 = vst.msk [vmem:[#allocation10 + $0x10] sm:$0xff] %vm7293_vm7, %v11963_v27  ;;  %6988 = vrot.lane.b32.xlu1 %v11989_v45, %s8051_s15  ;;  %7116 = vrot.lane.b32.xlu0 %v7218_v30, %s8055_s20 }
 0x7d1   : > { %7328 = vst.msk [vmem:[#allocation10 + $0x10] sm:$0xff] %vm7326_vm8, %v11944_v14  ;;  %v7270_v52 = vpop.permute.xlu1 %7269  ;;  %v7390_v14 = vld [vmem:[#allocation10 + $0x38] sm:$0xff] }
 0x7d2   : > { %7294 = vst.msk [vmem:[#allocation10] sm:$0xff] %vm7293_vm7, %v7270_v52 }
 0x7d3   : > { %7327 = vst.msk [vmem:[#allocation10] sm:$0xff] %vm7326_vm8, %v7303_v35 }
 0x7d4   : > { %7281 = vrot.lane.b32.xlu1 %v7265_v54, %s8061_s30  ;;  %7087 = vrot.lane.b32.xlu0 %v7265_v54, %s8053_s23 }
 0x7d5   : > { %v6981_v51 = vpop.permute.xlu1 %6980 }
 0x7d6   : > { %7003 = vst.msk [vmem:[#allocation10 + $0x20] sm:$0xff] %vm7000_vm6, %v6981_v51 }
 0x7d7   : > { %7100 = vst.msk [vmem:[#allocation10 + $0x20] sm:$0xff] %vm7097_vm4, %v11955_v15 }
 0x7d8   : > { %7133 = vst.msk [vmem:[#allocation10 + $0x20] sm:$0xff] %vm7130_vm13, %v11942_v39  ;;  %7314 = vrot.lane.b32.xlu1 %v11971_v20, %s8058_s22  ;;  %7083 = vrot.lane.b32.xlu0 %v7259_v1, %s8053_s23  ;;  %v7385_v43 = vld [vmem:[#allocation10 + $0x10] sm:$0xff]  ;;  %v7402_v39 = vpack.c.bf16 %v7390_v14, %v7388_v8  ;;  %v7396_v1 = vld [vmem:[#allocation10 + $0x68] sm:$0xff] }
 0x7d9   : > { %7198 = vst.msk [vmem:[#allocation10 + $0x20] sm:$0xff] %vm7195_vm10, %v11961_v22  ;;  %v7406_v56 = vpack.c.bf16 %v7398_v53, %v7396_v1 }
 0x7da   : > { %7296 = vst.msk [vmem:[#allocation10 + $0x20] sm:$0xff] %vm7293_vm7, %v7274_v16  ;;  %v7383_v13 = vld [vmem:[#allocation10] sm:$0xff] }
 0x7db   : > { %7329 = vst.msk [vmem:[#allocation10 + $0x20] sm:$0xff] %vm7326_vm8, %v11973_v31  ;;  %v7399_v15 = vpack.c.bf16 %v7385_v43, %v7383_v13  ;;  %v7392_v31 = vld [vmem:[#allocation10 + $0x48] sm:$0xff] }
 0x7dc   : > { %7181 = vrot.lane.b32.xlu0 %v11989_v45, %s8060_s29  ;;  %v7404_v17 = vpack.c.bf16 %v7394_v25, %v7392_v31 }
 0x7dd   : > { %7531 = vmatmul.mubr.bf16.vlgmr.msra.gmra.mxu1 %v7399_v15  ;;  %v7594_v15 = vld [vmem:[%s12128_s9] sm:$0xff] }
 0x7de   : > { %7795 = vmatprep.mubr.msk.bf16.mxu1 %vm6791_vm11, %v7402_v39  ;;  %7955 = vmatpush3.msra.mxu0 %v7594_v15 }
 0x7e0   : > { %7185 = vrot.lane.b32.xlu0 %v11982_v2, %s8060_s29 }
 0x7e2   : > { %v7387_v59 = vld [vmem:[#allocation10 + $0x20] sm:$0xff] }
 0x7e4   : > { %7283 = vrot.lane.b32.xlu0 %v7268_v7, %s8061_s30 }
 0x7e8   : > { %7316 = vrot.lane.b32.xlu0 %v11864_v62, %s8058_s22 }
 0x81e   : > { %v7119_v38 = vpop.permute.xlu1 %7118  ;;  %v7313_v41 = vpop.permute.xlu0 %7312 }
 0x822   : > { %v7115_v48 = vpop.permute.xlu1 %7114  ;;  %v6926_v11 = vpop.permute.xlu0 %6925 }
 0x823   : > { %6943 = vst.msk [vmem:[#allocation10 + $0x70] sm:$0xff] %vm6935_vm5, %v6926_v11 }
 0x826   : > { %v7086_v23 = vpop.permute.xlu1 %7085  ;;  %v7309_v22 = vpop.permute.xlu0 %7308 }
 0x82a   : > { %v7184_v27 = vpop.permute.xlu1 %7183  ;;  %v6922_v60 = vpop.permute.xlu0 %6921 }
 0x82b   : > { %6941 = vst.msk [vmem:[#allocation10 + $0x50] sm:$0xff] %vm6935_vm5, %v6922_v60 }
 0x82e   : > { %v7082_v29 = vpop.permute.xlu1 %7081  ;;  %v7280_v10 = vpop.permute.xlu0 %7279 }
 0x82f   : > { %7102 = vst.msk [vmem:[#allocation10 + $0x40] sm:$0xff] %vm7097_vm4, %v7082_v29 }
 0x830   : > { %7135 = vst.msk [vmem:[#allocation10 + $0x40] sm:$0xff] %vm7130_vm13, %v7115_v48 }
 0x832   : > { %v7180_v50 = vpop.permute.xlu1 %7179  ;;  %v6991_v62 = vpop.permute.xlu0 %6990 }
 0x833   : > { %7200 = vst.msk [vmem:[#allocation10 + $0x40] sm:$0xff] %vm7195_vm10, %v7180_v50 }
 0x834   : > { %7008 = vst.msk [vmem:[#allocation10 + $0x70] sm:$0xff] %vm7000_vm6, %v6991_v62 }
 0x836   : > { %v7311_v28 = vpop.permute.xlu1 %7310  ;;  %v7121_v24 = vpop.permute.xlu0 %7120 }
 0x83a   : > { %v6924_v21 = vpop.permute.xlu1 %6923  ;;  %v7276_v57 = vpop.permute.xlu0 %7275 }
 0x83b   : > { %6942 = vst.msk [vmem:[#allocation10 + $0x60] sm:$0xff] %vm6935_vm5, %v6924_v21 }
 0x83c   : > { %7297 = vst.msk [vmem:[#allocation10 + $0x30] sm:$0xff] %vm7293_vm7, %v7276_v57 }
 0x83d   : > { %7330 = vst.msk [vmem:[#allocation10 + $0x30] sm:$0xff] %vm7326_vm8, %v7309_v22 }
 0x83e   : > { %v7278_v61 = vpop.permute.xlu1 %7277  ;;  %v6987_v32 = vpop.permute.xlu0 %6986 }
 0x83f   : > { %7298 = vst.msk [vmem:[#allocation10 + $0x40] sm:$0xff] %vm7293_vm7, %v7278_v61 }
 0x840   : > { %7006 = vst.msk [vmem:[#allocation10 + $0x50] sm:$0xff] %vm7000_vm6, %v6987_v32 }
 0x841   : > { %7331 = vst.msk [vmem:[#allocation10 + $0x40] sm:$0xff] %vm7326_vm8, %v7311_v28 }
 0x842   : > { %v6989_v6 = vpop.permute.xlu1 %6988  ;;  %v7117_v20 = vpop.permute.xlu0 %7116 }
 0x843   : > { %7007 = vst.msk [vmem:[#allocation10 + $0x60] sm:$0xff] %vm7000_vm6, %v6989_v6  ;;  %vm7676_vm6 = vcmask 90112  }
 0x844   : > { %v7389_v46 = vld [vmem:[#allocation10 + $0x30] sm:$0xff]  ;;  %7104 = vst.msk [vmem:[#allocation10 + $0x60] sm:$0xff] %vm7097_vm4, %v7086_v23 }
 0x845   : > { %v7401_v47 = vpack.c.bf16 %v7389_v46, %v7387_v59  ;;  %7137 = vst.msk [vmem:[#allocation10 + $0x60] sm:$0xff] %vm7130_vm13, %v7119_v38 }
 0x846   : > { %7202 = vst.msk [vmem:[#allocation10 + $0x60] sm:$0xff] %vm7195_vm10, %v7184_v27  ;;  %v7282_v30 = vpop.permute.xlu1 %7281  ;;  %v7088_v4 = vpop.permute.xlu0 %7087 }
 0x847   : > { %7539 = vmatmul.mubr.bf16.gmra.mxu1 %v7401_v47  ;;  %7300 = vst.msk [vmem:[#allocation10 + $0x60] sm:$0xff] %vm7293_vm7, %v7282_v30 }
 0x848   : > { %7105 = vst.msk [vmem:[#allocation10 + $0x70] sm:$0xff] %vm7097_vm4, %v7088_v4  ;;  %7796 = vmatprep.mubr.msk.bf16.mxu1 %vm6791_vm11, %v7404_v17  ;;  %v7391_v26 = vld [vmem:[#allocation10 + $0x40] sm:$0xff] }
 0x849   : > { %7138 = vst.msk [vmem:[#allocation10 + $0x70] sm:$0xff] %vm7130_vm13, %v7121_v24 }
 0x84a   : > { %v7315_v18 = vpop.permute.xlu1 %7314  ;;  %v7084_v2 = vpop.permute.xlu0 %7083 }
 0x84b   : > { %7333 = vst.msk [vmem:[#allocation10 + $0x60] sm:$0xff] %vm7326_vm8, %v7315_v18 }
 0x84c   : > { %7103 = vst.msk [vmem:[#allocation10 + $0x50] sm:$0xff] %vm7097_vm4, %v7084_v2 }
 0x84d   : > { %7136 = vst.msk [vmem:[#allocation10 + $0x50] sm:$0xff] %vm7130_vm13, %v7117_v20 }
 0x84e   : > { %v7182_v55 = vpop.permute.xlu0 %7181 }
 0x84f   : > { %7201 = vst.msk [vmem:[#allocation10 + $0x50] sm:$0xff] %vm7195_vm10, %v7182_v55 }
 0x850   : > { %7299 = vst.msk [vmem:[#allocation10 + $0x50] sm:$0xff] %vm7293_vm7, %v7280_v10 }
 0x851   : > { %7332 = vst.msk [vmem:[#allocation10 + $0x50] sm:$0xff] %vm7326_vm8, %v7313_v41 }
 0x852   : > { %v7186_v9 = vpop.permute.xlu0 %7185  ;;  %v7395_v44 = vld [vmem:[#allocation10 + $0x60] sm:$0xff] }
 0x853   : > { %7203 = vst.msk [vmem:[#allocation10 + $0x70] sm:$0xff] %vm7195_vm10, %v7186_v9 }
 0x856   : > { %v7284_v45 = vpop.permute.xlu0 %7283 }
 0x857   : > { %7301 = vst.msk [vmem:[#allocation10 + $0x70] sm:$0xff] %vm7293_vm7, %v7284_v45 }
 0x858   : > { %v7393_v5 = vld [vmem:[#allocation10 + $0x50] sm:$0xff] }
 0x859   : > { %v7403_v3 = vpack.c.bf16 %v7393_v5, %v7391_v26 }
 0x85a   : > { %v7317_v35 = vpop.permute.xlu0 %7316 }
 0x85b   : > { %7334 = vst.msk [vmem:[#allocation10 + $0x70] sm:$0xff] %vm7326_vm8, %v7317_v35  ;;  %7547 = vmatmul.mubr.bf16.gmra.mxu1 %v7403_v3  ;;  %v7596_v3 = vld [vmem:[%s12129_s10] sm:$0x1] }
 0x85c   : > { %7797 = vmatprep.mubr.msk.bf16.mxu1 %vm6791_vm11, %v7406_v56 }
 0x862   : > { %v7397_v19 = vld [vmem:[#allocation10 + $0x70] sm:$0xff] }
 0x863   : > { %v7405_v16 = vpack.c.bf16 %v7397_v19, %v7395_v44 }
 0x865   : > { %7555 = vmatmul.mubr.bf16.gmra.mxu1 %v7405_v16  ;;  %v7671_v16 = vand.u32 127, %v5430_v37 }
 0x867   : > { %vm7672_vm5 = vcmp.lt.s32.totalorder %v7671_v16, 6 }
 0x89d   : > { %v7532_v58 = vpop.f32.mrf.mxu1 }
 0x89e   : > { %v7533_v42 = vadd.f32 %v7784_v63, %v7532_v58 }
 0x89f   : > { %v7534_v34 = vpop.f32.mrf.mxu1 }
 0x8a0   : > { %v7563_v12 = vmax.f32 %v7533_v42, 0.0 }
 0x8a1   : > { %v7535_v36 = vpop.f32.mrf.mxu1 }
 0x8a2   : > { %v7536_v52 = vadd.f32 %v7784_v63, %v7535_v36  ;;  %v7571_v14 = vsel %vm6791_vm11, %v7563_v12, 0.0 }
 0x8a3   : > { %v7537_v54 = vpop.f32.mrf.mxu1 }
 0x8a4   : > { %v7564_v51 = vmax.f32 %v7536_v52, 0.0 }
 0x8a6   : > { %v7572_v13 = vsel %vm6791_vm11, %v7564_v51, 0.0 }
 0x8a7   : > { %v7573_v43 = vadd.f32 %v7572_v13, %v7571_v14 }
 0x907   : > { %v7540_v8 = vpop.f32.mrf.mxu1 }
 0x908   : > { %v7541_v7 = vadd.f32 %v7784_v63, %v7540_v8 }
 0x909   : > { %v7542_v39 = vpop.f32.mrf.mxu1 }
 0x90a   : > { %v7565_v11 = vmax.f32 %v7541_v7, 0.0 }
 0x90b   : > { %v7543_v40 = vpop.f32.mrf.mxu1 }
 0x90c   : > { %v7544_v41 = vadd.f32 %v7784_v63, %v7543_v40  ;;  %v7574_v10 = vsel %vm6791_vm11, %v7565_v11, 0.0 }
 0x90d   : > { %v7545_v33 = vpop.f32.mrf.mxu1  ;;  %v7575_v28 = vadd.f32 %v7574_v10, %v7573_v43 }
 0x90e   : > { %v7566_v27 = vmax.f32 %v7544_v41, 0.0 }
 0x910   : > { %v7576_v0 = vsel %vm6791_vm11, %v7566_v27, 0.0 }
 0x911   : > { %v7577_v61 = vadd.f32 %v7576_v0, %v7575_v28 }
 0x91b   : > { %v7548_v38 = vpop.f32.mrf.mxu1 }
 0x91c   : > { %v7549_v23 = vadd.f32 %v7784_v63, %v7548_v38 }
 0x91d   : > { %v7550_v48 = vpop.f32.mrf.mxu1 }
 0x91e   : > { %v7567_v50 = vmax.f32 %v7549_v23, 0.0 }
 0x91f   : > { %v7551_v22 = vpop.f32.mrf.mxu1 }
 0x920   : > { %v7552_v60 = vadd.f32 %v7784_v63, %v7551_v22  ;;  %v7578_v21 = vsel %vm6791_vm11, %v7567_v50, 0.0 }
 0x921   : > { %v7553_v29 = vpop.f32.mrf.mxu1  ;;  %v7579_v31 = vadd.f32 %v7578_v21, %v7577_v61 }
 0x922   : > { %v7568_v62 = vmax.f32 %v7552_v60, 0.0 }
 0x924   : > { %v7580_v6 = vsel %vm6791_vm11, %v7568_v62, 0.0 }
 0x925   : > { %v7556_v24 = vpop.f32.mrf.mxu1  ;;  %v7581_v25 = vadd.f32 %v7580_v6, %v7579_v31 }
 0x926   : > { %v7557_v57 = vadd.f32 %v7784_v63, %v7556_v24 }
 0x927   : > { %v7558_v32 = vpop.f32.mrf.mxu1 }
 0x928   : > { %v7569_v20 = vmax.f32 %v7557_v57, 0.0 }
 0x929   : > { %v7559_v59 = vpop.f32.mrf.mxu1 }
 0x92a   : > { %v7582_v46 = vsel %vm6791_vm11, %v7569_v20, 0.0  ;;  %v7560_v47 = vadd.f32 %v7784_v63, %v7559_v59 }
 0x92b   : > { %v7561_v17 = vpop.f32.mrf.mxu1  ;;  %v7583_v4 = vadd.f32 %v7582_v46, %v7581_v25 }
 0x92c   : > { %v7570_v30 = vmax.f32 %v7560_v47, 0.0 }
 0x92e   : > { %v7584_v18 = vsel %vm6791_vm11, %v7570_v30, 0.0 }
 0x92f   : > { %v7585_v2 = vadd.f32 %v7584_v18, %v7583_v4 }
 0x931   : > { %v7586_v55 = vrot.slane %v7585_v2, 4 }
 0x933   : > { %v7587_v9 = vadd.f32 %v7586_v55, %v7585_v2 }
 0x935   : > { %v7588_v45 = vrot.slane %v7587_v9, 2 }
 0x937   : > { %v7589_v1 = vadd.f32 %v7588_v45, %v7587_v9 }
 0x939   : > { %v7590_v53 = vrot.slane %v7589_v1, 1 }
 0x93b   : > { %v7591_v26 = vadd.f32 %v7590_v53, %v7589_v1 }
 0x93d   : > { %v7593_v5 = vmul.f32 0.015625, %v7591_v26 }
 0x93f   : > { %7957 = vmatmul.mubr.msk.f32.vlgmr.msra.gmra.mxu0 %vm6791_vm11, %v7593_v5 }
 0x9ff   : > { %v7666_v35 = vpop.f32.mrf.mxu0 }
 0xa00   : > { %v7667_v56 = vadd.f32 %v7666_v35, %v7596_v3 }
 0xa01   : > { %v7958_v44 = vpop.f32.mrf.mxu0 }
 0xa02   : > { %v7673_v19 = vmul.f32 1.442695, %v7667_v56 }
 0xa04   : > { %8030 = vpow2.f32 %v7673_v19 }
 0xa11   : > { %v8031_v63 = vpop.eup %8030 }
 0xa12   : > { %v7675_v58 = vsel %vm7672_vm5, %v7667_v56, %v8031_v63 }
 0xa13   : > { %7677 = vst.msk [vmem:[%s382_s27] sm:$0x1] %vm7676_vm6, %v7675_v58 }
 0xa14 PF: > { %s21_s17 = sadd.s32 1, %s8041_s17  }
 0xa15   : > { %p18_p4 = scmp.ge.s32.totalorder %s21_s17, 4  }
 0xa17   :  { %20 = sbr.rel (!%p18_p4) target bundleno = 1 (0x1), region = 102 }

</bundles_post_ra>
